<compile_context>
chip_gen: v7x
topology: tpu7x:2x2x1
jax: 0.10.0
libtpu: 0.0.40
codegen_flags: <defaults>
</compile_context>

<pallas_src>
from functools import partial

import numpy as np
import jax
import jax.numpy as jnp
from jax.experimental import pallas as pl
from jax.experimental.pallas import tpu as pltpu

# ----------------------------- model configuration -----------------------------
IN_FEATURES = ["p2", "p3", "p4", "p5"]
STRIDES = {"p2": 4, "p3": 8, "p4": 16, "p5": 32}
COMMON_STRIDE = 4          # cfg.MODEL.*.COMMON_STRIDE
CONV_DIMS = 32             # cfg.MODEL.*.CONVS_DIM  (GroupNorm(32, 32) -> group size 1)
FEAT_CHANNELS = 16         # backbone FPN channels (small synthetic value)
SEM_CLASSES = 8            # cfg.MODEL.SEM_SEG_HEAD.NUM_CLASSES
INS_CLASSES = 8            # cfg.MODEL.INS_SEG_HEAD.NUM_CLASSES (number of mask slots)
PIXEL_MEAN = (103.53, 116.28, 123.675)
PIXEL_STD = (57.375, 57.12, 58.395)
GN_EPS = 1e-5


def _pick_hw_tile(hw, max_tile=2048):
    """Tile the lane (H*W) axis when it is large; keeps blocks 128-aligned."""
    if hw > max_tile and hw % max_tile == 0:
        return max_tile
    return hw


# ------------------------------- Pallas kernels --------------------------------
def _normalize_kernel(x_ref, mean_ref, inv_std_ref, o_ref):
    # (x - mean) * (1/std); mean/inv_std are (C, 1), x/o are (C, hw_tile).
    o_ref[...] = (x_ref[...] - mean_ref[...]) * inv_std_ref[...]


def _conv3x3_kernel(x_ref, w_ref, b_ref, g_ref, bt_ref, o_ref, *, use_gn, relu, inv_hw):
    # x_ref: (9*Cin, HW) channel-concatenated im2col for one sample
    # w_ref: (Cout, 9*Cin), b/g/bt: (Cout, 1), o_ref: (Cout, HW)  (lane-dense output)
    acc = jnp.dot(w_ref[...], x_ref[...], preferred_element_type=jnp.float32)
    if use_gn:
        # GroupNorm(32, conv_dims=32) -> group size 1, i.e. per-channel norm over H*W.
        # Single-pass statistics: sum and sum-of-squares over the lane axis.
        s1 = jnp.sum(acc, axis=1, keepdims=True) * inv_hw                  # mean
        s2 = jnp.sum(acc * acc, axis=1, keepdims=True) * inv_hw            # E[x^2]
        var = s2 - s1 * s1
        acc = (acc - s1) * jax.lax.rsqrt(var + GN_EPS)
        acc = acc * g_ref[...] + bt_ref[...]
    else:
        acc = acc + b_ref[...]
    if relu:
        acc = jnp.maximum(acc, 0.0)
    o_ref[...] = acc


def _conv1x1_kernel(x_ref, w_ref, b_ref, o_ref, *, relu):
    # 1x1 conv: (Cout, Cin) @ (Cin, hw_tile) + bias, optionally ReLU.
    y = jnp.dot(w_ref[...], x_ref[...], preferred_element_type=jnp.float32) + b_ref[...]
    if relu:
        y = jnp.maximum(y, 0.0)
    o_ref[...] = y


def _rows_matmul_kernel(x_ref, w_ref, o_ref):
    # Row-tiled dense matmul used by the separable bilinear upsample.
    o_ref[...] = jnp.dot(x_ref[...], w_ref[...], preferred_element_type=jnp.float32)


def _softmax_kernel(x_ref, o_ref):
    # softmax over the channel axis (axis 0 of the (C, hw_tile) tile)
    x = x_ref[...]
    m = jnp.max(x, axis=0, keepdims=True)
    e = jnp.exp(x - m)
    o_ref[...] = e * pl.reciprocal(jnp.sum(e, axis=0, keepdims=True), approx=True)


def _max_sigmoid_kernel(x_ref, o_ref):
    # global max-pool over spatial (axis 1) + sigmoid.  x: (C, HW), out: (C, 1)
    m = jnp.max(x_ref[...], axis=1, keepdims=True)
    o_ref[...] = pl.reciprocal(1.0 + jnp.exp(-m), approx=True)


# ------------------------------- Pallas wrappers --------------------------------
def normalize_images(images):
    N, C, H, W = images.shape
    HW = H * W
    hw_tile = _pick_hw_tile(HW)
    mean = jnp.asarray(PIXEL_MEAN, jnp.float32).reshape(C, 1)
    inv_std = jnp.asarray([1.0 / s for s in PIXEL_STD], jnp.float32).reshape(C, 1)
    x2 = images.reshape(N, C, HW)
    y = pl.pallas_call(
        _normalize_kernel,
        out_shape=jax.ShapeDtypeStruct((N, C, HW), jnp.float32),
        grid=(N, HW // hw_tile),
        in_specs=[
            pl.BlockSpec((None, C, hw_tile), lambda n, j: (n, 0, j)),
            pl.BlockSpec((C, 1), lambda n, j: (0, 0)),
            pl.BlockSpec((C, 1), lambda n, j: (0, 0)),
        ],
        out_specs=pl.BlockSpec((None, C, hw_tile), lambda n, j: (n, 0, j)),
        compiler_params=pltpu.CompilerParams(
            dimension_semantics=("parallel", "parallel")),
    )(x2, mean, inv_std)
    return y.reshape(N, C, H, W)


def _im2col_taps(xp, stride, Ho, Wo):
    # xp: (N, Cin, Hp, Wp) padded input; returns (N, 9*Cin, Ho*Wo) with taps
    # concatenated along channels (tap-major, channel-minor) -- stride-aware.
    N, Cin = xp.shape[0], xp.shape[1]
    taps = []
    for dy in range(3):
        for dx in range(3):
            t = xp[:, :,
                   dy:dy + stride * (Ho - 1) + 1:stride,
                   dx:dx + stride * (Wo - 1) + 1:stride]
            taps.append(t.reshape(N, Cin, Ho * Wo))
    return jnp.concatenate(taps, axis=1)


def conv3x3(x_nchw, w2, b, gamma, beta, *, padding, stride=1, use_gn, relu):
    """3x3 conv (stride 1 or 2), fused (GroupNorm | bias) + ReLU.

    w2 is the pre-flattened weight (Cout, 9*Cin) with the same (dy, dx, cin)
    ordering as _im2col_taps.  Output stays NCHW.
    """
    N, Cin, H, W = x_nchw.shape
    Cout = w2.shape[0]
    xp = x_nchw
    if padding:
        xp = jnp.pad(xp, ((0, 0), (0, 0), (padding, padding), (padding, padding)))
    Hp, Wp = xp.shape[2], xp.shape[3]
    Ho = (Hp - 3) // stride + 1
    Wo = (Wp - 3) // stride + 1
    HW = Ho * Wo
    # TODO(synk): the tap stack still duplicates the input ~9x in HBM; an in-kernel
    # windowed read of a padded VMEM tile would cut that traffic but requires
    # non-tile-aligned in-kernel reshapes that Mosaic handles poorly at these sizes.
    x9 = _im2col_taps(xp, stride, Ho, Wo)                         # (N, 9*Cin, HW)
    b2 = (b if b is not None else jnp.zeros((Cout,), jnp.float32)).reshape(Cout, 1)
    g2 = (gamma if gamma is not None else jnp.ones((Cout,), jnp.float32)).reshape(Cout, 1)
    bt2 = (beta if beta is not None else jnp.zeros((Cout,), jnp.float32)).reshape(Cout, 1)

    out = pl.pallas_call(
        partial(_conv3x3_kernel, use_gn=use_gn, relu=relu, inv_hw=1.0 / HW),
        out_shape=jax.ShapeDtypeStruct((N, Cout, HW), jnp.float32),
        grid=(N,),
        in_specs=[
            pl.BlockSpec((None, 9 * Cin, HW), lambda n: (n, 0, 0)),
            pl.BlockSpec((Cout, 9 * Cin), lambda n: (0, 0)),
            pl.BlockSpec((Cout, 1), lambda n: (0, 0)),
            pl.BlockSpec((Cout, 1), lambda n: (0, 0)),
            pl.BlockSpec((Cout, 1), lambda n: (0, 0)),
        ],
        out_specs=pl.BlockSpec((None, Cout, HW), lambda n: (n, 0, 0)),
        compiler_params=pltpu.CompilerParams(dimension_semantics=("parallel",)),
    )(x9, w2, b2, g2, bt2)
    return out.reshape(N, Cout, Ho, Wo)


def conv1x1(x_nchw, w, b, *, relu=False):
    """1x1 conv as a channel-first Pallas matmul.  w: (Cout, Cin), b: (Cout,)."""
    N, Cin, H, W = x_nchw.shape
    Cout = w.shape[0]
    HW = H * W
    hw_tile = _pick_hw_tile(HW)
    x2 = x_nchw.reshape(N, Cin, HW)
    y = pl.pallas_call(
        partial(_conv1x1_kernel, relu=relu),
        out_shape=jax.ShapeDtypeStruct((N, Cout, HW), jnp.float32),
        grid=(N, HW // hw_tile),
        in_specs=[
            pl.BlockSpec((None, Cin, hw_tile), lambda n, j: (n, 0, j)),
            pl.BlockSpec((Cout, Cin), lambda n, j: (0, 0)),
            pl.BlockSpec((Cout, 1), lambda n, j: (0, 0)),
        ],
        out_specs=pl.BlockSpec((None, Cout, hw_tile), lambda n, j: (n, 0, j)),
        compiler_params=pltpu.CompilerParams(
            dimension_semantics=("parallel", "parallel")),
    )(x2, w, b.reshape(Cout, 1))
    return y.reshape(N, Cout, H, W)


def _row_tiled_matmul(x, w):
    """(M, K) @ (K, Nc) with row tiling so large M pipelines through VMEM."""
    M, K = x.shape
    Nc = w.shape[1]
    tm = M
    for cand in (1024, 512, 256, 128):
        if M > cand and M % cand == 0:
            tm = cand
            break
    return pl.pallas_call(
        _rows_matmul_kernel,
        out_shape=jax.ShapeDtypeStruct((M, Nc), jnp.float32),
        grid=(M // tm,),
        in_specs=[
            pl.BlockSpec((tm, K), lambda i: (i, 0)),
            pl.BlockSpec((K, Nc), lambda i: (0, 0)),
        ],
        out_specs=pl.BlockSpec((tm, Nc), lambda i: (i, 0)),
        compiler_params=pltpu.CompilerParams(dimension_semantics=("parallel",)),
    )(x, w)


def _bilinear_matrix(out_size, in_size, scale):
    # PyTorch bilinear, align_corners=False: src = (o + 0.5)/scale - 0.5, clamped at 0.
    A = np.zeros((out_size, in_size), np.float32)
    for o in range(out_size):
        src = max((o + 0.5) / scale - 0.5, 0.0)
        i0 = min(int(np.floor(src)), in_size - 1)
        i1 = min(i0 + 1, in_size - 1)
        w1 = src - i0
        A[o, i0] += 1.0 - w1
        A[o, i1] += w1
    return A


def bilinear_upsample(x_nchw, scale):
    """Separable bilinear upsample as two batched row-tiled matmuls."""
    N, C, H, W = x_nchw.shape
    Ho, Wo = H * scale, W * scale
    awt = jnp.asarray(_bilinear_matrix(Wo, W, scale).T)       # (W, Wo)
    aht = jnp.asarray(_bilinear_matrix(Ho, H, scale).T)       # (H, Ho)
    # W direction: fold N*C*H into the row axis -> lane-dense Wo output.
    y = _row_tiled_matmul(x_nchw.reshape(N * C * H, W), awt).reshape(N, C, H, Wo)
    # H direction: bring H last, fold N*C*Wo into rows.
    yt = jnp.swapaxes(y, 2, 3).reshape(N * C * Wo, H)
    z = _row_tiled_matmul(yt, aht).reshape(N, C, Wo, Ho)
    return jnp.swapaxes(z, 2, 3)


def softmax_channels(x_nchw):
    N, C, H, W = x_nchw.shape
    HW = H * W
    hw_tile = _pick_hw_tile(HW)
    x2 = x_nchw.reshape(N, C, HW)
    y = pl.pallas_call(
        _softmax_kernel,
        out_shape=jax.ShapeDtypeStruct((N, C, HW), jnp.float32),
        grid=(N, HW // hw_tile),
        in_specs=[pl.BlockSpec((None, C, hw_tile), lambda n, j: (n, 0, j))],
        out_specs=pl.BlockSpec((None, C, hw_tile), lambda n, j: (n, 0, j)),
        compiler_params=pltpu.CompilerParams(
            dimension_semantics=("parallel", "parallel")),
    )(x2)
    return y.reshape(N, C, H, W)


def global_maxpool_sigmoid(x_nchw):
    N, C, H, W = x_nchw.shape
    HW = H * W
    x2 = x_nchw.reshape(N, C, HW)
    y = pl.pallas_call(
        _max_sigmoid_kernel,
        out_shape=jax.ShapeDtypeStruct((N, C, 1), jnp.float32),
        grid=(N,),
        in_specs=[pl.BlockSpec((None, C, HW), lambda n: (n, 0, 0))],
        out_specs=pl.BlockSpec((None, C, 1), lambda n: (n, 0, 0)),
        compiler_params=pltpu.CompilerParams(dimension_semantics=("parallel",)),
    )(x2)
    return y.reshape(N, C)


# --------------------------------- parameters ----------------------------------
def _conv3_init(key, cin, cout, use_gn):
    # c2_msra_fill: kaiming_normal (fan_out) weight, zero bias; GN gamma=1, beta=0.
    std = (2.0 / (cout * 9)) ** 0.5
    w = std * jax.random.normal(key, (cout, cin, 3, 3), jnp.float32)
    # Pre-flatten to (Cout, 9*Cin) with (dy, dx, cin) ordering to match the im2col taps.
    w2 = jnp.transpose(w, (0, 2, 3, 1)).reshape(cout, 9 * cin)
    if use_gn:
        return {"w2": w2, "b": None,
                "gamma": jnp.ones((cout,), jnp.float32),
                "beta": jnp.zeros((cout,), jnp.float32)}
    return {"w2": w2, "b": jnp.zeros((cout,), jnp.float32), "gamma": None, "beta": None}


def _conv1_init(key, cin, cout):
    std = (2.0 / cout) ** 0.5
    w = std * jax.random.normal(key, (cout, cin), jnp.float32)   # (Cout, Cin)
    return {"w": w, "b": jnp.zeros((cout,), jnp.float32)}


def init_params(key):
    params = {"backbone": {}, "sem_heads": {}, "ins_heads": {}}
    for f in IN_FEATURES:
        key, k = jax.random.split(key)
        params["backbone"][f] = _conv1_init(k, 3, FEAT_CHANNELS)
    for name in ("sem_heads", "ins_heads"):
        for f in IN_FEATURES:
            length = max(1, int(np.log2(STRIDES[f]) - np.log2(COMMON_STRIDE)))
            convs, cin = [], FEAT_CHANNELS
            for _ in range(length):
                key, k = jax.random.split(key)
                convs.append(_conv3_init(k, cin, CONV_DIMS, use_gn=True))
                cin = CONV_DIMS
            params[name][f] = convs
    key, k = jax.random.split(key)
    params["sem_pred"] = _conv1_init(k, CONV_DIMS, SEM_CLASSES)
    key, k = jax.random.split(key)
    params["ins_pred"] = _conv1_init(k, CONV_DIMS, INS_CLASSES)
    score = []
    for _ in range(4):
        key, k = jax.random.split(key)
        score.append(_conv3_init(k, INS_CLASSES, INS_CLASSES, use_gn=False))
    params["score"] = score
    return params


# ---------------------------------- forward -------------------------------------
def run_scale_heads(features, heads):
    out = None
    for f in IN_FEATURES:
        x = features[f]
        do_up = STRIDES[f] != COMMON_STRIDE
        for cp in heads[f]:
            x = conv3x3(x, cp["w2"], cp["b"], cp["gamma"], cp["beta"],
                        padding=1, stride=1, use_gn=True, relu=True)
            if do_up:
                x = bilinear_upsample(x, 2)
        out = x if out is None else out + x
    return out


def run_score(x, score_params):
    # nn.Conv2d(k=3, stride=2, pad=0) + ReLU, x4, with stride-2-aware im2col
    # (no stride-1-then-subsample waste).
    for cp in score_params:
        x = conv3x3(x, cp["w2"], cp["b"], None, None,
                    padding=0, stride=2, use_gn=False, relu=True)
    return x


def solo_inference(images, params):
    # 1) pixel normalization (Solo.normalizer)
    x = normalize_images(images)

    # 2) backbone features
    # TODO(synk): detectron2 build_backbone (ResNet-FPN) has no clean Pallas translation here;
    #             deterministic stand-in = per-level average pooling + Pallas 1x1 conv projection.
    N, C, H, W = x.shape
    feats = {}
    for f in IN_FEATURES:
        s = STRIDES[f]
        pooled = x.reshape(N, C, H // s, s, W // s, s).mean(axis=(3, 5))
        pw = params["backbone"][f]
        feats[f] = conv1x1(pooled, pw["w"], pw["b"], relu=True)

    # 3) SemHead (inference branch): scale heads -> predictor -> x4 bilinear upsample
    sx = run_scale_heads(feats, params["sem_heads"])
    sem_logits = conv1x1(sx, params["sem_pred"]["w"], params["sem_pred"]["b"])
    sem_seg = bilinear_upsample(sem_logits, COMMON_STRIDE)

    # 4) InsHead (inference branch)
    ix = run_scale_heads(feats, params["ins_heads"])
    mask_logits = conv1x1(ix, params["ins_pred"]["w"], params["ins_pred"]["b"])
    scores = run_score(mask_logits, params["score"])
    pred_scores = global_maxpool_sigmoid(scores)                       # (N, B), sigmoid
    pred_masks = softmax_channels(bilinear_upsample(mask_logits, COMMON_STRIDE))

    # TODO(synk): Solo.postprocess (argmax/bincount + cv2.Canny/findContours/boundingRect) and the
    #             training losses (scipy linear_sum_assignment) have no Pallas equivalent; the raw
    #             head outputs (sem_seg, pred_masks, pred_scores) are returned instead.
    return sem_seg, pred_masks, pred_scores


# ------------------------------------ main ---------------------------------------
if __name__ == "__main__":
    root = jax.random.PRNGKey(0)
    k_params, k_img = jax.random.split(root)
    params = init_params(k_params)
    # small image batch: N=2, C=3, H=W=128 (p2..p5 feature maps at 32/16/8/4)
    images = jax.random.uniform(k_img, (2, 3, 128, 128), jnp.float32,
                                minval=0.0, maxval=255.0)
    sem_seg, pred_masks, pred_scores = jax.jit(solo_inference)(images, params)
    jax.block_until_ready((sem_seg, pred_masks, pred_scores))
    assert sem_seg.shape == (2, SEM_CLASSES, 128, 128)
    assert pred_masks.shape == (2, INS_CLASSES, 128, 128)
    assert pred_scores.shape == (2, INS_CLASSES)
    assert bool(jnp.all(jnp.isfinite(sem_seg)))
    assert bool(jnp.all(jnp.isfinite(pred_masks)))
    assert bool(jnp.all(jnp.isfinite(pred_scores)))
    print("KERNEL_OK")
</pallas_src>

<mosaic_0001>
module attributes {stable_mosaic.version = 11 : i64} {
  func.func @_normalize_kernel(%arg0: i32, %arg1: i32, %arg2: memref<1x3x2048xf32, #tpu.memory_space<vmem>>, %arg3: memref<3x1xf32, #tpu.memory_space<vmem>>, %arg4: memref<3x1xf32, #tpu.memory_space<vmem>>, %arg5: memref<1x3x2048xf32, #tpu.memory_space<vmem>>) attributes {dimension_semantics = [#tpu.dimension_semantics<parallel>, #tpu.dimension_semantics<parallel>], iteration_bounds = array<i64: 2, 8>, scalar_prefetch = 0 : i64, scratch_operands = 0 : i64, tpu.core_type = #tpu.core_type<tc>, window_params = [{transform_indices = @transform_0, window_bounds = array<i64: 1, 3, 2048>}, {pipeline_mode = #tpu.pipeline_mode<synchronous>, transform_indices = @transform_1, window_bounds = array<i64: 3, 1>}, {pipeline_mode = #tpu.pipeline_mode<synchronous>, transform_indices = @transform_2, window_bounds = array<i64: 3, 1>}, {transform_indices = @transform_3, window_bounds = array<i64: 1, 3, 2048>}]} {
    %c0 = arith.constant 0 : index
    %c0_0 = arith.constant 0 : index
    %c0_1 = arith.constant 0 : index
    %0 = vector.load %arg2[%c0, %c0_0, %c0_1] : memref<1x3x2048xf32, #tpu.memory_space<vmem>>, vector<1x3x2048xf32>
    %1 = vector.shape_cast %0 : vector<1x3x2048xf32> to vector<3x2048xf32>
    %c0_2 = arith.constant 0 : index
    %c0_3 = arith.constant 0 : index
    %2 = vector.load %arg3[%c0_2, %c0_3] : memref<3x1xf32, #tpu.memory_space<vmem>>, vector<3x1xf32>
    %3 = vector.broadcast %2 : vector<3x1xf32> to vector<3x2048xf32>
    %4 = arith.subf %1, %3 : vector<3x2048xf32>
    %c0_4 = arith.constant 0 : index
    %c0_5 = arith.constant 0 : index
    %5 = vector.load %arg4[%c0_4, %c0_5] : memref<3x1xf32, #tpu.memory_space<vmem>>, vector<3x1xf32>
    %6 = vector.broadcast %5 : vector<3x1xf32> to vector<3x2048xf32>
    %7 = arith.mulf %4, %6 : vector<3x2048xf32>
    %c0_6 = arith.constant 0 : index
    %c0_7 = arith.constant 0 : index
    %c0_8 = arith.constant 0 : index
    %8 = vector.load %arg5[%c0_6, %c0_7, %c0_8] : memref<1x3x2048xf32, #tpu.memory_space<vmem>>, vector<1x3x2048xf32>
    %9 = vector.shape_cast %8 : vector<1x3x2048xf32> to vector<3x2048xf32>
    %10 = vector.shape_cast %7 : vector<3x2048xf32> to vector<1x3x2048xf32>
    tpu.vector_store %arg5[%c0_6, %c0_7, %c0_8], %10 {strides = array<i32>} : memref<1x3x2048xf32, #tpu.memory_space<vmem>>, vector<1x3x2048xf32>,
    return
  }
  func.func @transform_0(%arg0: i32, %arg1: i32) -> (i32, i32, i32) {
    %c0_i32 = arith.constant 0 : i32
    %c0_i32_0 = arith.constant 0 : i32
    return %arg0, %c0_i32, %arg1 : i32, i32, i32
  }
  func.func @transform_1(%arg0: i32, %arg1: i32) -> (i32, i32) {
    %c0_i32 = arith.constant 0 : i32
    %c0_i32_0 = arith.constant 0 : i32
    %c0_i32_1 = arith.constant 0 : i32
    return %c0_i32, %c0_i32_0 : i32, i32
  }
  func.func @transform_2(%arg0: i32, %arg1: i32) -> (i32, i32) {
    %c0_i32 = arith.constant 0 : i32
    %c0_i32_0 = arith.constant 0 : i32
    %c0_i32_1 = arith.constant 0 : i32
    return %c0_i32, %c0_i32_0 : i32, i32
  }
  func.func @transform_3(%arg0: i32, %arg1: i32) -> (i32, i32, i32) {
    %c0_i32 = arith.constant 0 : i32
    %c0_i32_0 = arith.constant 0 : i32
    return %arg0, %c0_i32, %arg1 : i32, i32, i32
  }
}

module attributes {stable_mosaic.version = 11 : i64} {
  func.func @_conv1x1_kernel(%arg0: i32, %arg1: i32, %arg2: memref<1x3x16xf32, #tpu.memory_space<vmem>>, %arg3: memref<16x3xf32, #tpu.memory_space<vmem>>, %arg4: memref<16x1xf32, #tpu.memory_space<vmem>>, %arg5: memref<1x16x16xf32, #tpu.memory_space<vmem>>) attributes {dimension_semantics = [#tpu.dimension_semantics<parallel>, #tpu.dimension_semantics<parallel>], iteration_bounds = array<i64: 2, 1>, scalar_prefetch = 0 : i64, scratch_operands = 0 : i64, tpu.core_type = #tpu.core_type<tc>, window_params = [{transform_indices = @transform_0, window_bounds = array<i64: 1, 3, 16>}, {pipeline_mode = #tpu.pipeline_mode<synchronous>, transform_indices = @transform_1, window_bounds = array<i64: 16, 3>}, {pipeline_mode = #tpu.pipeline_mode<synchronous>, transform_indices = @transform_2, window_bounds = array<i64: 16, 1>}, {transform_indices = @transform_3, window_bounds = array<i64: 1, 16, 16>}]} {
    %c0 = arith.constant 0 : index
    %c0_0 = arith.constant 0 : index
    %0 = vector.load %arg3[%c0, %c0_0] : memref<16x3xf32, #tpu.memory_space<vmem>>, vector<16x3xf32>
    %c0_1 = arith.constant 0 : index
    %c0_2 = arith.constant 0 : index
    %c0_3 = arith.constant 0 : index
    %1 = vector.load %arg2[%c0_1, %c0_2, %c0_3] : memref<1x3x16xf32, #tpu.memory_space<vmem>>, vector<1x3x16xf32>
    %2 = vector.shape_cast %1 : vector<1x3x16xf32> to vector<3x16xf32>
    %cst = arith.constant dense<0.000000e+00> : vector<16x16xf32>
    %3 = tpu.matmul %0, %2, %cst {dimension_numbers = #tpu.dot_dimension_numbers<[1], [0], [0], [1], [0, 0, 1, 1], [], []>} : vector<16x3xf32>, vector<3x16xf32>, vector<16x16xf32> -> vector<16x16xf32>
    %c0_4 = arith.constant 0 : index
    %c0_5 = arith.constant 0 : index
    %4 = vector.load %arg4[%c0_4, %c0_5] : memref<16x1xf32, #tpu.memory_space<vmem>>, vector<16x1xf32>
    %5 = vector.broadcast %4 : vector<16x1xf32> to vector<16x16xf32>
    %6 = arith.addf %3, %5 : vector<16x16xf32>
    %cst_6 = arith.constant 0.000000e+00 : f32
    %7 = vector.broadcast %cst_6 : f32 to vector<16x16xf32>
    %8 = arith.maximumf %6, %7 : vector<16x16xf32>
    %c0_7 = arith.constant 0 : index
    %c0_8 = arith.constant 0 : index
    %c0_9 = arith.constant 0 : index
    %9 = vector.load %arg5[%c0_7, %c0_8, %c0_9] : memref<1x16x16xf32, #tpu.memory_space<vmem>>, vector<1x16x16xf32>
    %10 = vector.shape_cast %9 : vector<1x16x16xf32> to vector<16x16xf32>
    %11 = vector.shape_cast %8 : vector<16x16xf32> to vector<1x16x16xf32>
    tpu.vector_store %arg5[%c0_7, %c0_8, %c0_9], %11 {strides = array<i32>} : memref<1x16x16xf32, #tpu.memory_space<vmem>>, vector<1x16x16xf32>,
    return
  }
  func.func @transform_0(%arg0: i32, %arg1: i32) -> (i32, i32, i32) {
    %c0_i32 = arith.constant 0 : i32
    %c0_i32_0 = arith.constant 0 : i32
    return %arg0, %c0_i32, %arg1 : i32, i32, i32
  }
  func.func @transform_1(%arg0: i32, %arg1: i32) -> (i32, i32) {
    %c0_i32 = arith.constant 0 : i32
    %c0_i32_0 = arith.constant 0 : i32
    %c0_i32_1 = arith.constant 0 : i32
    return %c0_i32, %c0_i32_0 : i32, i32
  }
  func.func @transform_2(%arg0: i32, %arg1: i32) -> (i32, i32) {
    %c0_i32 = arith.constant 0 : i32
    %c0_i32_0 = arith.constant 0 : i32
    %c0_i32_1 = arith.constant 0 : i32
    return %c0_i32, %c0_i32_0 : i32, i32
  }
  func.func @transform_3(%arg0: i32, %arg1: i32) -> (i32, i32, i32) {
    %c0_i32 = arith.constant 0 : i32
    %c0_i32_0 = arith.constant 0 : i32
    return %arg0, %c0_i32, %arg1 : i32, i32, i32
  }
}

module attributes {stable_mosaic.version = 11 : i64} {
  func.func @_conv3x3_kernel(%arg0: i32, %arg1: memref<1x144x16xf32, #tpu.memory_space<vmem>>, %arg2: memref<32x144xf32, #tpu.memory_space<vmem>>, %arg3: memref<32x1xf32, #tpu.memory_space<vmem>>, %arg4: memref<32x1xf32, #tpu.memory_space<vmem>>, %arg5: memref<32x1xf32, #tpu.memory_space<vmem>>, %arg6: memref<1x32x16xf32, #tpu.memory_space<vmem>>) attributes {dimension_semantics = [#tpu.dimension_semantics<parallel>], iteration_bounds = array<i64: 2>, scalar_prefetch = 0 : i64, scratch_operands = 0 : i64, tpu.core_type = #tpu.core_type<tc>, window_params = [{transform_indices = @transform_0, window_bounds = array<i64: 1, 144, 16>}, {pipeline_mode = #tpu.pipeline_mode<synchronous>, transform_indices = @transform_1, window_bounds = array<i64: 32, 144>}, {pipeline_mode = #tpu.pipeline_mode<synchronous>, transform_indices = @transform_2, window_bounds = array<i64: 32, 1>}, {pipeline_mode = #tpu.pipeline_mode<synchronous>, transform_indices = @transform_3, window_bounds = array<i64: 32, 1>}, {pipeline_mode = #tpu.pipeline_mode<synchronous>, transform_indices = @transform_4, window_bounds = array<i64: 32, 1>}, {transform_indices = @transform_5, window_bounds = array<i64: 1, 32, 16>}]} {
    %c0 = arith.constant 0 : index
    %c0_0 = arith.constant 0 : index
    %0 = vector.load %arg2[%c0, %c0_0] : memref<32x144xf32, #tpu.memory_space<vmem>>, vector<32x144xf32>
    %c0_1 = arith.constant 0 : index
    %c0_2 = arith.constant 0 : index
    %c0_3 = arith.constant 0 : index
    %1 = vector.load %arg1[%c0_1, %c0_2, %c0_3] : memref<1x144x16xf32, #tpu.memory_space<vmem>>, vector<1x144x16xf32>
    %2 = vector.shape_cast %1 : vector<1x144x16xf32> to vector<144x16xf32>
    %cst = arith.constant dense<0.000000e+00> : vector<32x16xf32>
    %3 = tpu.matmul %0, %2, %cst {dimension_numbers = #tpu.dot_dimension_numbers<[1], [0], [0], [1], [0, 0, 1, 1], [], []>} : vector<32x144xf32>, vector<144x16xf32>, vector<32x16xf32> -> vector<32x16xf32>
    %cst_4 = arith.constant dense<0.000000e+00> : vector<32xf32>
    %4 = vector.multi_reduction <add>, %3, %cst_4 [1] : vector<32x16xf32> to vector<32xf32>
    %5 = vector.shape_cast %4 : vector<32xf32> to vector<32x1xf32>
    %cst_5 = arith.constant 6.250000e-02 : f32
    %6 = vector.broadcast %cst_5 : f32 to vector<32x1xf32>
    %7 = arith.mulf %5, %6 : vector<32x1xf32>
    %8 = arith.mulf %3, %3 : vector<32x16xf32>
    %cst_6 = arith.constant dense<0.000000e+00> : vector<32xf32>
    %9 = vector.multi_reduction <add>, %8, %cst_6 [1] : vector<32x16xf32> to vector<32xf32>
    %10 = vector.shape_cast %9 : vector<32xf32> to vector<32x1xf32>
    %cst_7 = arith.constant 6.250000e-02 : f32
    %11 = vector.broadcast %cst_7 : f32 to vector<32x1xf32>
    %12 = arith.mulf %10, %11 : vector<32x1xf32>
    %13 = arith.mulf %7, %7 : vector<32x1xf32>
    %14 = arith.subf %12, %13 : vector<32x1xf32>
    %15 = vector.broadcast %7 : vector<32x1xf32> to vector<32x16xf32>
    %16 = arith.subf %3, %15 : vector<32x16xf32>
    %cst_8 = arith.constant 9.99999974E-6 : f32
    %17 = vector.broadcast %cst_8 : f32 to vector<32x1xf32>
    %18 = arith.addf %14, %17 : vector<32x1xf32>
    %19 = math.rsqrt %18 : vector<32x1xf32>
    %20 = vector.broadcast %19 : vector<32x1xf32> to vector<32x16xf32>
    %21 = arith.mulf %16, %20 : vector<32x16xf32>
    %c0_9 = arith.constant 0 : index
    %c0_10 = arith.constant 0 : index
    %22 = vector.load %arg4[%c0_9, %c0_10] : memref<32x1xf32, #tpu.memory_space<vmem>>, vector<32x1xf32>
    %23 = vector.broadcast %22 : vector<32x1xf32> to vector<32x16xf32>
    %24 = arith.mulf %21, %23 : vector<32x16xf32>
    %c0_11 = arith.constant 0 : index
    %c0_12 = arith.constant 0 : index
    %25 = vector.load %arg5[%c0_11, %c0_12] : memref<32x1xf32, #tpu.memory_space<vmem>>, vector<32x1xf32>
    %26 = vector.broadcast %25 : vector<32x1xf32> to vector<32x16xf32>
    %27 = arith.addf %24, %26 : vector<32x16xf32>
    %cst_13 = arith.constant 0.000000e+00 : f32
    %28 = vector.broadcast %cst_13 : f32 to vector<32x16xf32>
    %29 = arith.maximumf %27, %28 : vector<32x16xf32>
    %c0_14 = arith.constant 0 : index
    %c0_15 = arith.constant 0 : index
    %c0_16 = arith.constant 0 : index
    %30 = vector.load %arg6[%c0_14, %c0_15, %c0_16] : memref<1x32x16xf32, #tpu.memory_space<vmem>>, vector<1x32x16xf32>
    %31 = vector.shape_cast %30 : vector<1x32x16xf32> to vector<32x16xf32>
    %32 = vector.shape_cast %29 : vector<32x16xf32> to vector<1x32x16xf32>
    tpu.vector_store %arg6[%c0_14, %c0_15, %c0_16], %32 {strides = array<i32>} : memref<1x32x16xf32, #tpu.memory_space<vmem>>, vector<1x32x16xf32>,
    return
  }
  func.func @transform_0(%arg0: i32) -> (i32, i32, i32) {
    %c0_i32 = arith.constant 0 : i32
    %c0_i32_0 = arith.constant 0 : i32
    %c0_i32_1 = arith.constant 0 : i32
    return %arg0, %c0_i32, %c0_i32_0 : i32, i32, i32
  }
  func.func @transform_1(%arg0: i32) -> (i32, i32) {
    %c0_i32 = arith.constant 0 : i32
    %c0_i32_0 = arith.constant 0 : i32
    %c0_i32_1 = arith.constant 0 : i32
    return %c0_i32, %c0_i32_0 : i32, i32
  }
  func.func @transform_2(%arg0: i32) -> (i32, i32) {
    %c0_i32 = arith.constant 0 : i32
    %c0_i32_0 = arith.constant 0 : i32
    %c0_i32_1 = arith.constant 0 : i32
    return %c0_i32, %c0_i32_0 : i32, i32
  }
  func.func @transform_3(%arg0: i32) -> (i32, i32) {
    %c0_i32 = arith.constant 0 : i32
    %c0_i32_0 = arith.constant 0 : i32
    %c0_i32_1 = arith.constant 0 : i32
    return %c0_i32, %c0_i32_0 : i32, i32
  }
  func.func @transform_4(%arg0: i32) -> (i32, i32) {
    %c0_i32 = arith.constant 0 : i32
    %c0_i32_0 = arith.constant 0 : i32
    %c0_i32_1 = arith.constant 0 : i32
    return %c0_i32, %c0_i32_0 : i32, i32
  }
  func.func @transform_5(%arg0: i32) -> (i32, i32, i32) {
    %c0_i32 = arith.constant 0 : i32
    %c0_i32_0 = arith.constant 0 : i32
    %c0_i32_1 = arith.constant 0 : i32
    return %arg0, %c0_i32, %c0_i32_0 : i32, i32, i32
  }
}

module attributes {stable_mosaic.version = 11 : i64} {
  func.func @_rows_matmul_kernel(%arg0: i32, %arg1: memref<128x4xf32, #tpu.memory_space<vmem>>, %arg2: memref<4x8xf32, #tpu.memory_space<vmem>>, %arg3: memref<128x8xf32, #tpu.memory_space<vmem>>) attributes {dimension_semantics = [#tpu.dimension_semantics<parallel>], iteration_bounds = array<i64: 2>, scalar_prefetch = 0 : i64, scratch_operands = 0 : i64, tpu.core_type = #tpu.core_type<tc>, window_params = [{transform_indices = @transform_0, window_bounds = array<i64: 128, 4>}, {pipeline_mode = #tpu.pipeline_mode<synchronous>, transform_indices = @transform_1, window_bounds = array<i64: 4, 8>}, {transform_indices = @transform_2, window_bounds = array<i64: 128, 8>}]} {
    %c0 = arith.constant 0 : index
    %c0_0 = arith.constant 0 : index
    %0 = vector.load %arg1[%c0, %c0_0] : memref<128x4xf32, #tpu.memory_space<vmem>>, vector<128x4xf32>
    %c0_1 = arith.constant 0 : index
    %c0_2 = arith.constant 0 : index
    %1 = vector.load %arg2[%c0_1, %c0_2] : memref<4x8xf32, #tpu.memory_space<vmem>>, vector<4x8xf32>
    %cst = arith.constant dense<0.000000e+00> : vector<128x8xf32>
    %2 = tpu.matmul %0, %1, %cst {dimension_numbers = #tpu.dot_dimension_numbers<[1], [0], [0], [1], [0, 0, 1, 1], [], []>} : vector<128x4xf32>, vector<4x8xf32>, vector<128x8xf32> -> vector<128x8xf32>
    %c0_3 = arith.constant 0 : index
    %c0_4 = arith.constant 0 : index
    %3 = vector.load %arg3[%c0_3, %c0_4] : memref<128x8xf32, #tpu.memory_space<vmem>>, vector<128x8xf32>
    tpu.vector_store %arg3[%c0_3, %c0_4], %2 {strides = array<i32>} : memref<128x8xf32, #tpu.memory_space<vmem>>, vector<128x8xf32>,
    return
  }
  func.func @transform_0(%arg0: i32) -> (i32, i32) {
    %c0_i32 = arith.constant 0 : i32
    %c0_i32_0 = arith.constant 0 : i32
    return %arg0, %c0_i32 : i32, i32
  }
  func.func @transform_1(%arg0: i32) -> (i32, i32) {
    %c0_i32 = arith.constant 0 : i32
    %c0_i32_0 = arith.constant 0 : i32
    %c0_i32_1 = arith.constant 0 : i32
    return %c0_i32, %c0_i32_0 : i32, i32
  }
  func.func @transform_2(%arg0: i32) -> (i32, i32) {
    %c0_i32 = arith.constant 0 : i32
    %c0_i32_0 = arith.constant 0 : i32
    return %arg0, %c0_i32 : i32, i32
  }
}

module attributes {stable_mosaic.version = 11 : i64} {
  func.func @_rows_matmul_kernel(%arg0: i32, %arg1: memref<256x4xf32, #tpu.memory_space<vmem>>, %arg2: memref<4x8xf32, #tpu.memory_space<vmem>>, %arg3: memref<256x8xf32, #tpu.memory_space<vmem>>) attributes {dimension_semantics = [#tpu.dimension_semantics<parallel>], iteration_bounds = array<i64: 2>, scalar_prefetch = 0 : i64, scratch_operands = 0 : i64, tpu.core_type = #tpu.core_type<tc>, window_params = [{transform_indices = @transform_0, window_bounds = array<i64: 256, 4>}, {pipeline_mode = #tpu.pipeline_mode<synchronous>, transform_indices = @transform_1, window_bounds = array<i64: 4, 8>}, {transform_indices = @transform_2, window_bounds = array<i64: 256, 8>}]} {
    %c0 = arith.constant 0 : index
    %c0_0 = arith.constant 0 : index
    %0 = vector.load %arg1[%c0, %c0_0] : memref<256x4xf32, #tpu.memory_space<vmem>>, vector<256x4xf32>
    %c0_1 = arith.constant 0 : index
    %c0_2 = arith.constant 0 : index
    %1 = vector.load %arg2[%c0_1, %c0_2] : memref<4x8xf32, #tpu.memory_space<vmem>>, vector<4x8xf32>
    %cst = arith.constant dense<0.000000e+00> : vector<256x8xf32>
    %2 = tpu.matmul %0, %1, %cst {dimension_numbers = #tpu.dot_dimension_numbers<[1], [0], [0], [1], [0, 0, 1, 1], [], []>} : vector<256x4xf32>, vector<4x8xf32>, vector<256x8xf32> -> vector<256x8xf32>
    %c0_3 = arith.constant 0 : index
    %c0_4 = arith.constant 0 : index
    %3 = vector.load %arg3[%c0_3, %c0_4] : memref<256x8xf32, #tpu.memory_space<vmem>>, vector<256x8xf32>
    tpu.vector_store %arg3[%c0_3, %c0_4], %2 {strides = array<i32>} : memref<256x8xf32, #tpu.memory_space<vmem>>, vector<256x8xf32>,
    return
  }
  func.func @transform_0(%arg0: i32) -> (i32, i32) {
    %c0_i32 = arith.constant 0 : i32
    %c0_i32_0 = arith.constant 0 : i32
    return %arg0, %c0_i32 : i32, i32
  }
  func.func @transform_1(%arg0: i32) -> (i32, i32) {
    %c0_i32 = arith.constant 0 : i32
    %c0_i32_0 = arith.constant 0 : i32
    %c0_i32_1 = arith.constant 0 : i32
    return %c0_i32, %c0_i32_0 : i32, i32
  }
  func.func @transform_2(%arg0: i32) -> (i32, i32) {
    %c0_i32 = arith.constant 0 : i32
    %c0_i32_0 = arith.constant 0 : i32
    return %arg0, %c0_i32 : i32, i32
  }
}

module attributes {stable_mosaic.version = 11 : i64} {
  func.func @_conv3x3_kernel(%arg0: i32, %arg1: memref<1x288x64xf32, #tpu.memory_space<vmem>>, %arg2: memref<32x288xf32, #tpu.memory_space<vmem>>, %arg3: memref<32x1xf32, #tpu.memory_space<vmem>>, %arg4: memref<32x1xf32, #tpu.memory_space<vmem>>, %arg5: memref<32x1xf32, #tpu.memory_space<vmem>>, %arg6: memref<1x32x64xf32, #tpu.memory_space<vmem>>) attributes {dimension_semantics = [#tpu.dimension_semantics<parallel>], iteration_bounds = array<i64: 2>, scalar_prefetch = 0 : i64, scratch_operands = 0 : i64, tpu.core_type = #tpu.core_type<tc>, window_params = [{transform_indices = @transform_0, window_bounds = array<i64: 1, 288, 64>}, {pipeline_mode = #tpu.pipeline_mode<synchronous>, transform_indices = @transform_1, window_bounds = array<i64: 32, 288>}, {pipeline_mode = #tpu.pipeline_mode<synchronous>, transform_indices = @transform_2, window_bounds = array<i64: 32, 1>}, {pipeline_mode = #tpu.pipeline_mode<synchronous>, transform_indices = @transform_3, window_bounds = array<i64: 32, 1>}, {pipeline_mode = #tpu.pipeline_mode<synchronous>, transform_indices = @transform_4, window_bounds = array<i64: 32, 1>}, {transform_indices = @transform_5, window_bounds = array<i64: 1, 32, 64>}]} {
    %c0 = arith.constant 0 : index
    %c0_0 = arith.constant 0 : index
    %0 = vector.load %arg2[%c0, %c0_0] : memref<32x288xf32, #tpu.memory_space<vmem>>, vector<32x288xf32>
    %c0_1 = arith.constant 0 : index
    %c0_2 = arith.constant 0 : index
    %c0_3 = arith.constant 0 : index
    %1 = vector.load %arg1[%c0_1, %c0_2, %c0_3] : memref<1x288x64xf32, #tpu.memory_space<vmem>>, vector<1x288x64xf32>
    %2 = vector.shape_cast %1 : vector<1x288x64xf32> to vector<288x64xf32>
    %cst = arith.constant dense<0.000000e+00> : vector<32x64xf32>
    %3 = tpu.matmul %0, %2, %cst {dimension_numbers = #tpu.dot_dimension_numbers<[1], [0], [0], [1], [0, 0, 1, 1], [], []>} : vector<32x288xf32>, vector<288x64xf32>, vector<32x64xf32> -> vector<32x64xf32>
    %cst_4 = arith.constant dense<0.000000e+00> : vector<32xf32>
    %4 = vector.multi_reduction <add>, %3, %cst_4 [1] : vector<32x64xf32> to vector<32xf32>
    %5 = vector.shape_cast %4 : vector<32xf32> to vector<32x1xf32>
    %cst_5 = arith.constant 1.562500e-02 : f32
    %6 = vector.broadcast %cst_5 : f32 to vector<32x1xf32>
    %7 = arith.mulf %5, %6 : vector<32x1xf32>
    %8 = arith.mulf %3, %3 : vector<32x64xf32>
    %cst_6 = arith.constant dense<0.000000e+00> : vector<32xf32>
    %9 = vector.multi_reduction <add>, %8, %cst_6 [1] : vector<32x64xf32> to vector<32xf32>
    %10 = vector.shape_cast %9 : vector<32xf32> to vector<32x1xf32>
    %cst_7 = arith.constant 1.562500e-02 : f32
    %11 = vector.broadcast %cst_7 : f32 to vector<32x1xf32>
    %12 = arith.mulf %10, %11 : vector<32x1xf32>
    %13 = arith.mulf %7, %7 : vector<32x1xf32>
    %14 = arith.subf %12, %13 : vector<32x1xf32>
    %15 = vector.broadcast %7 : vector<32x1xf32> to vector<32x64xf32>
    %16 = arith.subf %3, %15 : vector<32x64xf32>
    %cst_8 = arith.constant 9.99999974E-6 : f32
    %17 = vector.broadcast %cst_8 : f32 to vector<32x1xf32>
    %18 = arith.addf %14, %17 : vector<32x1xf32>
    %19 = math.rsqrt %18 : vector<32x1xf32>
    %20 = vector.broadcast %19 : vector<32x1xf32> to vector<32x64xf32>
    %21 = arith.mulf %16, %20 : vector<32x64xf32>
    %c0_9 = arith.constant 0 : index
    %c0_10 = arith.constant 0 : index
    %22 = vector.load %arg4[%c0_9, %c0_10] : memref<32x1xf32, #tpu.memory_space<vmem>>, vector<32x1xf32>
    %23 = vector.broadcast %22 : vector<32x1xf32> to vector<32x64xf32>
    %24 = arith.mulf %21, %23 : vector<32x64xf32>
    %c0_11 = arith.constant 0 : index
    %c0_12 = arith.constant 0 : index
    %25 = vector.load %arg5[%c0_11, %c0_12] : memref<32x1xf32, #tpu.memory_space<vmem>>, vector<32x1xf32>
    %26 = vector.broadcast %25 : vector<32x1xf32> to vector<32x64xf32>
    %27 = arith.addf %24, %26 : vector<32x64xf32>
    %cst_13 = arith.constant 0.000000e+00 : f32
    %28 = vector.broadcast %cst_13 : f32 to vector<32x64xf32>
    %29 = arith.maximumf %27, %28 : vector<32x64xf32>
    %c0_14 = arith.constant 0 : index
    %c0_15 = arith.constant 0 : index
    %c0_16 = arith.constant 0 : index
    %30 = vector.load %arg6[%c0_14, %c0_15, %c0_16] : memref<1x32x64xf32, #tpu.memory_space<vmem>>, vector<1x32x64xf32>
    %31 = vector.shape_cast %30 : vector<1x32x64xf32> to vector<32x64xf32>
    %32 = vector.shape_cast %29 : vector<32x64xf32> to vector<1x32x64xf32>
    tpu.vector_store %arg6[%c0_14, %c0_15, %c0_16], %32 {strides = array<i32>} : memref<1x32x64xf32, #tpu.memory_space<vmem>>, vector<1x32x64xf32>,
    return
  }
  func.func @transform_0(%arg0: i32) -> (i32, i32, i32) {
    %c0_i32 = arith.constant 0 : i32
    %c0_i32_0 = arith.constant 0 : i32
    %c0_i32_1 = arith.constant 0 : i32
    return %arg0, %c0_i32, %c0_i32_0 : i32, i32, i32
  }
  func.func @transform_1(%arg0: i32) -> (i32, i32) {
    %c0_i32 = arith.constant 0 : i32
    %c0_i32_0 = arith.constant 0 : i32
    %c0_i32_1 = arith.constant 0 : i32
    return %c0_i32, %c0_i32_0 : i32, i32
  }
  func.func @transform_2(%arg0: i32) -> (i32, i32) {
    %c0_i32 = arith.constant 0 : i32
    %c0_i32_0 = arith.constant 0 : i32
    %c0_i32_1 = arith.constant 0 : i32
    return %c0_i32, %c0_i32_0 : i32, i32
  }
  func.func @transform_3(%arg0: i32) -> (i32, i32) {
    %c0_i32 = arith.constant 0 : i32
    %c0_i32_0 = arith.constant 0 : i32
    %c0_i32_1 = arith.constant 0 : i32
    return %c0_i32, %c0_i32_0 : i32, i32
  }
  func.func @transform_4(%arg0: i32) -> (i32, i32) {
    %c0_i32 = arith.constant 0 : i32
    %c0_i32_0 = arith.constant 0 : i32
    %c0_i32_1 = arith.constant 0 : i32
    return %c0_i32, %c0_i32_0 : i32, i32
  }
  func.func @transform_5(%arg0: i32) -> (i32, i32, i32) {
    %c0_i32 = arith.constant 0 : i32
    %c0_i32_0 = arith.constant 0 : i32
    %c0_i32_1 = arith.constant 0 : i32
    return %arg0, %c0_i32, %c0_i32_0 : i32, i32, i32
  }
}

module attributes {stable_mosaic.version = 11 : i64} {
  func.func @_rows_matmul_kernel(%arg0: i32, %arg1: memref<256x8xf32, #tpu.memory_space<vmem>>, %arg2: memref<8x16xf32, #tpu.memory_space<vmem>>, %arg3: memref<256x16xf32, #tpu.memory_space<vmem>>) attributes {dimension_semantics = [#tpu.dimension_semantics<parallel>], iteration_bounds = array<i64: 2>, scalar_prefetch = 0 : i64, scratch_operands = 0 : i64, tpu.core_type = #tpu.core_type<tc>, window_params = [{transform_indices = @transform_0, window_bounds = array<i64: 256, 8>}, {pipeline_mode = #tpu.pipeline_mode<synchronous>, transform_indices = @transform_1, window_bounds = array<i64: 8, 16>}, {transform_indices = @transform_2, window_bounds = array<i64: 256, 16>}]} {
    %c0 = arith.constant 0 : index
    %c0_0 = arith.constant 0 : index
    %0 = vector.load %arg1[%c0, %c0_0] : memref<256x8xf32, #tpu.memory_space<vmem>>, vector<256x8xf32>
    %c0_1 = arith.constant 0 : index
    %c0_2 = arith.constant 0 : index
    %1 = vector.load %arg2[%c0_1, %c0_2] : memref<8x16xf32, #tpu.memory_space<vmem>>, vector<8x16xf32>
    %cst = arith.constant dense<0.000000e+00> : vector<256x16xf32>
    %2 = tpu.matmul %0, %1, %cst {dimension_numbers = #tpu.dot_dimension_numbers<[1], [0], [0], [1], [0, 0, 1, 1], [], []>} : vector<256x8xf32>, vector<8x16xf32>, vector<256x16xf32> -> vector<256x16xf32>
    %c0_3 = arith.constant 0 : index
    %c0_4 = arith.constant 0 : index
    %3 = vector.load %arg3[%c0_3, %c0_4] : memref<256x16xf32, #tpu.memory_space<vmem>>, vector<256x16xf32>
    tpu.vector_store %arg3[%c0_3, %c0_4], %2 {strides = array<i32>} : memref<256x16xf32, #tpu.memory_space<vmem>>, vector<256x16xf32>,
    return
  }
  func.func @transform_0(%arg0: i32) -> (i32, i32) {
    %c0_i32 = arith.constant 0 : i32
    %c0_i32_0 = arith.constant 0 : i32
    return %arg0, %c0_i32 : i32, i32
  }
  func.func @transform_1(%arg0: i32) -> (i32, i32) {
    %c0_i32 = arith.constant 0 : i32
    %c0_i32_0 = arith.constant 0 : i32
    %c0_i32_1 = arith.constant 0 : i32
    return %c0_i32, %c0_i32_0 : i32, i32
  }
  func.func @transform_2(%arg0: i32) -> (i32, i32) {
    %c0_i32 = arith.constant 0 : i32
    %c0_i32_0 = arith.constant 0 : i32
    return %arg0, %c0_i32 : i32, i32
  }
}

module attributes {stable_mosaic.version = 11 : i64} {
  func.func @_rows_matmul_kernel(%arg0: i32, %arg1: memref<512x8xf32, #tpu.memory_space<vmem>>, %arg2: memref<8x16xf32, #tpu.memory_space<vmem>>, %arg3: memref<512x16xf32, #tpu.memory_space<vmem>>) attributes {dimension_semantics = [#tpu.dimension_semantics<parallel>], iteration_bounds = array<i64: 2>, scalar_prefetch = 0 : i64, scratch_operands = 0 : i64, tpu.core_type = #tpu.core_type<tc>, window_params = [{transform_indices = @transform_0, window_bounds = array<i64: 512, 8>}, {pipeline_mode = #tpu.pipeline_mode<synchronous>, transform_indices = @transform_1, window_bounds = array<i64: 8, 16>}, {transform_indices = @transform_2, window_bounds = array<i64: 512, 16>}]} {
    %c0 = arith.constant 0 : index
    %c0_0 = arith.constant 0 : index
    %0 = vector.load %arg1[%c0, %c0_0] : memref<512x8xf32, #tpu.memory_space<vmem>>, vector<512x8xf32>
    %c0_1 = arith.constant 0 : index
    %c0_2 = arith.constant 0 : index
    %1 = vector.load %arg2[%c0_1, %c0_2] : memref<8x16xf32, #tpu.memory_space<vmem>>, vector<8x16xf32>
    %cst = arith.constant dense<0.000000e+00> : vector<512x16xf32>
    %2 = tpu.matmul %0, %1, %cst {dimension_numbers = #tpu.dot_dimension_numbers<[1], [0], [0], [1], [0, 0, 1, 1], [], []>} : vector<512x8xf32>, vector<8x16xf32>, vector<512x16xf32> -> vector<512x16xf32>
    %c0_3 = arith.constant 0 : index
    %c0_4 = arith.constant 0 : index
    %3 = vector.load %arg3[%c0_3, %c0_4] : memref<512x16xf32, #tpu.memory_space<vmem>>, vector<512x16xf32>
    tpu.vector_store %arg3[%c0_3, %c0_4], %2 {strides = array<i32>} : memref<512x16xf32, #tpu.memory_space<vmem>>, vector<512x16xf32>,
    return
  }
  func.func @transform_0(%arg0: i32) -> (i32, i32) {
    %c0_i32 = arith.constant 0 : i32
    %c0_i32_0 = arith.constant 0 : i32
    return %arg0, %c0_i32 : i32, i32
  }
  func.func @transform_1(%arg0: i32) -> (i32, i32) {
    %c0_i32 = arith.constant 0 : i32
    %c0_i32_0 = arith.constant 0 : i32
    %c0_i32_1 = arith.constant 0 : i32
    return %c0_i32, %c0_i32_0 : i32, i32
  }
  func.func @transform_2(%arg0: i32) -> (i32, i32) {
    %c0_i32 = arith.constant 0 : i32
    %c0_i32_0 = arith.constant 0 : i32
    return %arg0, %c0_i32 : i32, i32
  }
}

module attributes {stable_mosaic.version = 11 : i64} {
  func.func @_conv3x3_kernel(%arg0: i32, %arg1: memref<1x288x256xf32, #tpu.memory_space<vmem>>, %arg2: memref<32x288xf32, #tpu.memory_space<vmem>>, %arg3: memref<32x1xf32, #tpu.memory_space<vmem>>, %arg4: memref<32x1xf32, #tpu.memory_space<vmem>>, %arg5: memref<32x1xf32, #tpu.memory_space<vmem>>, %arg6: memref<1x32x256xf32, #tpu.memory_space<vmem>>) attributes {dimension_semantics = [#tpu.dimension_semantics<parallel>], iteration_bounds = array<i64: 2>, scalar_prefetch = 0 : i64, scratch_operands = 0 : i64, tpu.core_type = #tpu.core_type<tc>, window_params = [{transform_indices = @transform_0, window_bounds = array<i64: 1, 288, 256>}, {pipeline_mode = #tpu.pipeline_mode<synchronous>, transform_indices = @transform_1, window_bounds = array<i64: 32, 288>}, {pipeline_mode = #tpu.pipeline_mode<synchronous>, transform_indices = @transform_2, window_bounds = array<i64: 32, 1>}, {pipeline_mode = #tpu.pipeline_mode<synchronous>, transform_indices = @transform_3, window_bounds = array<i64: 32, 1>}, {pipeline_mode = #tpu.pipeline_mode<synchronous>, transform_indices = @transform_4, window_bounds = array<i64: 32, 1>}, {transform_indices = @transform_5, window_bounds = array<i64: 1, 32, 256>}]} {
    %c0 = arith.constant 0 : index
    %c0_0 = arith.constant 0 : index
    %0 = vector.load %arg2[%c0, %c0_0] : memref<32x288xf32, #tpu.memory_space<vmem>>, vector<32x288xf32>
    %c0_1 = arith.constant 0 : index
    %c0_2 = arith.constant 0 : index
    %c0_3 = arith.constant 0 : index
    %1 = vector.load %arg1[%c0_1, %c0_2, %c0_3] : memref<1x288x256xf32, #tpu.memory_space<vmem>>, vector<1x288x256xf32>
    %2 = vector.shape_cast %1 : vector<1x288x256xf32> to vector<288x256xf32>
    %cst = arith.constant dense<0.000000e+00> : vector<32x256xf32>
    %3 = tpu.matmul %0, %2, %cst {dimension_numbers = #tpu.dot_dimension_numbers<[1], [0], [0], [1], [0, 0, 1, 1], [], []>} : vector<32x288xf32>, vector<288x256xf32>, vector<32x256xf32> -> vector<32x256xf32>
    %cst_4 = arith.constant dense<0.000000e+00> : vector<32xf32>
    %4 = vector.multi_reduction <add>, %3, %cst_4 [1] : vector<32x256xf32> to vector<32xf32>
    %5 = vector.shape_cast %4 : vector<32xf32> to vector<32x1xf32>
    %cst_5 = arith.constant 3.906250e-03 : f32
    %6 = vector.broadcast %cst_5 : f32 to vector<32x1xf32>
    %7 = arith.mulf %5, %6 : vector<32x1xf32>
    %8 = arith.mulf %3, %3 : vector<32x256xf32>
    %cst_6 = arith.constant dense<0.000000e+00> : vector<32xf32>
    %9 = vector.multi_reduction <add>, %8, %cst_6 [1] : vector<32x256xf32> to vector<32xf32>
    %10 = vector.shape_cast %9 : vector<32xf32> to vector<32x1xf32>
    %cst_7 = arith.constant 3.906250e-03 : f32
    %11 = vector.broadcast %cst_7 : f32 to vector<32x1xf32>
    %12 = arith.mulf %10, %11 : vector<32x1xf32>
    %13 = arith.mulf %7, %7 : vector<32x1xf32>
    %14 = arith.subf %12, %13 : vector<32x1xf32>
    %15 = vector.broadcast %7 : vector<32x1xf32> to vector<32x256xf32>
    %16 = arith.subf %3, %15 : vector<32x256xf32>
    %cst_8 = arith.constant 9.99999974E-6 : f32
    %17 = vector.broadcast %cst_8 : f32 to vector<32x1xf32>
    %18 = arith.addf %14, %17 : vector<32x1xf32>
    %19 = math.rsqrt %18 : vector<32x1xf32>
    %20 = vector.broadcast %19 : vector<32x1xf32> to vector<32x256xf32>
    %21 = arith.mulf %16, %20 : vector<32x256xf32>
    %c0_9 = arith.constant 0 : index
    %c0_10 = arith.constant 0 : index
    %22 = vector.load %arg4[%c0_9, %c0_10] : memref<32x1xf32, #tpu.memory_space<vmem>>, vector<32x1xf32>
    %23 = vector.broadcast %22 : vector<32x1xf32> to vector<32x256xf32>
    %24 = arith.mulf %21, %23 : vector<32x256xf32>
    %c0_11 = arith.constant 0 : index
    %c0_12 = arith.constant 0 : index
    %25 = vector.load %arg5[%c0_11, %c0_12] : memref<32x1xf32, #tpu.memory_space<vmem>>, vector<32x1xf32>
    %26 = vector.broadcast %25 : vector<32x1xf32> to vector<32x256xf32>
    %27 = arith.addf %24, %26 : vector<32x256xf32>
    %cst_13 = arith.constant 0.000000e+00 : f32
    %28 = vector.broadcast %cst_13 : f32 to vector<32x256xf32>
    %29 = arith.maximumf %27, %28 : vector<32x256xf32>
    %c0_14 = arith.constant 0 : index
    %c0_15 = arith.constant 0 : index
    %c0_16 = arith.constant 0 : index
    %30 = vector.load %arg6[%c0_14, %c0_15, %c0_16] : memref<1x32x256xf32, #tpu.memory_space<vmem>>, vector<1x32x256xf32>
    %31 = vector.shape_cast %30 : vector<1x32x256xf32> to vector<32x256xf32>
    %32 = vector.shape_cast %29 : vector<32x256xf32> to vector<1x32x256xf32>
    tpu.vector_store %arg6[%c0_14, %c0_15, %c0_16], %32 {strides = array<i32>} : memref<1x32x256xf32, #tpu.memory_space<vmem>>, vector<1x32x256xf32>,
    return
  }
  func.func @transform_0(%arg0: i32) -> (i32, i32, i32) {
    %c0_i32 = arith.constant 0 : i32
    %c0_i32_0 = arith.constant 0 : i32
    %c0_i32_1 = arith.constant 0 : i32
    return %arg0, %c0_i32, %c0_i32_0 : i32, i32, i32
  }
  func.func @transform_1(%arg0: i32) -> (i32, i32) {
    %c0_i32 = arith.constant 0 : i32
    %c0_i32_0 = arith.constant 0 : i32
    %c0_i32_1 = arith.constant 0 : i32
    return %c0_i32, %c0_i32_0 : i32, i32
  }
  func.func @transform_2(%arg0: i32) -> (i32, i32) {
    %c0_i32 = arith.constant 0 : i32
    %c0_i32_0 = arith.constant 0 : i32
    %c0_i32_1 = arith.constant 0 : i32
    return %c0_i32, %c0_i32_0 : i32, i32
  }
  func.func @transform_3(%arg0: i32) -> (i32, i32) {
    %c0_i32 = arith.constant 0 : i32
    %c0_i32_0 = arith.constant 0 : i32
    %c0_i32_1 = arith.constant 0 : i32
    return %c0_i32, %c0_i32_0 : i32, i32
  }
  func.func @transform_4(%arg0: i32) -> (i32, i32) {
    %c0_i32 = arith.constant 0 : i32
    %c0_i32_0 = arith.constant 0 : i32
    %c0_i32_1 = arith.constant 0 : i32
    return %c0_i32, %c0_i32_0 : i32, i32
  }
  func.func @transform_5(%arg0: i32) -> (i32, i32, i32) {
    %c0_i32 = arith.constant 0 : i32
    %c0_i32_0 = arith.constant 0 : i32
    %c0_i32_1 = arith.constant 0 : i32
    return %arg0, %c0_i32, %c0_i32_0 : i32, i32, i32
  }
}

module attributes {stable_mosaic.version = 11 : i64} {
  func.func @_rows_matmul_kernel(%arg0: i32, %arg1: memref<512x16xf32, #tpu.memory_space<vmem>>, %arg2: memref<16x32xf32, #tpu.memory_space<vmem>>, %arg3: memref<512x32xf32, #tpu.memory_space<vmem>>) attributes {dimension_semantics = [#tpu.dimension_semantics<parallel>], iteration_bounds = array<i64: 2>, scalar_prefetch = 0 : i64, scratch_operands = 0 : i64, tpu.core_type = #tpu.core_type<tc>, window_params = [{transform_indices = @transform_0, window_bounds = array<i64: 512, 16>}, {pipeline_mode = #tpu.pipeline_mode<synchronous>, transform_indices = @transform_1, window_bounds = array<i64: 16, 32>}, {transform_indices = @transform_2, window_bounds = array<i64: 512, 32>}]} {
    %c0 = arith.constant 0 : index
    %c0_0 = arith.constant 0 : index
    %0 = vector.load %arg1[%c0, %c0_0] : memref<512x16xf32, #tpu.memory_space<vmem>>, vector<512x16xf32>
    %c0_1 = arith.constant 0 : index
    %c0_2 = arith.constant 0 : index
    %1 = vector.load %arg2[%c0_1, %c0_2] : memref<16x32xf32, #tpu.memory_space<vmem>>, vector<16x32xf32>
    %cst = arith.constant dense<0.000000e+00> : vector<512x32xf32>
    %2 = tpu.matmul %0, %1, %cst {dimension_numbers = #tpu.dot_dimension_numbers<[1], [0], [0], [1], [0, 0, 1, 1], [], []>} : vector<512x16xf32>, vector<16x32xf32>, vector<512x32xf32> -> vector<512x32xf32>
    %c0_3 = arith.constant 0 : index
    %c0_4 = arith.constant 0 : index
    %3 = vector.load %arg3[%c0_3, %c0_4] : memref<512x32xf32, #tpu.memory_space<vmem>>, vector<512x32xf32>
    tpu.vector_store %arg3[%c0_3, %c0_4], %2 {strides = array<i32>} : memref<512x32xf32, #tpu.memory_space<vmem>>, vector<512x32xf32>,
    return
  }
  func.func @transform_0(%arg0: i32) -> (i32, i32) {
    %c0_i32 = arith.constant 0 : i32
    %c0_i32_0 = arith.constant 0 : i32
    return %arg0, %c0_i32 : i32, i32
  }
  func.func @transform_1(%arg0: i32) -> (i32, i32) {
    %c0_i32 = arith.constant 0 : i32
    %c0_i32_0 = arith.constant 0 : i32
    %c0_i32_1 = arith.constant 0 : i32
    return %c0_i32, %c0_i32_0 : i32, i32
  }
  func.func @transform_2(%arg0: i32) -> (i32, i32) {
    %c0_i32 = arith.constant 0 : i32
    %c0_i32_0 = arith.constant 0 : i32
    return %arg0, %c0_i32 : i32, i32
  }
}

module attributes {stable_mosaic.version = 11 : i64} {
  func.func @_rows_matmul_kernel(%arg0: i32, %arg1: memref<1024x16xf32, #tpu.memory_space<vmem>>, %arg2: memref<16x32xf32, #tpu.memory_space<vmem>>, %arg3: memref<1024x32xf32, #tpu.memory_space<vmem>>) attributes {dimension_semantics = [#tpu.dimension_semantics<parallel>], iteration_bounds = array<i64: 2>, scalar_prefetch = 0 : i64, scratch_operands = 0 : i64, tpu.core_type = #tpu.core_type<tc>, window_params = [{transform_indices = @transform_0, window_bounds = array<i64: 1024, 16>}, {pipeline_mode = #tpu.pipeline_mode<synchronous>, transform_indices = @transform_1, window_bounds = array<i64: 16, 32>}, {transform_indices = @transform_2, window_bounds = array<i64: 1024, 32>}]} {
    %c0 = arith.constant 0 : index
    %c0_0 = arith.constant 0 : index
    %0 = vector.load %arg1[%c0, %c0_0] : memref<1024x16xf32, #tpu.memory_space<vmem>>, vector<1024x16xf32>
    %c0_1 = arith.constant 0 : index
    %c0_2 = arith.constant 0 : index
    %1 = vector.load %arg2[%c0_1, %c0_2] : memref<16x32xf32, #tpu.memory_space<vmem>>, vector<16x32xf32>
    %cst = arith.constant dense<0.000000e+00> : vector<1024x32xf32>
    %2 = tpu.matmul %0, %1, %cst {dimension_numbers = #tpu.dot_dimension_numbers<[1], [0], [0], [1], [0, 0, 1, 1], [], []>} : vector<1024x16xf32>, vector<16x32xf32>, vector<1024x32xf32> -> vector<1024x32xf32>
    %c0_3 = arith.constant 0 : index
    %c0_4 = arith.constant 0 : index
    %3 = vector.load %arg3[%c0_3, %c0_4] : memref<1024x32xf32, #tpu.memory_space<vmem>>, vector<1024x32xf32>
    tpu.vector_store %arg3[%c0_3, %c0_4], %2 {strides = array<i32>} : memref<1024x32xf32, #tpu.memory_space<vmem>>, vector<1024x32xf32>,
    return
  }
  func.func @transform_0(%arg0: i32) -> (i32, i32) {
    %c0_i32 = arith.constant 0 : i32
    %c0_i32_0 = arith.constant 0 : i32
    return %arg0, %c0_i32 : i32, i32
  }
  func.func @transform_1(%arg0: i32) -> (i32, i32) {
    %c0_i32 = arith.constant 0 : i32
    %c0_i32_0 = arith.constant 0 : i32
    %c0_i32_1 = arith.constant 0 : i32
    return %c0_i32, %c0_i32_0 : i32, i32
  }
  func.func @transform_2(%arg0: i32) -> (i32, i32) {
    %c0_i32 = arith.constant 0 : i32
    %c0_i32_0 = arith.constant 0 : i32
    return %arg0, %c0_i32 : i32, i32
  }
}

module attributes {stable_mosaic.version = 11 : i64} {
  func.func @_conv1x1_kernel(%arg0: i32, %arg1: i32, %arg2: memref<1x3x64xf32, #tpu.memory_space<vmem>>, %arg3: memref<16x3xf32, #tpu.memory_space<vmem>>, %arg4: memref<16x1xf32, #tpu.memory_space<vmem>>, %arg5: memref<1x16x64xf32, #tpu.memory_space<vmem>>) attributes {dimension_semantics = [#tpu.dimension_semantics<parallel>, #tpu.dimension_semantics<parallel>], iteration_bounds = array<i64: 2, 1>, scalar_prefetch = 0 : i64, scratch_operands = 0 : i64, tpu.core_type = #tpu.core_type<tc>, window_params = [{transform_indices = @transform_0, window_bounds = array<i64: 1, 3, 64>}, {pipeline_mode = #tpu.pipeline_mode<synchronous>, transform_indices = @transform_1, window_bounds = array<i64: 16, 3>}, {pipeline_mode = #tpu.pipeline_mode<synchronous>, transform_indices = @transform_2, window_bounds = array<i64: 16, 1>}, {transform_indices = @transform_3, window_bounds = array<i64: 1, 16, 64>}]} {
    %c0 = arith.constant 0 : index
    %c0_0 = arith.constant 0 : index
    %0 = vector.load %arg3[%c0, %c0_0] : memref<16x3xf32, #tpu.memory_space<vmem>>, vector<16x3xf32>
    %c0_1 = arith.constant 0 : index
    %c0_2 = arith.constant 0 : index
    %c0_3 = arith.constant 0 : index
    %1 = vector.load %arg2[%c0_1, %c0_2, %c0_3] : memref<1x3x64xf32, #tpu.memory_space<vmem>>, vector<1x3x64xf32>
    %2 = vector.shape_cast %1 : vector<1x3x64xf32> to vector<3x64xf32>
    %cst = arith.constant dense<0.000000e+00> : vector<16x64xf32>
    %3 = tpu.matmul %0, %2, %cst {dimension_numbers = #tpu.dot_dimension_numbers<[1], [0], [0], [1], [0, 0, 1, 1], [], []>} : vector<16x3xf32>, vector<3x64xf32>, vector<16x64xf32> -> vector<16x64xf32>
    %c0_4 = arith.constant 0 : index
    %c0_5 = arith.constant 0 : index
    %4 = vector.load %arg4[%c0_4, %c0_5] : memref<16x1xf32, #tpu.memory_space<vmem>>, vector<16x1xf32>
    %5 = vector.broadcast %4 : vector<16x1xf32> to vector<16x64xf32>
    %6 = arith.addf %3, %5 : vector<16x64xf32>
    %cst_6 = arith.constant 0.000000e+00 : f32
    %7 = vector.broadcast %cst_6 : f32 to vector<16x64xf32>
    %8 = arith.maximumf %6, %7 : vector<16x64xf32>
    %c0_7 = arith.constant 0 : index
    %c0_8 = arith.constant 0 : index
    %c0_9 = arith.constant 0 : index
    %9 = vector.load %arg5[%c0_7, %c0_8, %c0_9] : memref<1x16x64xf32, #tpu.memory_space<vmem>>, vector<1x16x64xf32>
    %10 = vector.shape_cast %9 : vector<1x16x64xf32> to vector<16x64xf32>
    %11 = vector.shape_cast %8 : vector<16x64xf32> to vector<1x16x64xf32>
    tpu.vector_store %arg5[%c0_7, %c0_8, %c0_9], %11 {strides = array<i32>} : memref<1x16x64xf32, #tpu.memory_space<vmem>>, vector<1x16x64xf32>,
    return
  }
  func.func @transform_0(%arg0: i32, %arg1: i32) -> (i32, i32, i32) {
    %c0_i32 = arith.constant 0 : i32
    %c0_i32_0 = arith.constant 0 : i32
    return %arg0, %c0_i32, %arg1 : i32, i32, i32
  }
  func.func @transform_1(%arg0: i32, %arg1: i32) -> (i32, i32) {
    %c0_i32 = arith.constant 0 : i32
    %c0_i32_0 = arith.constant 0 : i32
    %c0_i32_1 = arith.constant 0 : i32
    return %c0_i32, %c0_i32_0 : i32, i32
  }
  func.func @transform_2(%arg0: i32, %arg1: i32) -> (i32, i32) {
    %c0_i32 = arith.constant 0 : i32
    %c0_i32_0 = arith.constant 0 : i32
    %c0_i32_1 = arith.constant 0 : i32
    return %c0_i32, %c0_i32_0 : i32, i32
  }
  func.func @transform_3(%arg0: i32, %arg1: i32) -> (i32, i32, i32) {
    %c0_i32 = arith.constant 0 : i32
    %c0_i32_0 = arith.constant 0 : i32
    return %arg0, %c0_i32, %arg1 : i32, i32, i32
  }
}

module attributes {stable_mosaic.version = 11 : i64} {
  func.func @_conv3x3_kernel(%arg0: i32, %arg1: memref<1x144x64xf32, #tpu.memory_space<vmem>>, %arg2: memref<32x144xf32, #tpu.memory_space<vmem>>, %arg3: memref<32x1xf32, #tpu.memory_space<vmem>>, %arg4: memref<32x1xf32, #tpu.memory_space<vmem>>, %arg5: memref<32x1xf32, #tpu.memory_space<vmem>>, %arg6: memref<1x32x64xf32, #tpu.memory_space<vmem>>) attributes {dimension_semantics = [#tpu.dimension_semantics<parallel>], iteration_bounds = array<i64: 2>, scalar_prefetch = 0 : i64, scratch_operands = 0 : i64, tpu.core_type = #tpu.core_type<tc>, window_params = [{transform_indices = @transform_0, window_bounds = array<i64: 1, 144, 64>}, {pipeline_mode = #tpu.pipeline_mode<synchronous>, transform_indices = @transform_1, window_bounds = array<i64: 32, 144>}, {pipeline_mode = #tpu.pipeline_mode<synchronous>, transform_indices = @transform_2, window_bounds = array<i64: 32, 1>}, {pipeline_mode = #tpu.pipeline_mode<synchronous>, transform_indices = @transform_3, window_bounds = array<i64: 32, 1>}, {pipeline_mode = #tpu.pipeline_mode<synchronous>, transform_indices = @transform_4, window_bounds = array<i64: 32, 1>}, {transform_indices = @transform_5, window_bounds = array<i64: 1, 32, 64>}]} {
    %c0 = arith.constant 0 : index
    %c0_0 = arith.constant 0 : index
    %0 = vector.load %arg2[%c0, %c0_0] : memref<32x144xf32, #tpu.memory_space<vmem>>, vector<32x144xf32>
    %c0_1 = arith.constant 0 : index
    %c0_2 = arith.constant 0 : index
    %c0_3 = arith.constant 0 : index
    %1 = vector.load %arg1[%c0_1, %c0_2, %c0_3] : memref<1x144x64xf32, #tpu.memory_space<vmem>>, vector<1x144x64xf32>
    %2 = vector.shape_cast %1 : vector<1x144x64xf32> to vector<144x64xf32>
    %cst = arith.constant dense<0.000000e+00> : vector<32x64xf32>
    %3 = tpu.matmul %0, %2, %cst {dimension_numbers = #tpu.dot_dimension_numbers<[1], [0], [0], [1], [0, 0, 1, 1], [], []>} : vector<32x144xf32>, vector<144x64xf32>, vector<32x64xf32> -> vector<32x64xf32>
    %cst_4 = arith.constant dense<0.000000e+00> : vector<32xf32>
    %4 = vector.multi_reduction <add>, %3, %cst_4 [1] : vector<32x64xf32> to vector<32xf32>
    %5 = vector.shape_cast %4 : vector<32xf32> to vector<32x1xf32>
    %cst_5 = arith.constant 1.562500e-02 : f32
    %6 = vector.broadcast %cst_5 : f32 to vector<32x1xf32>
    %7 = arith.mulf %5, %6 : vector<32x1xf32>
    %8 = arith.mulf %3, %3 : vector<32x64xf32>
    %cst_6 = arith.constant dense<0.000000e+00> : vector<32xf32>
    %9 = vector.multi_reduction <add>, %8, %cst_6 [1] : vector<32x64xf32> to vector<32xf32>
    %10 = vector.shape_cast %9 : vector<32xf32> to vector<32x1xf32>
    %cst_7 = arith.constant 1.562500e-02 : f32
    %11 = vector.broadcast %cst_7 : f32 to vector<32x1xf32>
    %12 = arith.mulf %10, %11 : vector<32x1xf32>
    %13 = arith.mulf %7, %7 : vector<32x1xf32>
    %14 = arith.subf %12, %13 : vector<32x1xf32>
    %15 = vector.broadcast %7 : vector<32x1xf32> to vector<32x64xf32>
    %16 = arith.subf %3, %15 : vector<32x64xf32>
    %cst_8 = arith.constant 9.99999974E-6 : f32
    %17 = vector.broadcast %cst_8 : f32 to vector<32x1xf32>
    %18 = arith.addf %14, %17 : vector<32x1xf32>
    %19 = math.rsqrt %18 : vector<32x1xf32>
    %20 = vector.broadcast %19 : vector<32x1xf32> to vector<32x64xf32>
    %21 = arith.mulf %16, %20 : vector<32x64xf32>
    %c0_9 = arith.constant 0 : index
    %c0_10 = arith.constant 0 : index
    %22 = vector.load %arg4[%c0_9, %c0_10] : memref<32x1xf32, #tpu.memory_space<vmem>>, vector<32x1xf32>
    %23 = vector.broadcast %22 : vector<32x1xf32> to vector<32x64xf32>
    %24 = arith.mulf %21, %23 : vector<32x64xf32>
    %c0_11 = arith.constant 0 : index
    %c0_12 = arith.constant 0 : index
    %25 = vector.load %arg5[%c0_11, %c0_12] : memref<32x1xf32, #tpu.memory_space<vmem>>, vector<32x1xf32>
    %26 = vector.broadcast %25 : vector<32x1xf32> to vector<32x64xf32>
    %27 = arith.addf %24, %26 : vector<32x64xf32>
    %cst_13 = arith.constant 0.000000e+00 : f32
    %28 = vector.broadcast %cst_13 : f32 to vector<32x64xf32>
    %29 = arith.maximumf %27, %28 : vector<32x64xf32>
    %c0_14 = arith.constant 0 : index
    %c0_15 = arith.constant 0 : index
    %c0_16 = arith.constant 0 : index
    %30 = vector.load %arg6[%c0_14, %c0_15, %c0_16] : memref<1x32x64xf32, #tpu.memory_space<vmem>>, vector<1x32x64xf32>
    %31 = vector.shape_cast %30 : vector<1x32x64xf32> to vector<32x64xf32>
    %32 = vector.shape_cast %29 : vector<32x64xf32> to vector<1x32x64xf32>
    tpu.vector_store %arg6[%c0_14, %c0_15, %c0_16], %32 {strides = array<i32>} : memref<1x32x64xf32, #tpu.memory_space<vmem>>, vector<1x32x64xf32>,
    return
  }
  func.func @transform_0(%arg0: i32) -> (i32, i32, i32) {
    %c0_i32 = arith.constant 0 : i32
    %c0_i32_0 = arith.constant 0 : i32
    %c0_i32_1 = arith.constant 0 : i32
    return %arg0, %c0_i32, %c0_i32_0 : i32, i32, i32
  }
  func.func @transform_1(%arg0: i32) -> (i32, i32) {
    %c0_i32 = arith.constant 0 : i32
    %c0_i32_0 = arith.constant 0 : i32
    %c0_i32_1 = arith.constant 0 : i32
    return %c0_i32, %c0_i32_0 : i32, i32
  }
  func.func @transform_2(%arg0: i32) -> (i32, i32) {
    %c0_i32 = arith.constant 0 : i32
    %c0_i32_0 = arith.constant 0 : i32
    %c0_i32_1 = arith.constant 0 : i32
    return %c0_i32, %c0_i32_0 : i32, i32
  }
  func.func @transform_3(%arg0: i32) -> (i32, i32) {
    %c0_i32 = arith.constant 0 : i32
    %c0_i32_0 = arith.constant 0 : i32
    %c0_i32_1 = arith.constant 0 : i32
    return %c0_i32, %c0_i32_0 : i32, i32
  }
  func.func @transform_4(%arg0: i32) -> (i32, i32) {
    %c0_i32 = arith.constant 0 : i32
    %c0_i32_0 = arith.constant 0 : i32
    %c0_i32_1 = arith.constant 0 : i32
    return %c0_i32, %c0_i32_0 : i32, i32
  }
  func.func @transform_5(%arg0: i32) -> (i32, i32, i32) {
    %c0_i32 = arith.constant 0 : i32
    %c0_i32_0 = arith.constant 0 : i32
    %c0_i32_1 = arith.constant 0 : i32
    return %arg0, %c0_i32, %c0_i32_0 : i32, i32, i32
  }
}

module attributes {stable_mosaic.version = 11 : i64} {
  func.func @_conv1x1_kernel(%arg0: i32, %arg1: i32, %arg2: memref<1x3x1024xf32, #tpu.memory_space<vmem>>, %arg3: memref<16x3xf32, #tpu.memory_space<vmem>>, %arg4: memref<16x1xf32, #tpu.memory_space<vmem>>, %arg5: memref<1x16x1024xf32, #tpu.memory_space<vmem>>) attributes {dimension_semantics = [#tpu.dimension_semantics<parallel>, #tpu.dimension_semantics<parallel>], iteration_bounds = array<i64: 2, 1>, scalar_prefetch = 0 : i64, scratch_operands = 0 : i64, tpu.core_type = #tpu.core_type<tc>, window_params = [{transform_indices = @transform_0, window_bounds = array<i64: 1, 3, 1024>}, {pipeline_mode = #tpu.pipeline_mode<synchronous>, transform_indices = @transform_1, window_bounds = array<i64: 16, 3>}, {pipeline_mode = #tpu.pipeline_mode<synchronous>, transform_indices = @transform_2, window_bounds = array<i64: 16, 1>}, {transform_indices = @transform_3, window_bounds = array<i64: 1, 16, 1024>}]} {
    %c0 = arith.constant 0 : index
    %c0_0 = arith.constant 0 : index
    %0 = vector.load %arg3[%c0, %c0_0] : memref<16x3xf32, #tpu.memory_space<vmem>>, vector<16x3xf32>
    %c0_1 = arith.constant 0 : index
    %c0_2 = arith.constant 0 : index
    %c0_3 = arith.constant 0 : index
    %1 = vector.load %arg2[%c0_1, %c0_2, %c0_3] : memref<1x3x1024xf32, #tpu.memory_space<vmem>>, vector<1x3x1024xf32>
    %2 = vector.shape_cast %1 : vector<1x3x1024xf32> to vector<3x1024xf32>
    %cst = arith.constant dense<0.000000e+00> : vector<16x1024xf32>
    %3 = tpu.matmul %0, %2, %cst {dimension_numbers = #tpu.dot_dimension_numbers<[1], [0], [0], [1], [0, 0, 1, 1], [], []>} : vector<16x3xf32>, vector<3x1024xf32>, vector<16x1024xf32> -> vector<16x1024xf32>
    %c0_4 = arith.constant 0 : index
    %c0_5 = arith.constant 0 : index
    %4 = vector.load %arg4[%c0_4, %c0_5] : memref<16x1xf32, #tpu.memory_space<vmem>>, vector<16x1xf32>
    %5 = vector.broadcast %4 : vector<16x1xf32> to vector<16x1024xf32>
    %6 = arith.addf %3, %5 : vector<16x1024xf32>
    %cst_6 = arith.constant 0.000000e+00 : f32
    %7 = vector.broadcast %cst_6 : f32 to vector<16x1024xf32>
    %8 = arith.maximumf %6, %7 : vector<16x1024xf32>
    %c0_7 = arith.constant 0 : index
    %c0_8 = arith.constant 0 : index
    %c0_9 = arith.constant 0 : index
    %9 = vector.load %arg5[%c0_7, %c0_8, %c0_9] : memref<1x16x1024xf32, #tpu.memory_space<vmem>>, vector<1x16x1024xf32>
    %10 = vector.shape_cast %9 : vector<1x16x1024xf32> to vector<16x1024xf32>
    %11 = vector.shape_cast %8 : vector<16x1024xf32> to vector<1x16x1024xf32>
    tpu.vector_store %arg5[%c0_7, %c0_8, %c0_9], %11 {strides = array<i32>} : memref<1x16x1024xf32, #tpu.memory_space<vmem>>, vector<1x16x1024xf32>,
    return
  }
  func.func @transform_0(%arg0: i32, %arg1: i32) -> (i32, i32, i32) {
    %c0_i32 = arith.constant 0 : i32
    %c0_i32_0 = arith.constant 0 : i32
    return %arg0, %c0_i32, %arg1 : i32, i32, i32
  }
  func.func @transform_1(%arg0: i32, %arg1: i32) -> (i32, i32) {
    %c0_i32 = arith.constant 0 : i32
    %c0_i32_0 = arith.constant 0 : i32
    %c0_i32_1 = arith.constant 0 : i32
    return %c0_i32, %c0_i32_0 : i32, i32
  }
  func.func @transform_2(%arg0: i32, %arg1: i32) -> (i32, i32) {
    %c0_i32 = arith.constant 0 : i32
    %c0_i32_0 = arith.constant 0 : i32
    %c0_i32_1 = arith.constant 0 : i32
    return %c0_i32, %c0_i32_0 : i32, i32
  }
  func.func @transform_3(%arg0: i32, %arg1: i32) -> (i32, i32, i32) {
    %c0_i32 = arith.constant 0 : i32
    %c0_i32_0 = arith.constant 0 : i32
    return %arg0, %c0_i32, %arg1 : i32, i32, i32
  }
}

module attributes {stable_mosaic.version = 11 : i64} {
  func.func @_conv3x3_kernel(%arg0: i32, %arg1: memref<1x144x1024xf32, #tpu.memory_space<vmem>>, %arg2: memref<32x144xf32, #tpu.memory_space<vmem>>, %arg3: memref<32x1xf32, #tpu.memory_space<vmem>>, %arg4: memref<32x1xf32, #tpu.memory_space<vmem>>, %arg5: memref<32x1xf32, #tpu.memory_space<vmem>>, %arg6: memref<1x32x1024xf32, #tpu.memory_space<vmem>>) attributes {dimension_semantics = [#tpu.dimension_semantics<parallel>], iteration_bounds = array<i64: 2>, scalar_prefetch = 0 : i64, scratch_operands = 0 : i64, tpu.core_type = #tpu.core_type<tc>, window_params = [{transform_indices = @transform_0, window_bounds = array<i64: 1, 144, 1024>}, {pipeline_mode = #tpu.pipeline_mode<synchronous>, transform_indices = @transform_1, window_bounds = array<i64: 32, 144>}, {pipeline_mode = #tpu.pipeline_mode<synchronous>, transform_indices = @transform_2, window_bounds = array<i64: 32, 1>}, {pipeline_mode = #tpu.pipeline_mode<synchronous>, transform_indices = @transform_3, window_bounds = array<i64: 32, 1>}, {pipeline_mode = #tpu.pipeline_mode<synchronous>, transform_indices = @transform_4, window_bounds = array<i64: 32, 1>}, {transform_indices = @transform_5, window_bounds = array<i64: 1, 32, 1024>}]} {
    %c0 = arith.constant 0 : index
    %c0_0 = arith.constant 0 : index
    %0 = vector.load %arg2[%c0, %c0_0] : memref<32x144xf32, #tpu.memory_space<vmem>>, vector<32x144xf32>
    %c0_1 = arith.constant 0 : index
    %c0_2 = arith.constant 0 : index
    %c0_3 = arith.constant 0 : index
    %1 = vector.load %arg1[%c0_1, %c0_2, %c0_3] : memref<1x144x1024xf32, #tpu.memory_space<vmem>>, vector<1x144x1024xf32>
    %2 = vector.shape_cast %1 : vector<1x144x1024xf32> to vector<144x1024xf32>
    %cst = arith.constant dense<0.000000e+00> : vector<32x1024xf32>
    %3 = tpu.matmul %0, %2, %cst {dimension_numbers = #tpu.dot_dimension_numbers<[1], [0], [0], [1], [0, 0, 1, 1], [], []>} : vector<32x144xf32>, vector<144x1024xf32>, vector<32x1024xf32> -> vector<32x1024xf32>
    %cst_4 = arith.constant dense<0.000000e+00> : vector<32xf32>
    %4 = vector.multi_reduction <add>, %3, %cst_4 [1] : vector<32x1024xf32> to vector<32xf32>
    %5 = vector.shape_cast %4 : vector<32xf32> to vector<32x1xf32>
    %cst_5 = arith.constant 9.765625E-4 : f32
    %6 = vector.broadcast %cst_5 : f32 to vector<32x1xf32>
    %7 = arith.mulf %5, %6 : vector<32x1xf32>
    %8 = arith.mulf %3, %3 : vector<32x1024xf32>
    %cst_6 = arith.constant dense<0.000000e+00> : vector<32xf32>
    %9 = vector.multi_reduction <add>, %8, %cst_6 [1] : vector<32x1024xf32> to vector<32xf32>
    %10 = vector.shape_cast %9 : vector<32xf32> to vector<32x1xf32>
    %cst_7 = arith.constant 9.765625E-4 : f32
    %11 = vector.broadcast %cst_7 : f32 to vector<32x1xf32>
    %12 = arith.mulf %10, %11 : vector<32x1xf32>
    %13 = arith.mulf %7, %7 : vector<32x1xf32>
    %14 = arith.subf %12, %13 : vector<32x1xf32>
    %15 = vector.broadcast %7 : vector<32x1xf32> to vector<32x1024xf32>
    %16 = arith.subf %3, %15 : vector<32x1024xf32>
    %cst_8 = arith.constant 9.99999974E-6 : f32
    %17 = vector.broadcast %cst_8 : f32 to vector<32x1xf32>
    %18 = arith.addf %14, %17 : vector<32x1xf32>
    %19 = math.rsqrt %18 : vector<32x1xf32>
    %20 = vector.broadcast %19 : vector<32x1xf32> to vector<32x1024xf32>
    %21 = arith.mulf %16, %20 : vector<32x1024xf32>
    %c0_9 = arith.constant 0 : index
    %c0_10 = arith.constant 0 : index
    %22 = vector.load %arg4[%c0_9, %c0_10] : memref<32x1xf32, #tpu.memory_space<vmem>>, vector<32x1xf32>
    %23 = vector.broadcast %22 : vector<32x1xf32> to vector<32x1024xf32>
    %24 = arith.mulf %21, %23 : vector<32x1024xf32>
    %c0_11 = arith.constant 0 : index
    %c0_12 = arith.constant 0 : index
    %25 = vector.load %arg5[%c0_11, %c0_12] : memref<32x1xf32, #tpu.memory_space<vmem>>, vector<32x1xf32>
    %26 = vector.broadcast %25 : vector<32x1xf32> to vector<32x1024xf32>
    %27 = arith.addf %24, %26 : vector<32x1024xf32>
    %cst_13 = arith.constant 0.000000e+00 : f32
    %28 = vector.broadcast %cst_13 : f32 to vector<32x1024xf32>
    %29 = arith.maximumf %27, %28 : vector<32x1024xf32>
    %c0_14 = arith.constant 0 : index
    %c0_15 = arith.constant 0 : index
    %c0_16 = arith.constant 0 : index
    %30 = vector.load %arg6[%c0_14, %c0_15, %c0_16] : memref<1x32x1024xf32, #tpu.memory_space<vmem>>, vector<1x32x1024xf32>
    %31 = vector.shape_cast %30 : vector<1x32x1024xf32> to vector<32x1024xf32>
    %32 = vector.shape_cast %29 : vector<32x1024xf32> to vector<1x32x1024xf32>
    tpu.vector_store %arg6[%c0_14, %c0_15, %c0_16], %32 {strides = array<i32>} : memref<1x32x1024xf32, #tpu.memory_space<vmem>>, vector<1x32x1024xf32>,
    return
  }
  func.func @transform_0(%arg0: i32) -> (i32, i32, i32) {
    %c0_i32 = arith.constant 0 : i32
    %c0_i32_0 = arith.constant 0 : i32
    %c0_i32_1 = arith.constant 0 : i32
    return %arg0, %c0_i32, %c0_i32_0 : i32, i32, i32
  }
  func.func @transform_1(%arg0: i32) -> (i32, i32) {
    %c0_i32 = arith.constant 0 : i32
    %c0_i32_0 = arith.constant 0 : i32
    %c0_i32_1 = arith.constant 0 : i32
    return %c0_i32, %c0_i32_0 : i32, i32
  }
  func.func @transform_2(%arg0: i32) -> (i32, i32) {
    %c0_i32 = arith.constant 0 : i32
    %c0_i32_0 = arith.constant 0 : i32
    %c0_i32_1 = arith.constant 0 : i32
    return %c0_i32, %c0_i32_0 : i32, i32
  }
  func.func @transform_3(%arg0: i32) -> (i32, i32) {
    %c0_i32 = arith.constant 0 : i32
    %c0_i32_0 = arith.constant 0 : i32
    %c0_i32_1 = arith.constant 0 : i32
    return %c0_i32, %c0_i32_0 : i32, i32
  }
  func.func @transform_4(%arg0: i32) -> (i32, i32) {
    %c0_i32 = arith.constant 0 : i32
    %c0_i32_0 = arith.constant 0 : i32
    %c0_i32_1 = arith.constant 0 : i32
    return %c0_i32, %c0_i32_0 : i32, i32
  }
  func.func @transform_5(%arg0: i32) -> (i32, i32, i32) {
    %c0_i32 = arith.constant 0 : i32
    %c0_i32_0 = arith.constant 0 : i32
    %c0_i32_1 = arith.constant 0 : i32
    return %arg0, %c0_i32, %c0_i32_0 : i32, i32, i32
  }
}

module attributes {stable_mosaic.version = 11 : i64} {
  func.func @_conv1x1_kernel(%arg0: i32, %arg1: i32, %arg2: memref<1x3x256xf32, #tpu.memory_space<vmem>>, %arg3: memref<16x3xf32, #tpu.memory_space<vmem>>, %arg4: memref<16x1xf32, #tpu.memory_space<vmem>>, %arg5: memref<1x16x256xf32, #tpu.memory_space<vmem>>) attributes {dimension_semantics = [#tpu.dimension_semantics<parallel>, #tpu.dimension_semantics<parallel>], iteration_bounds = array<i64: 2, 1>, scalar_prefetch = 0 : i64, scratch_operands = 0 : i64, tpu.core_type = #tpu.core_type<tc>, window_params = [{transform_indices = @transform_0, window_bounds = array<i64: 1, 3, 256>}, {pipeline_mode = #tpu.pipeline_mode<synchronous>, transform_indices = @transform_1, window_bounds = array<i64: 16, 3>}, {pipeline_mode = #tpu.pipeline_mode<synchronous>, transform_indices = @transform_2, window_bounds = array<i64: 16, 1>}, {transform_indices = @transform_3, window_bounds = array<i64: 1, 16, 256>}]} {
    %c0 = arith.constant 0 : index
    %c0_0 = arith.constant 0 : index
    %0 = vector.load %arg3[%c0, %c0_0] : memref<16x3xf32, #tpu.memory_space<vmem>>, vector<16x3xf32>
    %c0_1 = arith.constant 0 : index
    %c0_2 = arith.constant 0 : index
    %c0_3 = arith.constant 0 : index
    %1 = vector.load %arg2[%c0_1, %c0_2, %c0_3] : memref<1x3x256xf32, #tpu.memory_space<vmem>>, vector<1x3x256xf32>
    %2 = vector.shape_cast %1 : vector<1x3x256xf32> to vector<3x256xf32>
    %cst = arith.constant dense<0.000000e+00> : vector<16x256xf32>
    %3 = tpu.matmul %0, %2, %cst {dimension_numbers = #tpu.dot_dimension_numbers<[1], [0], [0], [1], [0, 0, 1, 1], [], []>} : vector<16x3xf32>, vector<3x256xf32>, vector<16x256xf32> -> vector<16x256xf32>
    %c0_4 = arith.constant 0 : index
    %c0_5 = arith.constant 0 : index
    %4 = vector.load %arg4[%c0_4, %c0_5] : memref<16x1xf32, #tpu.memory_space<vmem>>, vector<16x1xf32>
    %5 = vector.broadcast %4 : vector<16x1xf32> to vector<16x256xf32>
    %6 = arith.addf %3, %5 : vector<16x256xf32>
    %cst_6 = arith.constant 0.000000e+00 : f32
    %7 = vector.broadcast %cst_6 : f32 to vector<16x256xf32>
    %8 = arith.maximumf %6, %7 : vector<16x256xf32>
    %c0_7 = arith.constant 0 : index
    %c0_8 = arith.constant 0 : index
    %c0_9 = arith.constant 0 : index
    %9 = vector.load %arg5[%c0_7, %c0_8, %c0_9] : memref<1x16x256xf32, #tpu.memory_space<vmem>>, vector<1x16x256xf32>
    %10 = vector.shape_cast %9 : vector<1x16x256xf32> to vector<16x256xf32>
    %11 = vector.shape_cast %8 : vector<16x256xf32> to vector<1x16x256xf32>
    tpu.vector_store %arg5[%c0_7, %c0_8, %c0_9], %11 {strides = array<i32>} : memref<1x16x256xf32, #tpu.memory_space<vmem>>, vector<1x16x256xf32>,
    return
  }
  func.func @transform_0(%arg0: i32, %arg1: i32) -> (i32, i32, i32) {
    %c0_i32 = arith.constant 0 : i32
    %c0_i32_0 = arith.constant 0 : i32
    return %arg0, %c0_i32, %arg1 : i32, i32, i32
  }
  func.func @transform_1(%arg0: i32, %arg1: i32) -> (i32, i32) {
    %c0_i32 = arith.constant 0 : i32
    %c0_i32_0 = arith.constant 0 : i32
    %c0_i32_1 = arith.constant 0 : i32
    return %c0_i32, %c0_i32_0 : i32, i32
  }
  func.func @transform_2(%arg0: i32, %arg1: i32) -> (i32, i32) {
    %c0_i32 = arith.constant 0 : i32
    %c0_i32_0 = arith.constant 0 : i32
    %c0_i32_1 = arith.constant 0 : i32
    return %c0_i32, %c0_i32_0 : i32, i32
  }
  func.func @transform_3(%arg0: i32, %arg1: i32) -> (i32, i32, i32) {
    %c0_i32 = arith.constant 0 : i32
    %c0_i32_0 = arith.constant 0 : i32
    return %arg0, %c0_i32, %arg1 : i32, i32, i32
  }
}

module attributes {stable_mosaic.version = 11 : i64} {
  func.func @_conv3x3_kernel(%arg0: i32, %arg1: memref<1x144x256xf32, #tpu.memory_space<vmem>>, %arg2: memref<32x144xf32, #tpu.memory_space<vmem>>, %arg3: memref<32x1xf32, #tpu.memory_space<vmem>>, %arg4: memref<32x1xf32, #tpu.memory_space<vmem>>, %arg5: memref<32x1xf32, #tpu.memory_space<vmem>>, %arg6: memref<1x32x256xf32, #tpu.memory_space<vmem>>) attributes {dimension_semantics = [#tpu.dimension_semantics<parallel>], iteration_bounds = array<i64: 2>, scalar_prefetch = 0 : i64, scratch_operands = 0 : i64, tpu.core_type = #tpu.core_type<tc>, window_params = [{transform_indices = @transform_0, window_bounds = array<i64: 1, 144, 256>}, {pipeline_mode = #tpu.pipeline_mode<synchronous>, transform_indices = @transform_1, window_bounds = array<i64: 32, 144>}, {pipeline_mode = #tpu.pipeline_mode<synchronous>, transform_indices = @transform_2, window_bounds = array<i64: 32, 1>}, {pipeline_mode = #tpu.pipeline_mode<synchronous>, transform_indices = @transform_3, window_bounds = array<i64: 32, 1>}, {pipeline_mode = #tpu.pipeline_mode<synchronous>, transform_indices = @transform_4, window_bounds = array<i64: 32, 1>}, {transform_indices = @transform_5, window_bounds = array<i64: 1, 32, 256>}]} {
    %c0 = arith.constant 0 : index
    %c0_0 = arith.constant 0 : index
    %0 = vector.load %arg2[%c0, %c0_0] : memref<32x144xf32, #tpu.memory_space<vmem>>, vector<32x144xf32>
    %c0_1 = arith.constant 0 : index
    %c0_2 = arith.constant 0 : index
    %c0_3 = arith.constant 0 : index
    %1 = vector.load %arg1[%c0_1, %c0_2, %c0_3] : memref<1x144x256xf32, #tpu.memory_space<vmem>>, vector<1x144x256xf32>
    %2 = vector.shape_cast %1 : vector<1x144x256xf32> to vector<144x256xf32>
    %cst = arith.constant dense<0.000000e+00> : vector<32x256xf32>
    %3 = tpu.matmul %0, %2, %cst {dimension_numbers = #tpu.dot_dimension_numbers<[1], [0], [0], [1], [0, 0, 1, 1], [], []>} : vector<32x144xf32>, vector<144x256xf32>, vector<32x256xf32> -> vector<32x256xf32>
    %cst_4 = arith.constant dense<0.000000e+00> : vector<32xf32>
    %4 = vector.multi_reduction <add>, %3, %cst_4 [1] : vector<32x256xf32> to vector<32xf32>
    %5 = vector.shape_cast %4 : vector<32xf32> to vector<32x1xf32>
    %cst_5 = arith.constant 3.906250e-03 : f32
    %6 = vector.broadcast %cst_5 : f32 to vector<32x1xf32>
    %7 = arith.mulf %5, %6 : vector<32x1xf32>
    %8 = arith.mulf %3, %3 : vector<32x256xf32>
    %cst_6 = arith.constant dense<0.000000e+00> : vector<32xf32>
    %9 = vector.multi_reduction <add>, %8, %cst_6 [1] : vector<32x256xf32> to vector<32xf32>
    %10 = vector.shape_cast %9 : vector<32xf32> to vector<32x1xf32>
    %cst_7 = arith.constant 3.906250e-03 : f32
    %11 = vector.broadcast %cst_7 : f32 to vector<32x1xf32>
    %12 = arith.mulf %10, %11 : vector<32x1xf32>
    %13 = arith.mulf %7, %7 : vector<32x1xf32>
    %14 = arith.subf %12, %13 : vector<32x1xf32>
    %15 = vector.broadcast %7 : vector<32x1xf32> to vector<32x256xf32>
    %16 = arith.subf %3, %15 : vector<32x256xf32>
    %cst_8 = arith.constant 9.99999974E-6 : f32
    %17 = vector.broadcast %cst_8 : f32 to vector<32x1xf32>
    %18 = arith.addf %14, %17 : vector<32x1xf32>
    %19 = math.rsqrt %18 : vector<32x1xf32>
    %20 = vector.broadcast %19 : vector<32x1xf32> to vector<32x256xf32>
    %21 = arith.mulf %16, %20 : vector<32x256xf32>
    %c0_9 = arith.constant 0 : index
    %c0_10 = arith.constant 0 : index
    %22 = vector.load %arg4[%c0_9, %c0_10] : memref<32x1xf32, #tpu.memory_space<vmem>>, vector<32x1xf32>
    %23 = vector.broadcast %22 : vector<32x1xf32> to vector<32x256xf32>
    %24 = arith.mulf %21, %23 : vector<32x256xf32>
    %c0_11 = arith.constant 0 : index
    %c0_12 = arith.constant 0 : index
    %25 = vector.load %arg5[%c0_11, %c0_12] : memref<32x1xf32, #tpu.memory_space<vmem>>, vector<32x1xf32>
    %26 = vector.broadcast %25 : vector<32x1xf32> to vector<32x256xf32>
    %27 = arith.addf %24, %26 : vector<32x256xf32>
    %cst_13 = arith.constant 0.000000e+00 : f32
    %28 = vector.broadcast %cst_13 : f32 to vector<32x256xf32>
    %29 = arith.maximumf %27, %28 : vector<32x256xf32>
    %c0_14 = arith.constant 0 : index
    %c0_15 = arith.constant 0 : index
    %c0_16 = arith.constant 0 : index
    %30 = vector.load %arg6[%c0_14, %c0_15, %c0_16] : memref<1x32x256xf32, #tpu.memory_space<vmem>>, vector<1x32x256xf32>
    %31 = vector.shape_cast %30 : vector<1x32x256xf32> to vector<32x256xf32>
    %32 = vector.shape_cast %29 : vector<32x256xf32> to vector<1x32x256xf32>
    tpu.vector_store %arg6[%c0_14, %c0_15, %c0_16], %32 {strides = array<i32>} : memref<1x32x256xf32, #tpu.memory_space<vmem>>, vector<1x32x256xf32>,
    return
  }
  func.func @transform_0(%arg0: i32) -> (i32, i32, i32) {
    %c0_i32 = arith.constant 0 : i32
    %c0_i32_0 = arith.constant 0 : i32
    %c0_i32_1 = arith.constant 0 : i32
    return %arg0, %c0_i32, %c0_i32_0 : i32, i32, i32
  }
  func.func @transform_1(%arg0: i32) -> (i32, i32) {
    %c0_i32 = arith.constant 0 : i32
    %c0_i32_0 = arith.constant 0 : i32
    %c0_i32_1 = arith.constant 0 : i32
    return %c0_i32, %c0_i32_0 : i32, i32
  }
  func.func @transform_2(%arg0: i32) -> (i32, i32) {
    %c0_i32 = arith.constant 0 : i32
    %c0_i32_0 = arith.constant 0 : i32
    %c0_i32_1 = arith.constant 0 : i32
    return %c0_i32, %c0_i32_0 : i32, i32
  }
  func.func @transform_3(%arg0: i32) -> (i32, i32) {
    %c0_i32 = arith.constant 0 : i32
    %c0_i32_0 = arith.constant 0 : i32
    %c0_i32_1 = arith.constant 0 : i32
    return %c0_i32, %c0_i32_0 : i32, i32
  }
  func.func @transform_4(%arg0: i32) -> (i32, i32) {
    %c0_i32 = arith.constant 0 : i32
    %c0_i32_0 = arith.constant 0 : i32
    %c0_i32_1 = arith.constant 0 : i32
    return %c0_i32, %c0_i32_0 : i32, i32
  }
  func.func @transform_5(%arg0: i32) -> (i32, i32, i32) {
    %c0_i32 = arith.constant 0 : i32
    %c0_i32_0 = arith.constant 0 : i32
    %c0_i32_1 = arith.constant 0 : i32
    return %arg0, %c0_i32, %c0_i32_0 : i32, i32, i32
  }
}

module attributes {stable_mosaic.version = 11 : i64} {
  func.func @_conv1x1_kernel(%arg0: i32, %arg1: i32, %arg2: memref<1x32x1024xf32, #tpu.memory_space<vmem>>, %arg3: memref<8x32xf32, #tpu.memory_space<vmem>>, %arg4: memref<8x1xf32, #tpu.memory_space<vmem>>, %arg5: memref<1x8x1024xf32, #tpu.memory_space<vmem>>) attributes {dimension_semantics = [#tpu.dimension_semantics<parallel>, #tpu.dimension_semantics<parallel>], iteration_bounds = array<i64: 2, 1>, scalar_prefetch = 0 : i64, scratch_operands = 0 : i64, tpu.core_type = #tpu.core_type<tc>, window_params = [{transform_indices = @transform_0, window_bounds = array<i64: 1, 32, 1024>}, {pipeline_mode = #tpu.pipeline_mode<synchronous>, transform_indices = @transform_1, window_bounds = array<i64: 8, 32>}, {pipeline_mode = #tpu.pipeline_mode<synchronous>, transform_indices = @transform_2, window_bounds = array<i64: 8, 1>}, {transform_indices = @transform_3, window_bounds = array<i64: 1, 8, 1024>}]} {
    %c0 = arith.constant 0 : index
    %c0_0 = arith.constant 0 : index
    %0 = vector.load %arg3[%c0, %c0_0] : memref<8x32xf32, #tpu.memory_space<vmem>>, vector<8x32xf32>
    %c0_1 = arith.constant 0 : index
    %c0_2 = arith.constant 0 : index
    %c0_3 = arith.constant 0 : index
    %1 = vector.load %arg2[%c0_1, %c0_2, %c0_3] : memref<1x32x1024xf32, #tpu.memory_space<vmem>>, vector<1x32x1024xf32>
    %2 = vector.shape_cast %1 : vector<1x32x1024xf32> to vector<32x1024xf32>
    %cst = arith.constant dense<0.000000e+00> : vector<8x1024xf32>
    %3 = tpu.matmul %0, %2, %cst {dimension_numbers = #tpu.dot_dimension_numbers<[1], [0], [0], [1], [0, 0, 1, 1], [], []>} : vector<8x32xf32>, vector<32x1024xf32>, vector<8x1024xf32> -> vector<8x1024xf32>
    %c0_4 = arith.constant 0 : index
    %c0_5 = arith.constant 0 : index
    %4 = vector.load %arg4[%c0_4, %c0_5] : memref<8x1xf32, #tpu.memory_space<vmem>>, vector<8x1xf32>
    %5 = vector.broadcast %4 : vector<8x1xf32> to vector<8x1024xf32>
    %6 = arith.addf %3, %5 : vector<8x1024xf32>
    %c0_6 = arith.constant 0 : index
    %c0_7 = arith.constant 0 : index
    %c0_8 = arith.constant 0 : index
    %7 = vector.load %arg5[%c0_6, %c0_7, %c0_8] : memref<1x8x1024xf32, #tpu.memory_space<vmem>>, vector<1x8x1024xf32>
    %8 = vector.shape_cast %7 : vector<1x8x1024xf32> to vector<8x1024xf32>
    %9 = vector.shape_cast %6 : vector<8x1024xf32> to vector<1x8x1024xf32>
    tpu.vector_store %arg5[%c0_6, %c0_7, %c0_8], %9 {strides = array<i32>} : memref<1x8x1024xf32, #tpu.memory_space<vmem>>, vector<1x8x1024xf32>,
    return
  }
  func.func @transform_0(%arg0: i32, %arg1: i32) -> (i32, i32, i32) {
    %c0_i32 = arith.constant 0 : i32
    %c0_i32_0 = arith.constant 0 : i32
    return %arg0, %c0_i32, %arg1 : i32, i32, i32
  }
  func.func @transform_1(%arg0: i32, %arg1: i32) -> (i32, i32) {
    %c0_i32 = arith.constant 0 : i32
    %c0_i32_0 = arith.constant 0 : i32
    %c0_i32_1 = arith.constant 0 : i32
    return %c0_i32, %c0_i32_0 : i32, i32
  }
  func.func @transform_2(%arg0: i32, %arg1: i32) -> (i32, i32) {
    %c0_i32 = arith.constant 0 : i32
    %c0_i32_0 = arith.constant 0 : i32
    %c0_i32_1 = arith.constant 0 : i32
    return %c0_i32, %c0_i32_0 : i32, i32
  }
  func.func @transform_3(%arg0: i32, %arg1: i32) -> (i32, i32, i32) {
    %c0_i32 = arith.constant 0 : i32
    %c0_i32_0 = arith.constant 0 : i32
    return %arg0, %c0_i32, %arg1 : i32, i32, i32
  }
}

module attributes {stable_mosaic.version = 11 : i64} {
  func.func @_rows_matmul_kernel(%arg0: i32, %arg1: memref<256x32xf32, #tpu.memory_space<vmem>>, %arg2: memref<32x128xf32, #tpu.memory_space<vmem>>, %arg3: memref<256x128xf32, #tpu.memory_space<vmem>>) attributes {dimension_semantics = [#tpu.dimension_semantics<parallel>], iteration_bounds = array<i64: 2>, scalar_prefetch = 0 : i64, scratch_operands = 0 : i64, tpu.core_type = #tpu.core_type<tc>, window_params = [{transform_indices = @transform_0, window_bounds = array<i64: 256, 32>}, {pipeline_mode = #tpu.pipeline_mode<synchronous>, transform_indices = @transform_1, window_bounds = array<i64: 32, 128>}, {transform_indices = @transform_2, window_bounds = array<i64: 256, 128>}]} {
    %c0 = arith.constant 0 : index
    %c0_0 = arith.constant 0 : index
    %0 = vector.load %arg1[%c0, %c0_0] : memref<256x32xf32, #tpu.memory_space<vmem>>, vector<256x32xf32>
    %c0_1 = arith.constant 0 : index
    %c0_2 = arith.constant 0 : index
    %1 = vector.load %arg2[%c0_1, %c0_2] : memref<32x128xf32, #tpu.memory_space<vmem>>, vector<32x128xf32>
    %cst = arith.constant dense<0.000000e+00> : vector<256x128xf32>
    %2 = tpu.matmul %0, %1, %cst {dimension_numbers = #tpu.dot_dimension_numbers<[1], [0], [0], [1], [0, 0, 1, 1], [], []>} : vector<256x32xf32>, vector<32x128xf32>, vector<256x128xf32> -> vector<256x128xf32>
    %c0_3 = arith.constant 0 : index
    %c0_4 = arith.constant 0 : index
    %3 = vector.load %arg3[%c0_3, %c0_4] : memref<256x128xf32, #tpu.memory_space<vmem>>, vector<256x128xf32>
    tpu.vector_store %arg3[%c0_3, %c0_4], %2 {strides = array<i32>} : memref<256x128xf32, #tpu.memory_space<vmem>>, vector<256x128xf32>,
    return
  }
  func.func @transform_0(%arg0: i32) -> (i32, i32) {
    %c0_i32 = arith.constant 0 : i32
    %c0_i32_0 = arith.constant 0 : i32
    return %arg0, %c0_i32 : i32, i32
  }
  func.func @transform_1(%arg0: i32) -> (i32, i32) {
    %c0_i32 = arith.constant 0 : i32
    %c0_i32_0 = arith.constant 0 : i32
    %c0_i32_1 = arith.constant 0 : i32
    return %c0_i32, %c0_i32_0 : i32, i32
  }
  func.func @transform_2(%arg0: i32) -> (i32, i32) {
    %c0_i32 = arith.constant 0 : i32
    %c0_i32_0 = arith.constant 0 : i32
    return %arg0, %c0_i32 : i32, i32
  }
}

module attributes {stable_mosaic.version = 11 : i64} {
  func.func @_rows_matmul_kernel(%arg0: i32, %arg1: memref<1024x32xf32, #tpu.memory_space<vmem>>, %arg2: memref<32x128xf32, #tpu.memory_space<vmem>>, %arg3: memref<1024x128xf32, #tpu.memory_space<vmem>>) attributes {dimension_semantics = [#tpu.dimension_semantics<parallel>], iteration_bounds = array<i64: 2>, scalar_prefetch = 0 : i64, scratch_operands = 0 : i64, tpu.core_type = #tpu.core_type<tc>, window_params = [{transform_indices = @transform_0, window_bounds = array<i64: 1024, 32>}, {pipeline_mode = #tpu.pipeline_mode<synchronous>, transform_indices = @transform_1, window_bounds = array<i64: 32, 128>}, {transform_indices = @transform_2, window_bounds = array<i64: 1024, 128>}]} {
    %c0 = arith.constant 0 : index
    %c0_0 = arith.constant 0 : index
    %0 = vector.load %arg1[%c0, %c0_0] : memref<1024x32xf32, #tpu.memory_space<vmem>>, vector<1024x32xf32>
    %c0_1 = arith.constant 0 : index
    %c0_2 = arith.constant 0 : index
    %1 = vector.load %arg2[%c0_1, %c0_2] : memref<32x128xf32, #tpu.memory_space<vmem>>, vector<32x128xf32>
    %cst = arith.constant dense<0.000000e+00> : vector<1024x128xf32>
    %2 = tpu.matmul %0, %1, %cst {dimension_numbers = #tpu.dot_dimension_numbers<[1], [0], [0], [1], [0, 0, 1, 1], [], []>} : vector<1024x32xf32>, vector<32x128xf32>, vector<1024x128xf32> -> vector<1024x128xf32>
    %c0_3 = arith.constant 0 : index
    %c0_4 = arith.constant 0 : index
    %3 = vector.load %arg3[%c0_3, %c0_4] : memref<1024x128xf32, #tpu.memory_space<vmem>>, vector<1024x128xf32>
    tpu.vector_store %arg3[%c0_3, %c0_4], %2 {strides = array<i32>} : memref<1024x128xf32, #tpu.memory_space<vmem>>, vector<1024x128xf32>,
    return
  }
  func.func @transform_0(%arg0: i32) -> (i32, i32) {
    %c0_i32 = arith.constant 0 : i32
    %c0_i32_0 = arith.constant 0 : i32
    return %arg0, %c0_i32 : i32, i32
  }
  func.func @transform_1(%arg0: i32) -> (i32, i32) {
    %c0_i32 = arith.constant 0 : i32
    %c0_i32_0 = arith.constant 0 : i32
    %c0_i32_1 = arith.constant 0 : i32
    return %c0_i32, %c0_i32_0 : i32, i32
  }
  func.func @transform_2(%arg0: i32) -> (i32, i32) {
    %c0_i32 = arith.constant 0 : i32
    %c0_i32_0 = arith.constant 0 : i32
    return %arg0, %c0_i32 : i32, i32
  }
}

module attributes {stable_mosaic.version = 11 : i64} {
  func.func @_softmax_kernel(%arg0: i32, %arg1: i32, %arg2: memref<1x8x2048xf32, #tpu.memory_space<vmem>>, %arg3: memref<1x8x2048xf32, #tpu.memory_space<vmem>>) attributes {dimension_semantics = [#tpu.dimension_semantics<parallel>, #tpu.dimension_semantics<parallel>], iteration_bounds = array<i64: 2, 8>, scalar_prefetch = 0 : i64, scratch_operands = 0 : i64, tpu.core_type = #tpu.core_type<tc>, window_params = [{transform_indices = @transform_0, window_bounds = array<i64: 1, 8, 2048>}, {transform_indices = @transform_1, window_bounds = array<i64: 1, 8, 2048>}]} {
    %c0 = arith.constant 0 : index
    %c0_0 = arith.constant 0 : index
    %c0_1 = arith.constant 0 : index
    %0 = vector.load %arg2[%c0, %c0_0, %c0_1] : memref<1x8x2048xf32, #tpu.memory_space<vmem>>, vector<1x8x2048xf32>
    %1 = vector.shape_cast %0 : vector<1x8x2048xf32> to vector<8x2048xf32>
    %cst = arith.constant dense<0xFF800000> : vector<2048xf32>
    %2 = vector.multi_reduction <maximumf>, %1, %cst [0] : vector<8x2048xf32> to vector<2048xf32>
    %3 = vector.shape_cast %2 : vector<2048xf32> to vector<1x2048xf32>
    %4 = vector.broadcast %3 : vector<1x2048xf32> to vector<8x2048xf32>
    %5 = arith.subf %1, %4 : vector<8x2048xf32>
    %6 = math.exp %5 : vector<8x2048xf32>
    %cst_2 = arith.constant dense<0.000000e+00> : vector<2048xf32>
    %7 = vector.multi_reduction <add>, %6, %cst_2 [0] : vector<8x2048xf32> to vector<2048xf32>
    %8 = vector.shape_cast %7 : vector<2048xf32> to vector<1x2048xf32>
    %9 = tpu.reciprocal %8 {approx = true} : vector<1x2048xf32> -> vector<1x2048xf32>
    %10 = vector.broadcast %9 : vector<1x2048xf32> to vector<8x2048xf32>
    %11 = arith.mulf %6, %10 : vector<8x2048xf32>
    %c0_3 = arith.constant 0 : index
    %c0_4 = arith.constant 0 : index
    %c0_5 = arith.constant 0 : index
    %12 = vector.load %arg3[%c0_3, %c0_4, %c0_5] : memref<1x8x2048xf32, #tpu.memory_space<vmem>>, vector<1x8x2048xf32>
    %13 = vector.shape_cast %12 : vector<1x8x2048xf32> to vector<8x2048xf32>
    %14 = vector.shape_cast %11 : vector<8x2048xf32> to vector<1x8x2048xf32>
    tpu.vector_store %arg3[%c0_3, %c0_4, %c0_5], %14 {strides = array<i32>} : memref<1x8x2048xf32, #tpu.memory_space<vmem>>, vector<1x8x2048xf32>,
    return
  }
  func.func @transform_0(%arg0: i32, %arg1: i32) -> (i32, i32, i32) {
    %c0_i32 = arith.constant 0 : i32
    %c0_i32_0 = arith.constant 0 : i32
    return %arg0, %c0_i32, %arg1 : i32, i32, i32
  }
  func.func @transform_1(%arg0: i32, %arg1: i32) -> (i32, i32, i32) {
    %c0_i32 = arith.constant 0 : i32
    %c0_i32_0 = arith.constant 0 : i32
    return %arg0, %c0_i32, %arg1 : i32, i32, i32
  }
}

module attributes {stable_mosaic.version = 11 : i64} {
  func.func @_conv3x3_kernel(%arg0: i32, %arg1: memref<1x72x225xf32, #tpu.memory_space<vmem>>, %arg2: memref<8x72xf32, #tpu.memory_space<vmem>>, %arg3: memref<8x1xf32, #tpu.memory_space<vmem>>, %arg4: memref<8x1xf32, #tpu.memory_space<vmem>>, %arg5: memref<8x1xf32, #tpu.memory_space<vmem>>, %arg6: memref<1x8x225xf32, #tpu.memory_space<vmem>>) attributes {dimension_semantics = [#tpu.dimension_semantics<parallel>], iteration_bounds = array<i64: 2>, scalar_prefetch = 0 : i64, scratch_operands = 0 : i64, tpu.core_type = #tpu.core_type<tc>, window_params = [{transform_indices = @transform_0, window_bounds = array<i64: 1, 72, 225>}, {pipeline_mode = #tpu.pipeline_mode<synchronous>, transform_indices = @transform_1, window_bounds = array<i64: 8, 72>}, {pipeline_mode = #tpu.pipeline_mode<synchronous>, transform_indices = @transform_2, window_bounds = array<i64: 8, 1>}, {pipeline_mode = #tpu.pipeline_mode<synchronous>, transform_indices = @transform_3, window_bounds = array<i64: 8, 1>}, {pipeline_mode = #tpu.pipeline_mode<synchronous>, transform_indices = @transform_4, window_bounds = array<i64: 8, 1>}, {transform_indices = @transform_5, window_bounds = array<i64: 1, 8, 225>}]} {
    %c0 = arith.constant 0 : index
    %c0_0 = arith.constant 0 : index
    %0 = vector.load %arg2[%c0, %c0_0] : memref<8x72xf32, #tpu.memory_space<vmem>>, vector<8x72xf32>
    %c0_1 = arith.constant 0 : index
    %c0_2 = arith.constant 0 : index
    %c0_3 = arith.constant 0 : index
    %1 = vector.load %arg1[%c0_1, %c0_2, %c0_3] : memref<1x72x225xf32, #tpu.memory_space<vmem>>, vector<1x72x225xf32>
    %2 = vector.shape_cast %1 : vector<1x72x225xf32> to vector<72x225xf32>
    %cst = arith.constant dense<0.000000e+00> : vector<8x225xf32>
    %3 = tpu.matmul %0, %2, %cst {dimension_numbers = #tpu.dot_dimension_numbers<[1], [0], [0], [1], [0, 0, 1, 1], [], []>} : vector<8x72xf32>, vector<72x225xf32>, vector<8x225xf32> -> vector<8x225xf32>
    %c0_4 = arith.constant 0 : index
    %c0_5 = arith.constant 0 : index
    %4 = vector.load %arg3[%c0_4, %c0_5] : memref<8x1xf32, #tpu.memory_space<vmem>>, vector<8x1xf32>
    %5 = vector.broadcast %4 : vector<8x1xf32> to vector<8x225xf32>
    %6 = arith.addf %3, %5 : vector<8x225xf32>
    %cst_6 = arith.constant 0.000000e+00 : f32
    %7 = vector.broadcast %cst_6 : f32 to vector<8x225xf32>
    %8 = arith.maximumf %6, %7 : vector<8x225xf32>
    %c0_7 = arith.constant 0 : index
    %c0_8 = arith.constant 0 : index
    %c0_9 = arith.constant 0 : index
    %9 = vector.load %arg6[%c0_7, %c0_8, %c0_9] : memref<1x8x225xf32, #tpu.memory_space<vmem>>, vector<1x8x225xf32>
    %10 = vector.shape_cast %9 : vector<1x8x225xf32> to vector<8x225xf32>
    %11 = vector.shape_cast %8 : vector<8x225xf32> to vector<1x8x225xf32>
    tpu.vector_store %arg6[%c0_7, %c0_8, %c0_9], %11 {strides = array<i32>} : memref<1x8x225xf32, #tpu.memory_space<vmem>>, vector<1x8x225xf32>,
    return
  }
  func.func @transform_0(%arg0: i32) -> (i32, i32, i32) {
    %c0_i32 = arith.constant 0 : i32
    %c0_i32_0 = arith.constant 0 : i32
    %c0_i32_1 = arith.constant 0 : i32
    return %arg0, %c0_i32, %c0_i32_0 : i32, i32, i32
  }
  func.func @transform_1(%arg0: i32) -> (i32, i32) {
    %c0_i32 = arith.constant 0 : i32
    %c0_i32_0 = arith.constant 0 : i32
    %c0_i32_1 = arith.constant 0 : i32
    return %c0_i32, %c0_i32_0 : i32, i32
  }
  func.func @transform_2(%arg0: i32) -> (i32, i32) {
    %c0_i32 = arith.constant 0 : i32
    %c0_i32_0 = arith.constant 0 : i32
    %c0_i32_1 = arith.constant 0 : i32
    return %c0_i32, %c0_i32_0 : i32, i32
  }
  func.func @transform_3(%arg0: i32) -> (i32, i32) {
    %c0_i32 = arith.constant 0 : i32
    %c0_i32_0 = arith.constant 0 : i32
    %c0_i32_1 = arith.constant 0 : i32
    return %c0_i32, %c0_i32_0 : i32, i32
  }
  func.func @transform_4(%arg0: i32) -> (i32, i32) {
    %c0_i32 = arith.constant 0 : i32
    %c0_i32_0 = arith.constant 0 : i32
    %c0_i32_1 = arith.constant 0 : i32
    return %c0_i32, %c0_i32_0 : i32, i32
  }
  func.func @transform_5(%arg0: i32) -> (i32, i32, i32) {
    %c0_i32 = arith.constant 0 : i32
    %c0_i32_0 = arith.constant 0 : i32
    %c0_i32_1 = arith.constant 0 : i32
    return %arg0, %c0_i32, %c0_i32_0 : i32, i32, i32
  }
}

module attributes {stable_mosaic.version = 11 : i64} {
  func.func @_conv3x3_kernel(%arg0: i32, %arg1: memref<1x72x49xf32, #tpu.memory_space<vmem>>, %arg2: memref<8x72xf32, #tpu.memory_space<vmem>>, %arg3: memref<8x1xf32, #tpu.memory_space<vmem>>, %arg4: memref<8x1xf32, #tpu.memory_space<vmem>>, %arg5: memref<8x1xf32, #tpu.memory_space<vmem>>, %arg6: memref<1x8x49xf32, #tpu.memory_space<vmem>>) attributes {dimension_semantics = [#tpu.dimension_semantics<parallel>], iteration_bounds = array<i64: 2>, scalar_prefetch = 0 : i64, scratch_operands = 0 : i64, tpu.core_type = #tpu.core_type<tc>, window_params = [{transform_indices = @transform_0, window_bounds = array<i64: 1, 72, 49>}, {pipeline_mode = #tpu.pipeline_mode<synchronous>, transform_indices = @transform_1, window_bounds = array<i64: 8, 72>}, {pipeline_mode = #tpu.pipeline_mode<synchronous>, transform_indices = @transform_2, window_bounds = array<i64: 8, 1>}, {pipeline_mode = #tpu.pipeline_mode<synchronous>, transform_indices = @transform_3, window_bounds = array<i64: 8, 1>}, {pipeline_mode = #tpu.pipeline_mode<synchronous>, transform_indices = @transform_4, window_bounds = array<i64: 8, 1>}, {transform_indices = @transform_5, window_bounds = array<i64: 1, 8, 49>}]} {
    %c0 = arith.constant 0 : index
    %c0_0 = arith.constant 0 : index
    %0 = vector.load %arg2[%c0, %c0_0] : memref<8x72xf32, #tpu.memory_space<vmem>>, vector<8x72xf32>
    %c0_1 = arith.constant 0 : index
    %c0_2 = arith.constant 0 : index
    %c0_3 = arith.constant 0 : index
    %1 = vector.load %arg1[%c0_1, %c0_2, %c0_3] : memref<1x72x49xf32, #tpu.memory_space<vmem>>, vector<1x72x49xf32>
    %2 = vector.shape_cast %1 : vector<1x72x49xf32> to vector<72x49xf32>
    %cst = arith.constant dense<0.000000e+00> : vector<8x49xf32>
    %3 = tpu.matmul %0, %2, %cst {dimension_numbers = #tpu.dot_dimension_numbers<[1], [0], [0], [1], [0, 0, 1, 1], [], []>} : vector<8x72xf32>, vector<72x49xf32>, vector<8x49xf32> -> vector<8x49xf32>
    %c0_4 = arith.constant 0 : index
    %c0_5 = arith.constant 0 : index
    %4 = vector.load %arg3[%c0_4, %c0_5] : memref<8x1xf32, #tpu.memory_space<vmem>>, vector<8x1xf32>
    %5 = vector.broadcast %4 : vector<8x1xf32> to vector<8x49xf32>
    %6 = arith.addf %3, %5 : vector<8x49xf32>
    %cst_6 = arith.constant 0.000000e+00 : f32
    %7 = vector.broadcast %cst_6 : f32 to vector<8x49xf32>
    %8 = arith.maximumf %6, %7 : vector<8x49xf32>
    %c0_7 = arith.constant 0 : index
    %c0_8 = arith.constant 0 : index
    %c0_9 = arith.constant 0 : index
    %9 = vector.load %arg6[%c0_7, %c0_8, %c0_9] : memref<1x8x49xf32, #tpu.memory_space<vmem>>, vector<1x8x49xf32>
    %10 = vector.shape_cast %9 : vector<1x8x49xf32> to vector<8x49xf32>
    %11 = vector.shape_cast %8 : vector<8x49xf32> to vector<1x8x49xf32>
    tpu.vector_store %arg6[%c0_7, %c0_8, %c0_9], %11 {strides = array<i32>} : memref<1x8x49xf32, #tpu.memory_space<vmem>>, vector<1x8x49xf32>,
    return
  }
  func.func @transform_0(%arg0: i32) -> (i32, i32, i32) {
    %c0_i32 = arith.constant 0 : i32
    %c0_i32_0 = arith.constant 0 : i32
    %c0_i32_1 = arith.constant 0 : i32
    return %arg0, %c0_i32, %c0_i32_0 : i32, i32, i32
  }
  func.func @transform_1(%arg0: i32) -> (i32, i32) {
    %c0_i32 = arith.constant 0 : i32
    %c0_i32_0 = arith.constant 0 : i32
    %c0_i32_1 = arith.constant 0 : i32
    return %c0_i32, %c0_i32_0 : i32, i32
  }
  func.func @transform_2(%arg0: i32) -> (i32, i32) {
    %c0_i32 = arith.constant 0 : i32
    %c0_i32_0 = arith.constant 0 : i32
    %c0_i32_1 = arith.constant 0 : i32
    return %c0_i32, %c0_i32_0 : i32, i32
  }
  func.func @transform_3(%arg0: i32) -> (i32, i32) {
    %c0_i32 = arith.constant 0 : i32
    %c0_i32_0 = arith.constant 0 : i32
    %c0_i32_1 = arith.constant 0 : i32
    return %c0_i32, %c0_i32_0 : i32, i32
  }
  func.func @transform_4(%arg0: i32) -> (i32, i32) {
    %c0_i32 = arith.constant 0 : i32
    %c0_i32_0 = arith.constant 0 : i32
    %c0_i32_1 = arith.constant 0 : i32
    return %c0_i32, %c0_i32_0 : i32, i32
  }
  func.func @transform_5(%arg0: i32) -> (i32, i32, i32) {
    %c0_i32 = arith.constant 0 : i32
    %c0_i32_0 = arith.constant 0 : i32
    %c0_i32_1 = arith.constant 0 : i32
    return %arg0, %c0_i32, %c0_i32_0 : i32, i32, i32
  }
}

module attributes {stable_mosaic.version = 11 : i64} {
  func.func @_conv3x3_kernel(%arg0: i32, %arg1: memref<1x72x1xf32, #tpu.memory_space<vmem>>, %arg2: memref<8x72xf32, #tpu.memory_space<vmem>>, %arg3: memref<8x1xf32, #tpu.memory_space<vmem>>, %arg4: memref<8x1xf32, #tpu.memory_space<vmem>>, %arg5: memref<8x1xf32, #tpu.memory_space<vmem>>, %arg6: memref<1x8x1xf32, #tpu.memory_space<vmem>>) attributes {dimension_semantics = [#tpu.dimension_semantics<parallel>], iteration_bounds = array<i64: 2>, scalar_prefetch = 0 : i64, scratch_operands = 0 : i64, tpu.core_type = #tpu.core_type<tc>, window_params = [{transform_indices = @transform_0, window_bounds = array<i64: 1, 72, 1>}, {pipeline_mode = #tpu.pipeline_mode<synchronous>, transform_indices = @transform_1, window_bounds = array<i64: 8, 72>}, {pipeline_mode = #tpu.pipeline_mode<synchronous>, transform_indices = @transform_2, window_bounds = array<i64: 8, 1>}, {pipeline_mode = #tpu.pipeline_mode<synchronous>, transform_indices = @transform_3, window_bounds = array<i64: 8, 1>}, {pipeline_mode = #tpu.pipeline_mode<synchronous>, transform_indices = @transform_4, window_bounds = array<i64: 8, 1>}, {transform_indices = @transform_5, window_bounds = array<i64: 1, 8, 1>}]} {
    %c0 = arith.constant 0 : index
    %c0_0 = arith.constant 0 : index
    %0 = vector.load %arg2[%c0, %c0_0] : memref<8x72xf32, #tpu.memory_space<vmem>>, vector<8x72xf32>
    %c0_1 = arith.constant 0 : index
    %c0_2 = arith.constant 0 : index
    %c0_3 = arith.constant 0 : index
    %1 = vector.load %arg1[%c0_1, %c0_2, %c0_3] : memref<1x72x1xf32, #tpu.memory_space<vmem>>, vector<1x72x1xf32>
    %2 = vector.shape_cast %1 : vector<1x72x1xf32> to vector<72x1xf32>
    %cst = arith.constant dense<0.000000e+00> : vector<8x1xf32>
    %3 = tpu.matmul %0, %2, %cst {dimension_numbers = #tpu.dot_dimension_numbers<[1], [0], [0], [1], [0, 0, 1, 1], [], []>} : vector<8x72xf32>, vector<72x1xf32>, vector<8x1xf32> -> vector<8x1xf32>
    %c0_4 = arith.constant 0 : index
    %c0_5 = arith.constant 0 : index
    %4 = vector.load %arg3[%c0_4, %c0_5] : memref<8x1xf32, #tpu.memory_space<vmem>>, vector<8x1xf32>
    %5 = arith.addf %3, %4 : vector<8x1xf32>
    %cst_6 = arith.constant 0.000000e+00 : f32
    %6 = vector.broadcast %cst_6 : f32 to vector<8x1xf32>
    %7 = arith.maximumf %5, %6 : vector<8x1xf32>
    %c0_7 = arith.constant 0 : index
    %c0_8 = arith.constant 0 : index
    %c0_9 = arith.constant 0 : index
    %8 = vector.load %arg6[%c0_7, %c0_8, %c0_9] : memref<1x8x1xf32, #tpu.memory_space<vmem>>, vector<1x8x1xf32>
    %9 = vector.shape_cast %8 : vector<1x8x1xf32> to vector<8x1xf32>
    %10 = vector.shape_cast %7 : vector<8x1xf32> to vector<1x8x1xf32>
    tpu.vector_store %arg6[%c0_7, %c0_8, %c0_9], %10 {strides = array<i32>} : memref<1x8x1xf32, #tpu.memory_space<vmem>>, vector<1x8x1xf32>,
    return
  }
  func.func @transform_0(%arg0: i32) -> (i32, i32, i32) {
    %c0_i32 = arith.constant 0 : i32
    %c0_i32_0 = arith.constant 0 : i32
    %c0_i32_1 = arith.constant 0 : i32
    return %arg0, %c0_i32, %c0_i32_0 : i32, i32, i32
  }
  func.func @transform_1(%arg0: i32) -> (i32, i32) {
    %c0_i32 = arith.constant 0 : i32
    %c0_i32_0 = arith.constant 0 : i32
    %c0_i32_1 = arith.constant 0 : i32
    return %c0_i32, %c0_i32_0 : i32, i32
  }
  func.func @transform_2(%arg0: i32) -> (i32, i32) {
    %c0_i32 = arith.constant 0 : i32
    %c0_i32_0 = arith.constant 0 : i32
    %c0_i32_1 = arith.constant 0 : i32
    return %c0_i32, %c0_i32_0 : i32, i32
  }
  func.func @transform_3(%arg0: i32) -> (i32, i32) {
    %c0_i32 = arith.constant 0 : i32
    %c0_i32_0 = arith.constant 0 : i32
    %c0_i32_1 = arith.constant 0 : i32
    return %c0_i32, %c0_i32_0 : i32, i32
  }
  func.func @transform_4(%arg0: i32) -> (i32, i32) {
    %c0_i32 = arith.constant 0 : i32
    %c0_i32_0 = arith.constant 0 : i32
    %c0_i32_1 = arith.constant 0 : i32
    return %c0_i32, %c0_i32_0 : i32, i32
  }
  func.func @transform_5(%arg0: i32) -> (i32, i32, i32) {
    %c0_i32 = arith.constant 0 : i32
    %c0_i32_0 = arith.constant 0 : i32
    %c0_i32_1 = arith.constant 0 : i32
    return %arg0, %c0_i32, %c0_i32_0 : i32, i32, i32
  }
}

module attributes {stable_mosaic.version = 11 : i64} {
  func.func @_conv3x3_kernel(%arg0: i32, %arg1: memref<1x72x9xf32, #tpu.memory_space<vmem>>, %arg2: memref<8x72xf32, #tpu.memory_space<vmem>>, %arg3: memref<8x1xf32, #tpu.memory_space<vmem>>, %arg4: memref<8x1xf32, #tpu.memory_space<vmem>>, %arg5: memref<8x1xf32, #tpu.memory_space<vmem>>, %arg6: memref<1x8x9xf32, #tpu.memory_space<vmem>>) attributes {dimension_semantics = [#tpu.dimension_semantics<parallel>], iteration_bounds = array<i64: 2>, scalar_prefetch = 0 : i64, scratch_operands = 0 : i64, tpu.core_type = #tpu.core_type<tc>, window_params = [{transform_indices = @transform_0, window_bounds = array<i64: 1, 72, 9>}, {pipeline_mode = #tpu.pipeline_mode<synchronous>, transform_indices = @transform_1, window_bounds = array<i64: 8, 72>}, {pipeline_mode = #tpu.pipeline_mode<synchronous>, transform_indices = @transform_2, window_bounds = array<i64: 8, 1>}, {pipeline_mode = #tpu.pipeline_mode<synchronous>, transform_indices = @transform_3, window_bounds = array<i64: 8, 1>}, {pipeline_mode = #tpu.pipeline_mode<synchronous>, transform_indices = @transform_4, window_bounds = array<i64: 8, 1>}, {transform_indices = @transform_5, window_bounds = array<i64: 1, 8, 9>}]} {
    %c0 = arith.constant 0 : index
    %c0_0 = arith.constant 0 : index
    %0 = vector.load %arg2[%c0, %c0_0] : memref<8x72xf32, #tpu.memory_space<vmem>>, vector<8x72xf32>
    %c0_1 = arith.constant 0 : index
    %c0_2 = arith.constant 0 : index
    %c0_3 = arith.constant 0 : index
    %1 = vector.load %arg1[%c0_1, %c0_2, %c0_3] : memref<1x72x9xf32, #tpu.memory_space<vmem>>, vector<1x72x9xf32>
    %2 = vector.shape_cast %1 : vector<1x72x9xf32> to vector<72x9xf32>
    %cst = arith.constant dense<0.000000e+00> : vector<8x9xf32>
    %3 = tpu.matmul %0, %2, %cst {dimension_numbers = #tpu.dot_dimension_numbers<[1], [0], [0], [1], [0, 0, 1, 1], [], []>} : vector<8x72xf32>, vector<72x9xf32>, vector<8x9xf32> -> vector<8x9xf32>
    %c0_4 = arith.constant 0 : index
    %c0_5 = arith.constant 0 : index
    %4 = vector.load %arg3[%c0_4, %c0_5] : memref<8x1xf32, #tpu.memory_space<vmem>>, vector<8x1xf32>
    %5 = vector.broadcast %4 : vector<8x1xf32> to vector<8x9xf32>
    %6 = arith.addf %3, %5 : vector<8x9xf32>
    %cst_6 = arith.constant 0.000000e+00 : f32
    %7 = vector.broadcast %cst_6 : f32 to vector<8x9xf32>
    %8 = arith.maximumf %6, %7 : vector<8x9xf32>
    %c0_7 = arith.constant 0 : index
    %c0_8 = arith.constant 0 : index
    %c0_9 = arith.constant 0 : index
    %9 = vector.load %arg6[%c0_7, %c0_8, %c0_9] : memref<1x8x9xf32, #tpu.memory_space<vmem>>, vector<1x8x9xf32>
    %10 = vector.shape_cast %9 : vector<1x8x9xf32> to vector<8x9xf32>
    %11 = vector.shape_cast %8 : vector<8x9xf32> to vector<1x8x9xf32>
    tpu.vector_store %arg6[%c0_7, %c0_8, %c0_9], %11 {strides = array<i32>} : memref<1x8x9xf32, #tpu.memory_space<vmem>>, vector<1x8x9xf32>,
    return
  }
  func.func @transform_0(%arg0: i32) -> (i32, i32, i32) {
    %c0_i32 = arith.constant 0 : i32
    %c0_i32_0 = arith.constant 0 : i32
    %c0_i32_1 = arith.constant 0 : i32
    return %arg0, %c0_i32, %c0_i32_0 : i32, i32, i32
  }
  func.func @transform_1(%arg0: i32) -> (i32, i32) {
    %c0_i32 = arith.constant 0 : i32
    %c0_i32_0 = arith.constant 0 : i32
    %c0_i32_1 = arith.constant 0 : i32
    return %c0_i32, %c0_i32_0 : i32, i32
  }
  func.func @transform_2(%arg0: i32) -> (i32, i32) {
    %c0_i32 = arith.constant 0 : i32
    %c0_i32_0 = arith.constant 0 : i32
    %c0_i32_1 = arith.constant 0 : i32
    return %c0_i32, %c0_i32_0 : i32, i32
  }
  func.func @transform_3(%arg0: i32) -> (i32, i32) {
    %c0_i32 = arith.constant 0 : i32
    %c0_i32_0 = arith.constant 0 : i32
    %c0_i32_1 = arith.constant 0 : i32
    return %c0_i32, %c0_i32_0 : i32, i32
  }
  func.func @transform_4(%arg0: i32) -> (i32, i32) {
    %c0_i32 = arith.constant 0 : i32
    %c0_i32_0 = arith.constant 0 : i32
    %c0_i32_1 = arith.constant 0 : i32
    return %c0_i32, %c0_i32_0 : i32, i32
  }
  func.func @transform_5(%arg0: i32) -> (i32, i32, i32) {
    %c0_i32 = arith.constant 0 : i32
    %c0_i32_0 = arith.constant 0 : i32
    %c0_i32_1 = arith.constant 0 : i32
    return %arg0, %c0_i32, %c0_i32_0 : i32, i32, i32
  }
}

module attributes {stable_mosaic.version = 11 : i64} {
  func.func @_max_sigmoid_kernel(%arg0: i32, %arg1: memref<1x8x1xf32, #tpu.memory_space<vmem>>, %arg2: memref<1x8x1xf32, #tpu.memory_space<vmem>>) attributes {dimension_semantics = [#tpu.dimension_semantics<parallel>], iteration_bounds = array<i64: 2>, scalar_prefetch = 0 : i64, scratch_operands = 0 : i64, tpu.core_type = #tpu.core_type<tc>, window_params = [{transform_indices = @transform_0, window_bounds = array<i64: 1, 8, 1>}, {transform_indices = @transform_1, window_bounds = array<i64: 1, 8, 1>}]} {
    %c0 = arith.constant 0 : index
    %c0_0 = arith.constant 0 : index
    %c0_1 = arith.constant 0 : index
    %0 = vector.load %arg1[%c0, %c0_0, %c0_1] : memref<1x8x1xf32, #tpu.memory_space<vmem>>, vector<1x8x1xf32>
    %1 = vector.shape_cast %0 : vector<1x8x1xf32> to vector<8x1xf32>
    %cst = arith.constant dense<0xFF800000> : vector<8xf32>
    %2 = vector.multi_reduction <maximumf>, %1, %cst [1] : vector<8x1xf32> to vector<8xf32>
    %3 = vector.shape_cast %2 : vector<8xf32> to vector<8x1xf32>
    %cst_2 = arith.constant 0.000000e+00 : f32
    %4 = vector.broadcast %cst_2 : f32 to vector<8x1xf32>
    %5 = arith.subf %4, %3 : vector<8x1xf32>
    %6 = math.exp %5 : vector<8x1xf32>
    %cst_3 = arith.constant 1.000000e+00 : f32
    %7 = vector.broadcast %cst_3 : f32 to vector<8x1xf32>
    %8 = arith.addf %7, %6 : vector<8x1xf32>
    %9 = tpu.reciprocal %8 {approx = true} : vector<8x1xf32> -> vector<8x1xf32>
    %c0_4 = arith.constant 0 : index
    %c0_5 = arith.constant 0 : index
    %c0_6 = arith.constant 0 : index
    %10 = vector.load %arg2[%c0_4, %c0_5, %c0_6] : memref<1x8x1xf32, #tpu.memory_space<vmem>>, vector<1x8x1xf32>
    %11 = vector.shape_cast %10 : vector<1x8x1xf32> to vector<8x1xf32>
    %12 = vector.shape_cast %9 : vector<8x1xf32> to vector<1x8x1xf32>
    tpu.vector_store %arg2[%c0_4, %c0_5, %c0_6], %12 {strides = array<i32>} : memref<1x8x1xf32, #tpu.memory_space<vmem>>, vector<1x8x1xf32>,
    return
  }
  func.func @transform_0(%arg0: i32) -> (i32, i32, i32) {
    %c0_i32 = arith.constant 0 : i32
    %c0_i32_0 = arith.constant 0 : i32
    %c0_i32_1 = arith.constant 0 : i32
    return %arg0, %c0_i32, %c0_i32_0 : i32, i32, i32
  }
  func.func @transform_1(%arg0: i32) -> (i32, i32, i32) {
    %c0_i32 = arith.constant 0 : i32
    %c0_i32_0 = arith.constant 0 : i32
    %c0_i32_1 = arith.constant 0 : i32
    return %arg0, %c0_i32, %c0_i32_0 : i32, i32, i32
  }
}

</mosaic_0001>

<bundles_post_ra>
// kernel: solo_inference.55
= control target key start
LH: loop header
LB: loop body
LE: loop exit
PB: predicated region body
PF: predicated region fallthrough
CT: control target
= control target key end

     0   :  { %8 = vsyncpa [#allocation3], 0  ;;  %s742_s0 = inlined_call_operand.vmem [shape: f32[2,3,16384], index: 0, kind: input, shape index: {}]   ;;  %s743_s1 = inlined_call_operand.hbm [shape: f32[3,1], index: 1, kind: input, shape index: {}]   ;;  %s744_s2 = inlined_call_operand.hbm [shape: f32[3,1], index: 2, kind: input, shape index: {}]   ;;  %s745_s3 = inlined_call_operand.vmem [shape: f32[2,3,16384], index: 3, kind: output, shape index: {}]  }
   0x1   :  { %9 = vsyncpa [#allocation5], 0  ;;  %s615_s12 = smov 0   ;;  %s617_s13 = smov 0  }
   0x2   :  { %s619_s14 = smov 0   ;;  %s621_s15 = smov 0  }
   0x3   :  { %s623_s16 = smov 0  }
   0x4 LB: > { %s406_s17 = sadd.s32 4294967295, %s589_s16   ;;  %s24_s18 = sadd.s32 1, %s581_s14  ;;  %s589_s16 = sphi %s623_s16, %s15_s16   ;;  %s585_s15 = sphi %s621_s15, %s757_s15   ;;  %s581_s14 = sphi %s619_s14, %s756_s14   ;;  %s577_s13 = sphi %s617_s13, %s755_s13   ;;  %s573_s12 = sphi %s615_s12, %s754_s12  }
   0x5   : > { %p25_p0 = scmp.ge.s32.totalorder %s24_s18, 8  ;;  %s27_s19 = sadd.s32 1, %s585_s15 }
   0x6   : > { %p408_p1 = scmp.ge.s32.totalorder %s589_s16, 1  ;;  %p130_p2 = scmp.lt.s32.totalorder %s589_s16, 17 }
   0x7   : > { %s759_s18 = smov (%p25_p0, %s24_s18), 0  ;;  %s761_s19 = smov (!%p25_p0, %s27_s19), %s585_s15 }
   0x8   : > { %p648_p3 = pnand %p408_p1, %p130_p2  ;;  %p29_p4 = scmp.ge.s32.totalorder %s761_s19, 2 }
   0x9   : > { %p652_p5 = scmp.eq.s32.totalorder %s406_s17, 0  ;;  %s591_s22 = smov [#allocation2]  }
   0xa   : > { %s749_s20 = scalar_select %p648_p3, 1, 0 }
   0xb   : > { %s750_s21 = scalar_select %p652_p5, 1, 0 }
   0xc   : > { %p431_p6 = pneg %p648_p3  ;;  %s763_s19 = smov (%p29_p4, %s761_s19), 0 }
   0xd   : > { %s143_s23 = sshll.u32 %s591_s22, 4  ;;  %s592_s25 = smov [#allocation4]   ;;  %s144_s23 = int_to_ptr.vmem [resolvable:$true] %s143_s23 }
   0xe   : > { %p662_p7 = pnand %p652_p5, %p431_p6  ;;  %s154_s26 = sshll.u32 %s592_s25, 4  ;;  %s155_s26 = int_to_ptr.vmem [resolvable:$true] %s154_s26 }
   0xf   : > { %s487_s29 = scalar_lea.hbm %s743_s1, 64 }
  0x10   : > { %p488_p8 = scmp.ne.s32.totalorder %s743_s1, %s487_s29  ;;  %p489_p9 = pneg %p662_p7 }
  0x11   : > { %p494_p12 = scmp.lt.u32.totalorder %s487_s29, %s743_s1 }
  0x12   : > { %p490_p10 = pnand %p489_p9, %p488_p8 }
  0x14   : > { %p491_p11 = pneg %p490_p10 }
  0x16   : > { %p496_p13 = pnand %p494_p12, %p491_p11 }
  0x18   : > { %499 = shalt.err (!%p496_p13)
}
  0x19   : > { %s500_s7 = scalar_lea.vmem %s144_s23, 64  ;;  %p508_p4 = scmp.lt.s32.totalorder %s144_s23, %s144_s23 }
  0x1a   : > { %p501_p0 = scmp.ne.s32.totalorder %s144_s23, %s500_s7  ;;  %p509_p6 = scmp.lt.s32.totalorder %s500_s7, %s500_s7 }
  0x1c   : > { %p503_p1 = pnand %p501_p0, %p489_p9  ;;  %p510_p5 = por %p509_p6, %p508_p4 }
  0x1e   : > { %p504_p2 = pneg %p503_p1 }
  0x20   : > { %p511_p3 = pnand %p510_p5, %p504_p2 }
  0x22   : > { %514 = shalt.err (!%p511_p3)
}
  0x23   : > { %434 = dma.hbm_to_vmem [thread:$0]  (!%p662_p7), %s743_s1, 64, %s144_s23, [#allocation3]  }
  0x24   : > { %s515_s17 = scalar_lea.hbm %s744_s2, 64 }
  0x25   : > { %p516_p8 = scmp.ne.s32.totalorder %s744_s2, %s515_s17  ;;  %p522_p10 = scmp.lt.u32.totalorder %s515_s17, %s744_s2 }
  0x27   : > { %p518_p5 = pnand %p516_p8, %p489_p9 }
  0x29   : > { %p519_p3 = pneg %p518_p5 }
  0x2b   : > { %p524_p11 = pnand %p522_p10, %p519_p3 }
  0x2d   : > { %527 = shalt.err (!%p524_p11)
}
  0x2e   : > { %s528_s23 = scalar_lea.vmem %s155_s26, 64  ;;  %p536_p1 = scmp.lt.s32.totalorder %s155_s26, %s155_s26 }
  0x2f   : > { %p529_p12 = scmp.ne.s32.totalorder %s155_s26, %s528_s23  ;;  %p537_p2 = scmp.lt.s32.totalorder %s528_s23, %s528_s23 }
  0x31   : > { %p531_p13 = pnand %p529_p12, %p489_p9  ;;  %p538_p4 = por %p537_p2, %p536_p1 }
  0x33   : > { %p532_p0 = pneg %p531_p13 }
  0x35   : > { %p539_p6 = pnand %p538_p4, %p532_p0 }
  0x37   : > { %542 = shalt.err (!%p539_p6)
}
  0x38   : > { %437 = dma.hbm_to_vmem [thread:$0]  (!%p662_p7), %s744_s2, 64, %s155_s26, [#allocation5]  }
  0x39   : > { %p752_p8 = scmp.ne.s32.totalorder %s749_s20, 0 }
  0x3a   : > { %p753_p5 = scmp.ne.s32.totalorder (!%p752_p8), %s750_s21, 0 }
  0x3b   : > { %180 = sbr.rel (%p752_p8) target bundleno = 211 (0xd3), region = 32 }
  0x42   : > { %564 = dma.done.wait (%p753_p5), [#allocation3], 64  }
  0x43   : > { %566 = vsyncadd (%p753_p5), [#allocation3], 4294967232 }
  0x44   : > { %568 = dma.done.wait (%p753_p5), [#allocation5], 64  }
  0x45   : > { %570 = vsyncadd (%p753_p5), [#allocation5], 4294967232  ;;  %v593_v0 = vmov 0   ;;  %v244_v1 = vld [vmem:[#allocation2] sm:$0x7]  ;;  %s415_s20 = sshll.u32 %s573_s12, 4  ;;  %v252_v5 = vlaneseq }
  0x46   : > { %486 = vset.pattern.permute.xlu0 %v593_v0  ;;  %v265_v2 = vld [vmem:[#allocation4] sm:$0x7]  ;;  %p217_p7 = scmp.lt.s32.totalorder %s577_s13, 1  ;;  %p219_p9 = scmp.lt.s32.totalorder %s415_s20, 127  ;;  %v594_v3 = vmov 839922192  }
  0x47   : > { %247 = vperm.xlu0 %486, %v244_v1   ;;  %v250_v4 = vunpack.c.l.s4 %v594_v3  ;;  %v253_v7 = vshrl.u32 %v252_v5, 7 }
  0x48   : > { %s765_s13 = smov (!%p217_p7, %s577_s13), 1  ;;  %s767_s20 = smov (!%p219_p9, %s415_s20), 127 }
  0x49   : > { %s416_s24 = sshll.u32 %s765_s13, 7  ;;  %v251_v6 = vunpack.c.0.s8 %v250_v4 }
  0x4a   : > { %s222_s21 = sadd.s32 %s416_s24, %s767_s20 }
  0x4b   : > { %268 = vperm.xlu0 %486, %v265_v2   ;;  %s417_s26 = sshll.u32 %s222_s21, 2  ;;  %v254_v8 = vsub.s32 %v251_v6, %v253_v7 }
  0x4c   : > { %s224_s6 = scalar_lea.vmem %s742_s0, %s417_s26  ;;  %s234_s7 = scalar_lea.vmem %s745_s3, %s417_s26 }
  0x4d   : > { %v236_v10 = vld [vmem:[%s224_s6] sm:$0x77]  ;;  %v237_v11 = vld [vmem:[%s224_s6 + $0x8] sm:$0x77]  ;;  %v238_v13 = vld [vmem:[%s224_s6 + $0x10] sm:$0x77] }
  0x4e   : > { %v239_v14 = vld [vmem:[%s224_s6 + $0x18] sm:$0x77]  ;;  %v240_v15 = vld [vmem:[%s224_s6 + $0x20] sm:$0x77]  ;;  %v241_v16 = vld [vmem:[%s224_s6 + $0x28] sm:$0x77] }
  0x4f   : > { %v242_v17 = vld [vmem:[%s224_s6 + $0x30] sm:$0x77]  ;;  %v243_v18 = vld [vmem:[%s224_s6 + $0x38] sm:$0x77] }
  0xc6   : > { %v248_v9 = vpop.permute.xlu0 %247 }
  0xc7   : > { %v255_v12 = vrot.slane %v248_v9, %v254_v8 }
  0xc9   : > { %v257_v19 = vsub.f32 %v236_v10, %v255_v12  ;;  %v258_v21 = vsub.f32 %v237_v11, %v255_v12  ;;  %v259_v22 = vsub.f32 %v238_v13, %v255_v12  ;;  %v260_v23 = vsub.f32 %v239_v14, %v255_v12 }
  0xca   : > { %v269_v20 = vpop.permute.xlu0 %268  ;;  %v261_v25 = vsub.f32 %v240_v15, %v255_v12  ;;  %v262_v26 = vsub.f32 %v241_v16, %v255_v12  ;;  %v263_v27 = vsub.f32 %v242_v17, %v255_v12  ;;  %v264_v28 = vsub.f32 %v243_v18, %v255_v12 }
  0xcb   : > { %v276_v24 = vrot.slane %v269_v20, %v254_v8 }
  0xcd   : > { %v278_v29 = vmul.f32 %v276_v24, %v257_v19  ;;  %v279_v30 = vmul.f32 %v276_v24, %v258_v21  ;;  %v280_v31 = vmul.f32 %v276_v24, %v259_v22  ;;  %v281_v32 = vmul.f32 %v276_v24, %v260_v23 }
  0xce   : > { %v282_v33 = vmul.f32 %v276_v24, %v261_v25  ;;  %v283_v34 = vmul.f32 %v276_v24, %v262_v26  ;;  %v284_v35 = vmul.f32 %v276_v24, %v263_v27  ;;  %v285_v36 = vmul.f32 %v276_v24, %v264_v28 }
  0xcf   : > { %286 = vst [vmem:[%s234_s7] sm:$0x77] %v278_v29  ;;  %287 = vst [vmem:[%s234_s7 + $0x8] sm:$0x77] %v279_v30 }
  0xd0   : > { %288 = vst [vmem:[%s234_s7 + $0x10] sm:$0x77] %v280_v31  ;;  %289 = vst [vmem:[%s234_s7 + $0x18] sm:$0x77] %v281_v32 }
  0xd1   : > { %290 = vst [vmem:[%s234_s7 + $0x20] sm:$0x77] %v282_v33  ;;  %291 = vst [vmem:[%s234_s7 + $0x28] sm:$0x77] %v283_v34 }
  0xd2   : > { %292 = vst [vmem:[%s234_s7 + $0x30] sm:$0x77] %v284_v35  ;;  %293 = vst [vmem:[%s234_s7 + $0x38] sm:$0x77] %v285_v36 }
  0xd3 PF: > { %s15_s16 = sadd.s32 1, %s589_s16   ;;  %s754_s12 = smov %s581_s14 }
  0xd4   : > { %p12_p3 = scmp.ge.s32.totalorder %s15_s16, 18   ;;  %s755_s13 = smov %s585_s15 }
  0xd5   : > { %s756_s14 = smov %s759_s18  ;;  %s757_s15 = smov %s763_s19 }
  0xd6   :  { %14 = sbr.rel (!%p12_p3) target bundleno = 4 (0x4), region = 71 }
  0xdd   :  { %324 = vsyncpa [#allocation3], 1 }
  0xde   :  { %326 = vsyncpa [#allocation3 + $0x1], 1 }
  0xdf   :  { %327 = vsyncpa [#allocation5], 1 }

// kernel: solo_inference.59
= control target key start
LH: loop header
LB: loop body
LE: loop exit
PB: predicated region body
PF: predicated region fallthrough
CT: control target
= control target key end

     0   :  { %s478_s12 = smov 0   ;;  %s480_s13 = smov 0   ;;  %s525_s0 = inlined_call_operand.vmem [shape: f32[2,3,16], index: 0, kind: input, shape index: {}]   ;;  %s526_s1 = inlined_call_operand.vmem [shape: f32[16,3], index: 1, kind: input, shape index: {}]   ;;  %s527_s2 = inlined_call_operand.vmem [shape: f32[16,1], index: 2, kind: input, shape index: {}]   ;;  %s528_s3 = inlined_call_operand.vmem [shape: f32[2,16,16], index: 3, kind: output, shape index: {}]  }
   0x1   :  { %s482_s14 = smov 0  }
   0x2 LB: > { %s25_s15 = sadd.s32 1, %s451_s13  ;;  %p389_p0 = scmp.ge.s32.totalorder %s455_s14, 1  ;;  %s455_s14 = sphi %s482_s14, %s13_s14   ;;  %s451_s13 = sphi %s480_s13, %s530_s13   ;;  %s447_s12 = sphi %s478_s12, %s529_s12  }
   0x3   : > { %p27_p1 = scmp.ge.s32.totalorder %s25_s15, 2  ;;  %p155_p2 = scmp.lt.s32.totalorder %s455_s14, 3 }
   0x5   : > { %s532_s15 = smov (%p27_p1, %s25_s15), 0  ;;  %p156_p3 = pnand %p389_p0, %p155_p2 }
   0x6   : > { %p184_p4 = scmp.lt.s32.totalorder (!%p156_p3), %s447_s12, 1  ;;  %v199_v0 = vld [vmem:[%s526_s1] sm:$0xff] (!%p156_p3)  ;;  %vm214_vm0 = vcmask (!%p156_p3), 23552   ;;  %v457_v1 = vmov (!%p156_p3), 0   ;;  %v203_v3 = vld [vmem:[%s527_s2 + $0x8] sm:$0xff] (!%p156_p3)  ;;  %vm221_vm1 = vcmask (!%p156_p3), 1042432  }
   0x7   : > { %159 = sbr.rel (%p156_p3) target bundleno = 238 (0xee), region = 32  ;;  %404 = vmatprep.mubr.msk.f32.mxu0 (!%p156_p3), %vm214_vm0, %v199_v0  ;;  %432 = vset.pattern.permute.xlu0 (!%p156_p3), %v457_v1  ;;  %v202_v2 = vld [vmem:[%s527_s2] sm:$0xff] (!%p156_p3)  ;;  %v200_v5 = vld [vmem:[%s526_s1 + $0x8] sm:$0xff] (!%p156_p3)  ;;  %vm302_vm2 = vcmask (!%p156_p3), 130048  }
   0x8   : > { %206 = vperm.xlu0 (!%p156_p3), %432, %v202_v2  }
   0xc   : > { %211 = vperm.xlu0 (!%p156_p3), %432, %v203_v3  }
   0xe   : > { %s534_s12 = smov (!%p184_p4, %s447_s12), 1 }
   0xf   : > { %s390_s22 = sshll.u32 %s534_s12, 2  ;;  %s398_s28 = sshll.u32 %s534_s12, 4 }
  0x10   : > { %s190_s25 = scalar_lea.vmem %s525_s0, %s390_s22  ;;  %s198_s4 = scalar_lea.vmem %s528_s3, %s398_s28 }
  0x11   : > { %v201_v4 = vld [vmem:[%s190_s25] sm:$0x7] }
  0x12   : > { %402 = vmatprep.subr.msk.mxu0 %vm221_vm1, %v201_v4 }
  0x13   : > { %403 = vmatpush3.msk.msra.mxu0 %vm221_vm1, %v201_v4 }
  0x14   : > { %405 = vmatmul.mubr.msk.f32.vlgmr.msra.gmra.mrb[0].mxu0 %vm214_vm0, %v200_v5 }
  0x87   : > { %v207_v6 = vpop.permute.xlu0 %206 }
  0x8b   : > { %v212_v7 = vpop.permute.xlu0 %211 }
  0xe7   : > { %v406_v8 = vpop.f32.mrb[0].mxu0 }
  0xe8   : > { %v297_v9 = vadd.f32 %v406_v8, %v212_v7  ;;  %v291_v10 = vpop.f32.mrb[1].mxu0 }
  0xe9   : > { %v292_v11 = vadd.f32 %v291_v10, %v207_v6 }
  0xea   : > { %v301_v12 = vmax.f32 %v297_v9, 0.0 }
  0xeb   : > { %v300_v13 = vmax.f32 %v292_v11, 0.0 }
  0xec   : > { %304 = vst.msk [vmem:[%s198_s4 + $0x8] sm:$0xff] %vm302_vm2, %v301_v12 }
  0xed   : > { %303 = vst.msk [vmem:[%s198_s4] sm:$0xff] %vm302_vm2, %v300_v13 }
  0xee PF: > { %s13_s14 = sadd.s32 1, %s455_s14   ;;  %s529_s12 = smov %s451_s13 }
  0xef   : > { %p10_p5 = scmp.ge.s32.totalorder %s13_s14, 4   ;;  %s530_s13 = smov %s532_s15 }
  0xf1   :  { %12 = sbr.rel (!%p10_p5) target bundleno = 2 (0x2), region = 62 }

// kernel: solo_inference.70
= control target key start
LH: loop header
LB: loop body
LE: loop exit
PB: predicated region body
PF: predicated region fallthrough
CT: control target
= control target key end

     0   :  { %s649_s18 = smov 0   ;;  %s802_s0 = inlined_call_operand.vmem [shape: f32[2,144,16], index: 0, kind: input, shape index: {}]   ;;  %s803_s1 = inlined_call_operand.vmem [shape: f32[32,144], index: 1, kind: input, shape index: {}]   ;;  %s804_s2 = inlined_call_operand.vmem [shape: f32[32,1], index: 2, kind: input, shape index: {}]   ;;  %s805_s3 = inlined_call_operand.vmem [shape: f32[32,1], index: 3, kind: input, shape index: {}]   ;;  %s806_s4 = inlined_call_operand.vmem [shape: f32[32,1], index: 4, kind: input, shape index: {}]   ;;  %s807_s5 = inlined_call_operand.vmem [shape: f32[2,32,16], index: 5, kind: output, shape index: {}]  }
   0x1 LB: > { %s528_s2 = sadd.s32 4294967295, %s615_s18   ;;  %p532_p0 = scmp.ge.s32.totalorder %s615_s18, 1  ;;  %s615_s18 = sphi %s649_s18, %s15_s18  }
   0x2   : > { %p187_p1 = scmp.lt.s32.totalorder %s615_s18, 3 }
   0x4   : > { %p188_p2 = pnand %p532_p0, %p187_p1 }
   0x5   : > { %p215_p3 = scmp.lt.s32.totalorder (!%p188_p2), %s528_s2, 1  ;;  %v226_v0 = vld [vmem:[%s803_s1 + $0x8] sm:$0xff] (!%p188_p2)  ;;  %vm251_vm0 = vcmask (!%p188_p2), 130048   ;;  %v617_v2 = vmov (!%p188_p2), 0.0|0.0   ;;  %v225_v30 = vld [vmem:[%s803_s1] sm:$0xff] (!%p188_p2)  ;;  %v228_v32 = vld [vmem:[%s803_s1 + $0x18] sm:$0xff] (!%p188_p2) }
   0x6   : > { %191 = sbr.rel (%p188_p2) target bundleno = 517 (0x205), region = 40  ;;  %v230_v1 = vld [vmem:[%s803_s1 + $0x28] sm:$0xff] (!%p188_p2)  ;;  %543 = vmatprep.subr.bf16.mxu0 (!%p188_p2), %v617_v2  ;;  %570 = vmatprep.subr.bf16.mxu1 (!%p188_p2), %v617_v2  ;;  %v229_v31 = vld [vmem:[%s803_s1 + $0x20] sm:$0xff] (!%p188_p2)  ;;  %v232_v33 = vld [vmem:[%s803_s1 + $0x38] sm:$0xff] (!%p188_p2)  ;;  %v618_v36 = vmov (!%p188_p2), 0  }
   0x7   : > { %536 = vmatprep.mubr.msk.f32.mxu0 (!%p188_p2), %vm251_vm0, %v226_v0  ;;  %538 = vmatprep.mubr.msk.f32.mxu1 (!%p188_p2), %vm251_vm0, %v230_v1  ;;  %v227_v34 = vld [vmem:[%s803_s1 + $0x10] sm:$0xff] (!%p188_p2)  ;;  %v410_v52 = vld [vmem:[%s805_s3 + $0x8] sm:$0xff] (!%p188_p2)  ;;  %v412_v54 = vld [vmem:[%s805_s3 + $0x18] sm:$0xff] (!%p188_p2) }
   0x8   : > { %v231_v35 = vld [vmem:[%s803_s1 + $0x30] sm:$0xff] (!%p188_p2)  ;;  %600 = vset.pattern.permute.xlu1 (!%p188_p2), %v618_v36  ;;  %599 = vset.pattern.permute.xlu0 (!%p188_p2), %v618_v36  ;;  %v437_v55 = vld [vmem:[%s806_s4] sm:$0xff] (!%p188_p2)  ;;  %v438_v56 = vld [vmem:[%s806_s4 + $0x8] sm:$0xff] (!%p188_p2) }
   0x9   : > { %v411_v53 = vld [vmem:[%s805_s3 + $0x10] sm:$0xff] (!%p188_p2)  ;;  %v409_v57 = vld [vmem:[%s805_s3] sm:$0xff] (!%p188_p2)  ;;  %v440_v0 = vld [vmem:[%s806_s4 + $0x18] sm:$0xff] (!%p188_p2) }
   0xa   : > { %v439_v58 = vld [vmem:[%s806_s4 + $0x10] sm:$0xff] (!%p188_p2) }
   0xd   : > { %s809_s2 = smov (!%p215_p3, %s528_s2), 1 }
   0xe   : > { %s588_s23 = smul.u32 144, %s809_s2  ;;  %s542_s6 = sshll.u32 %s809_s2, 5 }
   0xf   : > { %s787_s9 = scalar_lea.vmem %s807_s5, %s542_s6 }
  0x10   : > { %s673_s26 = scalar_lea.vmem %s802_s0, %s588_s23 }
  0x11   : > { %v233_v3 = vld [vmem:[%s673_s26] sm:$0xff]  ;;  %v234_v4 = vld [vmem:[%s673_s26 + $0x8] sm:$0xff]  ;;  %v235_v5 = vld [vmem:[%s673_s26 + $0x10] sm:$0xff] }
  0x12   : > { %v544_v6 = vpack.c.bf16 %v234_v4, %v233_v3  ;;  %v236_v7 = vld [vmem:[%s673_s26 + $0x18] sm:$0xff]  ;;  %v237_v9 = vld [vmem:[%s673_s26 + $0x20] sm:$0xff]  ;;  %v238_v10 = vld [vmem:[%s673_s26 + $0x28] sm:$0xff] }
  0x13   : > { %v547_v8 = vpack.c.bf16 %v236_v7, %v235_v5  ;;  %v550_v11 = vpack.c.bf16 %v238_v10, %v237_v9  ;;  %v239_v12 = vld [vmem:[%s673_s26 + $0x30] sm:$0xff]  ;;  %v240_v13 = vld [vmem:[%s673_s26 + $0x38] sm:$0xff]  ;;  %v241_v15 = vld [vmem:[%s673_s26 + $0x40] sm:$0xff] }
  0x14   : > { %545 = vmatpush1.bf16.msra.mxu0 %v544_v6  ;;  %579 = vmatpush1.bf16.msra.mxu1 %v544_v6  ;;  %v553_v14 = vpack.c.bf16 %v240_v13, %v239_v12  ;;  %v242_v16 = vld [vmem:[%s673_s26 + $0x48] sm:$0xff]  ;;  %v243_v18 = vld [vmem:[%s673_s26 + $0x50] sm:$0xff]  ;;  %v244_v19 = vld [vmem:[%s673_s26 + $0x58] sm:$0xff] }
  0x15   : > { %546 = vmatprep.subr.bf16.mxu0 %v617_v2  ;;  %571 = vmatprep.subr.bf16.mxu1 %v617_v2  ;;  %v556_v17 = vpack.c.bf16 %v242_v16, %v241_v15  ;;  %v559_v20 = vpack.c.bf16 %v244_v19, %v243_v18  ;;  %v245_v21 = vld [vmem:[%s673_s26 + $0x60] sm:$0xff]  ;;  %v246_v22 = vld [vmem:[%s673_s26 + $0x68] sm:$0xff]  ;;  %v247_v24 = vld [vmem:[%s673_s26 + $0x70] sm:$0xff] }
  0x16   : > { %v562_v23 = vpack.c.bf16 %v246_v22, %v245_v21  ;;  %v248_v25 = vld [vmem:[%s673_s26 + $0x78] sm:$0xff]  ;;  %v249_v27 = vld [vmem:[%s673_s26 + $0x80] sm:$0xff]  ;;  %v250_v28 = vld [vmem:[%s673_s26 + $0x88] sm:$0xff] }
  0x17   : > { %v565_v26 = vpack.c.bf16 %v248_v25, %v247_v24  ;;  %v568_v29 = vpack.c.bf16 %v250_v28, %v249_v27 }
  0x18   : > { %548 = vmatpush1.bf16.msra.mxu0 %v547_v8  ;;  %580 = vmatpush1.bf16.msra.mxu1 %v547_v8 }
  0x19   : > { %549 = vmatprep.subr.bf16.mxu0 %v617_v2  ;;  %572 = vmatprep.subr.bf16.mxu1 %v617_v2 }
  0x1c   : > { %551 = vmatpush1.bf16.msra.mxu0 %v550_v11  ;;  %581 = vmatpush1.bf16.msra.mxu1 %v550_v11 }
  0x1d   : > { %552 = vmatprep.subr.bf16.mxu0 %v617_v2  ;;  %573 = vmatprep.subr.bf16.mxu1 %v617_v2 }
  0x20   : > { %554 = vmatpush1.bf16.msra.mxu0 %v553_v14  ;;  %582 = vmatpush1.bf16.msra.mxu1 %v553_v14 }
  0x21   : > { %555 = vmatprep.subr.bf16.mxu0 %v617_v2  ;;  %574 = vmatprep.subr.bf16.mxu1 %v617_v2 }
  0x24   : > { %557 = vmatpush1.bf16.msra.mxu0 %v556_v17  ;;  %583 = vmatpush1.bf16.msra.mxu1 %v556_v17 }
  0x25   : > { %558 = vmatprep.subr.bf16.mxu0 %v617_v2  ;;  %575 = vmatprep.subr.bf16.mxu1 %v617_v2 }
  0x28   : > { %560 = vmatpush1.bf16.msra.mxu0 %v559_v20  ;;  %584 = vmatpush1.bf16.msra.mxu1 %v559_v20 }
  0x29   : > { %561 = vmatprep.subr.bf16.mxu0 %v617_v2  ;;  %576 = vmatprep.subr.bf16.mxu1 %v617_v2 }
  0x2c   : > { %563 = vmatpush1.bf16.msra.mxu0 %v562_v23  ;;  %585 = vmatpush1.bf16.msra.mxu1 %v562_v23 }
  0x2d   : > { %564 = vmatprep.subr.bf16.mxu0 %v617_v2  ;;  %577 = vmatprep.subr.bf16.mxu1 %v617_v2 }
  0x30   : > { %566 = vmatpush1.bf16.msra.mxu0 %v565_v26  ;;  %586 = vmatpush1.bf16.msra.mxu1 %v565_v26 }
  0x31   : > { %567 = vmatprep.subr.bf16.mxu0 %v617_v2  ;;  %578 = vmatprep.subr.bf16.mxu1 %v617_v2 }
  0x34   : > { %569 = vmatpush1.bf16.msra.mxu0 %v568_v29  ;;  %587 = vmatpush1.bf16.msra.mxu1 %v568_v29 }
  0x37   : > { %329 = vmatmul.mubr.f32.vlgmr.msra.gmra.mrb[0].mxu0 %v225_v30  ;;  %339 = vmatmul.mubr.f32.vlgmr.msra.gmra.mrb[0].mxu1 %v229_v31 }
  0x38   : > { %537 = vmatprep.mubr.msk.f32.mxu0 %vm251_vm0, %v228_v32  ;;  %539 = vmatprep.mubr.msk.f32.mxu1 %vm251_vm0, %v232_v33 }
  0x3b   : > { %334 = vmatmul.mubr.f32.gmra.mrb[2].mxu0 %v227_v34  ;;  %344 = vmatmul.mubr.f32.gmra.mrb[2].mxu1 %v231_v35 }
 0x10a   : > { %v729_v37 = vpop.f32.mrb[0].mxu0  ;;  %v731_v38 = vpop.f32.mrb[0].mxu1 }
 0x10b   : > { %v342_v39 = vpop.f32.mrb[1].mxu1  ;;  %v355_v40 = vsel %vm251_vm0, %v731_v38, 0.0  ;;  %v349_v41 = vsel %vm251_vm0, %v729_v37, 0.0  ;;  %v365_v42 = vmul.f32 %v729_v37, %v729_v37  ;;  %v332_v43 = vpop.f32.mrb[1].mxu0  ;;  %v367_v47 = vmul.f32 %v731_v38, %v731_v38 }
 0x10c   : > { %356 = vadd.xlane.f32.xlu1 %v355_v40  ;;  %350 = vadd.xlane.f32.xlu0 %v349_v41 }
 0x10d   : > { %v369_v44 = vsel %vm251_vm0, %v365_v42, 0.0  ;;  %v375_v50 = vsel %vm251_vm0, %v367_v47, 0.0 }
 0x10e   : > { %v740_v45 = vpop.f32.mrb[2].mxu0  ;;  %v742_v46 = vpop.f32.mrb[2].mxu1 }
 0x10f   : > { %v347_v48 = vpop.f32.mrb[3].mxu1  ;;  %v337_v49 = vpop.f32.mrb[3].mxu0  ;;  %v352_v51 = vsel %vm251_vm0, %v740_v45, 0.0  ;;  %v358_v59 = vsel %vm251_vm0, %v742_v46, 0.0  ;;  %v366_v60 = vmul.f32 %v740_v45, %v740_v45  ;;  %v368_v62 = vmul.f32 %v742_v46, %v742_v46 }
 0x110   : > { %370 = vadd.xlane.f32.xlu0 %v369_v44 }
 0x111   : > { %v372_v61 = vsel %vm251_vm0, %v366_v60, 0.0  ;;  %v378_v63 = vsel %vm251_vm0, %v368_v62, 0.0 }
 0x114   : > { %376 = vadd.xlane.f32.xlu0 %v375_v50 }
 0x118   : > { %353 = vadd.xlane.f32.xlu0 %v352_v51 }
 0x11d   : > { %420 = vperm.xlu1 %600, %v410_v52  }
 0x121   : > { %425 = vperm.xlu1 %600, %v411_v53  }
 0x125   : > { %430 = vperm.xlu1 %600, %v412_v54  }
 0x129   : > { %443 = vperm.xlu1 %600, %v437_v55  }
 0x12d   : > { %448 = vperm.xlu1 %600, %v438_v56  }
 0x12e   : > { %415 = vperm.xlu0 %599, %v409_v57  }
 0x131   : > { %453 = vperm.xlu1 %600, %v439_v58  }
 0x155   : > { %359 = vadd.xlane.f32.xlu1 %v358_v59 }
 0x159   : > { %373 = vadd.xlane.f32.xlu1 %v372_v61 }
 0x15d   : > { %379 = vadd.xlane.f32.xlu1 %v378_v63 }
 0x16e   : > { %458 = vperm.xlu1 %600, %v440_v0  }
 0x199   : > { %v357_v1 = vpop.xlane.xlu1 %356  ;;  %v351_v2 = vpop.xlane.xlu0 %350 }
 0x19a   : > { %v361_v3 = vmul.f32 0.0625, %v351_v2  ;;  %v363_v7 = vmul.f32 0.0625, %v357_v1 }
 0x19c   : > { %v385_v4 = vmul.f32 %v361_v3, %v361_v3  ;;  %v387_v12 = vmul.f32 %v363_v7, %v363_v7  ;;  %v393_v20 = vsub.f32 %v729_v37, %v361_v3  ;;  %v395_v25 = vsub.f32 %v731_v38, %v363_v7 }
 0x19d   : > { %v421_v5 = vpop.permute.xlu1 %420  ;;  %v371_v6 = vpop.xlane.xlu0 %370 }
 0x19e   : > { %v381_v8 = vmul.f32 0.0625, %v371_v6 }
 0x1a0   : > { %v389_v9 = vsub.f32 %v381_v8, %v385_v4 }
 0x1a1   : > { %v426_v10 = vpop.permute.xlu1 %425  ;;  %v377_v11 = vpop.xlane.xlu0 %376 }
 0x1a2   : > { %v397_v13 = vadd.f32 1e-05, %v389_v9  ;;  %v383_v14 = vmul.f32 0.0625, %v377_v11 }
 0x1a4   : > { %601 = vrsqrt.f32 %v397_v13  ;;  %v391_v15 = vsub.f32 %v383_v14, %v387_v12 }
 0x1a5   : > { %v431_v16 = vpop.permute.xlu1 %430  ;;  %v354_v18 = vpop.xlane.xlu0 %353 }
 0x1a6   : > { %v399_v17 = vadd.f32 1e-05, %v391_v15  ;;  %v362_v36 = vmul.f32 0.0625, %v354_v18 }
 0x1a8   : > { %603 = vrsqrt.f32 %v399_v17  ;;  %v386_v37 = vmul.f32 %v362_v36, %v362_v36  ;;  %v394_v50 = vsub.f32 %v740_v45, %v362_v36 }
 0x1a9   : > { %v444_v19 = vpop.permute.xlu1 %443 }
 0x1ad   : > { %v416_v22 = vpop.permute.xlu0 %415  ;;  %v449_v24 = vpop.permute.xlu1 %448 }
 0x1ae   : > { %v602_v21 = vpop.eup %601 }
 0x1af   : > { %v405_v23 = vmul.f32 %v602_v21, %v393_v20 }
 0x1b1   : > { %v433_v26 = vmul.f32 %v416_v22, %v405_v23  ;;  %v454_v32 = vpop.permute.xlu1 %453 }
 0x1b2   : > { %v604_v27 = vpop.eup %603 }
 0x1b3   : > { %v461_v28 = vadd.f32 %v444_v19, %v433_v26  ;;  %v407_v29 = vmul.f32 %v604_v27, %v395_v25 }
 0x1b5   : > { %v465_v30 = vmax.f32 %v461_v28, 0.0  ;;  %v435_v31 = vmul.f32 %v426_v10, %v407_v29 }
 0x1b7   : > { %469 = vst.msk [vmem:[%s787_s9] sm:$0xff] %vm251_vm0, %v465_v30  ;;  %v463_v33 = vadd.f32 %v454_v32, %v435_v31 }
 0x1b9   : > { %v467_v34 = vmax.f32 %v463_v33, 0.0 }
 0x1bb   : > { %471 = vst.msk [vmem:[%s787_s9 + $0x10] sm:$0xff] %vm251_vm0, %v467_v34 }
 0x1e2   : > { %v360_v35 = vpop.xlane.xlu1 %359 }
 0x1e3   : > { %v364_v39 = vmul.f32 0.0625, %v360_v35 }
 0x1e5   : > { %v388_v43 = vmul.f32 %v364_v39, %v364_v39  ;;  %v396_v53 = vsub.f32 %v742_v46, %v364_v39 }
 0x1e6   : > { %v374_v38 = vpop.xlane.xlu1 %373 }
 0x1e7   : > { %v382_v40 = vmul.f32 0.0625, %v374_v38 }
 0x1e9   : > { %v390_v41 = vsub.f32 %v382_v40, %v386_v37 }
 0x1ea   : > { %v380_v42 = vpop.xlane.xlu1 %379 }
 0x1eb   : > { %v398_v44 = vadd.f32 1e-05, %v390_v41  ;;  %v384_v47 = vmul.f32 0.0625, %v380_v42 }
 0x1ed   : > { %605 = vrsqrt.f32 %v398_v44  ;;  %v392_v48 = vsub.f32 %v384_v47, %v388_v43 }
 0x1ee   : > { %v459_v60 = vpop.permute.xlu1 %458 }
 0x1ef   : > { %v400_v49 = vadd.f32 1e-05, %v392_v48 }
 0x1f1   : > { %607 = vrsqrt.f32 %v400_v49 }
 0x1f7   : > { %v606_v51 = vpop.eup %605 }
 0x1f8   : > { %v406_v52 = vmul.f32 %v606_v51, %v394_v50 }
 0x1fa   : > { %v434_v54 = vmul.f32 %v421_v5, %v406_v52 }
 0x1fb   : > { %v608_v55 = vpop.eup %607 }
 0x1fc   : > { %v462_v56 = vadd.f32 %v449_v24, %v434_v54  ;;  %v408_v57 = vmul.f32 %v608_v55, %v396_v53 }
 0x1fe   : > { %v466_v58 = vmax.f32 %v462_v56, 0.0  ;;  %v436_v59 = vmul.f32 %v431_v16, %v408_v57 }
 0x200   : > { %470 = vst.msk [vmem:[%s787_s9 + $0x8] sm:$0xff] %vm251_vm0, %v466_v58  ;;  %v464_v61 = vadd.f32 %v459_v60, %v436_v59 }
 0x202   : > { %v468_v62 = vmax.f32 %v464_v61, 0.0 }
 0x204   : > { %472 = vst.msk [vmem:[%s787_s9 + $0x18] sm:$0xff] %vm251_vm0, %v468_v62 }
 0x205 PF: > { %s15_s18 = sadd.s32 1, %s615_s18  }
 0x206   : > { %p12_p4 = scmp.ge.s32.totalorder %s15_s18, 4  }
 0x208   :  { %14 = sbr.rel (!%p12_p4) target bundleno = 1 (0x1), region = 70 }

// kernel: solo_inference.71
= control target key start
LH: loop header
LB: loop body
LE: loop exit
PB: predicated region body
PF: predicated region fallthrough
CT: control target
= control target key end

     0   :  { %s539_s9 = smov 0   ;;  %s616_s0 = inlined_call_operand.vmem [shape: f32[256,4], index: 0, kind: input, shape index: {}]   ;;  %s617_s1 = inlined_call_operand.vmem [shape: f32[4,8], index: 1, kind: input, shape index: {}]   ;;  %s618_s2 = inlined_call_operand.vmem [shape: f32[256,8], index: 2, kind: output, shape index: {}]  }
   0x1 LB: > { %s435_s10 = sadd.s32 4294967295, %s522_s9   ;;  %p439_p0 = scmp.ge.s32.totalorder %s522_s9, 1  ;;  %s522_s9 = sphi %s539_s9, %s12_s9  }
   0x2   : > { %p113_p1 = scmp.lt.s32.totalorder %s522_s9, 3 }
   0x4   : > { %p114_p2 = pnand %p439_p0, %p113_p1 }
   0x5   : > { %v163_v0 = vld [vmem:[%s617_s1] sm:$0xf] (!%p114_p2)  ;;  %vm213_vm0 = vcmask (!%p114_p2), 1043456   ;;  %s440_s13 = sshll.u32 (!%p114_p2), %s435_s10, 4  ;;  %vm164_vm1 = vcmask (!%p114_p2), 31744   ;;  %vm362_vm2 = vcmask (!%p114_p2), 64512  }
   0x6   : > { %117 = sbr.rel (%p114_p2) target bundleno = 245 (0xf5), region = 28  ;;  %480 = vmatprep.subr.msk.mxu0 (!%p114_p2), %vm213_vm0, %v163_v0  ;;  %506 = vmatprep.subr.msk.mxu1 (!%p114_p2), %vm213_vm0, %v163_v0  ;;  %p136_p3 = scmp.lt.s32.totalorder (!%p114_p2), %s440_s13, 31 }
   0x7   : > { %481 = vmatpush3.msk.msra.mxu0 (!%p114_p2), %vm213_vm0, %v163_v0  ;;  %507 = vmatpush3.msk.msra.mxu1 (!%p114_p2), %vm213_vm0, %v163_v0 }
   0xd   : > { %s620_s13 = smov (!%p136_p3, %s440_s13), 31 }
   0xe   : > { %s441_s14 = sshll.u32 %s620_s13, 3 }
   0xf   : > { %s139_s17 = scalar_lea.vmem %s616_s0, %s441_s14  ;;  %s579_s20 = scalar_lea.vmem %s618_s2, %s441_s14 }
  0x10   : > { %v147_v1 = vld [vmem:[%s139_s17] sm:$0xff]  ;;  %v148_v3 = vld [vmem:[%s139_s17 + $0x8] sm:$0xff]  ;;  %v149_v5 = vld [vmem:[%s139_s17 + $0x10] sm:$0xff] }
  0x11   : > { %v155_v2 = vld [vmem:[%s139_s17 + $0x40] sm:$0xff]  ;;  %482 = vmatprep.mubr.msk.f32.mxu0 %vm164_vm1, %v147_v1  ;;  %v156_v4 = vld [vmem:[%s139_s17 + $0x48] sm:$0xff]  ;;  %v157_v6 = vld [vmem:[%s139_s17 + $0x50] sm:$0xff] }
  0x12   : > { %494 = vmatprep.mubr.msk.f32.mxu1 %vm164_vm1, %v155_v2  ;;  %483 = vmatmul.mubr.msk.f32.vlgmr.msra.gmra.mrb[0].mxu0 %vm164_vm1, %v148_v3  ;;  %v150_v7 = vld [vmem:[%s139_s17 + $0x18] sm:$0xff]  ;;  %v151_v9 = vld [vmem:[%s139_s17 + $0x20] sm:$0xff]  ;;  %v152_v11 = vld [vmem:[%s139_s17 + $0x28] sm:$0xff] }
  0x13   : > { %495 = vmatmul.mubr.msk.f32.vlgmr.msra.gmra.mrb[0].mxu1 %vm164_vm1, %v156_v4  ;;  %485 = vmatprep.mubr.msk.f32.mxu0 %vm164_vm1, %v149_v5  ;;  %v158_v8 = vld [vmem:[%s139_s17 + $0x58] sm:$0xff]  ;;  %v159_v10 = vld [vmem:[%s139_s17 + $0x60] sm:$0xff]  ;;  %v160_v12 = vld [vmem:[%s139_s17 + $0x68] sm:$0xff] }
  0x14   : > { %497 = vmatprep.mubr.msk.f32.mxu1 %vm164_vm1, %v157_v6  ;;  %v153_v13 = vld [vmem:[%s139_s17 + $0x30] sm:$0xff]  ;;  %v154_v15 = vld [vmem:[%s139_s17 + $0x38] sm:$0xff] }
  0x15   : > { %v161_v14 = vld [vmem:[%s139_s17 + $0x70] sm:$0xff]  ;;  %v162_v16 = vld [vmem:[%s139_s17 + $0x78] sm:$0xff] }
  0x16   : > { %486 = vmatmul.mubr.msk.f32.gmra.mrb[2].mxu0 %vm164_vm1, %v150_v7 }
  0x17   : > { %498 = vmatmul.mubr.msk.f32.gmra.mrb[2].mxu1 %vm164_vm1, %v158_v8  ;;  %488 = vmatprep.mubr.msk.f32.mxu0 %vm164_vm1, %v151_v9 }
  0x18   : > { %500 = vmatprep.mubr.msk.f32.mxu1 %vm164_vm1, %v159_v10 }
  0x1a   : > { %489 = vmatmul.mubr.msk.f32.gmra.mrb[4].mxu0 %vm164_vm1, %v152_v11 }
  0x1b   : > { %501 = vmatmul.mubr.msk.f32.gmra.mrb[4].mxu1 %vm164_vm1, %v160_v12  ;;  %491 = vmatprep.mubr.msk.f32.mxu0 %vm164_vm1, %v153_v13 }
  0x1c   : > { %503 = vmatprep.mubr.msk.f32.mxu1 %vm164_vm1, %v161_v14 }
  0x1e   : > { %492 = vmatmul.mubr.msk.f32.gmra.mrb[6].mxu0 %vm164_vm1, %v154_v15 }
  0x1f   : > { %504 = vmatmul.mubr.msk.f32.gmra.mrb[6].mxu1 %vm164_vm1, %v162_v16 }
  0xe5   : > { %v484_v17 = vpop.f32.mrb[0].mxu0 }
  0xe6   : > { %v496_v18 = vpop.f32.mrb[0].mxu1  ;;  %364 = vst.msk [vmem:[%s579_s20 + $0x8] sm:$0xff] %vm362_vm2, %v484_v17  ;;  %v283_v19 = vpop.f32.mrb[1].mxu0 }
  0xe7   : > { %372 = vst.msk [vmem:[%s579_s20 + $0x48] sm:$0xff] %vm362_vm2, %v496_v18  ;;  %v323_v20 = vpop.f32.mrb[1].mxu1  ;;  %363 = vst.msk [vmem:[%s579_s20] sm:$0xff] %vm362_vm2, %v283_v19 }
  0xe8   : > { %371 = vst.msk [vmem:[%s579_s20 + $0x40] sm:$0xff] %vm362_vm2, %v323_v20 }
  0xe9   : > { %v487_v21 = vpop.f32.mrb[2].mxu0 }
  0xea   : > { %v499_v22 = vpop.f32.mrb[2].mxu1  ;;  %366 = vst.msk [vmem:[%s579_s20 + $0x18] sm:$0xff] %vm362_vm2, %v487_v21  ;;  %v293_v23 = vpop.f32.mrb[3].mxu0 }
  0xeb   : > { %374 = vst.msk [vmem:[%s579_s20 + $0x58] sm:$0xff] %vm362_vm2, %v499_v22  ;;  %v333_v24 = vpop.f32.mrb[3].mxu1  ;;  %365 = vst.msk [vmem:[%s579_s20 + $0x10] sm:$0xff] %vm362_vm2, %v293_v23 }
  0xec   : > { %373 = vst.msk [vmem:[%s579_s20 + $0x50] sm:$0xff] %vm362_vm2, %v333_v24 }
  0xed   : > { %v490_v25 = vpop.f32.mrb[4].mxu0 }
  0xee   : > { %v502_v26 = vpop.f32.mrb[4].mxu1  ;;  %368 = vst.msk [vmem:[%s579_s20 + $0x28] sm:$0xff] %vm362_vm2, %v490_v25  ;;  %v303_v27 = vpop.f32.mrb[5].mxu0 }
  0xef   : > { %376 = vst.msk [vmem:[%s579_s20 + $0x68] sm:$0xff] %vm362_vm2, %v502_v26  ;;  %v343_v28 = vpop.f32.mrb[5].mxu1  ;;  %367 = vst.msk [vmem:[%s579_s20 + $0x20] sm:$0xff] %vm362_vm2, %v303_v27 }
  0xf0   : > { %375 = vst.msk [vmem:[%s579_s20 + $0x60] sm:$0xff] %vm362_vm2, %v343_v28 }
  0xf1   : > { %v493_v29 = vpop.f32.mrb[6].mxu0 }
  0xf2   : > { %v505_v30 = vpop.f32.mrb[6].mxu1  ;;  %370 = vst.msk [vmem:[%s579_s20 + $0x38] sm:$0xff] %vm362_vm2, %v493_v29  ;;  %v313_v31 = vpop.f32.mrb[7].mxu0 }
  0xf3   : > { %378 = vst.msk [vmem:[%s579_s20 + $0x78] sm:$0xff] %vm362_vm2, %v505_v30  ;;  %v353_v32 = vpop.f32.mrb[7].mxu1  ;;  %369 = vst.msk [vmem:[%s579_s20 + $0x30] sm:$0xff] %vm362_vm2, %v313_v31 }
  0xf4   : > { %377 = vst.msk [vmem:[%s579_s20 + $0x70] sm:$0xff] %vm362_vm2, %v353_v32 }
  0xf5 PF: > { %s12_s9 = sadd.s32 1, %s522_s9  }
  0xf6   : > { %p9_p4 = scmp.ge.s32.totalorder %s12_s9, 4  }
  0xf8   :  { %11 = sbr.rel (!%p9_p4) target bundleno = 1 (0x1), region = 58 }

// kernel: solo_inference.72
= control target key start
LH: loop header
LB: loop body
LE: loop exit
PB: predicated region body
PF: predicated region fallthrough
CT: control target
= control target key end

     0   :  { %s755_s9 = smov 0   ;;  %s914_s0 = inlined_call_operand.vmem [shape: f32[512,4], index: 0, kind: input, shape index: {}]   ;;  %s915_s1 = inlined_call_operand.vmem [shape: f32[4,8], index: 1, kind: input, shape index: {}]   ;;  %s916_s2 = inlined_call_operand.vmem [shape: f32[512,8], index: 2, kind: output, shape index: {}]  }
   0x1 LB: > { %s595_s10 = sadd.s32 4294967295, %s738_s9   ;;  %p599_p0 = scmp.ge.s32.totalorder %s738_s9, 1  ;;  %s738_s9 = sphi %s755_s9, %s12_s9  }
   0x2   : > { %p113_p1 = scmp.lt.s32.totalorder %s738_s9, 3 }
   0x4   : > { %p114_p2 = pnand %p599_p0, %p113_p1 }
   0x5   : > { %v179_v0 = vld [vmem:[%s915_s1] sm:$0xf] (!%p114_p2)  ;;  %vm277_vm0 = vcmask (!%p114_p2), 1043456   ;;  %s600_s13 = sshll.u32 (!%p114_p2), %s595_s10, 5  ;;  %vm180_vm1 = vcmask (!%p114_p2), 31744   ;;  %vm506_vm2 = vcmask (!%p114_p2), 64512  }
   0x6   : > { %117 = sbr.rel (%p114_p2) target bundleno = 261 (0x105), region = 28  ;;  %672 = vmatprep.subr.msk.mxu0 (!%p114_p2), %vm277_vm0, %v179_v0  ;;  %722 = vmatprep.subr.msk.mxu1 (!%p114_p2), %vm277_vm0, %v179_v0  ;;  %p136_p3 = scmp.lt.s32.totalorder (!%p114_p2), %s600_s13, 63 }
   0x7   : > { %673 = vmatpush3.msk.msra.mxu0 (!%p114_p2), %vm277_vm0, %v179_v0  ;;  %723 = vmatpush3.msk.msra.mxu1 (!%p114_p2), %vm277_vm0, %v179_v0 }
   0xd   : > { %s918_s13 = smov (!%p136_p3, %s600_s13), 63 }
   0xe   : > { %s601_s14 = sshll.u32 %s918_s13, 3 }
   0xf   : > { %s774_s17 = scalar_lea.vmem %s914_s0, %s601_s14  ;;  %s845_s20 = scalar_lea.vmem %s916_s2, %s601_s14 }
  0x10   : > { %v147_v1 = vld [vmem:[%s774_s17] sm:$0xff]  ;;  %v148_v3 = vld [vmem:[%s774_s17 + $0x8] sm:$0xff]  ;;  %v149_v5 = vld [vmem:[%s774_s17 + $0x10] sm:$0xff] }
  0x11   : > { %v163_v2 = vld [vmem:[%s774_s17 + $0x80] sm:$0xff]  ;;  %674 = vmatprep.mubr.msk.f32.mxu0 %vm180_vm1, %v147_v1  ;;  %v164_v4 = vld [vmem:[%s774_s17 + $0x88] sm:$0xff]  ;;  %v165_v6 = vld [vmem:[%s774_s17 + $0x90] sm:$0xff] }
  0x12   : > { %698 = vmatprep.mubr.msk.f32.mxu1 %vm180_vm1, %v163_v2  ;;  %675 = vmatmul.mubr.msk.f32.vlgmr.msra.gmra.mrb[0].mxu0 %vm180_vm1, %v148_v3  ;;  %v150_v7 = vld [vmem:[%s774_s17 + $0x18] sm:$0xff]  ;;  %v151_v9 = vld [vmem:[%s774_s17 + $0x20] sm:$0xff]  ;;  %v152_v11 = vld [vmem:[%s774_s17 + $0x28] sm:$0xff] }
  0x13   : > { %699 = vmatmul.mubr.msk.f32.vlgmr.msra.gmra.mrb[0].mxu1 %vm180_vm1, %v164_v4  ;;  %677 = vmatprep.mubr.msk.f32.mxu0 %vm180_vm1, %v149_v5  ;;  %v166_v8 = vld [vmem:[%s774_s17 + $0x98] sm:$0xff]  ;;  %v167_v10 = vld [vmem:[%s774_s17 + $0xa0] sm:$0xff]  ;;  %v168_v12 = vld [vmem:[%s774_s17 + $0xa8] sm:$0xff] }
  0x14   : > { %701 = vmatprep.mubr.msk.f32.mxu1 %vm180_vm1, %v165_v6  ;;  %v153_v13 = vld [vmem:[%s774_s17 + $0x30] sm:$0xff]  ;;  %v154_v15 = vld [vmem:[%s774_s17 + $0x38] sm:$0xff]  ;;  %v155_v17 = vld [vmem:[%s774_s17 + $0x40] sm:$0xff] }
  0x15   : > { %v169_v14 = vld [vmem:[%s774_s17 + $0xb0] sm:$0xff]  ;;  %v170_v16 = vld [vmem:[%s774_s17 + $0xb8] sm:$0xff]  ;;  %v171_v18 = vld [vmem:[%s774_s17 + $0xc0] sm:$0xff] }
  0x16   : > { %678 = vmatmul.mubr.msk.f32.gmra.mrb[2].mxu0 %vm180_vm1, %v150_v7  ;;  %v156_v19 = vld [vmem:[%s774_s17 + $0x48] sm:$0xff]  ;;  %v157_v21 = vld [vmem:[%s774_s17 + $0x50] sm:$0xff]  ;;  %v158_v23 = vld [vmem:[%s774_s17 + $0x58] sm:$0xff] }
  0x17   : > { %702 = vmatmul.mubr.msk.f32.gmra.mrb[2].mxu1 %vm180_vm1, %v166_v8  ;;  %680 = vmatprep.mubr.msk.f32.mxu0 %vm180_vm1, %v151_v9  ;;  %v172_v20 = vld [vmem:[%s774_s17 + $0xc8] sm:$0xff]  ;;  %v173_v22 = vld [vmem:[%s774_s17 + $0xd0] sm:$0xff]  ;;  %v174_v24 = vld [vmem:[%s774_s17 + $0xd8] sm:$0xff] }
  0x18   : > { %704 = vmatprep.mubr.msk.f32.mxu1 %vm180_vm1, %v167_v10  ;;  %v159_v25 = vld [vmem:[%s774_s17 + $0x60] sm:$0xff]  ;;  %v160_v27 = vld [vmem:[%s774_s17 + $0x68] sm:$0xff]  ;;  %v161_v29 = vld [vmem:[%s774_s17 + $0x70] sm:$0xff] }
  0x19   : > { %v175_v26 = vld [vmem:[%s774_s17 + $0xe0] sm:$0xff]  ;;  %v176_v28 = vld [vmem:[%s774_s17 + $0xe8] sm:$0xff]  ;;  %v177_v30 = vld [vmem:[%s774_s17 + $0xf0] sm:$0xff] }
  0x1a   : > { %681 = vmatmul.mubr.msk.f32.gmra.mrb[4].mxu0 %vm180_vm1, %v152_v11  ;;  %v162_v31 = vld [vmem:[%s774_s17 + $0x78] sm:$0xff] }
  0x1b   : > { %705 = vmatmul.mubr.msk.f32.gmra.mrb[4].mxu1 %vm180_vm1, %v168_v12  ;;  %683 = vmatprep.mubr.msk.f32.mxu0 %vm180_vm1, %v153_v13  ;;  %v178_v32 = vld [vmem:[%s774_s17 + $0xf8] sm:$0xff] }
  0x1c   : > { %707 = vmatprep.mubr.msk.f32.mxu1 %vm180_vm1, %v169_v14 }
  0x1e   : > { %684 = vmatmul.mubr.msk.f32.gmra.mrb[6].mxu0 %vm180_vm1, %v154_v15 }
  0x1f   : > { %708 = vmatmul.mubr.msk.f32.gmra.mrb[6].mxu1 %vm180_vm1, %v170_v16  ;;  %686 = vmatprep.mubr.msk.f32.mxu0 %vm180_vm1, %v155_v17 }
  0x20   : > { %710 = vmatprep.mubr.msk.f32.mxu1 %vm180_vm1, %v171_v18 }
  0x22   : > { %687 = vmatmul.mubr.msk.f32.gmra.mrb[8].mxu0 %vm180_vm1, %v156_v19 }
  0x23   : > { %711 = vmatmul.mubr.msk.f32.gmra.mrb[8].mxu1 %vm180_vm1, %v172_v20  ;;  %689 = vmatprep.mubr.msk.f32.mxu0 %vm180_vm1, %v157_v21 }
  0x24   : > { %713 = vmatprep.mubr.msk.f32.mxu1 %vm180_vm1, %v173_v22 }
  0x26   : > { %690 = vmatmul.mubr.msk.f32.gmra.mrb[10].mxu0 %vm180_vm1, %v158_v23 }
  0x27   : > { %714 = vmatmul.mubr.msk.f32.gmra.mrb[10].mxu1 %vm180_vm1, %v174_v24  ;;  %692 = vmatprep.mubr.msk.f32.mxu0 %vm180_vm1, %v159_v25 }
  0x28   : > { %716 = vmatprep.mubr.msk.f32.mxu1 %vm180_vm1, %v175_v26 }
  0x2a   : > { %693 = vmatmul.mubr.msk.f32.gmra.mrb[12].mxu0 %vm180_vm1, %v160_v27 }
  0x2b   : > { %717 = vmatmul.mubr.msk.f32.gmra.mrb[12].mxu1 %vm180_vm1, %v176_v28  ;;  %695 = vmatprep.mubr.msk.f32.mxu0 %vm180_vm1, %v161_v29 }
  0x2c   : > { %719 = vmatprep.mubr.msk.f32.mxu1 %vm180_vm1, %v177_v30 }
  0x2e   : > { %696 = vmatmul.mubr.msk.f32.gmra.mrb[14].mxu0 %vm180_vm1, %v162_v31 }
  0x2f   : > { %720 = vmatmul.mubr.msk.f32.gmra.mrb[14].mxu1 %vm180_vm1, %v178_v32 }
  0xe5   : > { %v676_v33 = vpop.f32.mrb[0].mxu0 }
  0xe6   : > { %v700_v34 = vpop.f32.mrb[0].mxu1  ;;  %508 = vst.msk [vmem:[%s845_s20 + $0x8] sm:$0xff] %vm506_vm2, %v676_v33  ;;  %v347_v35 = vpop.f32.mrb[1].mxu0 }
  0xe7   : > { %524 = vst.msk [vmem:[%s845_s20 + $0x88] sm:$0xff] %vm506_vm2, %v700_v34  ;;  %v427_v36 = vpop.f32.mrb[1].mxu1  ;;  %507 = vst.msk [vmem:[%s845_s20] sm:$0xff] %vm506_vm2, %v347_v35 }
  0xe8   : > { %523 = vst.msk [vmem:[%s845_s20 + $0x80] sm:$0xff] %vm506_vm2, %v427_v36 }
  0xe9   : > { %v679_v37 = vpop.f32.mrb[2].mxu0 }
  0xea   : > { %v703_v38 = vpop.f32.mrb[2].mxu1  ;;  %510 = vst.msk [vmem:[%s845_s20 + $0x18] sm:$0xff] %vm506_vm2, %v679_v37  ;;  %v357_v39 = vpop.f32.mrb[3].mxu0 }
  0xeb   : > { %526 = vst.msk [vmem:[%s845_s20 + $0x98] sm:$0xff] %vm506_vm2, %v703_v38  ;;  %v437_v40 = vpop.f32.mrb[3].mxu1  ;;  %509 = vst.msk [vmem:[%s845_s20 + $0x10] sm:$0xff] %vm506_vm2, %v357_v39 }
  0xec   : > { %525 = vst.msk [vmem:[%s845_s20 + $0x90] sm:$0xff] %vm506_vm2, %v437_v40 }
  0xed   : > { %v682_v41 = vpop.f32.mrb[4].mxu0 }
  0xee   : > { %v706_v42 = vpop.f32.mrb[4].mxu1  ;;  %512 = vst.msk [vmem:[%s845_s20 + $0x28] sm:$0xff] %vm506_vm2, %v682_v41  ;;  %v367_v43 = vpop.f32.mrb[5].mxu0 }
  0xef   : > { %528 = vst.msk [vmem:[%s845_s20 + $0xa8] sm:$0xff] %vm506_vm2, %v706_v42  ;;  %v447_v44 = vpop.f32.mrb[5].mxu1  ;;  %511 = vst.msk [vmem:[%s845_s20 + $0x20] sm:$0xff] %vm506_vm2, %v367_v43 }
  0xf0   : > { %527 = vst.msk [vmem:[%s845_s20 + $0xa0] sm:$0xff] %vm506_vm2, %v447_v44 }
  0xf1   : > { %v685_v45 = vpop.f32.mrb[6].mxu0 }
  0xf2   : > { %v709_v46 = vpop.f32.mrb[6].mxu1  ;;  %514 = vst.msk [vmem:[%s845_s20 + $0x38] sm:$0xff] %vm506_vm2, %v685_v45  ;;  %v377_v47 = vpop.f32.mrb[7].mxu0 }
  0xf3   : > { %530 = vst.msk [vmem:[%s845_s20 + $0xb8] sm:$0xff] %vm506_vm2, %v709_v46  ;;  %v457_v48 = vpop.f32.mrb[7].mxu1  ;;  %513 = vst.msk [vmem:[%s845_s20 + $0x30] sm:$0xff] %vm506_vm2, %v377_v47 }
  0xf4   : > { %529 = vst.msk [vmem:[%s845_s20 + $0xb0] sm:$0xff] %vm506_vm2, %v457_v48 }
  0xf5   : > { %v688_v49 = vpop.f32.mrb[8].mxu0 }
  0xf6   : > { %v712_v50 = vpop.f32.mrb[8].mxu1  ;;  %516 = vst.msk [vmem:[%s845_s20 + $0x48] sm:$0xff] %vm506_vm2, %v688_v49  ;;  %v387_v51 = vpop.f32.mrb[9].mxu0 }
  0xf7   : > { %532 = vst.msk [vmem:[%s845_s20 + $0xc8] sm:$0xff] %vm506_vm2, %v712_v50  ;;  %v467_v52 = vpop.f32.mrb[9].mxu1  ;;  %515 = vst.msk [vmem:[%s845_s20 + $0x40] sm:$0xff] %vm506_vm2, %v387_v51 }
  0xf8   : > { %531 = vst.msk [vmem:[%s845_s20 + $0xc0] sm:$0xff] %vm506_vm2, %v467_v52 }
  0xf9   : > { %v691_v53 = vpop.f32.mrb[10].mxu0 }
  0xfa   : > { %v715_v54 = vpop.f32.mrb[10].mxu1  ;;  %518 = vst.msk [vmem:[%s845_s20 + $0x58] sm:$0xff] %vm506_vm2, %v691_v53  ;;  %v397_v55 = vpop.f32.mrb[11].mxu0 }
  0xfb   : > { %534 = vst.msk [vmem:[%s845_s20 + $0xd8] sm:$0xff] %vm506_vm2, %v715_v54  ;;  %v477_v56 = vpop.f32.mrb[11].mxu1  ;;  %517 = vst.msk [vmem:[%s845_s20 + $0x50] sm:$0xff] %vm506_vm2, %v397_v55 }
  0xfc   : > { %533 = vst.msk [vmem:[%s845_s20 + $0xd0] sm:$0xff] %vm506_vm2, %v477_v56 }
  0xfd   : > { %v694_v57 = vpop.f32.mrb[12].mxu0 }
  0xfe   : > { %v718_v58 = vpop.f32.mrb[12].mxu1  ;;  %520 = vst.msk [vmem:[%s845_s20 + $0x68] sm:$0xff] %vm506_vm2, %v694_v57  ;;  %v407_v59 = vpop.f32.mrb[13].mxu0 }
  0xff   : > { %536 = vst.msk [vmem:[%s845_s20 + $0xe8] sm:$0xff] %vm506_vm2, %v718_v58  ;;  %v487_v60 = vpop.f32.mrb[13].mxu1  ;;  %519 = vst.msk [vmem:[%s845_s20 + $0x60] sm:$0xff] %vm506_vm2, %v407_v59 }
 0x100   : > { %535 = vst.msk [vmem:[%s845_s20 + $0xe0] sm:$0xff] %vm506_vm2, %v487_v60 }
 0x101   : > { %v697_v61 = vpop.f32.mrb[14].mxu0 }
 0x102   : > { %v721_v62 = vpop.f32.mrb[14].mxu1  ;;  %522 = vst.msk [vmem:[%s845_s20 + $0x78] sm:$0xff] %vm506_vm2, %v697_v61  ;;  %v417_v63 = vpop.f32.mrb[15].mxu0 }
 0x103   : > { %538 = vst.msk [vmem:[%s845_s20 + $0xf8] sm:$0xff] %vm506_vm2, %v721_v62  ;;  %v497_v0 = vpop.f32.mrb[15].mxu1  ;;  %521 = vst.msk [vmem:[%s845_s20 + $0x70] sm:$0xff] %vm506_vm2, %v417_v63 }
 0x104   : > { %537 = vst.msk [vmem:[%s845_s20 + $0xf0] sm:$0xff] %vm506_vm2, %v497_v0 }
 0x105 PF: > { %s12_s9 = sadd.s32 1, %s738_s9  }
 0x106   : > { %p9_p4 = scmp.ge.s32.totalorder %s12_s9, 4  }
 0x108   :  { %11 = sbr.rel (!%p9_p4) target bundleno = 1 (0x1), region = 58 }

// kernel: solo_inference.73
= control target key start
LH: loop header
LB: loop body
LE: loop exit
PB: predicated region body
PF: predicated region fallthrough
CT: control target
= control target key end

     0   :  { %s816_s18 = smov 0   ;;  %s975_s0 = inlined_call_operand.vmem [shape: f32[2,288,64], index: 0, kind: input, shape index: {}]   ;;  %s976_s1 = inlined_call_operand.vmem [shape: f32[32,288], index: 1, kind: input, shape index: {}]   ;;  %s977_s2 = inlined_call_operand.vmem [shape: f32[32,1], index: 2, kind: input, shape index: {}]   ;;  %s978_s3 = inlined_call_operand.vmem [shape: f32[32,1], index: 3, kind: input, shape index: {}]   ;;  %s979_s4 = inlined_call_operand.vmem [shape: f32[32,1], index: 4, kind: input, shape index: {}]   ;;  %s980_s5 = inlined_call_operand.vmem [shape: f32[2,32,64], index: 5, kind: output, shape index: {}]  }
   0x1 LB: > { %s636_s2 = sadd.s32 4294967295, %s783_s18   ;;  %p640_p0 = scmp.ge.s32.totalorder %s783_s18, 1  ;;  %s783_s18 = sphi %s816_s18, %s15_s18  }
   0x2   : > { %p187_p1 = scmp.lt.s32.totalorder %s783_s18, 3 }
   0x4   : > { %p188_p2 = pnand %p640_p0, %p187_p1 }
   0x5   : > { %p215_p3 = scmp.lt.s32.totalorder (!%p188_p2), %s636_s2, 1  ;;  %v226_v0 = vld [vmem:[%s976_s1 + $0x8] sm:$0xff] (!%p188_p2)  ;;  %v227_v1 = vld [vmem:[%s976_s1 + $0x10] sm:$0xff] (!%p188_p2)  ;;  %vm273_vm0 = vcmask (!%p188_p2), 261120   ;;  %v233_v46 = vld [vmem:[%s976_s1 + $0x40] sm:$0xff] (!%p188_p2)  ;;  %vm456_vm1 = vcmask (!%p188_p2), 523264  }
   0x6   : > { %191 = sbr.rel (%p188_p2) target bundleno = 525 (0x20d), region = 40  ;;  %350 = vmatprep.mubr.f32.mxu0 (!%p188_p2), %v226_v0  ;;  %711 = vmatprep.mubr.msk.f32.mxu1 (!%p188_p2), %vm273_vm0, %v227_v1  ;;  %v230_v43 = vld [vmem:[%s976_s1 + $0x28] sm:$0xff] (!%p188_p2)  ;;  %v236_v51 = vld [vmem:[%s976_s1 + $0x58] sm:$0xff] (!%p188_p2)  ;;  %v225_v59 = vld [vmem:[%s976_s1] sm:$0xff] (!%p188_p2) }
   0x7   : > { %v229_v60 = vld [vmem:[%s976_s1 + $0x20] sm:$0xff] (!%p188_p2)  ;;  %v228_v61 = vld [vmem:[%s976_s1 + $0x18] sm:$0xff] (!%p188_p2)  ;;  %v231_v63 = vld [vmem:[%s976_s1 + $0x30] sm:$0xff] (!%p188_p2) }
   0x8   : > { %v232_v62 = vld [vmem:[%s976_s1 + $0x38] sm:$0xff] (!%p188_p2)  ;;  %v235_v0 = vld [vmem:[%s976_s1 + $0x50] sm:$0xff] (!%p188_p2)  ;;  %v234_v1 = vld [vmem:[%s976_s1 + $0x48] sm:$0xff] (!%p188_p2) }
   0xd   : > { %s982_s2 = smov (!%p215_p3, %s636_s2), 1 }
   0xe   : > { %s757_s23 = smul.u32 288, %s982_s2  ;;  %s650_s14 = sshll.u32 %s982_s2, 5 }
   0xf   : > { %s224_s17 = scalar_lea.vmem %s980_s5, %s650_s14 }
  0x10   : > { %s837_s26 = scalar_lea.vmem %s975_s0, %s757_s23 }
  0x11   : > { %v253_v2 = vld [vmem:[%s837_s26 + $0x80] sm:$0xff]  ;;  %v254_v3 = vld [vmem:[%s837_s26 + $0x88] sm:$0xff]  ;;  %v255_v7 = vld [vmem:[%s837_s26 + $0x90] sm:$0xff] }
  0x12   : > { %v237_v4 = vld [vmem:[%s837_s26] sm:$0xff]  ;;  %v717_v5 = vpack.c.bf16 %v254_v3, %v253_v2  ;;  %v238_v6 = vld [vmem:[%s837_s26 + $0x8] sm:$0xff]  ;;  %v256_v8 = vld [vmem:[%s837_s26 + $0x98] sm:$0xff]  ;;  %v785_v2 = vmov 0  }
  0x13   : > { %v719_v9 = vpack.c.bf16 %v238_v6, %v237_v4  ;;  %v721_v10 = vpack.c.bf16 %v256_v8, %v255_v7  ;;  %v239_v11 = vld [vmem:[%s837_s26 + $0x10] sm:$0xff]  ;;  %v240_v12 = vld [vmem:[%s837_s26 + $0x18] sm:$0xff]  ;;  %v257_v13 = vld [vmem:[%s837_s26 + $0xa0] sm:$0xff]  ;;  %768 = vset.pattern.permute.xlu1 %v785_v2  ;;  %767 = vset.pattern.permute.xlu0 %v785_v2 }
  0x14   : > { %718 = vmatprep.subr.bf16.mxu0 %v717_v5  ;;  %v258_v14 = vld [vmem:[%s837_s26 + $0xa8] sm:$0xff]  ;;  %v723_v15 = vpack.c.bf16 %v240_v12, %v239_v11  ;;  %v241_v17 = vld [vmem:[%s837_s26 + $0x20] sm:$0xff]  ;;  %v259_v19 = vld [vmem:[%s837_s26 + $0xb0] sm:$0xff] }
  0x15   : > { %720 = vmatpush3.bf16.msra.mxu0 %v719_v9  ;;  %v725_v16 = vpack.c.bf16 %v258_v14, %v257_v13  ;;  %v242_v18 = vld [vmem:[%s837_s26 + $0x28] sm:$0xff]  ;;  %v260_v20 = vld [vmem:[%s837_s26 + $0xb8] sm:$0xff]  ;;  %v243_v22 = vld [vmem:[%s837_s26 + $0x30] sm:$0xff] }
  0x16   : > { %722 = vmatprep.subr.bf16.mxu0 %v721_v10  ;;  %v727_v21 = vpack.c.bf16 %v242_v18, %v241_v17  ;;  %v729_v23 = vpack.c.bf16 %v260_v20, %v259_v19  ;;  %v244_v24 = vld [vmem:[%s837_s26 + $0x38] sm:$0xff]  ;;  %v269_v25 = vld [vmem:[%s837_s26 + $0x100] sm:$0xff]  ;;  %v270_v26 = vld [vmem:[%s837_s26 + $0x108] sm:$0xff] }
  0x17   : > { %v261_v27 = vld [vmem:[%s837_s26 + $0xc0] sm:$0xff]  ;;  %v262_v28 = vld [vmem:[%s837_s26 + $0xc8] sm:$0xff]  ;;  %v749_v29 = vpack.c.bf16 %v270_v26, %v269_v25  ;;  %v271_v30 = vld [vmem:[%s837_s26 + $0x110] sm:$0xff]  ;;  %v731_v32 = vpack.c.bf16 %v244_v24, %v243_v22 }
  0x18   : > { %v272_v31 = vld [vmem:[%s837_s26 + $0x118] sm:$0xff]  ;;  %v733_v34 = vpack.c.bf16 %v262_v28, %v261_v27  ;;  %v245_v35 = vld [vmem:[%s837_s26 + $0x40] sm:$0xff]  ;;  %v246_v36 = vld [vmem:[%s837_s26 + $0x48] sm:$0xff] }
  0x19   : > { %724 = vmatpush3.bf16.msra.mxu0 %v723_v15  ;;  %750 = vmatprep.subr.bf16.mxu1 %v749_v29  ;;  %v753_v33 = vpack.c.bf16 %v272_v31, %v271_v30  ;;  %v263_v37 = vld [vmem:[%s837_s26 + $0xd0] sm:$0xff]  ;;  %v264_v38 = vld [vmem:[%s837_s26 + $0xd8] sm:$0xff]  ;;  %v735_v39 = vpack.c.bf16 %v246_v36, %v245_v35  ;;  %v265_v44 = vld [vmem:[%s837_s26 + $0xe0] sm:$0xff] }
  0x1a   : > { %726 = vmatprep.subr.bf16.mxu0 %v725_v16  ;;  %752 = vmatpush3.bf16.msra.mxu1 %v749_v29  ;;  %v737_v40 = vpack.c.bf16 %v264_v38, %v263_v37  ;;  %v247_v41 = vld [vmem:[%s837_s26 + $0x50] sm:$0xff]  ;;  %v248_v42 = vld [vmem:[%s837_s26 + $0x58] sm:$0xff]  ;;  %v266_v45 = vld [vmem:[%s837_s26 + $0xe8] sm:$0xff] }
  0x1b   : > { %754 = vmatprep.subr.bf16.mxu1 %v753_v33  ;;  %v739_v47 = vpack.c.bf16 %v248_v42, %v247_v41  ;;  %v741_v48 = vpack.c.bf16 %v266_v45, %v265_v44  ;;  %v249_v49 = vld [vmem:[%s837_s26 + $0x60] sm:$0xff]  ;;  %v250_v50 = vld [vmem:[%s837_s26 + $0x68] sm:$0xff]  ;;  %v267_v52 = vld [vmem:[%s837_s26 + $0xf0] sm:$0xff] }
  0x1c   : > { %v268_v53 = vld [vmem:[%s837_s26 + $0xf8] sm:$0xff]  ;;  %v743_v54 = vpack.c.bf16 %v250_v50, %v249_v49  ;;  %v251_v56 = vld [vmem:[%s837_s26 + $0x70] sm:$0xff]  ;;  %v545_v36 = vld [vmem:[%s979_s4] sm:$0xff] }
  0x1d   : > { %728 = vmatpush3.bf16.msra.mxu0 %v727_v21  ;;  %v745_v55 = vpack.c.bf16 %v268_v53, %v267_v52  ;;  %v252_v57 = vld [vmem:[%s837_s26 + $0x78] sm:$0xff]  ;;  %v546_v37 = vld [vmem:[%s979_s4 + $0x8] sm:$0xff]  ;;  %v547_v38 = vld [vmem:[%s979_s4 + $0x10] sm:$0xff] }
  0x1e   : > { %730 = vmatprep.subr.bf16.mxu0 %v729_v23  ;;  %756 = vmatpush3.bf16.msra.mxu1 %v753_v33  ;;  %v747_v58 = vpack.c.bf16 %v252_v57, %v251_v56  ;;  %v519_v33 = vld [vmem:[%s978_s3 + $0x10] sm:$0xff]  ;;  %v520_v35 = vld [vmem:[%s978_s3 + $0x18] sm:$0xff] }
  0x1f   : > { %v548_v42 = vld [vmem:[%s979_s4 + $0x18] sm:$0xff] }
  0x21   : > { %732 = vmatpush3.bf16.msra.mxu0 %v731_v32  ;;  %712 = vmatmul.mubr.msk.f32.vlgmr.msra.gmra.mrb[0].mxu1 %vm273_vm0, %v230_v43  ;;  %v518_v32 = vld [vmem:[%s978_s3 + $0x8] sm:$0xff] }
  0x22   : > { %734 = vmatprep.subr.bf16.mxu0 %v733_v34  ;;  %714 = vmatprep.mubr.msk.f32.mxu1 %vm273_vm0, %v233_v46  ;;  %v517_v34 = vld [vmem:[%s978_s3] sm:$0xff] }
  0x25   : > { %736 = vmatpush3.bf16.msra.mxu0 %v735_v39  ;;  %715 = vmatmul.mubr.msk.f32.gmra.mrb[2].mxu1 %vm273_vm0, %v236_v51 }
  0x26   : > { %738 = vmatprep.subr.bf16.mxu0 %v737_v40 }
  0x29   : > { %740 = vmatpush3.bf16.msra.mxu0 %v739_v47 }
  0x2a   : > { %742 = vmatprep.subr.bf16.mxu0 %v741_v48 }
  0x2d   : > { %744 = vmatpush3.bf16.msra.mxu0 %v743_v54 }
  0x2e   : > { %746 = vmatprep.subr.bf16.mxu0 %v745_v55 }
  0x31   : > { %748 = vmatpush3.bf16.msra.mxu0 %v747_v58 }
  0x34   : > { %351 = vmatmul.mubr.f32.vlgmr.msra.gmra.mrb[0].mxu0 %v225_v59 }
  0x35   : > { %355 = vmatprep.mubr.f32.mxu0 %v229_v60 }
  0x38   : > { %356 = vmatmul.mubr.f32.gmra.mrb[2].mxu0 %v228_v61 }
  0x39   : > { %360 = vmatprep.mubr.f32.mxu0 %v232_v62 }
  0x3c   : > { %361 = vmatmul.mubr.f32.gmra.mrb[4].mxu0 %v231_v63 }
  0x3d   : > { %365 = vmatprep.mubr.f32.mxu0 %v235_v0 }
  0x40   : > { %366 = vmatmul.mubr.f32.gmra.mrb[6].mxu0 %v234_v1 }
  0xf4   : > { %v713_v3 = vpop.f32.mrb[0].mxu1 }
  0xf5   : > { %v437_v4 = vpop.f32.mrb[1].mxu1 }
  0xf8   : > { %v716_v5 = vpop.f32.mrb[2].mxu1 }
  0xf9   : > { %v447_v6 = vpop.f32.mrb[3].mxu1 }
 0x107   : > { %v683_v7 = vpop.f32.mrb[0].mxu0 }
 0x108   : > { %v684_v8 = vpop.f32.mrb[1].mxu0 }
 0x109   : > { %v685_v9 = vadd.f32 %v684_v8, %v683_v7 }
 0x10b   : > { %v908_v10 = vadd.f32 %v685_v9, %v437_v4  ;;  %v686_v11 = vpop.f32.mrb[2].mxu0 }
 0x10c   : > { %v687_v12 = vpop.f32.mrb[3].mxu0 }
 0x10d   : > { %v688_v13 = vadd.f32 %v687_v12, %v686_v11  ;;  %v457_v14 = vsel %vm456_vm1, %v908_v10, 0.0  ;;  %v473_v15 = vmul.f32 %v908_v10, %v908_v10 }
 0x10e   : > { %458 = vadd.xlane.f32.xlu0 %v457_v14 }
 0x10f   : > { %v914_v16 = vadd.f32 %v713_v3, %v688_v13  ;;  %v689_v17 = vpop.f32.mrb[4].mxu0  ;;  %v477_v20 = vsel %vm456_vm1, %v473_v15, 0.0 }
 0x110   : > { %v690_v18 = vpop.f32.mrb[5].mxu0 }
 0x111   : > { %v691_v19 = vadd.f32 %v690_v18, %v689_v17  ;;  %v474_v21 = vmul.f32 %v914_v16, %v914_v16  ;;  %v460_v27 = vsel %vm456_vm1, %v914_v16, 0.0 }
 0x112   : > { %478 = vadd.xlane.f32.xlu0 %v477_v20 }
 0x113   : > { %v692_v22 = vpop.f32.mrb[6].mxu0  ;;  %v919_v23 = vadd.f32 %v691_v19, %v447_v6  ;;  %v480_v24 = vsel %vm456_vm1, %v474_v21, 0.0 }
 0x114   : > { %v693_v25 = vpop.f32.mrb[7].mxu0  ;;  %481 = vadd.xlane.f32.xlu1 %v480_v24 }
 0x115   : > { %v694_v26 = vadd.f32 %v693_v25, %v692_v22  ;;  %v463_v28 = vsel %vm456_vm1, %v919_v23, 0.0  ;;  %v475_v29 = vmul.f32 %v919_v23, %v919_v23 }
 0x116   : > { %461 = vadd.xlane.f32.xlu0 %v460_v27 }
 0x117   : > { %v928_v30 = vadd.f32 %v716_v5, %v694_v26  ;;  %v483_v31 = vsel %vm456_vm1, %v475_v29, 0.0 }
 0x118   : > { %464 = vadd.xlane.f32.xlu1 %v463_v28 }
 0x119   : > { %v466_v39 = vsel %vm456_vm1, %v928_v30, 0.0  ;;  %v476_v40 = vmul.f32 %v928_v30, %v928_v30 }
 0x11a   : > { %484 = vadd.xlane.f32.xlu0 %v483_v31 }
 0x11b   : > { %v486_v41 = vsel %vm456_vm1, %v476_v40, 0.0 }
 0x129   : > { %528 = vperm.xlu1 %768, %v518_v32  }
 0x12d   : > { %533 = vperm.xlu1 %768, %v519_v33  }
 0x130   : > { %523 = vperm.xlu0 %767, %v517_v34  }
 0x131   : > { %538 = vperm.xlu1 %768, %v520_v35  }
 0x135   : > { %551 = vperm.xlu1 %768, %v545_v36  }
 0x139   : > { %556 = vperm.xlu1 %768, %v546_v37  }
 0x13d   : > { %561 = vperm.xlu1 %768, %v547_v38  }
 0x161   : > { %467 = vadd.xlane.f32.xlu1 %v466_v39 }
 0x165   : > { %487 = vadd.xlane.f32.xlu1 %v486_v41 }
 0x176   : > { %566 = vperm.xlu1 %768, %v548_v42  }
 0x19b   : > { %v459_v43 = vpop.xlane.xlu0 %458 }
 0x19c   : > { %v469_v44 = vmul.f32 0.015625, %v459_v43 }
 0x19e   : > { %v493_v46 = vmul.f32 %v469_v44, %v469_v44  ;;  %v501_v2 = vsub.f32 %v908_v10, %v469_v44 }
 0x19f   : > { %v479_v45 = vpop.xlane.xlu0 %478 }
 0x1a0   : > { %v489_v47 = vmul.f32 0.015625, %v479_v45 }
 0x1a1   : > { %v482_v48 = vpop.xlane.xlu1 %481 }
 0x1a2   : > { %v497_v49 = vsub.f32 %v489_v47, %v493_v46  ;;  %v490_v54 = vmul.f32 0.015625, %v482_v48 }
 0x1a3   : > { %v462_v50 = vpop.xlane.xlu0 %461 }
 0x1a4   : > { %v505_v51 = vadd.f32 1e-05, %v497_v49  ;;  %v470_v52 = vmul.f32 0.015625, %v462_v50 }
 0x1a5   : > { %v465_v53 = vpop.xlane.xlu1 %464 }
 0x1a6   : > { %769 = vrsqrt.f32 %v505_v51  ;;  %v494_v55 = vmul.f32 %v470_v52, %v470_v52  ;;  %v471_v56 = vmul.f32 0.015625, %v465_v53  ;;  %v502_v8 = vsub.f32 %v914_v16, %v470_v52 }
 0x1a7   : > { %v485_v57 = vpop.xlane.xlu0 %484 }
 0x1a8   : > { %v498_v58 = vsub.f32 %v490_v54, %v494_v55  ;;  %v495_v59 = vmul.f32 %v471_v56, %v471_v56  ;;  %v491_v60 = vmul.f32 0.015625, %v485_v57  ;;  %v503_v13 = vsub.f32 %v919_v23, %v471_v56 }
 0x1a9   : > { %v529_v61 = vpop.permute.xlu1 %528 }
 0x1aa   : > { %v506_v62 = vadd.f32 1e-05, %v498_v58  ;;  %v499_v63 = vsub.f32 %v491_v60, %v495_v59 }
 0x1ac   : > { %771 = vrsqrt.f32 %v506_v62  ;;  %v507_v0 = vadd.f32 1e-05, %v499_v63 }
 0x1ad   : > { %v534_v1 = vpop.permute.xlu1 %533 }
 0x1ae   : > { %773 = vrsqrt.f32 %v507_v0 }
 0x1af   : > { %v524_v4 = vpop.permute.xlu0 %523 }
 0x1b0   : > { %v770_v3 = vpop.eup %769 }
 0x1b1   : > { %v539_v5 = vpop.permute.xlu1 %538  ;;  %v513_v6 = vmul.f32 %v770_v3, %v501_v2 }
 0x1b3   : > { %v541_v7 = vmul.f32 %v524_v4, %v513_v6 }
 0x1b5   : > { %v552_v9 = vpop.permute.xlu1 %551 }
 0x1b6   : > { %v772_v11 = vpop.eup %771  ;;  %v569_v12 = vadd.f32 %v552_v9, %v541_v7 }
 0x1b7   : > { %v514_v14 = vmul.f32 %v772_v11, %v502_v8 }
 0x1b8   : > { %v774_v15 = vpop.eup %773  ;;  %v573_v10 = vmax.f32 %v569_v12, 0.0 }
 0x1b9   : > { %v542_v17 = vmul.f32 %v529_v61, %v514_v14  ;;  %v515_v18 = vmul.f32 %v774_v15, %v503_v13  ;;  %v557_v19 = vpop.permute.xlu1 %556 }
 0x1ba   : > { %577 = vst.msk [vmem:[%s224_s17] sm:$0xff] %vm456_vm1, %v573_v10 }
 0x1bb   : > { %v543_v20 = vmul.f32 %v534_v1, %v515_v18  ;;  %v570_v21 = vadd.f32 %v557_v19, %v542_v17 }
 0x1bd   : > { %v574_v16 = vmax.f32 %v570_v21, 0.0  ;;  %v562_v22 = vpop.permute.xlu1 %561 }
 0x1be   : > { %v571_v24 = vadd.f32 %v562_v22, %v543_v20 }
 0x1bf   : > { %578 = vst.msk [vmem:[%s224_s17 + $0x8] sm:$0xff] %vm456_vm1, %v574_v16 }
 0x1c0   : > { %v575_v23 = vmax.f32 %v571_v24, 0.0 }
 0x1c2   : > { %579 = vst.msk [vmem:[%s224_s17 + $0x10] sm:$0xff] %vm456_vm1, %v575_v23 }
 0x1ee   : > { %v468_v25 = vpop.xlane.xlu1 %467 }
 0x1ef   : > { %v472_v26 = vmul.f32 0.015625, %v468_v25 }
 0x1f1   : > { %v496_v28 = vmul.f32 %v472_v26, %v472_v26  ;;  %v504_v33 = vsub.f32 %v928_v30, %v472_v26 }
 0x1f2   : > { %v488_v27 = vpop.xlane.xlu1 %487 }
 0x1f3   : > { %v492_v29 = vmul.f32 0.015625, %v488_v27 }
 0x1f5   : > { %v500_v31 = vsub.f32 %v492_v29, %v496_v28 }
 0x1f6   : > { %v567_v37 = vpop.permute.xlu1 %566 }
 0x1f7   : > { %v508_v32 = vadd.f32 1e-05, %v500_v31 }
 0x1f9   : > { %775 = vrsqrt.f32 %v508_v32 }
 0x203   : > { %v776_v34 = vpop.eup %775 }
 0x204   : > { %v516_v35 = vmul.f32 %v776_v34, %v504_v33 }
 0x206   : > { %v544_v36 = vmul.f32 %v539_v5, %v516_v35 }
 0x208   : > { %v572_v38 = vadd.f32 %v567_v37, %v544_v36 }
 0x20a   : > { %v576_v39 = vmax.f32 %v572_v38, 0.0 }
 0x20c   : > { %580 = vst.msk [vmem:[%s224_s17 + $0x18] sm:$0xff] %vm456_vm1, %v576_v39 }
 0x20d PF: > { %s15_s18 = sadd.s32 1, %s783_s18  }
 0x20e   : > { %p12_p4 = scmp.ge.s32.totalorder %s15_s18, 4  }
 0x210   :  { %14 = sbr.rel (!%p12_p4) target bundleno = 1 (0x1), region = 70 }

// kernel: solo_inference.74
= control target key start
LH: loop header
LB: loop body
LE: loop exit
PB: predicated region body
PF: predicated region fallthrough
CT: control target
= control target key end

     0   :  { %s750_s9 = smov 0   ;;  %s909_s0 = inlined_call_operand.vmem [shape: f32[512,8], index: 0, kind: input, shape index: {}]   ;;  %s910_s1 = inlined_call_operand.vmem [shape: f32[8,16], index: 1, kind: input, shape index: {}]   ;;  %s911_s2 = inlined_call_operand.vmem [shape: f32[512,16], index: 2, kind: output, shape index: {}]  }
   0x1 LB: > { %s591_s10 = sadd.s32 4294967295, %s733_s9   ;;  %p595_p0 = scmp.ge.s32.totalorder %s733_s9, 1  ;;  %s733_s9 = sphi %s750_s9, %s12_s9  }
   0x2   : > { %p113_p1 = scmp.lt.s32.totalorder %s733_s9, 3 }
   0x4   : > { %p114_p2 = pnand %p595_p0, %p113_p1 }
   0x5   : > { %v179_v0 = vld [vmem:[%s910_s1] sm:$0xff] (!%p114_p2)  ;;  %s596_s13 = sshll.u32 (!%p114_p2), %s591_s10, 5  ;;  %vm180_vm0 = vcmask (!%p114_p2), 64512   ;;  %vm502_vm1 = vcmask (!%p114_p2), 130048  }
   0x6   : > { %117 = sbr.rel (%p114_p2) target bundleno = 261 (0x105), region = 28  ;;  %667 = vmatprep.subr.mxu0 (!%p114_p2), %v179_v0  ;;  %717 = vmatprep.subr.mxu1 (!%p114_p2), %v179_v0  ;;  %p136_p3 = scmp.lt.s32.totalorder (!%p114_p2), %s596_s13, 63 }
   0x7   : > { %668 = vmatpush3.msra.mxu0 (!%p114_p2), %v179_v0  ;;  %718 = vmatpush3.msra.mxu1 (!%p114_p2), %v179_v0 }
   0xd   : > { %s913_s13 = smov (!%p136_p3, %s596_s13), 63 }
   0xe   : > { %s597_s14 = sshll.u32 %s913_s13, 3 }
   0xf   : > { %s769_s17 = scalar_lea.vmem %s909_s0, %s597_s14  ;;  %s840_s20 = scalar_lea.vmem %s911_s2, %s597_s14 }
  0x10   : > { %v147_v1 = vld [vmem:[%s769_s17] sm:$0xff]  ;;  %v148_v3 = vld [vmem:[%s769_s17 + $0x8] sm:$0xff]  ;;  %v149_v5 = vld [vmem:[%s769_s17 + $0x10] sm:$0xff] }
  0x11   : > { %v163_v2 = vld [vmem:[%s769_s17 + $0x80] sm:$0xff]  ;;  %669 = vmatprep.mubr.msk.f32.mxu0 %vm180_vm0, %v147_v1  ;;  %v164_v4 = vld [vmem:[%s769_s17 + $0x88] sm:$0xff]  ;;  %v165_v6 = vld [vmem:[%s769_s17 + $0x90] sm:$0xff] }
  0x12   : > { %693 = vmatprep.mubr.msk.f32.mxu1 %vm180_vm0, %v163_v2  ;;  %670 = vmatmul.mubr.msk.f32.vlgmr.msra.gmra.mrb[0].mxu0 %vm180_vm0, %v148_v3  ;;  %v150_v7 = vld [vmem:[%s769_s17 + $0x18] sm:$0xff]  ;;  %v151_v9 = vld [vmem:[%s769_s17 + $0x20] sm:$0xff]  ;;  %v152_v11 = vld [vmem:[%s769_s17 + $0x28] sm:$0xff] }
  0x13   : > { %694 = vmatmul.mubr.msk.f32.vlgmr.msra.gmra.mrb[0].mxu1 %vm180_vm0, %v164_v4  ;;  %672 = vmatprep.mubr.msk.f32.mxu0 %vm180_vm0, %v149_v5  ;;  %v166_v8 = vld [vmem:[%s769_s17 + $0x98] sm:$0xff]  ;;  %v167_v10 = vld [vmem:[%s769_s17 + $0xa0] sm:$0xff]  ;;  %v168_v12 = vld [vmem:[%s769_s17 + $0xa8] sm:$0xff] }
  0x14   : > { %696 = vmatprep.mubr.msk.f32.mxu1 %vm180_vm0, %v165_v6  ;;  %v153_v13 = vld [vmem:[%s769_s17 + $0x30] sm:$0xff]  ;;  %v154_v15 = vld [vmem:[%s769_s17 + $0x38] sm:$0xff]  ;;  %v155_v17 = vld [vmem:[%s769_s17 + $0x40] sm:$0xff] }
  0x15   : > { %v169_v14 = vld [vmem:[%s769_s17 + $0xb0] sm:$0xff]  ;;  %v170_v16 = vld [vmem:[%s769_s17 + $0xb8] sm:$0xff]  ;;  %v171_v18 = vld [vmem:[%s769_s17 + $0xc0] sm:$0xff] }
  0x16   : > { %673 = vmatmul.mubr.msk.f32.gmra.mrb[2].mxu0 %vm180_vm0, %v150_v7  ;;  %v156_v19 = vld [vmem:[%s769_s17 + $0x48] sm:$0xff]  ;;  %v157_v21 = vld [vmem:[%s769_s17 + $0x50] sm:$0xff]  ;;  %v158_v23 = vld [vmem:[%s769_s17 + $0x58] sm:$0xff] }
  0x17   : > { %697 = vmatmul.mubr.msk.f32.gmra.mrb[2].mxu1 %vm180_vm0, %v166_v8  ;;  %675 = vmatprep.mubr.msk.f32.mxu0 %vm180_vm0, %v151_v9  ;;  %v172_v20 = vld [vmem:[%s769_s17 + $0xc8] sm:$0xff]  ;;  %v173_v22 = vld [vmem:[%s769_s17 + $0xd0] sm:$0xff]  ;;  %v174_v24 = vld [vmem:[%s769_s17 + $0xd8] sm:$0xff] }
  0x18   : > { %699 = vmatprep.mubr.msk.f32.mxu1 %vm180_vm0, %v167_v10  ;;  %v159_v25 = vld [vmem:[%s769_s17 + $0x60] sm:$0xff]  ;;  %v160_v27 = vld [vmem:[%s769_s17 + $0x68] sm:$0xff]  ;;  %v161_v29 = vld [vmem:[%s769_s17 + $0x70] sm:$0xff] }
  0x19   : > { %v175_v26 = vld [vmem:[%s769_s17 + $0xe0] sm:$0xff]  ;;  %v176_v28 = vld [vmem:[%s769_s17 + $0xe8] sm:$0xff]  ;;  %v177_v30 = vld [vmem:[%s769_s17 + $0xf0] sm:$0xff] }
  0x1a   : > { %676 = vmatmul.mubr.msk.f32.gmra.mrb[4].mxu0 %vm180_vm0, %v152_v11  ;;  %v162_v31 = vld [vmem:[%s769_s17 + $0x78] sm:$0xff] }
  0x1b   : > { %700 = vmatmul.mubr.msk.f32.gmra.mrb[4].mxu1 %vm180_vm0, %v168_v12  ;;  %678 = vmatprep.mubr.msk.f32.mxu0 %vm180_vm0, %v153_v13  ;;  %v178_v32 = vld [vmem:[%s769_s17 + $0xf8] sm:$0xff] }
  0x1c   : > { %702 = vmatprep.mubr.msk.f32.mxu1 %vm180_vm0, %v169_v14 }
  0x1e   : > { %679 = vmatmul.mubr.msk.f32.gmra.mrb[6].mxu0 %vm180_vm0, %v154_v15 }
  0x1f   : > { %703 = vmatmul.mubr.msk.f32.gmra.mrb[6].mxu1 %vm180_vm0, %v170_v16  ;;  %681 = vmatprep.mubr.msk.f32.mxu0 %vm180_vm0, %v155_v17 }
  0x20   : > { %705 = vmatprep.mubr.msk.f32.mxu1 %vm180_vm0, %v171_v18 }
  0x22   : > { %682 = vmatmul.mubr.msk.f32.gmra.mrb[8].mxu0 %vm180_vm0, %v156_v19 }
  0x23   : > { %706 = vmatmul.mubr.msk.f32.gmra.mrb[8].mxu1 %vm180_vm0, %v172_v20  ;;  %684 = vmatprep.mubr.msk.f32.mxu0 %vm180_vm0, %v157_v21 }
  0x24   : > { %708 = vmatprep.mubr.msk.f32.mxu1 %vm180_vm0, %v173_v22 }
  0x26   : > { %685 = vmatmul.mubr.msk.f32.gmra.mrb[10].mxu0 %vm180_vm0, %v158_v23 }
  0x27   : > { %709 = vmatmul.mubr.msk.f32.gmra.mrb[10].mxu1 %vm180_vm0, %v174_v24  ;;  %687 = vmatprep.mubr.msk.f32.mxu0 %vm180_vm0, %v159_v25 }
  0x28   : > { %711 = vmatprep.mubr.msk.f32.mxu1 %vm180_vm0, %v175_v26 }
  0x2a   : > { %688 = vmatmul.mubr.msk.f32.gmra.mrb[12].mxu0 %vm180_vm0, %v160_v27 }
  0x2b   : > { %712 = vmatmul.mubr.msk.f32.gmra.mrb[12].mxu1 %vm180_vm0, %v176_v28  ;;  %690 = vmatprep.mubr.msk.f32.mxu0 %vm180_vm0, %v161_v29 }
  0x2c   : > { %714 = vmatprep.mubr.msk.f32.mxu1 %vm180_vm0, %v177_v30 }
  0x2e   : > { %691 = vmatmul.mubr.msk.f32.gmra.mrb[14].mxu0 %vm180_vm0, %v162_v31 }
  0x2f   : > { %715 = vmatmul.mubr.msk.f32.gmra.mrb[14].mxu1 %vm180_vm0, %v178_v32 }
  0xe5   : > { %v671_v33 = vpop.f32.mrb[0].mxu0 }
  0xe6   : > { %v695_v34 = vpop.f32.mrb[0].mxu1  ;;  %504 = vst.msk [vmem:[%s840_s20 + $0x8] sm:$0xff] %vm502_vm1, %v671_v33  ;;  %v343_v35 = vpop.f32.mrb[1].mxu0 }
  0xe7   : > { %520 = vst.msk [vmem:[%s840_s20 + $0x88] sm:$0xff] %vm502_vm1, %v695_v34  ;;  %v423_v36 = vpop.f32.mrb[1].mxu1  ;;  %503 = vst.msk [vmem:[%s840_s20] sm:$0xff] %vm502_vm1, %v343_v35 }
  0xe8   : > { %519 = vst.msk [vmem:[%s840_s20 + $0x80] sm:$0xff] %vm502_vm1, %v423_v36 }
  0xe9   : > { %v674_v37 = vpop.f32.mrb[2].mxu0 }
  0xea   : > { %v698_v38 = vpop.f32.mrb[2].mxu1  ;;  %506 = vst.msk [vmem:[%s840_s20 + $0x18] sm:$0xff] %vm502_vm1, %v674_v37  ;;  %v353_v39 = vpop.f32.mrb[3].mxu0 }
  0xeb   : > { %522 = vst.msk [vmem:[%s840_s20 + $0x98] sm:$0xff] %vm502_vm1, %v698_v38  ;;  %v433_v40 = vpop.f32.mrb[3].mxu1  ;;  %505 = vst.msk [vmem:[%s840_s20 + $0x10] sm:$0xff] %vm502_vm1, %v353_v39 }
  0xec   : > { %521 = vst.msk [vmem:[%s840_s20 + $0x90] sm:$0xff] %vm502_vm1, %v433_v40 }
  0xed   : > { %v677_v41 = vpop.f32.mrb[4].mxu0 }
  0xee   : > { %v701_v42 = vpop.f32.mrb[4].mxu1  ;;  %508 = vst.msk [vmem:[%s840_s20 + $0x28] sm:$0xff] %vm502_vm1, %v677_v41  ;;  %v363_v43 = vpop.f32.mrb[5].mxu0 }
  0xef   : > { %524 = vst.msk [vmem:[%s840_s20 + $0xa8] sm:$0xff] %vm502_vm1, %v701_v42  ;;  %v443_v44 = vpop.f32.mrb[5].mxu1  ;;  %507 = vst.msk [vmem:[%s840_s20 + $0x20] sm:$0xff] %vm502_vm1, %v363_v43 }
  0xf0   : > { %523 = vst.msk [vmem:[%s840_s20 + $0xa0] sm:$0xff] %vm502_vm1, %v443_v44 }
  0xf1   : > { %v680_v45 = vpop.f32.mrb[6].mxu0 }
  0xf2   : > { %v704_v46 = vpop.f32.mrb[6].mxu1  ;;  %510 = vst.msk [vmem:[%s840_s20 + $0x38] sm:$0xff] %vm502_vm1, %v680_v45  ;;  %v373_v47 = vpop.f32.mrb[7].mxu0 }
  0xf3   : > { %526 = vst.msk [vmem:[%s840_s20 + $0xb8] sm:$0xff] %vm502_vm1, %v704_v46  ;;  %v453_v48 = vpop.f32.mrb[7].mxu1  ;;  %509 = vst.msk [vmem:[%s840_s20 + $0x30] sm:$0xff] %vm502_vm1, %v373_v47 }
  0xf4   : > { %525 = vst.msk [vmem:[%s840_s20 + $0xb0] sm:$0xff] %vm502_vm1, %v453_v48 }
  0xf5   : > { %v683_v49 = vpop.f32.mrb[8].mxu0 }
  0xf6   : > { %v707_v50 = vpop.f32.mrb[8].mxu1  ;;  %512 = vst.msk [vmem:[%s840_s20 + $0x48] sm:$0xff] %vm502_vm1, %v683_v49  ;;  %v383_v51 = vpop.f32.mrb[9].mxu0 }
  0xf7   : > { %528 = vst.msk [vmem:[%s840_s20 + $0xc8] sm:$0xff] %vm502_vm1, %v707_v50  ;;  %v463_v52 = vpop.f32.mrb[9].mxu1  ;;  %511 = vst.msk [vmem:[%s840_s20 + $0x40] sm:$0xff] %vm502_vm1, %v383_v51 }
  0xf8   : > { %527 = vst.msk [vmem:[%s840_s20 + $0xc0] sm:$0xff] %vm502_vm1, %v463_v52 }
  0xf9   : > { %v686_v53 = vpop.f32.mrb[10].mxu0 }
  0xfa   : > { %v710_v54 = vpop.f32.mrb[10].mxu1  ;;  %514 = vst.msk [vmem:[%s840_s20 + $0x58] sm:$0xff] %vm502_vm1, %v686_v53  ;;  %v393_v55 = vpop.f32.mrb[11].mxu0 }
  0xfb   : > { %530 = vst.msk [vmem:[%s840_s20 + $0xd8] sm:$0xff] %vm502_vm1, %v710_v54  ;;  %v473_v56 = vpop.f32.mrb[11].mxu1  ;;  %513 = vst.msk [vmem:[%s840_s20 + $0x50] sm:$0xff] %vm502_vm1, %v393_v55 }
  0xfc   : > { %529 = vst.msk [vmem:[%s840_s20 + $0xd0] sm:$0xff] %vm502_vm1, %v473_v56 }
  0xfd   : > { %v689_v57 = vpop.f32.mrb[12].mxu0 }
  0xfe   : > { %v713_v58 = vpop.f32.mrb[12].mxu1  ;;  %516 = vst.msk [vmem:[%s840_s20 + $0x68] sm:$0xff] %vm502_vm1, %v689_v57  ;;  %v403_v59 = vpop.f32.mrb[13].mxu0 }
  0xff   : > { %532 = vst.msk [vmem:[%s840_s20 + $0xe8] sm:$0xff] %vm502_vm1, %v713_v58  ;;  %v483_v60 = vpop.f32.mrb[13].mxu1  ;;  %515 = vst.msk [vmem:[%s840_s20 + $0x60] sm:$0xff] %vm502_vm1, %v403_v59 }
 0x100   : > { %531 = vst.msk [vmem:[%s840_s20 + $0xe0] sm:$0xff] %vm502_vm1, %v483_v60 }
 0x101   : > { %v692_v61 = vpop.f32.mrb[14].mxu0 }
 0x102   : > { %v716_v62 = vpop.f32.mrb[14].mxu1  ;;  %518 = vst.msk [vmem:[%s840_s20 + $0x78] sm:$0xff] %vm502_vm1, %v692_v61  ;;  %v413_v63 = vpop.f32.mrb[15].mxu0 }
 0x103   : > { %534 = vst.msk [vmem:[%s840_s20 + $0xf8] sm:$0xff] %vm502_vm1, %v716_v62  ;;  %v493_v0 = vpop.f32.mrb[15].mxu1  ;;  %517 = vst.msk [vmem:[%s840_s20 + $0x70] sm:$0xff] %vm502_vm1, %v413_v63 }
 0x104   : > { %533 = vst.msk [vmem:[%s840_s20 + $0xf0] sm:$0xff] %vm502_vm1, %v493_v0 }
 0x105 PF: > { %s12_s9 = sadd.s32 1, %s733_s9  }
 0x106   : > { %p9_p4 = scmp.ge.s32.totalorder %s12_s9, 4  }
 0x108   :  { %11 = sbr.rel (!%p9_p4) target bundleno = 1 (0x1), region = 58 }

// kernel: solo_inference.75
= control target key start
LH: loop header
LB: loop body
LE: loop exit
PB: predicated region body
PF: predicated region fallthrough
CT: control target
= control target key end

     0   :  { %s1182_s9 = smov 0   ;;  %s1469_s0 = inlined_call_operand.vmem [shape: f32[1024,8], index: 0, kind: input, shape index: {}]   ;;  %s1470_s1 = inlined_call_operand.vmem [shape: f32[8,16], index: 1, kind: input, shape index: {}]   ;;  %s1471_s2 = inlined_call_operand.vmem [shape: f32[1024,16], index: 2, kind: output, shape index: {}]  }
   0x1 LB: > { %s911_s10 = sadd.s32 4294967295, %s1165_s9   ;;  %p915_p0 = scmp.ge.s32.totalorder %s1165_s9, 1  ;;  %s1165_s9 = sphi %s1182_s9, %s12_s9  }
   0x2   : > { %p113_p1 = scmp.lt.s32.totalorder %s1165_s9, 3 }
   0x4   : > { %p114_p2 = pnand %p915_p0, %p113_p1 }
   0x5   : > { %v211_v0 = vld [vmem:[%s1470_s1] sm:$0xff] (!%p114_p2)  ;;  %s916_s13 = sshll.u32 (!%p114_p2), %s911_s10, 6  ;;  %vm212_vm0 = vcmask (!%p114_p2), 64512   ;;  %vm790_vm1 = vcmask (!%p114_p2), 130048  }
   0x6   : > { %117 = sbr.rel (%p114_p2) target bundleno = 293 (0x125), region = 28  ;;  %1051 = vmatprep.subr.mxu0 (!%p114_p2), %v211_v0  ;;  %1149 = vmatprep.subr.mxu1 (!%p114_p2), %v211_v0  ;;  %p136_p3 = scmp.lt.s32.totalorder (!%p114_p2), %s916_s13, 127 }
   0x7   : > { %1052 = vmatpush3.msra.mxu0 (!%p114_p2), %v211_v0  ;;  %1150 = vmatpush3.msra.mxu1 (!%p114_p2), %v211_v0 }
   0xd   : > { %s1473_s13 = smov (!%p136_p3, %s916_s13), 127 }
   0xe   : > { %s917_s14 = sshll.u32 %s1473_s13, 3 }
   0xf   : > { %s1201_s17 = scalar_lea.vmem %s1469_s0, %s917_s14  ;;  %s1336_s20 = scalar_lea.vmem %s1471_s2, %s917_s14 }
  0x10   : > { %v147_v1 = vld [vmem:[%s1201_s17] sm:$0xff]  ;;  %v148_v3 = vld [vmem:[%s1201_s17 + $0x8] sm:$0xff]  ;;  %v149_v5 = vld [vmem:[%s1201_s17 + $0x10] sm:$0xff] }
  0x11   : > { %v179_v2 = vld [vmem:[%s1201_s17 + $0x100] sm:$0xff]  ;;  %1053 = vmatprep.mubr.msk.f32.mxu0 %vm212_vm0, %v147_v1  ;;  %v180_v4 = vld [vmem:[%s1201_s17 + $0x108] sm:$0xff]  ;;  %v181_v6 = vld [vmem:[%s1201_s17 + $0x110] sm:$0xff] }
  0x12   : > { %1101 = vmatprep.mubr.msk.f32.mxu1 %vm212_vm0, %v179_v2  ;;  %1054 = vmatmul.mubr.msk.f32.vlgmr.msra.gmra.mrb[0].mxu0 %vm212_vm0, %v148_v3  ;;  %v150_v7 = vld [vmem:[%s1201_s17 + $0x18] sm:$0xff]  ;;  %v151_v9 = vld [vmem:[%s1201_s17 + $0x20] sm:$0xff]  ;;  %v152_v11 = vld [vmem:[%s1201_s17 + $0x28] sm:$0xff] }
  0x13   : > { %1102 = vmatmul.mubr.msk.f32.vlgmr.msra.gmra.mrb[0].mxu1 %vm212_vm0, %v180_v4  ;;  %1056 = vmatprep.mubr.msk.f32.mxu0 %vm212_vm0, %v149_v5  ;;  %v182_v8 = vld [vmem:[%s1201_s17 + $0x118] sm:$0xff]  ;;  %v183_v10 = vld [vmem:[%s1201_s17 + $0x120] sm:$0xff]  ;;  %v184_v12 = vld [vmem:[%s1201_s17 + $0x128] sm:$0xff] }
  0x14   : > { %1104 = vmatprep.mubr.msk.f32.mxu1 %vm212_vm0, %v181_v6  ;;  %v153_v13 = vld [vmem:[%s1201_s17 + $0x30] sm:$0xff]  ;;  %v154_v15 = vld [vmem:[%s1201_s17 + $0x38] sm:$0xff]  ;;  %v155_v17 = vld [vmem:[%s1201_s17 + $0x40] sm:$0xff] }
  0x15   : > { %v185_v14 = vld [vmem:[%s1201_s17 + $0x130] sm:$0xff]  ;;  %v186_v16 = vld [vmem:[%s1201_s17 + $0x138] sm:$0xff]  ;;  %v187_v18 = vld [vmem:[%s1201_s17 + $0x140] sm:$0xff] }
  0x16   : > { %1057 = vmatmul.mubr.msk.f32.gmra.mrb[2].mxu0 %vm212_vm0, %v150_v7  ;;  %v156_v19 = vld [vmem:[%s1201_s17 + $0x48] sm:$0xff]  ;;  %v157_v21 = vld [vmem:[%s1201_s17 + $0x50] sm:$0xff]  ;;  %v158_v23 = vld [vmem:[%s1201_s17 + $0x58] sm:$0xff] }
  0x17   : > { %1105 = vmatmul.mubr.msk.f32.gmra.mrb[2].mxu1 %vm212_vm0, %v182_v8  ;;  %1059 = vmatprep.mubr.msk.f32.mxu0 %vm212_vm0, %v151_v9  ;;  %v188_v20 = vld [vmem:[%s1201_s17 + $0x148] sm:$0xff]  ;;  %v189_v22 = vld [vmem:[%s1201_s17 + $0x150] sm:$0xff]  ;;  %v190_v24 = vld [vmem:[%s1201_s17 + $0x158] sm:$0xff] }
  0x18   : > { %1107 = vmatprep.mubr.msk.f32.mxu1 %vm212_vm0, %v183_v10  ;;  %v159_v25 = vld [vmem:[%s1201_s17 + $0x60] sm:$0xff]  ;;  %v160_v27 = vld [vmem:[%s1201_s17 + $0x68] sm:$0xff]  ;;  %v161_v29 = vld [vmem:[%s1201_s17 + $0x70] sm:$0xff] }
  0x19   : > { %v191_v26 = vld [vmem:[%s1201_s17 + $0x160] sm:$0xff]  ;;  %v192_v28 = vld [vmem:[%s1201_s17 + $0x168] sm:$0xff]  ;;  %v193_v30 = vld [vmem:[%s1201_s17 + $0x170] sm:$0xff] }
  0x1a   : > { %1060 = vmatmul.mubr.msk.f32.gmra.mrb[4].mxu0 %vm212_vm0, %v152_v11  ;;  %v162_v31 = vld [vmem:[%s1201_s17 + $0x78] sm:$0xff]  ;;  %v163_v33 = vld [vmem:[%s1201_s17 + $0x80] sm:$0xff]  ;;  %v164_v35 = vld [vmem:[%s1201_s17 + $0x88] sm:$0xff] }
  0x1b   : > { %1108 = vmatmul.mubr.msk.f32.gmra.mrb[4].mxu1 %vm212_vm0, %v184_v12  ;;  %1062 = vmatprep.mubr.msk.f32.mxu0 %vm212_vm0, %v153_v13  ;;  %v194_v32 = vld [vmem:[%s1201_s17 + $0x178] sm:$0xff]  ;;  %v195_v34 = vld [vmem:[%s1201_s17 + $0x180] sm:$0xff]  ;;  %v196_v36 = vld [vmem:[%s1201_s17 + $0x188] sm:$0xff] }
  0x1c   : > { %1110 = vmatprep.mubr.msk.f32.mxu1 %vm212_vm0, %v185_v14  ;;  %v165_v37 = vld [vmem:[%s1201_s17 + $0x90] sm:$0xff]  ;;  %v166_v39 = vld [vmem:[%s1201_s17 + $0x98] sm:$0xff]  ;;  %v167_v41 = vld [vmem:[%s1201_s17 + $0xa0] sm:$0xff] }
  0x1d   : > { %v197_v38 = vld [vmem:[%s1201_s17 + $0x190] sm:$0xff]  ;;  %v198_v40 = vld [vmem:[%s1201_s17 + $0x198] sm:$0xff]  ;;  %v199_v42 = vld [vmem:[%s1201_s17 + $0x1a0] sm:$0xff] }
  0x1e   : > { %1063 = vmatmul.mubr.msk.f32.gmra.mrb[6].mxu0 %vm212_vm0, %v154_v15  ;;  %v168_v43 = vld [vmem:[%s1201_s17 + $0xa8] sm:$0xff]  ;;  %v169_v45 = vld [vmem:[%s1201_s17 + $0xb0] sm:$0xff]  ;;  %v170_v47 = vld [vmem:[%s1201_s17 + $0xb8] sm:$0xff] }
  0x1f   : > { %1111 = vmatmul.mubr.msk.f32.gmra.mrb[6].mxu1 %vm212_vm0, %v186_v16  ;;  %1065 = vmatprep.mubr.msk.f32.mxu0 %vm212_vm0, %v155_v17  ;;  %v200_v44 = vld [vmem:[%s1201_s17 + $0x1a8] sm:$0xff]  ;;  %v201_v46 = vld [vmem:[%s1201_s17 + $0x1b0] sm:$0xff]  ;;  %v202_v48 = vld [vmem:[%s1201_s17 + $0x1b8] sm:$0xff] }
  0x20   : > { %1113 = vmatprep.mubr.msk.f32.mxu1 %vm212_vm0, %v187_v18  ;;  %v171_v49 = vld [vmem:[%s1201_s17 + $0xc0] sm:$0xff]  ;;  %v172_v51 = vld [vmem:[%s1201_s17 + $0xc8] sm:$0xff]  ;;  %v173_v53 = vld [vmem:[%s1201_s17 + $0xd0] sm:$0xff] }
  0x21   : > { %v203_v50 = vld [vmem:[%s1201_s17 + $0x1c0] sm:$0xff]  ;;  %v204_v52 = vld [vmem:[%s1201_s17 + $0x1c8] sm:$0xff]  ;;  %v205_v54 = vld [vmem:[%s1201_s17 + $0x1d0] sm:$0xff] }
  0x22   : > { %1066 = vmatmul.mubr.msk.f32.gmra.mrb[8].mxu0 %vm212_vm0, %v156_v19  ;;  %v174_v55 = vld [vmem:[%s1201_s17 + $0xd8] sm:$0xff]  ;;  %v175_v57 = vld [vmem:[%s1201_s17 + $0xe0] sm:$0xff]  ;;  %v176_v59 = vld [vmem:[%s1201_s17 + $0xe8] sm:$0xff] }
  0x23   : > { %1114 = vmatmul.mubr.msk.f32.gmra.mrb[8].mxu1 %vm212_vm0, %v188_v20  ;;  %1068 = vmatprep.mubr.msk.f32.mxu0 %vm212_vm0, %v157_v21  ;;  %v206_v56 = vld [vmem:[%s1201_s17 + $0x1d8] sm:$0xff]  ;;  %v207_v58 = vld [vmem:[%s1201_s17 + $0x1e0] sm:$0xff]  ;;  %v208_v60 = vld [vmem:[%s1201_s17 + $0x1e8] sm:$0xff] }
  0x24   : > { %1116 = vmatprep.mubr.msk.f32.mxu1 %vm212_vm0, %v189_v22  ;;  %v177_v61 = vld [vmem:[%s1201_s17 + $0xf0] sm:$0xff]  ;;  %v178_v63 = vld [vmem:[%s1201_s17 + $0xf8] sm:$0xff] }
  0x25   : > { %v209_v62 = vld [vmem:[%s1201_s17 + $0x1f0] sm:$0xff]  ;;  %v210_v0 = vld [vmem:[%s1201_s17 + $0x1f8] sm:$0xff] }
  0x26   : > { %1069 = vmatmul.mubr.msk.f32.gmra.mrb[10].mxu0 %vm212_vm0, %v158_v23 }
  0x27   : > { %1117 = vmatmul.mubr.msk.f32.gmra.mrb[10].mxu1 %vm212_vm0, %v190_v24  ;;  %1071 = vmatprep.mubr.msk.f32.mxu0 %vm212_vm0, %v159_v25 }
  0x28   : > { %1119 = vmatprep.mubr.msk.f32.mxu1 %vm212_vm0, %v191_v26 }
  0x2a   : > { %1072 = vmatmul.mubr.msk.f32.gmra.mrb[12].mxu0 %vm212_vm0, %v160_v27 }
  0x2b   : > { %1120 = vmatmul.mubr.msk.f32.gmra.mrb[12].mxu1 %vm212_vm0, %v192_v28  ;;  %1074 = vmatprep.mubr.msk.f32.mxu0 %vm212_vm0, %v161_v29 }
  0x2c   : > { %1122 = vmatprep.mubr.msk.f32.mxu1 %vm212_vm0, %v193_v30 }
  0x2e   : > { %1075 = vmatmul.mubr.msk.f32.gmra.mrb[14].mxu0 %vm212_vm0, %v162_v31 }
  0x2f   : > { %1123 = vmatmul.mubr.msk.f32.gmra.mrb[14].mxu1 %vm212_vm0, %v194_v32  ;;  %1077 = vmatprep.mubr.msk.f32.mxu0 %vm212_vm0, %v163_v33 }
  0x30   : > { %1125 = vmatprep.mubr.msk.f32.mxu1 %vm212_vm0, %v195_v34 }
  0x32   : > { %1078 = vmatmul.mubr.msk.f32.gmra.mrb[16].mxu0 %vm212_vm0, %v164_v35 }
  0x33   : > { %1126 = vmatmul.mubr.msk.f32.gmra.mrb[16].mxu1 %vm212_vm0, %v196_v36  ;;  %1080 = vmatprep.mubr.msk.f32.mxu0 %vm212_vm0, %v165_v37 }
  0x34   : > { %1128 = vmatprep.mubr.msk.f32.mxu1 %vm212_vm0, %v197_v38 }
  0x36   : > { %1081 = vmatmul.mubr.msk.f32.gmra.mrb[18].mxu0 %vm212_vm0, %v166_v39 }
  0x37   : > { %1129 = vmatmul.mubr.msk.f32.gmra.mrb[18].mxu1 %vm212_vm0, %v198_v40  ;;  %1083 = vmatprep.mubr.msk.f32.mxu0 %vm212_vm0, %v167_v41 }
  0x38   : > { %1131 = vmatprep.mubr.msk.f32.mxu1 %vm212_vm0, %v199_v42 }
  0x3a   : > { %1084 = vmatmul.mubr.msk.f32.gmra.mrb[20].mxu0 %vm212_vm0, %v168_v43 }
  0x3b   : > { %1132 = vmatmul.mubr.msk.f32.gmra.mrb[20].mxu1 %vm212_vm0, %v200_v44  ;;  %1086 = vmatprep.mubr.msk.f32.mxu0 %vm212_vm0, %v169_v45 }
  0x3c   : > { %1134 = vmatprep.mubr.msk.f32.mxu1 %vm212_vm0, %v201_v46 }
  0x3e   : > { %1087 = vmatmul.mubr.msk.f32.gmra.mrb[22].mxu0 %vm212_vm0, %v170_v47 }
  0x3f   : > { %1135 = vmatmul.mubr.msk.f32.gmra.mrb[22].mxu1 %vm212_vm0, %v202_v48  ;;  %1089 = vmatprep.mubr.msk.f32.mxu0 %vm212_vm0, %v171_v49 }
  0x40   : > { %1137 = vmatprep.mubr.msk.f32.mxu1 %vm212_vm0, %v203_v50 }
  0x42   : > { %1090 = vmatmul.mubr.msk.f32.gmra.mrb[24].mxu0 %vm212_vm0, %v172_v51 }
  0x43   : > { %1138 = vmatmul.mubr.msk.f32.gmra.mrb[24].mxu1 %vm212_vm0, %v204_v52  ;;  %1092 = vmatprep.mubr.msk.f32.mxu0 %vm212_vm0, %v173_v53 }
  0x44   : > { %1140 = vmatprep.mubr.msk.f32.mxu1 %vm212_vm0, %v205_v54 }
  0x46   : > { %1093 = vmatmul.mubr.msk.f32.gmra.mrb[26].mxu0 %vm212_vm0, %v174_v55 }
  0x47   : > { %1141 = vmatmul.mubr.msk.f32.gmra.mrb[26].mxu1 %vm212_vm0, %v206_v56  ;;  %1095 = vmatprep.mubr.msk.f32.mxu0 %vm212_vm0, %v175_v57 }
  0x48   : > { %1143 = vmatprep.mubr.msk.f32.mxu1 %vm212_vm0, %v207_v58 }
  0x4a   : > { %1096 = vmatmul.mubr.msk.f32.gmra.mrb[28].mxu0 %vm212_vm0, %v176_v59 }
  0x4b   : > { %1144 = vmatmul.mubr.msk.f32.gmra.mrb[28].mxu1 %vm212_vm0, %v208_v60  ;;  %1098 = vmatprep.mubr.msk.f32.mxu0 %vm212_vm0, %v177_v61 }
  0x4c   : > { %1146 = vmatprep.mubr.msk.f32.mxu1 %vm212_vm0, %v209_v62 }
  0x4e   : > { %1099 = vmatmul.mubr.msk.f32.gmra.mrb[30].mxu0 %vm212_vm0, %v178_v63 }
  0x4f   : > { %1147 = vmatmul.mubr.msk.f32.gmra.mrb[30].mxu1 %vm212_vm0, %v210_v0 }
  0xe5   : > { %v1055_v1 = vpop.f32.mrb[0].mxu0 }
  0xe6   : > { %v1103_v2 = vpop.f32.mrb[0].mxu1  ;;  %792 = vst.msk [vmem:[%s1336_s20 + $0x8] sm:$0xff] %vm790_vm1, %v1055_v1  ;;  %v471_v3 = vpop.f32.mrb[1].mxu0 }
  0xe7   : > { %824 = vst.msk [vmem:[%s1336_s20 + $0x108] sm:$0xff] %vm790_vm1, %v1103_v2  ;;  %v631_v4 = vpop.f32.mrb[1].mxu1  ;;  %791 = vst.msk [vmem:[%s1336_s20] sm:$0xff] %vm790_vm1, %v471_v3 }
  0xe8   : > { %823 = vst.msk [vmem:[%s1336_s20 + $0x100] sm:$0xff] %vm790_vm1, %v631_v4 }
  0xe9   : > { %v1058_v5 = vpop.f32.mrb[2].mxu0 }
  0xea   : > { %v1106_v6 = vpop.f32.mrb[2].mxu1  ;;  %794 = vst.msk [vmem:[%s1336_s20 + $0x18] sm:$0xff] %vm790_vm1, %v1058_v5  ;;  %v481_v7 = vpop.f32.mrb[3].mxu0 }
  0xeb   : > { %826 = vst.msk [vmem:[%s1336_s20 + $0x118] sm:$0xff] %vm790_vm1, %v1106_v6  ;;  %v641_v8 = vpop.f32.mrb[3].mxu1  ;;  %793 = vst.msk [vmem:[%s1336_s20 + $0x10] sm:$0xff] %vm790_vm1, %v481_v7 }
  0xec   : > { %825 = vst.msk [vmem:[%s1336_s20 + $0x110] sm:$0xff] %vm790_vm1, %v641_v8 }
  0xed   : > { %v1061_v9 = vpop.f32.mrb[4].mxu0 }
  0xee   : > { %v1109_v10 = vpop.f32.mrb[4].mxu1  ;;  %796 = vst.msk [vmem:[%s1336_s20 + $0x28] sm:$0xff] %vm790_vm1, %v1061_v9  ;;  %v491_v11 = vpop.f32.mrb[5].mxu0 }
  0xef   : > { %828 = vst.msk [vmem:[%s1336_s20 + $0x128] sm:$0xff] %vm790_vm1, %v1109_v10  ;;  %v651_v12 = vpop.f32.mrb[5].mxu1  ;;  %795 = vst.msk [vmem:[%s1336_s20 + $0x20] sm:$0xff] %vm790_vm1, %v491_v11 }
  0xf0   : > { %827 = vst.msk [vmem:[%s1336_s20 + $0x120] sm:$0xff] %vm790_vm1, %v651_v12 }
  0xf1   : > { %v1064_v13 = vpop.f32.mrb[6].mxu0 }
  0xf2   : > { %v1112_v14 = vpop.f32.mrb[6].mxu1  ;;  %798 = vst.msk [vmem:[%s1336_s20 + $0x38] sm:$0xff] %vm790_vm1, %v1064_v13  ;;  %v501_v15 = vpop.f32.mrb[7].mxu0 }
  0xf3   : > { %830 = vst.msk [vmem:[%s1336_s20 + $0x138] sm:$0xff] %vm790_vm1, %v1112_v14  ;;  %v661_v16 = vpop.f32.mrb[7].mxu1  ;;  %797 = vst.msk [vmem:[%s1336_s20 + $0x30] sm:$0xff] %vm790_vm1, %v501_v15 }
  0xf4   : > { %829 = vst.msk [vmem:[%s1336_s20 + $0x130] sm:$0xff] %vm790_vm1, %v661_v16 }
  0xf5   : > { %v1067_v17 = vpop.f32.mrb[8].mxu0 }
  0xf6   : > { %v1115_v18 = vpop.f32.mrb[8].mxu1  ;;  %800 = vst.msk [vmem:[%s1336_s20 + $0x48] sm:$0xff] %vm790_vm1, %v1067_v17  ;;  %v511_v19 = vpop.f32.mrb[9].mxu0 }
  0xf7   : > { %832 = vst.msk [vmem:[%s1336_s20 + $0x148] sm:$0xff] %vm790_vm1, %v1115_v18  ;;  %v671_v20 = vpop.f32.mrb[9].mxu1  ;;  %799 = vst.msk [vmem:[%s1336_s20 + $0x40] sm:$0xff] %vm790_vm1, %v511_v19 }
  0xf8   : > { %831 = vst.msk [vmem:[%s1336_s20 + $0x140] sm:$0xff] %vm790_vm1, %v671_v20 }
  0xf9   : > { %v1070_v21 = vpop.f32.mrb[10].mxu0 }
  0xfa   : > { %v1118_v22 = vpop.f32.mrb[10].mxu1  ;;  %802 = vst.msk [vmem:[%s1336_s20 + $0x58] sm:$0xff] %vm790_vm1, %v1070_v21  ;;  %v521_v23 = vpop.f32.mrb[11].mxu0 }
  0xfb   : > { %834 = vst.msk [vmem:[%s1336_s20 + $0x158] sm:$0xff] %vm790_vm1, %v1118_v22  ;;  %v681_v24 = vpop.f32.mrb[11].mxu1  ;;  %801 = vst.msk [vmem:[%s1336_s20 + $0x50] sm:$0xff] %vm790_vm1, %v521_v23 }
  0xfc   : > { %833 = vst.msk [vmem:[%s1336_s20 + $0x150] sm:$0xff] %vm790_vm1, %v681_v24 }
  0xfd   : > { %v1073_v25 = vpop.f32.mrb[12].mxu0 }
  0xfe   : > { %v1121_v26 = vpop.f32.mrb[12].mxu1  ;;  %804 = vst.msk [vmem:[%s1336_s20 + $0x68] sm:$0xff] %vm790_vm1, %v1073_v25  ;;  %v531_v27 = vpop.f32.mrb[13].mxu0 }
  0xff   : > { %836 = vst.msk [vmem:[%s1336_s20 + $0x168] sm:$0xff] %vm790_vm1, %v1121_v26  ;;  %v691_v28 = vpop.f32.mrb[13].mxu1  ;;  %803 = vst.msk [vmem:[%s1336_s20 + $0x60] sm:$0xff] %vm790_vm1, %v531_v27 }
 0x100   : > { %835 = vst.msk [vmem:[%s1336_s20 + $0x160] sm:$0xff] %vm790_vm1, %v691_v28 }
 0x101   : > { %v1076_v29 = vpop.f32.mrb[14].mxu0 }
 0x102   : > { %v1124_v30 = vpop.f32.mrb[14].mxu1  ;;  %806 = vst.msk [vmem:[%s1336_s20 + $0x78] sm:$0xff] %vm790_vm1, %v1076_v29  ;;  %v541_v31 = vpop.f32.mrb[15].mxu0 }
 0x103   : > { %838 = vst.msk [vmem:[%s1336_s20 + $0x178] sm:$0xff] %vm790_vm1, %v1124_v30  ;;  %v701_v32 = vpop.f32.mrb[15].mxu1  ;;  %805 = vst.msk [vmem:[%s1336_s20 + $0x70] sm:$0xff] %vm790_vm1, %v541_v31 }
 0x104   : > { %837 = vst.msk [vmem:[%s1336_s20 + $0x170] sm:$0xff] %vm790_vm1, %v701_v32 }
 0x105   : > { %v1079_v33 = vpop.f32.mrb[16].mxu0 }
 0x106   : > { %v1127_v34 = vpop.f32.mrb[16].mxu1  ;;  %808 = vst.msk [vmem:[%s1336_s20 + $0x88] sm:$0xff] %vm790_vm1, %v1079_v33  ;;  %v551_v35 = vpop.f32.mrb[17].mxu0 }
 0x107   : > { %840 = vst.msk [vmem:[%s1336_s20 + $0x188] sm:$0xff] %vm790_vm1, %v1127_v34  ;;  %v711_v36 = vpop.f32.mrb[17].mxu1  ;;  %807 = vst.msk [vmem:[%s1336_s20 + $0x80] sm:$0xff] %vm790_vm1, %v551_v35 }
 0x108   : > { %839 = vst.msk [vmem:[%s1336_s20 + $0x180] sm:$0xff] %vm790_vm1, %v711_v36 }
 0x109   : > { %v1082_v37 = vpop.f32.mrb[18].mxu0 }
 0x10a   : > { %v1130_v38 = vpop.f32.mrb[18].mxu1  ;;  %810 = vst.msk [vmem:[%s1336_s20 + $0x98] sm:$0xff] %vm790_vm1, %v1082_v37  ;;  %v561_v39 = vpop.f32.mrb[19].mxu0 }
 0x10b   : > { %842 = vst.msk [vmem:[%s1336_s20 + $0x198] sm:$0xff] %vm790_vm1, %v1130_v38  ;;  %v721_v40 = vpop.f32.mrb[19].mxu1  ;;  %809 = vst.msk [vmem:[%s1336_s20 + $0x90] sm:$0xff] %vm790_vm1, %v561_v39 }
 0x10c   : > { %841 = vst.msk [vmem:[%s1336_s20 + $0x190] sm:$0xff] %vm790_vm1, %v721_v40 }
 0x10d   : > { %v1085_v41 = vpop.f32.mrb[20].mxu0 }
 0x10e   : > { %v1133_v42 = vpop.f32.mrb[20].mxu1  ;;  %812 = vst.msk [vmem:[%s1336_s20 + $0xa8] sm:$0xff] %vm790_vm1, %v1085_v41  ;;  %v571_v43 = vpop.f32.mrb[21].mxu0 }
 0x10f   : > { %844 = vst.msk [vmem:[%s1336_s20 + $0x1a8] sm:$0xff] %vm790_vm1, %v1133_v42  ;;  %v731_v44 = vpop.f32.mrb[21].mxu1  ;;  %811 = vst.msk [vmem:[%s1336_s20 + $0xa0] sm:$0xff] %vm790_vm1, %v571_v43 }
 0x110   : > { %843 = vst.msk [vmem:[%s1336_s20 + $0x1a0] sm:$0xff] %vm790_vm1, %v731_v44 }
 0x111   : > { %v1088_v45 = vpop.f32.mrb[22].mxu0 }
 0x112   : > { %v1136_v46 = vpop.f32.mrb[22].mxu1  ;;  %814 = vst.msk [vmem:[%s1336_s20 + $0xb8] sm:$0xff] %vm790_vm1, %v1088_v45  ;;  %v581_v47 = vpop.f32.mrb[23].mxu0 }
 0x113   : > { %846 = vst.msk [vmem:[%s1336_s20 + $0x1b8] sm:$0xff] %vm790_vm1, %v1136_v46  ;;  %v741_v48 = vpop.f32.mrb[23].mxu1  ;;  %813 = vst.msk [vmem:[%s1336_s20 + $0xb0] sm:$0xff] %vm790_vm1, %v581_v47 }
 0x114   : > { %845 = vst.msk [vmem:[%s1336_s20 + $0x1b0] sm:$0xff] %vm790_vm1, %v741_v48 }
 0x115   : > { %v1091_v49 = vpop.f32.mrb[24].mxu0 }
 0x116   : > { %v1139_v50 = vpop.f32.mrb[24].mxu1  ;;  %816 = vst.msk [vmem:[%s1336_s20 + $0xc8] sm:$0xff] %vm790_vm1, %v1091_v49  ;;  %v591_v51 = vpop.f32.mrb[25].mxu0 }
 0x117   : > { %848 = vst.msk [vmem:[%s1336_s20 + $0x1c8] sm:$0xff] %vm790_vm1, %v1139_v50  ;;  %v751_v52 = vpop.f32.mrb[25].mxu1  ;;  %815 = vst.msk [vmem:[%s1336_s20 + $0xc0] sm:$0xff] %vm790_vm1, %v591_v51 }
 0x118   : > { %847 = vst.msk [vmem:[%s1336_s20 + $0x1c0] sm:$0xff] %vm790_vm1, %v751_v52 }
 0x119   : > { %v1094_v53 = vpop.f32.mrb[26].mxu0 }
 0x11a   : > { %v1142_v54 = vpop.f32.mrb[26].mxu1  ;;  %818 = vst.msk [vmem:[%s1336_s20 + $0xd8] sm:$0xff] %vm790_vm1, %v1094_v53  ;;  %v601_v55 = vpop.f32.mrb[27].mxu0 }
 0x11b   : > { %850 = vst.msk [vmem:[%s1336_s20 + $0x1d8] sm:$0xff] %vm790_vm1, %v1142_v54  ;;  %v761_v56 = vpop.f32.mrb[27].mxu1  ;;  %817 = vst.msk [vmem:[%s1336_s20 + $0xd0] sm:$0xff] %vm790_vm1, %v601_v55 }
 0x11c   : > { %849 = vst.msk [vmem:[%s1336_s20 + $0x1d0] sm:$0xff] %vm790_vm1, %v761_v56 }
 0x11d   : > { %v1097_v57 = vpop.f32.mrb[28].mxu0 }
 0x11e   : > { %v1145_v58 = vpop.f32.mrb[28].mxu1  ;;  %820 = vst.msk [vmem:[%s1336_s20 + $0xe8] sm:$0xff] %vm790_vm1, %v1097_v57  ;;  %v611_v59 = vpop.f32.mrb[29].mxu0 }
 0x11f   : > { %852 = vst.msk [vmem:[%s1336_s20 + $0x1e8] sm:$0xff] %vm790_vm1, %v1145_v58  ;;  %v771_v60 = vpop.f32.mrb[29].mxu1  ;;  %819 = vst.msk [vmem:[%s1336_s20 + $0xe0] sm:$0xff] %vm790_vm1, %v611_v59 }
 0x120   : > { %851 = vst.msk [vmem:[%s1336_s20 + $0x1e0] sm:$0xff] %vm790_vm1, %v771_v60 }
 0x121   : > { %v1100_v61 = vpop.f32.mrb[30].mxu0 }
 0x122   : > { %v1148_v62 = vpop.f32.mrb[30].mxu1  ;;  %822 = vst.msk [vmem:[%s1336_s20 + $0xf8] sm:$0xff] %vm790_vm1, %v1100_v61  ;;  %v621_v63 = vpop.f32.mrb[31].mxu0 }
 0x123   : > { %854 = vst.msk [vmem:[%s1336_s20 + $0x1f8] sm:$0xff] %vm790_vm1, %v1148_v62  ;;  %v781_v0 = vpop.f32.mrb[31].mxu1  ;;  %821 = vst.msk [vmem:[%s1336_s20 + $0xf0] sm:$0xff] %vm790_vm1, %v621_v63 }
 0x124   : > { %853 = vst.msk [vmem:[%s1336_s20 + $0x1f0] sm:$0xff] %vm790_vm1, %v781_v0 }
 0x125 PF: > { %s12_s9 = sadd.s32 1, %s1165_s9  }
 0x126   : > { %p9_p4 = scmp.ge.s32.totalorder %s12_s9, 4  }
 0x128   :  { %11 = sbr.rel (!%p9_p4) target bundleno = 1 (0x1), region = 58 }

// kernel: solo_inference.76
= control target key start
LH: loop header
LB: loop body
LE: loop exit
PB: predicated region body
PF: predicated region fallthrough
CT: control target
= control target key end

     0   :  { %s863_s18 = smov 0   ;;  %s1084_s0 = inlined_call_operand.vmem [shape: f32[2,288,256], index: 0, kind: input, shape index: {}]   ;;  %s1085_s1 = inlined_call_operand.vmem [shape: f32[32,288], index: 1, kind: input, shape index: {}]   ;;  %s1086_s2 = inlined_call_operand.vmem [shape: f32[32,1], index: 2, kind: input, shape index: {}]   ;;  %s1087_s3 = inlined_call_operand.vmem [shape: f32[32,1], index: 3, kind: input, shape index: {}]   ;;  %s1088_s4 = inlined_call_operand.vmem [shape: f32[32,1], index: 4, kind: input, shape index: {}]   ;;  %s1089_s5 = inlined_call_operand.vmem [shape: f32[2,32,256], index: 5, kind: output, shape index: {}]  }
   0x1 LB: > { %s707_s2 = sadd.s32 4294967295, %s829_s18   ;;  %p711_p0 = scmp.ge.s32.totalorder %s829_s18, 1  ;;  %s829_s18 = sphi %s863_s18, %s15_s18  }
   0x2   : > { %p187_p1 = scmp.lt.s32.totalorder %s829_s18, 3 }
   0x4   : > { %p188_p2 = pnand %p711_p0, %p187_p1 }
   0x5   : > { %p215_p3 = scmp.lt.s32.totalorder (!%p188_p2), %s707_s2, 1  ;;  %v226_v0 = vld [vmem:[%s1085_s1 + $0x8] sm:$0xff] (!%p188_p2)  ;;  %v831_v1 = vmov (!%p188_p2), 0.0   ;;  %v227_v63 = vld [vmem:[%s1085_s1 + $0x10] sm:$0xff] (!%p188_p2)  ;;  %vm309_vm0 = vcmask (!%p188_p2), 261120  }
   0x6   : > { %191 = sbr.rel (%p188_p2) target bundleno = 556 (0x22c), region = 40  ;;  %475 = vmatprep.mubr.f32.mxu0 (!%p188_p2), %v831_v1  ;;  %386 = vmatprep.mubr.f32.mxu1 (!%p188_p2), %v226_v0 }
   0xd   : > { %s1091_s2 = smov (!%p215_p3, %s707_s2), 1 }
   0xe   : > { %s802_s21 = smul.u32 576, %s1091_s2  ;;  %s721_s14 = sshll.u32 %s1091_s2, 6 }
   0xf   : > { %s1067_s17 = scalar_lea.vmem %s1089_s5, %s721_s14 }
  0x10   : > { %s881_s24 = scalar_lea.vmem %s1084_s0, %s802_s21 }
  0x11   : > { %v238_v2 = vld [vmem:[%s881_s24 + $0x8] sm:$0xff]  ;;  %v240_v3 = vld [vmem:[%s881_s24 + $0x18] sm:$0xff]  ;;  %v237_v4 = vld [vmem:[%s881_s24] sm:$0xff] }
  0x12   : > { %v722_v5 = vpack.c.bf16 %v240_v3, %v238_v2  ;;  %v239_v6 = vld [vmem:[%s881_s24 + $0x10] sm:$0xff]  ;;  %v242_v7 = vld [vmem:[%s881_s24 + $0x28] sm:$0xff]  ;;  %v244_v8 = vld [vmem:[%s881_s24 + $0x38] sm:$0xff] }
  0x13   : > { %v724_v9 = vpack.c.bf16 %v239_v6, %v237_v4  ;;  %v726_v10 = vpack.c.bf16 %v244_v8, %v242_v7  ;;  %v241_v11 = vld [vmem:[%s881_s24 + $0x20] sm:$0xff]  ;;  %v243_v12 = vld [vmem:[%s881_s24 + $0x30] sm:$0xff]  ;;  %v246_v13 = vld [vmem:[%s881_s24 + $0x48] sm:$0xff] }
  0x14   : > { %723 = vmatprep.subr.bf16.mxu1 %v722_v5  ;;  %v248_v14 = vld [vmem:[%s881_s24 + $0x58] sm:$0xff]  ;;  %v728_v15 = vpack.c.bf16 %v243_v12, %v241_v11  ;;  %v245_v17 = vld [vmem:[%s881_s24 + $0x40] sm:$0xff]  ;;  %v247_v18 = vld [vmem:[%s881_s24 + $0x50] sm:$0xff] }
  0x15   : > { %725 = vmatpush1.bf16.msra.mxu1 %v724_v9  ;;  %v730_v16 = vpack.c.bf16 %v248_v14, %v246_v13  ;;  %v250_v19 = vld [vmem:[%s881_s24 + $0x68] sm:$0xff]  ;;  %v252_v20 = vld [vmem:[%s881_s24 + $0x78] sm:$0xff]  ;;  %v732_v21 = vpack.c.bf16 %v247_v18, %v245_v17  ;;  %v249_v23 = vld [vmem:[%s881_s24 + $0x60] sm:$0xff] }
  0x16   : > { %727 = vmatprep.subr.bf16.mxu1 %v726_v10  ;;  %v734_v22 = vpack.c.bf16 %v252_v20, %v250_v19  ;;  %v251_v24 = vld [vmem:[%s881_s24 + $0x70] sm:$0xff]  ;;  %v254_v25 = vld [vmem:[%s881_s24 + $0x88] sm:$0xff]  ;;  %v256_v26 = vld [vmem:[%s881_s24 + $0x98] sm:$0xff] }
  0x17   : > { %v736_v27 = vpack.c.bf16 %v251_v24, %v249_v23  ;;  %v738_v28 = vpack.c.bf16 %v256_v26, %v254_v25  ;;  %v253_v29 = vld [vmem:[%s881_s24 + $0x80] sm:$0xff]  ;;  %v255_v30 = vld [vmem:[%s881_s24 + $0x90] sm:$0xff]  ;;  %v258_v31 = vld [vmem:[%s881_s24 + $0xa8] sm:$0xff] }
  0x18   : > { %v260_v32 = vld [vmem:[%s881_s24 + $0xb8] sm:$0xff]  ;;  %v740_v33 = vpack.c.bf16 %v255_v30, %v253_v29  ;;  %v257_v35 = vld [vmem:[%s881_s24 + $0xa0] sm:$0xff]  ;;  %v259_v36 = vld [vmem:[%s881_s24 + $0xb0] sm:$0xff] }
  0x19   : > { %729 = vmatpush1.bf16.msra.mxu1 %v728_v15  ;;  %v742_v34 = vpack.c.bf16 %v260_v32, %v258_v31  ;;  %v262_v37 = vld [vmem:[%s881_s24 + $0xc8] sm:$0xff]  ;;  %v264_v38 = vld [vmem:[%s881_s24 + $0xd8] sm:$0xff]  ;;  %v744_v41 = vpack.c.bf16 %v259_v36, %v257_v35  ;;  %v261_v42 = vld [vmem:[%s881_s24 + $0xc0] sm:$0xff] }
  0x1a   : > { %731 = vmatprep.subr.bf16.mxu1 %v730_v16  ;;  %v302_v39 = vld [vmem:[%s881_s24 + $0x208] sm:$0xff]  ;;  %v304_v40 = vld [vmem:[%s881_s24 + $0x218] sm:$0xff]  ;;  %v301_v44 = vld [vmem:[%s881_s24 + $0x200] sm:$0xff]  ;;  %v746_v46 = vpack.c.bf16 %v264_v38, %v262_v37 }
  0x1b   : > { %v786_v43 = vpack.c.bf16 %v304_v40, %v302_v39  ;;  %v303_v45 = vld [vmem:[%s881_s24 + $0x210] sm:$0xff]  ;;  %v306_v49 = vld [vmem:[%s881_s24 + $0x228] sm:$0xff]  ;;  %v308_v50 = vld [vmem:[%s881_s24 + $0x238] sm:$0xff] }
  0x1c   : > { %v263_v47 = vld [vmem:[%s881_s24 + $0xd0] sm:$0xff]  ;;  %v788_v48 = vpack.c.bf16 %v303_v45, %v301_v44  ;;  %v266_v51 = vld [vmem:[%s881_s24 + $0xe8] sm:$0xff]  ;;  %v268_v52 = vld [vmem:[%s881_s24 + $0xf8] sm:$0xff]  ;;  %v790_v53 = vpack.c.bf16 %v308_v50, %v306_v49 }
  0x1d   : > { %733 = vmatpush1.bf16.msra.mxu1 %v732_v21  ;;  %787 = vmatprep.subr.bf16.mxu0 %v786_v43  ;;  %v305_v54 = vld [vmem:[%s881_s24 + $0x220] sm:$0xff]  ;;  %v307_v55 = vld [vmem:[%s881_s24 + $0x230] sm:$0xff]  ;;  %v748_v56 = vpack.c.bf16 %v263_v47, %v261_v42  ;;  %v750_v58 = vpack.c.bf16 %v268_v52, %v266_v51  ;;  %v270_v61 = vld [vmem:[%s881_s24 + $0x108] sm:$0xff] }
  0x1e   : > { %735 = vmatprep.subr.bf16.mxu1 %v734_v22  ;;  %789 = vmatpush1.bf16.msra.mxu0 %v788_v48  ;;  %v792_v57 = vpack.c.bf16 %v307_v55, %v305_v54  ;;  %v265_v59 = vld [vmem:[%s881_s24 + $0xe0] sm:$0xff]  ;;  %v267_v60 = vld [vmem:[%s881_s24 + $0xf0] sm:$0xff]  ;;  %v272_v62 = vld [vmem:[%s881_s24 + $0x118] sm:$0xff] }
  0x1f   : > { %791 = vmatprep.subr.bf16.mxu0 %v790_v53  ;;  %v752_v0 = vpack.c.bf16 %v267_v60, %v265_v59  ;;  %v754_v2 = vpack.c.bf16 %v272_v62, %v270_v61  ;;  %v269_v3 = vld [vmem:[%s881_s24 + $0x100] sm:$0xff]  ;;  %v271_v4 = vld [vmem:[%s881_s24 + $0x110] sm:$0xff]  ;;  %v274_v5 = vld [vmem:[%s881_s24 + $0x128] sm:$0xff] }
  0x20   : > { %v276_v6 = vld [vmem:[%s881_s24 + $0x138] sm:$0xff]  ;;  %v230_v7 = vld [vmem:[%s1085_s1 + $0x28] sm:$0xff]  ;;  %v756_v8 = vpack.c.bf16 %v271_v4, %v269_v3  ;;  %v273_v10 = vld [vmem:[%s881_s24 + $0x120] sm:$0xff] }
  0x21   : > { %737 = vmatpush1.bf16.msra.mxu1 %v736_v27  ;;  %v758_v9 = vpack.c.bf16 %v276_v6, %v274_v5  ;;  %v275_v11 = vld [vmem:[%s881_s24 + $0x130] sm:$0xff]  ;;  %v278_v12 = vld [vmem:[%s881_s24 + $0x148] sm:$0xff]  ;;  %v280_v13 = vld [vmem:[%s881_s24 + $0x158] sm:$0xff] }
  0x22   : > { %739 = vmatprep.subr.bf16.mxu1 %v738_v28  ;;  %793 = vmatpush1.bf16.msra.mxu0 %v792_v57  ;;  %v233_v14 = vld [vmem:[%s1085_s1 + $0x40] sm:$0xff]  ;;  %v760_v15 = vpack.c.bf16 %v275_v11, %v273_v10  ;;  %v762_v16 = vpack.c.bf16 %v280_v13, %v278_v12  ;;  %v279_v18 = vld [vmem:[%s881_s24 + $0x150] sm:$0xff]  ;;  %v282_v19 = vld [vmem:[%s881_s24 + $0x168] sm:$0xff]  ;;  %v832_v57 = vmov 0  }
  0x23   : > { %v277_v17 = vld [vmem:[%s881_s24 + $0x140] sm:$0xff]  ;;  %v284_v20 = vld [vmem:[%s881_s24 + $0x178] sm:$0xff]  ;;  %v283_v25 = vld [vmem:[%s881_s24 + $0x170] sm:$0xff]  ;;  %814 = vset.pattern.permute.xlu1 %v832_v57  ;;  %813 = vset.pattern.permute.xlu0 %v832_v57 }
  0x24   : > { %v236_v21 = vld [vmem:[%s1085_s1 + $0x58] sm:$0xff]  ;;  %v764_v22 = vpack.c.bf16 %v279_v18, %v277_v17  ;;  %v766_v23 = vpack.c.bf16 %v284_v20, %v282_v19  ;;  %v281_v24 = vld [vmem:[%s881_s24 + $0x160] sm:$0xff]  ;;  %v286_v26 = vld [vmem:[%s881_s24 + $0x188] sm:$0xff] }
  0x25   : > { %741 = vmatpush1.bf16.msra.mxu1 %v740_v33  ;;  %715 = vmatmul.mubr.msk.f32.vlgmr.msra.gmra.mrb[0].mxu0 %vm309_vm0, %v227_v63  ;;  %v288_v27 = vld [vmem:[%s881_s24 + $0x198] sm:$0xff]  ;;  %v285_v29 = vld [vmem:[%s881_s24 + $0x180] sm:$0xff]  ;;  %v287_v30 = vld [vmem:[%s881_s24 + $0x190] sm:$0xff] }
  0x26   : > { %743 = vmatprep.subr.bf16.mxu1 %v742_v34  ;;  %481 = vmatprep.mubr.f32.mxu0 %v831_v1  ;;  %v770_v28 = vpack.c.bf16 %v288_v27, %v286_v26  ;;  %v290_v31 = vld [vmem:[%s881_s24 + $0x1a8] sm:$0xff]  ;;  %v292_v32 = vld [vmem:[%s881_s24 + $0x1b8] sm:$0xff]  ;;  %v772_v33 = vpack.c.bf16 %v287_v30, %v285_v29  ;;  %v289_v35 = vld [vmem:[%s881_s24 + $0x1a0] sm:$0xff] }
  0x27   : > { %v774_v34 = vpack.c.bf16 %v292_v32, %v290_v31  ;;  %v291_v36 = vld [vmem:[%s881_s24 + $0x1b0] sm:$0xff]  ;;  %v294_v37 = vld [vmem:[%s881_s24 + $0x1c8] sm:$0xff]  ;;  %v296_v38 = vld [vmem:[%s881_s24 + $0x1d8] sm:$0xff] }
  0x28   : > { %v776_v39 = vpack.c.bf16 %v291_v36, %v289_v35  ;;  %v778_v40 = vpack.c.bf16 %v296_v38, %v294_v37  ;;  %v295_v42 = vld [vmem:[%s881_s24 + $0x1d0] sm:$0xff]  ;;  %v298_v43 = vld [vmem:[%s881_s24 + $0x1e8] sm:$0xff]  ;;  %v300_v44 = vld [vmem:[%s881_s24 + $0x1f8] sm:$0xff] }
  0x29   : > { %745 = vmatpush1.bf16.msra.mxu1 %v744_v41  ;;  %716 = vmatmul.mubr.msk.f32.gmra.mrb[2].mxu0 %vm309_vm0, %v230_v7  ;;  %v293_v41 = vld [vmem:[%s881_s24 + $0x1c0] sm:$0xff]  ;;  %v299_v48 = vld [vmem:[%s881_s24 + $0x1f0] sm:$0xff]  ;;  %v228_v52 = vld [vmem:[%s1085_s1 + $0x18] sm:$0xff] }
  0x2a   : > { %747 = vmatprep.subr.bf16.mxu1 %v746_v46  ;;  %487 = vmatprep.mubr.f32.mxu0 %v831_v1  ;;  %v780_v45 = vpack.c.bf16 %v295_v42, %v293_v41  ;;  %v782_v46 = vpack.c.bf16 %v300_v44, %v298_v43  ;;  %v297_v47 = vld [vmem:[%s881_s24 + $0x1e0] sm:$0xff]  ;;  %v232_v53 = vld [vmem:[%s1085_s1 + $0x38] sm:$0xff]  ;;  %v231_v54 = vld [vmem:[%s1085_s1 + $0x30] sm:$0xff] }
  0x2b   : > { %v784_v49 = vpack.c.bf16 %v299_v48, %v297_v47  ;;  %v225_v50 = vld [vmem:[%s1085_s1] sm:$0xff]  ;;  %v235_v55 = vld [vmem:[%s1085_s1 + $0x50] sm:$0xff]  ;;  %v573_v30 = vld [vmem:[%s1087_s3 + $0x8] sm:$0xff] }
  0x2c   : > { %v229_v51 = vld [vmem:[%s1085_s1 + $0x20] sm:$0xff]  ;;  %v574_v31 = vld [vmem:[%s1087_s3 + $0x10] sm:$0xff]  ;;  %v605_v35 = vld [vmem:[%s1088_s4 + $0x8] sm:$0xff] }
  0x2d   : > { %749 = vmatpush1.bf16.msra.mxu1 %v748_v56  ;;  %717 = vmatmul.mubr.msk.f32.gmra.mrb[4].mxu0 %vm309_vm0, %v233_v14  ;;  %v234_v56 = vld [vmem:[%s1085_s1 + $0x48] sm:$0xff]  ;;  %v572_v32 = vld [vmem:[%s1087_s3] sm:$0xff]  ;;  %v606_v36 = vld [vmem:[%s1088_s4 + $0x10] sm:$0xff] }
  0x2e   : > { %751 = vmatprep.subr.bf16.mxu1 %v750_v58  ;;  %493 = vmatprep.mubr.f32.mxu0 %v831_v1  ;;  %v768_v1 = vpack.c.bf16 %v283_v25, %v281_v24  ;;  %v607_v41 = vld [vmem:[%s1088_s4 + $0x18] sm:$0xff] }
  0x31   : > { %753 = vmatpush1.bf16.msra.mxu1 %v752_v0  ;;  %718 = vmatmul.mubr.msk.f32.gmra.mrb[6].mxu0 %vm309_vm0, %v236_v21 }
  0x32   : > { %755 = vmatprep.subr.bf16.mxu1 %v754_v2 }
  0x35   : > { %757 = vmatpush1.bf16.msra.mxu1 %v756_v8 }
  0x36   : > { %759 = vmatprep.subr.bf16.mxu1 %v758_v9 }
  0x39   : > { %761 = vmatpush1.bf16.msra.mxu1 %v760_v15 }
  0x3a   : > { %763 = vmatprep.subr.bf16.mxu1 %v762_v16 }
  0x3d   : > { %765 = vmatpush1.bf16.msra.mxu1 %v764_v22 }
  0x3e   : > { %767 = vmatprep.subr.bf16.mxu1 %v766_v23 }
  0x41   : > { %769 = vmatpush1.bf16.msra.mxu1 %v768_v1 }
  0x42   : > { %771 = vmatprep.subr.bf16.mxu1 %v770_v28 }
  0x45   : > { %773 = vmatpush1.bf16.msra.mxu1 %v772_v33  ;;  %v575_v33 = vld [vmem:[%s1087_s3 + $0x18] sm:$0xff] }
  0x46   : > { %775 = vmatprep.subr.bf16.mxu1 %v774_v34  ;;  %v604_v34 = vld [vmem:[%s1088_s4] sm:$0xff] }
  0x49   : > { %777 = vmatpush1.bf16.msra.mxu1 %v776_v39 }
  0x4a   : > { %779 = vmatprep.subr.bf16.mxu1 %v778_v40 }
  0x4d   : > { %781 = vmatpush1.bf16.msra.mxu1 %v780_v45 }
  0x4e   : > { %783 = vmatprep.subr.bf16.mxu1 %v782_v46 }
  0x51   : > { %785 = vmatpush1.bf16.msra.mxu1 %v784_v49 }
  0x54   : > { %387 = vmatmul.mubr.f32.vlgmr.msra.gmra.mrb[0].mxu1 %v225_v50 }
  0x55   : > { %392 = vmatprep.mubr.f32.mxu1 %v229_v51 }
  0x58   : > { %393 = vmatmul.mubr.f32.gmra.mrb[2].mxu1 %v228_v52 }
  0x59   : > { %398 = vmatprep.mubr.f32.mxu1 %v232_v53 }
  0x5c   : > { %399 = vmatmul.mubr.f32.gmra.mrb[4].mxu1 %v231_v54 }
  0x5d   : > { %404 = vmatprep.mubr.f32.mxu1 %v235_v55 }
  0x60   : > { %405 = vmatmul.mubr.f32.gmra.mrb[6].mxu1 %v234_v56 }
  0xf8   : > { %v477_v58 = vpop.f32.mrb[0].mxu0 }
  0xf9   : > { %v479_v59 = vpop.f32.mrb[1].mxu0 }
  0xfc   : > { %v483_v60 = vpop.f32.mrb[2].mxu0 }
  0xfd   : > { %v485_v61 = vpop.f32.mrb[3].mxu0 }
 0x100   : > { %v489_v62 = vpop.f32.mrb[4].mxu0 }
 0x101   : > { %v491_v63 = vpop.f32.mrb[5].mxu0 }
 0x104   : > { %v495_v0 = vpop.f32.mrb[6].mxu0 }
 0x105   : > { %v497_v2 = vpop.f32.mrb[7].mxu0 }
 0x127   : > { %v388_v3 = vpop.f32.mrb[0].mxu1 }
 0x128   : > { %v995_v4 = vadd.f32 %v477_v58, %v388_v3  ;;  %v390_v5 = vpop.f32.mrb[1].mxu1 }
 0x129   : > { %v997_v6 = vadd.f32 %v479_v59, %v390_v5 }
 0x12a   : > { %v516_v9 = vmul.f32 %v995_v4, %v995_v4 }
 0x12b   : > { %v394_v7 = vpop.f32.mrb[2].mxu1  ;;  %v500_v8 = vadd.f32 %v997_v6, %v995_v4  ;;  %v517_v10 = vmul.f32 %v997_v6, %v997_v6 }
 0x12c   : > { %v1005_v11 = vadd.f32 %v483_v60, %v394_v7  ;;  %v396_v12 = vpop.f32.mrb[3].mxu1 }
 0x12d   : > { %v1007_v13 = vadd.f32 %v485_v61, %v396_v12  ;;  %501 = vadd.xlane.f32.xlu0 %v500_v8  ;;  %v524_v16 = vadd.f32 %v517_v10, %v516_v9 }
 0x12e   : > { %v518_v14 = vmul.f32 %v1005_v11, %v1005_v11 }
 0x12f   : > { %v400_v15 = vpop.f32.mrb[4].mxu1  ;;  %v519_v17 = vmul.f32 %v1007_v13, %v1007_v13  ;;  %v503_v23 = vadd.f32 %v1007_v13, %v1005_v11 }
 0x130   : > { %v1013_v18 = vadd.f32 %v489_v62, %v400_v15  ;;  %v402_v19 = vpop.f32.mrb[5].mxu1 }
 0x131   : > { %525 = vadd.xlane.f32.xlu0 %v524_v16  ;;  %v1015_v20 = vadd.f32 %v491_v63, %v402_v19  ;;  %v527_v21 = vadd.f32 %v519_v17, %v518_v14 }
 0x132   : > { %v520_v22 = vmul.f32 %v1013_v18, %v1013_v18 }
 0x133   : > { %528 = vadd.xlane.f32.xlu1 %v527_v21  ;;  %v506_v24 = vadd.f32 %v1015_v20, %v1013_v18  ;;  %v521_v25 = vmul.f32 %v1015_v20, %v1015_v20  ;;  %v406_v26 = vpop.f32.mrb[6].mxu1 }
 0x134   : > { %v1025_v27 = vadd.f32 %v495_v0, %v406_v26  ;;  %v408_v1 = vpop.f32.mrb[7].mxu1 }
 0x135   : > { %504 = vadd.xlane.f32.xlu0 %v503_v23  ;;  %v530_v28 = vadd.f32 %v521_v25, %v520_v22  ;;  %v1027_v29 = vadd.f32 %v497_v2, %v408_v1 }
 0x136   : > { %v522_v38 = vmul.f32 %v1025_v27, %v1025_v27 }
 0x137   : > { %507 = vadd.xlane.f32.xlu1 %v506_v24  ;;  %v509_v37 = vadd.f32 %v1027_v29, %v1025_v27  ;;  %v523_v39 = vmul.f32 %v1027_v29, %v1027_v29 }
 0x139   : > { %531 = vadd.xlane.f32.xlu0 %v530_v28  ;;  %v533_v40 = vadd.f32 %v523_v39, %v522_v38 }
 0x148   : > { %583 = vperm.xlu1 %814, %v573_v30  }
 0x14c   : > { %588 = vperm.xlu1 %814, %v574_v31  }
 0x14f   : > { %578 = vperm.xlu0 %813, %v572_v32  }
 0x150   : > { %593 = vperm.xlu1 %814, %v575_v33  }
 0x154   : > { %610 = vperm.xlu1 %814, %v604_v34  }
 0x158   : > { %615 = vperm.xlu1 %814, %v605_v35  }
 0x15c   : > { %620 = vperm.xlu1 %814, %v606_v36  }
 0x180   : > { %510 = vadd.xlane.f32.xlu1 %v509_v37 }
 0x184   : > { %534 = vadd.xlane.f32.xlu1 %v533_v40 }
 0x195   : > { %625 = vperm.xlu1 %814, %v607_v41  }
 0x1ba   : > { %v502_v42 = vpop.xlane.xlu0 %501 }
 0x1bb   : > { %v512_v43 = vmul.f32 0.00390625, %v502_v42 }
 0x1bd   : > { %v540_v45 = vmul.f32 %v512_v43, %v512_v43  ;;  %v548_v2 = vsub.f32 %v995_v4, %v512_v43  ;;  %v549_v3 = vsub.f32 %v997_v6, %v512_v43 }
 0x1be   : > { %v526_v44 = vpop.xlane.xlu0 %525 }
 0x1bf   : > { %v536_v46 = vmul.f32 0.00390625, %v526_v44 }
 0x1c0   : > { %v529_v47 = vpop.xlane.xlu1 %528 }
 0x1c1   : > { %v544_v48 = vsub.f32 %v536_v46, %v540_v45  ;;  %v537_v53 = vmul.f32 0.00390625, %v529_v47 }
 0x1c2   : > { %v505_v49 = vpop.xlane.xlu0 %504 }
 0x1c3   : > { %v556_v50 = vadd.f32 1e-05, %v544_v48  ;;  %v513_v51 = vmul.f32 0.00390625, %v505_v49 }
 0x1c4   : > { %v508_v52 = vpop.xlane.xlu1 %507 }
 0x1c5   : > { %815 = vrsqrt.f32 %v556_v50  ;;  %v541_v54 = vmul.f32 %v513_v51, %v513_v51  ;;  %v514_v55 = vmul.f32 0.00390625, %v508_v52  ;;  %v550_v15 = vsub.f32 %v1005_v11, %v513_v51 }
 0x1c6   : > { %v532_v56 = vpop.xlane.xlu0 %531  ;;  %v551_v16 = vsub.f32 %v1007_v13, %v513_v51 }
 0x1c7   : > { %v545_v57 = vsub.f32 %v537_v53, %v541_v54  ;;  %v538_v58 = vmul.f32 0.00390625, %v532_v56  ;;  %v542_v59 = vmul.f32 %v514_v55, %v514_v55  ;;  %v552_v6 = vsub.f32 %v1013_v18, %v514_v55 }
 0x1c8   : > { %v584_v60 = vpop.permute.xlu1 %583  ;;  %v553_v24 = vsub.f32 %v1015_v20, %v514_v55 }
 0x1c9   : > { %v557_v61 = vadd.f32 1e-05, %v545_v57  ;;  %v546_v62 = vsub.f32 %v538_v58, %v542_v59 }
 0x1cb   : > { %817 = vrsqrt.f32 %v557_v61  ;;  %v558_v63 = vadd.f32 1e-05, %v546_v62 }
 0x1cc   : > { %v589_v0 = vpop.permute.xlu1 %588 }
 0x1cd   : > { %819 = vrsqrt.f32 %v558_v63 }
 0x1ce   : > { %v579_v7 = vpop.permute.xlu0 %578 }
 0x1cf   : > { %v816_v5 = vpop.eup %815 }
 0x1d0   : > { %v594_v8 = vpop.permute.xlu1 %593  ;;  %v564_v9 = vmul.f32 %v816_v5, %v548_v2  ;;  %v565_v10 = vmul.f32 %v816_v5, %v549_v3 }
 0x1d2   : > { %v596_v12 = vmul.f32 %v579_v7, %v564_v9  ;;  %v597_v14 = vmul.f32 %v579_v7, %v565_v10 }
 0x1d4   : > { %v611_v17 = vpop.permute.xlu1 %610 }
 0x1d5   : > { %v818_v19 = vpop.eup %817  ;;  %v628_v21 = vadd.f32 %v611_v17, %v596_v12  ;;  %v629_v22 = vadd.f32 %v611_v17, %v597_v14 }
 0x1d6   : > { %v566_v23 = vmul.f32 %v818_v19, %v550_v15  ;;  %v567_v4 = vmul.f32 %v818_v19, %v551_v16 }
 0x1d7   : > { %v636_v11 = vmax.f32 %v628_v21, 0.0  ;;  %v637_v25 = vmax.f32 %v629_v22, 0.0  ;;  %v820_v13 = vpop.eup %819 }
 0x1d8   : > { %v598_v26 = vmul.f32 %v584_v60, %v566_v23  ;;  %v599_v1 = vmul.f32 %v584_v60, %v567_v4  ;;  %v616_v28 = vpop.permute.xlu1 %615  ;;  %v568_v30 = vmul.f32 %v820_v13, %v552_v6  ;;  %v569_v31 = vmul.f32 %v820_v13, %v553_v24 }
 0x1d9   : > { %644 = vst [vmem:[%s1067_s17] sm:$0xff] %v636_v11  ;;  %645 = vst [vmem:[%s1067_s17 + $0x8] sm:$0xff] %v637_v25 }
 0x1da   : > { %v630_v32 = vadd.f32 %v616_v28, %v598_v26  ;;  %v631_v33 = vadd.f32 %v616_v28, %v599_v1  ;;  %v600_v34 = vmul.f32 %v589_v0, %v568_v30  ;;  %v601_v18 = vmul.f32 %v589_v0, %v569_v31 }
 0x1dc   : > { %v638_v35 = vmax.f32 %v630_v32, 0.0  ;;  %v639_v20 = vmax.f32 %v631_v33, 0.0  ;;  %v621_v36 = vpop.permute.xlu1 %620 }
 0x1dd   : > { %v632_v37 = vadd.f32 %v621_v36, %v600_v34  ;;  %v633_v38 = vadd.f32 %v621_v36, %v601_v18 }
 0x1de   : > { %646 = vst [vmem:[%s1067_s17 + $0x10] sm:$0xff] %v638_v35  ;;  %647 = vst [vmem:[%s1067_s17 + $0x18] sm:$0xff] %v639_v20 }
 0x1df   : > { %v640_v39 = vmax.f32 %v632_v37, 0.0  ;;  %v641_v40 = vmax.f32 %v633_v38, 0.0 }
 0x1e1   : > { %648 = vst [vmem:[%s1067_s17 + $0x20] sm:$0xff] %v640_v39  ;;  %649 = vst [vmem:[%s1067_s17 + $0x28] sm:$0xff] %v641_v40 }
 0x20d   : > { %v511_v41 = vpop.xlane.xlu1 %510 }
 0x20e   : > { %v515_v42 = vmul.f32 0.00390625, %v511_v41 }
 0x210   : > { %v543_v44 = vmul.f32 %v515_v42, %v515_v42  ;;  %v554_v48 = vsub.f32 %v1025_v27, %v515_v42  ;;  %v555_v49 = vsub.f32 %v1027_v29, %v515_v42 }
 0x211   : > { %v535_v43 = vpop.xlane.xlu1 %534 }
 0x212   : > { %v539_v45 = vmul.f32 0.00390625, %v535_v43 }
 0x214   : > { %v547_v46 = vsub.f32 %v539_v45, %v543_v44 }
 0x215   : > { %v626_v55 = vpop.permute.xlu1 %625 }
 0x216   : > { %v559_v47 = vadd.f32 1e-05, %v547_v46 }
 0x218   : > { %821 = vrsqrt.f32 %v559_v47 }
 0x222   : > { %v822_v50 = vpop.eup %821 }
 0x223   : > { %v570_v51 = vmul.f32 %v822_v50, %v554_v48  ;;  %v571_v52 = vmul.f32 %v822_v50, %v555_v49 }
 0x225   : > { %v602_v53 = vmul.f32 %v594_v8, %v570_v51  ;;  %v603_v54 = vmul.f32 %v594_v8, %v571_v52 }
 0x227   : > { %v634_v56 = vadd.f32 %v626_v55, %v602_v53  ;;  %v635_v57 = vadd.f32 %v626_v55, %v603_v54 }
 0x229   : > { %v642_v58 = vmax.f32 %v634_v56, 0.0  ;;  %v643_v59 = vmax.f32 %v635_v57, 0.0 }
 0x22b   : > { %650 = vst [vmem:[%s1067_s17 + $0x30] sm:$0xff] %v642_v58  ;;  %651 = vst [vmem:[%s1067_s17 + $0x38] sm:$0xff] %v643_v59 }
 0x22c PF: > { %s15_s18 = sadd.s32 1, %s829_s18  }
 0x22d   : > { %p12_p4 = scmp.ge.s32.totalorder %s15_s18, 4  }
 0x22f   :  { %14 = sbr.rel (!%p12_p4) target bundleno = 1 (0x1), region = 70 }

// kernel: solo_inference.77
= control target key start
LH: loop header
LB: loop body
LE: loop exit
PB: predicated region body
PF: predicated region fallthrough
CT: control target
= control target key end

     0   :  { %s1190_s9 = smov 0   ;;  %s1480_s0 = inlined_call_operand.vmem [shape: f32[1024,16], index: 0, kind: input, shape index: {}]   ;;  %s1481_s1 = inlined_call_operand.vmem [shape: f32[16,32], index: 1, kind: input, shape index: {}]   ;;  %s1482_s2 = inlined_call_operand.vmem [shape: f32[1024,32], index: 2, kind: output, shape index: {}]  }
   0x1 LB: > { %s912_s10 = sadd.s32 4294967295, %s1173_s9   ;;  %p916_p0 = scmp.ge.s32.totalorder %s1173_s9, 1  ;;  %s1173_s9 = sphi %s1190_s9, %s12_s9  }
   0x2   : > { %p113_p1 = scmp.lt.s32.totalorder %s1173_s9, 3 }
   0x4   : > { %p114_p2 = pnand %p916_p0, %p113_p1 }
   0x5   : > { %v211_v0 = vld [vmem:[%s1481_s1] sm:$0xff] (!%p114_p2)  ;;  %v212_v1 = vld [vmem:[%s1481_s1 + $0x8] sm:$0xff] (!%p114_p2)  ;;  %s917_s15 = sshll.u32 (!%p114_p2), %s912_s10, 6  ;;  %vm213_vm0 = vcmask (!%p114_p2), 130048   ;;  %vm791_vm1 = vcmask (!%p114_p2), 261120  }
   0x6   : > { %117 = sbr.rel (%p114_p2) target bundleno = 293 (0x125), region = 28  ;;  %v1153_v2 = vpack.c.bf16 (!%p114_p2), %v212_v1, %v211_v0  ;;  %p136_p3 = scmp.lt.s32.totalorder (!%p114_p2), %s917_s15, 127 }
   0x8   : > { %1154 = vmatprep.subr.bf16.mxu0 (!%p114_p2), %v1153_v2  ;;  %1157 = vmatprep.subr.bf16.mxu1 (!%p114_p2), %v1153_v2 }
   0x9   : > { %1156 = vmatpush3.bf16.msra.mxu0 (!%p114_p2), %v1153_v2  ;;  %1158 = vmatpush3.bf16.msra.mxu1 (!%p114_p2), %v1153_v2 }
   0xd   : > { %s1484_s15 = smov (!%p136_p3, %s917_s15), 127 }
   0xe   : > { %s918_s16 = sshll.u32 %s1484_s15, 3 }
   0xf   : > { %s1212_s19 = scalar_lea.vmem %s1480_s0, %s918_s16  ;;  %s1347_s22 = scalar_lea.vmem %s1482_s2, %s918_s16 }
  0x10   : > { %v147_v3 = vld [vmem:[%s1212_s19] sm:$0xff]  ;;  %v148_v5 = vld [vmem:[%s1212_s19 + $0x8] sm:$0xff]  ;;  %v149_v7 = vld [vmem:[%s1212_s19 + $0x10] sm:$0xff] }
  0x11   : > { %v179_v4 = vld [vmem:[%s1212_s19 + $0x100] sm:$0xff]  ;;  %1057 = vmatprep.mubr.msk.f32.mxu0 %vm213_vm0, %v147_v3  ;;  %v180_v6 = vld [vmem:[%s1212_s19 + $0x108] sm:$0xff]  ;;  %v181_v8 = vld [vmem:[%s1212_s19 + $0x110] sm:$0xff] }
  0x12   : > { %1105 = vmatprep.mubr.msk.f32.mxu1 %vm213_vm0, %v179_v4  ;;  %1058 = vmatmul.mubr.msk.f32.vlgmr.msra.gmra.mrb[0].mxu0 %vm213_vm0, %v148_v5  ;;  %v150_v9 = vld [vmem:[%s1212_s19 + $0x18] sm:$0xff]  ;;  %v151_v11 = vld [vmem:[%s1212_s19 + $0x20] sm:$0xff]  ;;  %v152_v13 = vld [vmem:[%s1212_s19 + $0x28] sm:$0xff] }
  0x13   : > { %1106 = vmatmul.mubr.msk.f32.vlgmr.msra.gmra.mrb[0].mxu1 %vm213_vm0, %v180_v6  ;;  %1060 = vmatprep.mubr.msk.f32.mxu0 %vm213_vm0, %v149_v7  ;;  %v182_v10 = vld [vmem:[%s1212_s19 + $0x118] sm:$0xff]  ;;  %v183_v12 = vld [vmem:[%s1212_s19 + $0x120] sm:$0xff]  ;;  %v184_v14 = vld [vmem:[%s1212_s19 + $0x128] sm:$0xff] }
  0x14   : > { %1108 = vmatprep.mubr.msk.f32.mxu1 %vm213_vm0, %v181_v8  ;;  %v153_v15 = vld [vmem:[%s1212_s19 + $0x30] sm:$0xff]  ;;  %v154_v17 = vld [vmem:[%s1212_s19 + $0x38] sm:$0xff]  ;;  %v155_v19 = vld [vmem:[%s1212_s19 + $0x40] sm:$0xff] }
  0x15   : > { %v185_v16 = vld [vmem:[%s1212_s19 + $0x130] sm:$0xff]  ;;  %v186_v18 = vld [vmem:[%s1212_s19 + $0x138] sm:$0xff]  ;;  %v187_v20 = vld [vmem:[%s1212_s19 + $0x140] sm:$0xff] }
  0x16   : > { %1061 = vmatmul.mubr.msk.f32.gmra.mrb[2].mxu0 %vm213_vm0, %v150_v9  ;;  %v156_v21 = vld [vmem:[%s1212_s19 + $0x48] sm:$0xff]  ;;  %v157_v23 = vld [vmem:[%s1212_s19 + $0x50] sm:$0xff]  ;;  %v158_v25 = vld [vmem:[%s1212_s19 + $0x58] sm:$0xff] }
  0x17   : > { %1109 = vmatmul.mubr.msk.f32.gmra.mrb[2].mxu1 %vm213_vm0, %v182_v10  ;;  %1063 = vmatprep.mubr.msk.f32.mxu0 %vm213_vm0, %v151_v11  ;;  %v188_v22 = vld [vmem:[%s1212_s19 + $0x148] sm:$0xff]  ;;  %v189_v24 = vld [vmem:[%s1212_s19 + $0x150] sm:$0xff]  ;;  %v190_v26 = vld [vmem:[%s1212_s19 + $0x158] sm:$0xff] }
  0x18   : > { %1111 = vmatprep.mubr.msk.f32.mxu1 %vm213_vm0, %v183_v12  ;;  %v159_v27 = vld [vmem:[%s1212_s19 + $0x60] sm:$0xff]  ;;  %v160_v29 = vld [vmem:[%s1212_s19 + $0x68] sm:$0xff]  ;;  %v161_v31 = vld [vmem:[%s1212_s19 + $0x70] sm:$0xff] }
  0x19   : > { %v191_v28 = vld [vmem:[%s1212_s19 + $0x160] sm:$0xff]  ;;  %v192_v30 = vld [vmem:[%s1212_s19 + $0x168] sm:$0xff]  ;;  %v193_v32 = vld [vmem:[%s1212_s19 + $0x170] sm:$0xff] }
  0x1a   : > { %1064 = vmatmul.mubr.msk.f32.gmra.mrb[4].mxu0 %vm213_vm0, %v152_v13  ;;  %v162_v33 = vld [vmem:[%s1212_s19 + $0x78] sm:$0xff]  ;;  %v163_v35 = vld [vmem:[%s1212_s19 + $0x80] sm:$0xff]  ;;  %v164_v37 = vld [vmem:[%s1212_s19 + $0x88] sm:$0xff] }
  0x1b   : > { %1112 = vmatmul.mubr.msk.f32.gmra.mrb[4].mxu1 %vm213_vm0, %v184_v14  ;;  %1066 = vmatprep.mubr.msk.f32.mxu0 %vm213_vm0, %v153_v15  ;;  %v194_v34 = vld [vmem:[%s1212_s19 + $0x178] sm:$0xff]  ;;  %v195_v36 = vld [vmem:[%s1212_s19 + $0x180] sm:$0xff]  ;;  %v196_v38 = vld [vmem:[%s1212_s19 + $0x188] sm:$0xff] }
  0x1c   : > { %1114 = vmatprep.mubr.msk.f32.mxu1 %vm213_vm0, %v185_v16  ;;  %v165_v39 = vld [vmem:[%s1212_s19 + $0x90] sm:$0xff]  ;;  %v166_v41 = vld [vmem:[%s1212_s19 + $0x98] sm:$0xff]  ;;  %v167_v43 = vld [vmem:[%s1212_s19 + $0xa0] sm:$0xff] }
  0x1d   : > { %v197_v40 = vld [vmem:[%s1212_s19 + $0x190] sm:$0xff]  ;;  %v198_v42 = vld [vmem:[%s1212_s19 + $0x198] sm:$0xff]  ;;  %v199_v44 = vld [vmem:[%s1212_s19 + $0x1a0] sm:$0xff] }
  0x1e   : > { %1067 = vmatmul.mubr.msk.f32.gmra.mrb[6].mxu0 %vm213_vm0, %v154_v17  ;;  %v168_v45 = vld [vmem:[%s1212_s19 + $0xa8] sm:$0xff]  ;;  %v169_v47 = vld [vmem:[%s1212_s19 + $0xb0] sm:$0xff]  ;;  %v170_v49 = vld [vmem:[%s1212_s19 + $0xb8] sm:$0xff] }
  0x1f   : > { %1115 = vmatmul.mubr.msk.f32.gmra.mrb[6].mxu1 %vm213_vm0, %v186_v18  ;;  %1069 = vmatprep.mubr.msk.f32.mxu0 %vm213_vm0, %v155_v19  ;;  %v200_v46 = vld [vmem:[%s1212_s19 + $0x1a8] sm:$0xff]  ;;  %v201_v48 = vld [vmem:[%s1212_s19 + $0x1b0] sm:$0xff]  ;;  %v202_v50 = vld [vmem:[%s1212_s19 + $0x1b8] sm:$0xff] }
  0x20   : > { %1117 = vmatprep.mubr.msk.f32.mxu1 %vm213_vm0, %v187_v20  ;;  %v171_v51 = vld [vmem:[%s1212_s19 + $0xc0] sm:$0xff]  ;;  %v172_v53 = vld [vmem:[%s1212_s19 + $0xc8] sm:$0xff]  ;;  %v173_v55 = vld [vmem:[%s1212_s19 + $0xd0] sm:$0xff] }
  0x21   : > { %v203_v52 = vld [vmem:[%s1212_s19 + $0x1c0] sm:$0xff]  ;;  %v204_v54 = vld [vmem:[%s1212_s19 + $0x1c8] sm:$0xff]  ;;  %v205_v56 = vld [vmem:[%s1212_s19 + $0x1d0] sm:$0xff] }
  0x22   : > { %1070 = vmatmul.mubr.msk.f32.gmra.mrb[8].mxu0 %vm213_vm0, %v156_v21  ;;  %v174_v57 = vld [vmem:[%s1212_s19 + $0xd8] sm:$0xff]  ;;  %v175_v59 = vld [vmem:[%s1212_s19 + $0xe0] sm:$0xff]  ;;  %v176_v61 = vld [vmem:[%s1212_s19 + $0xe8] sm:$0xff] }
  0x23   : > { %1118 = vmatmul.mubr.msk.f32.gmra.mrb[8].mxu1 %vm213_vm0, %v188_v22  ;;  %1072 = vmatprep.mubr.msk.f32.mxu0 %vm213_vm0, %v157_v23  ;;  %v206_v58 = vld [vmem:[%s1212_s19 + $0x1d8] sm:$0xff]  ;;  %v207_v60 = vld [vmem:[%s1212_s19 + $0x1e0] sm:$0xff]  ;;  %v208_v62 = vld [vmem:[%s1212_s19 + $0x1e8] sm:$0xff] }
  0x24   : > { %1120 = vmatprep.mubr.msk.f32.mxu1 %vm213_vm0, %v189_v24  ;;  %v177_v63 = vld [vmem:[%s1212_s19 + $0xf0] sm:$0xff]  ;;  %v178_v1 = vld [vmem:[%s1212_s19 + $0xf8] sm:$0xff] }
  0x25   : > { %v209_v0 = vld [vmem:[%s1212_s19 + $0x1f0] sm:$0xff]  ;;  %v210_v2 = vld [vmem:[%s1212_s19 + $0x1f8] sm:$0xff] }
  0x26   : > { %1073 = vmatmul.mubr.msk.f32.gmra.mrb[10].mxu0 %vm213_vm0, %v158_v25 }
  0x27   : > { %1121 = vmatmul.mubr.msk.f32.gmra.mrb[10].mxu1 %vm213_vm0, %v190_v26  ;;  %1075 = vmatprep.mubr.msk.f32.mxu0 %vm213_vm0, %v159_v27 }
  0x28   : > { %1123 = vmatprep.mubr.msk.f32.mxu1 %vm213_vm0, %v191_v28 }
  0x2a   : > { %1076 = vmatmul.mubr.msk.f32.gmra.mrb[12].mxu0 %vm213_vm0, %v160_v29 }
  0x2b   : > { %1124 = vmatmul.mubr.msk.f32.gmra.mrb[12].mxu1 %vm213_vm0, %v192_v30  ;;  %1078 = vmatprep.mubr.msk.f32.mxu0 %vm213_vm0, %v161_v31 }
  0x2c   : > { %1126 = vmatprep.mubr.msk.f32.mxu1 %vm213_vm0, %v193_v32 }
  0x2e   : > { %1079 = vmatmul.mubr.msk.f32.gmra.mrb[14].mxu0 %vm213_vm0, %v162_v33 }
  0x2f   : > { %1127 = vmatmul.mubr.msk.f32.gmra.mrb[14].mxu1 %vm213_vm0, %v194_v34  ;;  %1081 = vmatprep.mubr.msk.f32.mxu0 %vm213_vm0, %v163_v35 }
  0x30   : > { %1129 = vmatprep.mubr.msk.f32.mxu1 %vm213_vm0, %v195_v36 }
  0x32   : > { %1082 = vmatmul.mubr.msk.f32.gmra.mrb[16].mxu0 %vm213_vm0, %v164_v37 }
  0x33   : > { %1130 = vmatmul.mubr.msk.f32.gmra.mrb[16].mxu1 %vm213_vm0, %v196_v38  ;;  %1084 = vmatprep.mubr.msk.f32.mxu0 %vm213_vm0, %v165_v39 }
  0x34   : > { %1132 = vmatprep.mubr.msk.f32.mxu1 %vm213_vm0, %v197_v40 }
  0x36   : > { %1085 = vmatmul.mubr.msk.f32.gmra.mrb[18].mxu0 %vm213_vm0, %v166_v41 }
  0x37   : > { %1133 = vmatmul.mubr.msk.f32.gmra.mrb[18].mxu1 %vm213_vm0, %v198_v42  ;;  %1087 = vmatprep.mubr.msk.f32.mxu0 %vm213_vm0, %v167_v43 }
  0x38   : > { %1135 = vmatprep.mubr.msk.f32.mxu1 %vm213_vm0, %v199_v44 }
  0x3a   : > { %1088 = vmatmul.mubr.msk.f32.gmra.mrb[20].mxu0 %vm213_vm0, %v168_v45 }
  0x3b   : > { %1136 = vmatmul.mubr.msk.f32.gmra.mrb[20].mxu1 %vm213_vm0, %v200_v46  ;;  %1090 = vmatprep.mubr.msk.f32.mxu0 %vm213_vm0, %v169_v47 }
  0x3c   : > { %1138 = vmatprep.mubr.msk.f32.mxu1 %vm213_vm0, %v201_v48 }
  0x3e   : > { %1091 = vmatmul.mubr.msk.f32.gmra.mrb[22].mxu0 %vm213_vm0, %v170_v49 }
  0x3f   : > { %1139 = vmatmul.mubr.msk.f32.gmra.mrb[22].mxu1 %vm213_vm0, %v202_v50  ;;  %1093 = vmatprep.mubr.msk.f32.mxu0 %vm213_vm0, %v171_v51 }
  0x40   : > { %1141 = vmatprep.mubr.msk.f32.mxu1 %vm213_vm0, %v203_v52 }
  0x42   : > { %1094 = vmatmul.mubr.msk.f32.gmra.mrb[24].mxu0 %vm213_vm0, %v172_v53 }
  0x43   : > { %1142 = vmatmul.mubr.msk.f32.gmra.mrb[24].mxu1 %vm213_vm0, %v204_v54  ;;  %1096 = vmatprep.mubr.msk.f32.mxu0 %vm213_vm0, %v173_v55 }
  0x44   : > { %1144 = vmatprep.mubr.msk.f32.mxu1 %vm213_vm0, %v205_v56 }
  0x46   : > { %1097 = vmatmul.mubr.msk.f32.gmra.mrb[26].mxu0 %vm213_vm0, %v174_v57 }
  0x47   : > { %1145 = vmatmul.mubr.msk.f32.gmra.mrb[26].mxu1 %vm213_vm0, %v206_v58  ;;  %1099 = vmatprep.mubr.msk.f32.mxu0 %vm213_vm0, %v175_v59 }
  0x48   : > { %1147 = vmatprep.mubr.msk.f32.mxu1 %vm213_vm0, %v207_v60 }
  0x4a   : > { %1100 = vmatmul.mubr.msk.f32.gmra.mrb[28].mxu0 %vm213_vm0, %v176_v61 }
  0x4b   : > { %1148 = vmatmul.mubr.msk.f32.gmra.mrb[28].mxu1 %vm213_vm0, %v208_v62  ;;  %1102 = vmatprep.mubr.msk.f32.mxu0 %vm213_vm0, %v177_v63 }
  0x4c   : > { %1150 = vmatprep.mubr.msk.f32.mxu1 %vm213_vm0, %v209_v0 }
  0x4e   : > { %1103 = vmatmul.mubr.msk.f32.gmra.mrb[30].mxu0 %vm213_vm0, %v178_v1 }
  0x4f   : > { %1151 = vmatmul.mubr.msk.f32.gmra.mrb[30].mxu1 %vm213_vm0, %v210_v2 }
  0xe5   : > { %v1059_v3 = vpop.f32.mrb[0].mxu0 }
  0xe6   : > { %v1107_v4 = vpop.f32.mrb[0].mxu1  ;;  %793 = vst.msk [vmem:[%s1347_s22 + $0x8] sm:$0xff] %vm791_vm1, %v1059_v3  ;;  %v472_v5 = vpop.f32.mrb[1].mxu0 }
  0xe7   : > { %825 = vst.msk [vmem:[%s1347_s22 + $0x108] sm:$0xff] %vm791_vm1, %v1107_v4  ;;  %v632_v6 = vpop.f32.mrb[1].mxu1  ;;  %792 = vst.msk [vmem:[%s1347_s22] sm:$0xff] %vm791_vm1, %v472_v5 }
  0xe8   : > { %824 = vst.msk [vmem:[%s1347_s22 + $0x100] sm:$0xff] %vm791_vm1, %v632_v6 }
  0xe9   : > { %v1062_v7 = vpop.f32.mrb[2].mxu0 }
  0xea   : > { %v1110_v8 = vpop.f32.mrb[2].mxu1  ;;  %795 = vst.msk [vmem:[%s1347_s22 + $0x18] sm:$0xff] %vm791_vm1, %v1062_v7  ;;  %v482_v9 = vpop.f32.mrb[3].mxu0 }
  0xeb   : > { %827 = vst.msk [vmem:[%s1347_s22 + $0x118] sm:$0xff] %vm791_vm1, %v1110_v8  ;;  %v642_v10 = vpop.f32.mrb[3].mxu1  ;;  %794 = vst.msk [vmem:[%s1347_s22 + $0x10] sm:$0xff] %vm791_vm1, %v482_v9 }
  0xec   : > { %826 = vst.msk [vmem:[%s1347_s22 + $0x110] sm:$0xff] %vm791_vm1, %v642_v10 }
  0xed   : > { %v1065_v11 = vpop.f32.mrb[4].mxu0 }
  0xee   : > { %v1113_v12 = vpop.f32.mrb[4].mxu1  ;;  %797 = vst.msk [vmem:[%s1347_s22 + $0x28] sm:$0xff] %vm791_vm1, %v1065_v11  ;;  %v492_v13 = vpop.f32.mrb[5].mxu0 }
  0xef   : > { %829 = vst.msk [vmem:[%s1347_s22 + $0x128] sm:$0xff] %vm791_vm1, %v1113_v12  ;;  %v652_v14 = vpop.f32.mrb[5].mxu1  ;;  %796 = vst.msk [vmem:[%s1347_s22 + $0x20] sm:$0xff] %vm791_vm1, %v492_v13 }
  0xf0   : > { %828 = vst.msk [vmem:[%s1347_s22 + $0x120] sm:$0xff] %vm791_vm1, %v652_v14 }
  0xf1   : > { %v1068_v15 = vpop.f32.mrb[6].mxu0 }
  0xf2   : > { %v1116_v16 = vpop.f32.mrb[6].mxu1  ;;  %799 = vst.msk [vmem:[%s1347_s22 + $0x38] sm:$0xff] %vm791_vm1, %v1068_v15  ;;  %v502_v17 = vpop.f32.mrb[7].mxu0 }
  0xf3   : > { %831 = vst.msk [vmem:[%s1347_s22 + $0x138] sm:$0xff] %vm791_vm1, %v1116_v16  ;;  %v662_v18 = vpop.f32.mrb[7].mxu1  ;;  %798 = vst.msk [vmem:[%s1347_s22 + $0x30] sm:$0xff] %vm791_vm1, %v502_v17 }
  0xf4   : > { %830 = vst.msk [vmem:[%s1347_s22 + $0x130] sm:$0xff] %vm791_vm1, %v662_v18 }
  0xf5   : > { %v1071_v19 = vpop.f32.mrb[8].mxu0 }
  0xf6   : > { %v1119_v20 = vpop.f32.mrb[8].mxu1  ;;  %801 = vst.msk [vmem:[%s1347_s22 + $0x48] sm:$0xff] %vm791_vm1, %v1071_v19  ;;  %v512_v21 = vpop.f32.mrb[9].mxu0 }
  0xf7   : > { %833 = vst.msk [vmem:[%s1347_s22 + $0x148] sm:$0xff] %vm791_vm1, %v1119_v20  ;;  %v672_v22 = vpop.f32.mrb[9].mxu1  ;;  %800 = vst.msk [vmem:[%s1347_s22 + $0x40] sm:$0xff] %vm791_vm1, %v512_v21 }
  0xf8   : > { %832 = vst.msk [vmem:[%s1347_s22 + $0x140] sm:$0xff] %vm791_vm1, %v672_v22 }
  0xf9   : > { %v1074_v23 = vpop.f32.mrb[10].mxu0 }
  0xfa   : > { %v1122_v24 = vpop.f32.mrb[10].mxu1  ;;  %803 = vst.msk [vmem:[%s1347_s22 + $0x58] sm:$0xff] %vm791_vm1, %v1074_v23  ;;  %v522_v25 = vpop.f32.mrb[11].mxu0 }
  0xfb   : > { %835 = vst.msk [vmem:[%s1347_s22 + $0x158] sm:$0xff] %vm791_vm1, %v1122_v24  ;;  %v682_v26 = vpop.f32.mrb[11].mxu1  ;;  %802 = vst.msk [vmem:[%s1347_s22 + $0x50] sm:$0xff] %vm791_vm1, %v522_v25 }
  0xfc   : > { %834 = vst.msk [vmem:[%s1347_s22 + $0x150] sm:$0xff] %vm791_vm1, %v682_v26 }
  0xfd   : > { %v1077_v27 = vpop.f32.mrb[12].mxu0 }
  0xfe   : > { %v1125_v28 = vpop.f32.mrb[12].mxu1  ;;  %805 = vst.msk [vmem:[%s1347_s22 + $0x68] sm:$0xff] %vm791_vm1, %v1077_v27  ;;  %v532_v29 = vpop.f32.mrb[13].mxu0 }
  0xff   : > { %837 = vst.msk [vmem:[%s1347_s22 + $0x168] sm:$0xff] %vm791_vm1, %v1125_v28  ;;  %v692_v30 = vpop.f32.mrb[13].mxu1  ;;  %804 = vst.msk [vmem:[%s1347_s22 + $0x60] sm:$0xff] %vm791_vm1, %v532_v29 }
 0x100   : > { %836 = vst.msk [vmem:[%s1347_s22 + $0x160] sm:$0xff] %vm791_vm1, %v692_v30 }
 0x101   : > { %v1080_v31 = vpop.f32.mrb[14].mxu0 }
 0x102   : > { %v1128_v32 = vpop.f32.mrb[14].mxu1  ;;  %807 = vst.msk [vmem:[%s1347_s22 + $0x78] sm:$0xff] %vm791_vm1, %v1080_v31  ;;  %v542_v33 = vpop.f32.mrb[15].mxu0 }
 0x103   : > { %839 = vst.msk [vmem:[%s1347_s22 + $0x178] sm:$0xff] %vm791_vm1, %v1128_v32  ;;  %v702_v34 = vpop.f32.mrb[15].mxu1  ;;  %806 = vst.msk [vmem:[%s1347_s22 + $0x70] sm:$0xff] %vm791_vm1, %v542_v33 }
 0x104   : > { %838 = vst.msk [vmem:[%s1347_s22 + $0x170] sm:$0xff] %vm791_vm1, %v702_v34 }
 0x105   : > { %v1083_v35 = vpop.f32.mrb[16].mxu0 }
 0x106   : > { %v1131_v36 = vpop.f32.mrb[16].mxu1  ;;  %809 = vst.msk [vmem:[%s1347_s22 + $0x88] sm:$0xff] %vm791_vm1, %v1083_v35  ;;  %v552_v37 = vpop.f32.mrb[17].mxu0 }
 0x107   : > { %841 = vst.msk [vmem:[%s1347_s22 + $0x188] sm:$0xff] %vm791_vm1, %v1131_v36  ;;  %v712_v38 = vpop.f32.mrb[17].mxu1  ;;  %808 = vst.msk [vmem:[%s1347_s22 + $0x80] sm:$0xff] %vm791_vm1, %v552_v37 }
 0x108   : > { %840 = vst.msk [vmem:[%s1347_s22 + $0x180] sm:$0xff] %vm791_vm1, %v712_v38 }
 0x109   : > { %v1086_v39 = vpop.f32.mrb[18].mxu0 }
 0x10a   : > { %v1134_v40 = vpop.f32.mrb[18].mxu1  ;;  %811 = vst.msk [vmem:[%s1347_s22 + $0x98] sm:$0xff] %vm791_vm1, %v1086_v39  ;;  %v562_v41 = vpop.f32.mrb[19].mxu0 }
 0x10b   : > { %843 = vst.msk [vmem:[%s1347_s22 + $0x198] sm:$0xff] %vm791_vm1, %v1134_v40  ;;  %v722_v42 = vpop.f32.mrb[19].mxu1  ;;  %810 = vst.msk [vmem:[%s1347_s22 + $0x90] sm:$0xff] %vm791_vm1, %v562_v41 }
 0x10c   : > { %842 = vst.msk [vmem:[%s1347_s22 + $0x190] sm:$0xff] %vm791_vm1, %v722_v42 }
 0x10d   : > { %v1089_v43 = vpop.f32.mrb[20].mxu0 }
 0x10e   : > { %v1137_v44 = vpop.f32.mrb[20].mxu1  ;;  %813 = vst.msk [vmem:[%s1347_s22 + $0xa8] sm:$0xff] %vm791_vm1, %v1089_v43  ;;  %v572_v45 = vpop.f32.mrb[21].mxu0 }
 0x10f   : > { %845 = vst.msk [vmem:[%s1347_s22 + $0x1a8] sm:$0xff] %vm791_vm1, %v1137_v44  ;;  %v732_v46 = vpop.f32.mrb[21].mxu1  ;;  %812 = vst.msk [vmem:[%s1347_s22 + $0xa0] sm:$0xff] %vm791_vm1, %v572_v45 }
 0x110   : > { %844 = vst.msk [vmem:[%s1347_s22 + $0x1a0] sm:$0xff] %vm791_vm1, %v732_v46 }
 0x111   : > { %v1092_v47 = vpop.f32.mrb[22].mxu0 }
 0x112   : > { %v1140_v48 = vpop.f32.mrb[22].mxu1  ;;  %815 = vst.msk [vmem:[%s1347_s22 + $0xb8] sm:$0xff] %vm791_vm1, %v1092_v47  ;;  %v582_v49 = vpop.f32.mrb[23].mxu0 }
 0x113   : > { %847 = vst.msk [vmem:[%s1347_s22 + $0x1b8] sm:$0xff] %vm791_vm1, %v1140_v48  ;;  %v742_v50 = vpop.f32.mrb[23].mxu1  ;;  %814 = vst.msk [vmem:[%s1347_s22 + $0xb0] sm:$0xff] %vm791_vm1, %v582_v49 }
 0x114   : > { %846 = vst.msk [vmem:[%s1347_s22 + $0x1b0] sm:$0xff] %vm791_vm1, %v742_v50 }
 0x115   : > { %v1095_v51 = vpop.f32.mrb[24].mxu0 }
 0x116   : > { %v1143_v52 = vpop.f32.mrb[24].mxu1  ;;  %817 = vst.msk [vmem:[%s1347_s22 + $0xc8] sm:$0xff] %vm791_vm1, %v1095_v51  ;;  %v592_v53 = vpop.f32.mrb[25].mxu0 }
 0x117   : > { %849 = vst.msk [vmem:[%s1347_s22 + $0x1c8] sm:$0xff] %vm791_vm1, %v1143_v52  ;;  %v752_v54 = vpop.f32.mrb[25].mxu1  ;;  %816 = vst.msk [vmem:[%s1347_s22 + $0xc0] sm:$0xff] %vm791_vm1, %v592_v53 }
 0x118   : > { %848 = vst.msk [vmem:[%s1347_s22 + $0x1c0] sm:$0xff] %vm791_vm1, %v752_v54 }
 0x119   : > { %v1098_v55 = vpop.f32.mrb[26].mxu0 }
 0x11a   : > { %v1146_v56 = vpop.f32.mrb[26].mxu1  ;;  %819 = vst.msk [vmem:[%s1347_s22 + $0xd8] sm:$0xff] %vm791_vm1, %v1098_v55  ;;  %v602_v57 = vpop.f32.mrb[27].mxu0 }
 0x11b   : > { %851 = vst.msk [vmem:[%s1347_s22 + $0x1d8] sm:$0xff] %vm791_vm1, %v1146_v56  ;;  %v762_v58 = vpop.f32.mrb[27].mxu1  ;;  %818 = vst.msk [vmem:[%s1347_s22 + $0xd0] sm:$0xff] %vm791_vm1, %v602_v57 }
 0x11c   : > { %850 = vst.msk [vmem:[%s1347_s22 + $0x1d0] sm:$0xff] %vm791_vm1, %v762_v58 }
 0x11d   : > { %v1101_v59 = vpop.f32.mrb[28].mxu0 }
 0x11e   : > { %v1149_v60 = vpop.f32.mrb[28].mxu1  ;;  %821 = vst.msk [vmem:[%s1347_s22 + $0xe8] sm:$0xff] %vm791_vm1, %v1101_v59  ;;  %v612_v61 = vpop.f32.mrb[29].mxu0 }
 0x11f   : > { %853 = vst.msk [vmem:[%s1347_s22 + $0x1e8] sm:$0xff] %vm791_vm1, %v1149_v60  ;;  %v772_v62 = vpop.f32.mrb[29].mxu1  ;;  %820 = vst.msk [vmem:[%s1347_s22 + $0xe0] sm:$0xff] %vm791_vm1, %v612_v61 }
 0x120   : > { %852 = vst.msk [vmem:[%s1347_s22 + $0x1e0] sm:$0xff] %vm791_vm1, %v772_v62 }
 0x121   : > { %v1104_v63 = vpop.f32.mrb[30].mxu0 }
 0x122   : > { %v1152_v0 = vpop.f32.mrb[30].mxu1  ;;  %823 = vst.msk [vmem:[%s1347_s22 + $0xf8] sm:$0xff] %vm791_vm1, %v1104_v63  ;;  %v622_v1 = vpop.f32.mrb[31].mxu0 }
 0x123   : > { %855 = vst.msk [vmem:[%s1347_s22 + $0x1f8] sm:$0xff] %vm791_vm1, %v1152_v0  ;;  %v782_v2 = vpop.f32.mrb[31].mxu1  ;;  %822 = vst.msk [vmem:[%s1347_s22 + $0xf0] sm:$0xff] %vm791_vm1, %v622_v1 }
 0x124   : > { %854 = vst.msk [vmem:[%s1347_s22 + $0x1f0] sm:$0xff] %vm791_vm1, %v782_v2 }
 0x125 PF: > { %s12_s9 = sadd.s32 1, %s1173_s9  }
 0x126   : > { %p9_p4 = scmp.ge.s32.totalorder %s12_s9, 4  }
 0x128   :  { %11 = sbr.rel (!%p9_p4) target bundleno = 1 (0x1), region = 58 }

// kernel: solo_inference.78
= control target key start
LH: loop header
LB: loop body
LE: loop exit
PB: predicated region body
PF: predicated region fallthrough
CT: control target
= control target key end

     0   :  { %s2054_s9 = smov 0   ;;  %s2600_s0 = inlined_call_operand.vmem [shape: f32[2048,16], index: 0, kind: input, shape index: {}]   ;;  %s2601_s1 = inlined_call_operand.vmem [shape: f32[16,32], index: 1, kind: input, shape index: {}]   ;;  %s2602_s2 = inlined_call_operand.vmem [shape: f32[2048,32], index: 2, kind: output, shape index: {}]  }
   0x1 LB: > { %s1552_s10 = sadd.s32 4294967295, %s2037_s9   ;;  %p1556_p0 = scmp.ge.s32.totalorder %s2037_s9, 1  ;;  %s2037_s9 = sphi %s2054_s9, %s12_s9  }
   0x2   : > { %p113_p1 = scmp.lt.s32.totalorder %s2037_s9, 3 }
   0x4   : > { %p114_p2 = pnand %p1556_p0, %p113_p1 }
   0x5   : > { %v275_v0 = vld [vmem:[%s2601_s1] sm:$0xff] (!%p114_p2)  ;;  %v276_v1 = vld [vmem:[%s2601_s1 + $0x8] sm:$0xff] (!%p114_p2)  ;;  %s1557_s15 = sshll.u32 (!%p114_p2), %s1552_s10, 7  ;;  %vm277_vm0 = vcmask (!%p114_p2), 130048   ;;  %vm1367_vm1 = vcmask (!%p114_p2), 261120  }
   0x6   : > { %117 = sbr.rel (%p114_p2) target bundleno = 357 (0x165), region = 28  ;;  %v2017_v2 = vpack.c.bf16 (!%p114_p2), %v276_v1, %v275_v0  ;;  %p136_p3 = scmp.lt.s32.totalorder (!%p114_p2), %s1557_s15, 255 }
   0x8   : > { %2018 = vmatprep.subr.bf16.mxu0 (!%p114_p2), %v2017_v2  ;;  %2021 = vmatprep.subr.bf16.mxu1 (!%p114_p2), %v2017_v2 }
   0x9   : > { %2020 = vmatpush3.bf16.msra.mxu0 (!%p114_p2), %v2017_v2  ;;  %2022 = vmatpush3.bf16.msra.mxu1 (!%p114_p2), %v2017_v2 }
   0xd   : > { %s2604_s15 = smov (!%p136_p3, %s1557_s15), 255 }
   0xe   : > { %s1558_s16 = sshll.u32 %s2604_s15, 3 }
   0xf   : > { %s2076_s19 = scalar_lea.vmem %s2600_s0, %s1558_s16  ;;  %s2339_s22 = scalar_lea.vmem %s2602_s2, %s1558_s16 }
  0x10   : > { %v147_v3 = vld [vmem:[%s2076_s19] sm:$0xff]  ;;  %v148_v5 = vld [vmem:[%s2076_s19 + $0x8] sm:$0xff]  ;;  %v149_v7 = vld [vmem:[%s2076_s19 + $0x10] sm:$0xff] }
  0x11   : > { %v211_v4 = vld [vmem:[%s2076_s19 + $0x200] sm:$0xff]  ;;  %1825 = vmatprep.mubr.msk.f32.mxu0 %vm277_vm0, %v147_v3  ;;  %v212_v6 = vld [vmem:[%s2076_s19 + $0x208] sm:$0xff]  ;;  %v213_v8 = vld [vmem:[%s2076_s19 + $0x210] sm:$0xff] }
  0x12   : > { %1921 = vmatprep.mubr.msk.f32.mxu1 %vm277_vm0, %v211_v4  ;;  %1826 = vmatmul.mubr.msk.f32.vlgmr.msra.gmra.mrb[0].mxu0 %vm277_vm0, %v148_v5  ;;  %v150_v9 = vld [vmem:[%s2076_s19 + $0x18] sm:$0xff]  ;;  %v151_v11 = vld [vmem:[%s2076_s19 + $0x20] sm:$0xff]  ;;  %v152_v13 = vld [vmem:[%s2076_s19 + $0x28] sm:$0xff] }
  0x13   : > { %1922 = vmatmul.mubr.msk.f32.vlgmr.msra.gmra.mrb[0].mxu1 %vm277_vm0, %v212_v6  ;;  %1828 = vmatprep.mubr.msk.f32.mxu0 %vm277_vm0, %v149_v7  ;;  %v214_v10 = vld [vmem:[%s2076_s19 + $0x218] sm:$0xff]  ;;  %v215_v12 = vld [vmem:[%s2076_s19 + $0x220] sm:$0xff]  ;;  %v216_v14 = vld [vmem:[%s2076_s19 + $0x228] sm:$0xff] }
  0x14   : > { %1924 = vmatprep.mubr.msk.f32.mxu1 %vm277_vm0, %v213_v8  ;;  %v153_v15 = vld [vmem:[%s2076_s19 + $0x30] sm:$0xff]  ;;  %v154_v17 = vld [vmem:[%s2076_s19 + $0x38] sm:$0xff]  ;;  %v155_v19 = vld [vmem:[%s2076_s19 + $0x40] sm:$0xff] }
  0x15   : > { %v217_v16 = vld [vmem:[%s2076_s19 + $0x230] sm:$0xff]  ;;  %v218_v18 = vld [vmem:[%s2076_s19 + $0x238] sm:$0xff]  ;;  %v219_v20 = vld [vmem:[%s2076_s19 + $0x240] sm:$0xff] }
  0x16   : > { %1829 = vmatmul.mubr.msk.f32.gmra.mrb[2].mxu0 %vm277_vm0, %v150_v9  ;;  %v156_v21 = vld [vmem:[%s2076_s19 + $0x48] sm:$0xff]  ;;  %v157_v23 = vld [vmem:[%s2076_s19 + $0x50] sm:$0xff]  ;;  %v158_v25 = vld [vmem:[%s2076_s19 + $0x58] sm:$0xff] }
  0x17   : > { %1925 = vmatmul.mubr.msk.f32.gmra.mrb[2].mxu1 %vm277_vm0, %v214_v10  ;;  %1831 = vmatprep.mubr.msk.f32.mxu0 %vm277_vm0, %v151_v11  ;;  %v220_v22 = vld [vmem:[%s2076_s19 + $0x248] sm:$0xff]  ;;  %v221_v24 = vld [vmem:[%s2076_s19 + $0x250] sm:$0xff]  ;;  %v222_v26 = vld [vmem:[%s2076_s19 + $0x258] sm:$0xff] }
  0x18   : > { %1927 = vmatprep.mubr.msk.f32.mxu1 %vm277_vm0, %v215_v12  ;;  %v159_v27 = vld [vmem:[%s2076_s19 + $0x60] sm:$0xff]  ;;  %v160_v29 = vld [vmem:[%s2076_s19 + $0x68] sm:$0xff]  ;;  %v161_v31 = vld [vmem:[%s2076_s19 + $0x70] sm:$0xff] }
  0x19   : > { %v223_v28 = vld [vmem:[%s2076_s19 + $0x260] sm:$0xff]  ;;  %v224_v30 = vld [vmem:[%s2076_s19 + $0x268] sm:$0xff]  ;;  %v225_v32 = vld [vmem:[%s2076_s19 + $0x270] sm:$0xff] }
  0x1a   : > { %1832 = vmatmul.mubr.msk.f32.gmra.mrb[4].mxu0 %vm277_vm0, %v152_v13  ;;  %v162_v33 = vld [vmem:[%s2076_s19 + $0x78] sm:$0xff]  ;;  %v163_v35 = vld [vmem:[%s2076_s19 + $0x80] sm:$0xff]  ;;  %v164_v37 = vld [vmem:[%s2076_s19 + $0x88] sm:$0xff] }
  0x1b   : > { %1928 = vmatmul.mubr.msk.f32.gmra.mrb[4].mxu1 %vm277_vm0, %v216_v14  ;;  %1834 = vmatprep.mubr.msk.f32.mxu0 %vm277_vm0, %v153_v15  ;;  %v226_v34 = vld [vmem:[%s2076_s19 + $0x278] sm:$0xff]  ;;  %v227_v36 = vld [vmem:[%s2076_s19 + $0x280] sm:$0xff]  ;;  %v228_v38 = vld [vmem:[%s2076_s19 + $0x288] sm:$0xff] }
  0x1c   : > { %1930 = vmatprep.mubr.msk.f32.mxu1 %vm277_vm0, %v217_v16  ;;  %v165_v39 = vld [vmem:[%s2076_s19 + $0x90] sm:$0xff]  ;;  %v166_v41 = vld [vmem:[%s2076_s19 + $0x98] sm:$0xff]  ;;  %v167_v43 = vld [vmem:[%s2076_s19 + $0xa0] sm:$0xff] }
  0x1d   : > { %v229_v40 = vld [vmem:[%s2076_s19 + $0x290] sm:$0xff]  ;;  %v230_v42 = vld [vmem:[%s2076_s19 + $0x298] sm:$0xff]  ;;  %v231_v44 = vld [vmem:[%s2076_s19 + $0x2a0] sm:$0xff] }
  0x1e   : > { %1835 = vmatmul.mubr.msk.f32.gmra.mrb[6].mxu0 %vm277_vm0, %v154_v17  ;;  %v168_v45 = vld [vmem:[%s2076_s19 + $0xa8] sm:$0xff]  ;;  %v169_v47 = vld [vmem:[%s2076_s19 + $0xb0] sm:$0xff]  ;;  %v170_v49 = vld [vmem:[%s2076_s19 + $0xb8] sm:$0xff] }
  0x1f   : > { %1931 = vmatmul.mubr.msk.f32.gmra.mrb[6].mxu1 %vm277_vm0, %v218_v18  ;;  %1837 = vmatprep.mubr.msk.f32.mxu0 %vm277_vm0, %v155_v19  ;;  %v232_v46 = vld [vmem:[%s2076_s19 + $0x2a8] sm:$0xff]  ;;  %v233_v48 = vld [vmem:[%s2076_s19 + $0x2b0] sm:$0xff]  ;;  %v234_v50 = vld [vmem:[%s2076_s19 + $0x2b8] sm:$0xff] }
  0x20   : > { %1933 = vmatprep.mubr.msk.f32.mxu1 %vm277_vm0, %v219_v20  ;;  %v171_v51 = vld [vmem:[%s2076_s19 + $0xc0] sm:$0xff]  ;;  %v172_v53 = vld [vmem:[%s2076_s19 + $0xc8] sm:$0xff]  ;;  %v173_v55 = vld [vmem:[%s2076_s19 + $0xd0] sm:$0xff] }
  0x21   : > { %v235_v52 = vld [vmem:[%s2076_s19 + $0x2c0] sm:$0xff]  ;;  %v236_v54 = vld [vmem:[%s2076_s19 + $0x2c8] sm:$0xff]  ;;  %v237_v56 = vld [vmem:[%s2076_s19 + $0x2d0] sm:$0xff] }
  0x22   : > { %1838 = vmatmul.mubr.msk.f32.gmra.mrb[8].mxu0 %vm277_vm0, %v156_v21  ;;  %v174_v57 = vld [vmem:[%s2076_s19 + $0xd8] sm:$0xff]  ;;  %v175_v59 = vld [vmem:[%s2076_s19 + $0xe0] sm:$0xff]  ;;  %v176_v61 = vld [vmem:[%s2076_s19 + $0xe8] sm:$0xff] }
  0x23   : > { %1934 = vmatmul.mubr.msk.f32.gmra.mrb[8].mxu1 %vm277_vm0, %v220_v22  ;;  %1840 = vmatprep.mubr.msk.f32.mxu0 %vm277_vm0, %v157_v23  ;;  %v238_v58 = vld [vmem:[%s2076_s19 + $0x2d8] sm:$0xff]  ;;  %v239_v60 = vld [vmem:[%s2076_s19 + $0x2e0] sm:$0xff]  ;;  %v240_v62 = vld [vmem:[%s2076_s19 + $0x2e8] sm:$0xff] }
  0x24   : > { %1936 = vmatprep.mubr.msk.f32.mxu1 %vm277_vm0, %v221_v24  ;;  %v177_v63 = vld [vmem:[%s2076_s19 + $0xf0] sm:$0xff]  ;;  %v178_v1 = vld [vmem:[%s2076_s19 + $0xf8] sm:$0xff]  ;;  %v179_v3 = vld [vmem:[%s2076_s19 + $0x100] sm:$0xff] }
  0x25   : > { %v241_v0 = vld [vmem:[%s2076_s19 + $0x2f0] sm:$0xff]  ;;  %v242_v2 = vld [vmem:[%s2076_s19 + $0x2f8] sm:$0xff]  ;;  %v243_v4 = vld [vmem:[%s2076_s19 + $0x300] sm:$0xff] }
  0x26   : > { %1841 = vmatmul.mubr.msk.f32.gmra.mrb[10].mxu0 %vm277_vm0, %v158_v25  ;;  %v180_v5 = vld [vmem:[%s2076_s19 + $0x108] sm:$0xff]  ;;  %v181_v7 = vld [vmem:[%s2076_s19 + $0x110] sm:$0xff]  ;;  %v182_v9 = vld [vmem:[%s2076_s19 + $0x118] sm:$0xff] }
  0x27   : > { %1937 = vmatmul.mubr.msk.f32.gmra.mrb[10].mxu1 %vm277_vm0, %v222_v26  ;;  %1843 = vmatprep.mubr.msk.f32.mxu0 %vm277_vm0, %v159_v27  ;;  %v244_v6 = vld [vmem:[%s2076_s19 + $0x308] sm:$0xff]  ;;  %v245_v8 = vld [vmem:[%s2076_s19 + $0x310] sm:$0xff]  ;;  %v246_v10 = vld [vmem:[%s2076_s19 + $0x318] sm:$0xff] }
  0x28   : > { %1939 = vmatprep.mubr.msk.f32.mxu1 %vm277_vm0, %v223_v28  ;;  %v183_v11 = vld [vmem:[%s2076_s19 + $0x120] sm:$0xff]  ;;  %v184_v13 = vld [vmem:[%s2076_s19 + $0x128] sm:$0xff]  ;;  %v185_v15 = vld [vmem:[%s2076_s19 + $0x130] sm:$0xff] }
  0x29   : > { %v247_v12 = vld [vmem:[%s2076_s19 + $0x320] sm:$0xff]  ;;  %v248_v14 = vld [vmem:[%s2076_s19 + $0x328] sm:$0xff]  ;;  %v249_v16 = vld [vmem:[%s2076_s19 + $0x330] sm:$0xff] }
  0x2a   : > { %1844 = vmatmul.mubr.msk.f32.gmra.mrb[12].mxu0 %vm277_vm0, %v160_v29  ;;  %v186_v17 = vld [vmem:[%s2076_s19 + $0x138] sm:$0xff]  ;;  %v187_v19 = vld [vmem:[%s2076_s19 + $0x140] sm:$0xff]  ;;  %v188_v21 = vld [vmem:[%s2076_s19 + $0x148] sm:$0xff] }
  0x2b   : > { %1940 = vmatmul.mubr.msk.f32.gmra.mrb[12].mxu1 %vm277_vm0, %v224_v30  ;;  %1846 = vmatprep.mubr.msk.f32.mxu0 %vm277_vm0, %v161_v31  ;;  %v250_v18 = vld [vmem:[%s2076_s19 + $0x338] sm:$0xff]  ;;  %v251_v20 = vld [vmem:[%s2076_s19 + $0x340] sm:$0xff]  ;;  %v252_v22 = vld [vmem:[%s2076_s19 + $0x348] sm:$0xff] }
  0x2c   : > { %1942 = vmatprep.mubr.msk.f32.mxu1 %vm277_vm0, %v225_v32  ;;  %v189_v23 = vld [vmem:[%s2076_s19 + $0x150] sm:$0xff]  ;;  %v190_v25 = vld [vmem:[%s2076_s19 + $0x158] sm:$0xff]  ;;  %v191_v27 = vld [vmem:[%s2076_s19 + $0x160] sm:$0xff] }
  0x2d   : > { %v253_v24 = vld [vmem:[%s2076_s19 + $0x350] sm:$0xff]  ;;  %v254_v26 = vld [vmem:[%s2076_s19 + $0x358] sm:$0xff]  ;;  %v255_v28 = vld [vmem:[%s2076_s19 + $0x360] sm:$0xff] }
  0x2e   : > { %1847 = vmatmul.mubr.msk.f32.gmra.mrb[14].mxu0 %vm277_vm0, %v162_v33  ;;  %v192_v29 = vld [vmem:[%s2076_s19 + $0x168] sm:$0xff]  ;;  %v193_v31 = vld [vmem:[%s2076_s19 + $0x170] sm:$0xff]  ;;  %v194_v33 = vld [vmem:[%s2076_s19 + $0x178] sm:$0xff] }
  0x2f   : > { %1943 = vmatmul.mubr.msk.f32.gmra.mrb[14].mxu1 %vm277_vm0, %v226_v34  ;;  %1849 = vmatprep.mubr.msk.f32.mxu0 %vm277_vm0, %v163_v35  ;;  %v256_v30 = vld [vmem:[%s2076_s19 + $0x368] sm:$0xff]  ;;  %v257_v32 = vld [vmem:[%s2076_s19 + $0x370] sm:$0xff]  ;;  %v258_v34 = vld [vmem:[%s2076_s19 + $0x378] sm:$0xff] }
  0x30   : > { %1945 = vmatprep.mubr.msk.f32.mxu1 %vm277_vm0, %v227_v36  ;;  %v195_v35 = vld [vmem:[%s2076_s19 + $0x180] sm:$0xff] }
  0x31   : > { %v259_v36 = vld [vmem:[%s2076_s19 + $0x380] sm:$0xff] }
  0x32   : > { %1850 = vmatmul.mubr.msk.f32.gmra.mrb[16].mxu0 %vm277_vm0, %v164_v37  ;;  %v196_v37 = vld [vmem:[%s2076_s19 + $0x188] sm:$0xff] }
  0x33   : > { %1946 = vmatmul.mubr.msk.f32.gmra.mrb[16].mxu1 %vm277_vm0, %v228_v38  ;;  %1852 = vmatprep.mubr.msk.f32.mxu0 %vm277_vm0, %v165_v39  ;;  %v260_v38 = vld [vmem:[%s2076_s19 + $0x388] sm:$0xff]  ;;  %v197_v39 = vld [vmem:[%s2076_s19 + $0x190] sm:$0xff] }
  0x34   : > { %1948 = vmatprep.mubr.msk.f32.mxu1 %vm277_vm0, %v229_v40  ;;  %v261_v40 = vld [vmem:[%s2076_s19 + $0x390] sm:$0xff] }
  0x36   : > { %1853 = vmatmul.mubr.msk.f32.gmra.mrb[18].mxu0 %vm277_vm0, %v166_v41  ;;  %v198_v41 = vld [vmem:[%s2076_s19 + $0x198] sm:$0xff] }
  0x37   : > { %1949 = vmatmul.mubr.msk.f32.gmra.mrb[18].mxu1 %vm277_vm0, %v230_v42  ;;  %1855 = vmatprep.mubr.msk.f32.mxu0 %vm277_vm0, %v167_v43  ;;  %v262_v42 = vld [vmem:[%s2076_s19 + $0x398] sm:$0xff]  ;;  %v199_v43 = vld [vmem:[%s2076_s19 + $0x1a0] sm:$0xff] }
  0x38   : > { %1951 = vmatprep.mubr.msk.f32.mxu1 %vm277_vm0, %v231_v44  ;;  %v263_v44 = vld [vmem:[%s2076_s19 + $0x3a0] sm:$0xff] }
  0x3a   : > { %1856 = vmatmul.mubr.msk.f32.gmra.mrb[20].mxu0 %vm277_vm0, %v168_v45  ;;  %v200_v45 = vld [vmem:[%s2076_s19 + $0x1a8] sm:$0xff] }
  0x3b   : > { %1952 = vmatmul.mubr.msk.f32.gmra.mrb[20].mxu1 %vm277_vm0, %v232_v46  ;;  %1858 = vmatprep.mubr.msk.f32.mxu0 %vm277_vm0, %v169_v47  ;;  %v264_v46 = vld [vmem:[%s2076_s19 + $0x3a8] sm:$0xff]  ;;  %v201_v47 = vld [vmem:[%s2076_s19 + $0x1b0] sm:$0xff] }
  0x3c   : > { %1954 = vmatprep.mubr.msk.f32.mxu1 %vm277_vm0, %v233_v48  ;;  %v265_v48 = vld [vmem:[%s2076_s19 + $0x3b0] sm:$0xff] }
  0x3e   : > { %1859 = vmatmul.mubr.msk.f32.gmra.mrb[22].mxu0 %vm277_vm0, %v170_v49  ;;  %v202_v49 = vld [vmem:[%s2076_s19 + $0x1b8] sm:$0xff] }
  0x3f   : > { %1955 = vmatmul.mubr.msk.f32.gmra.mrb[22].mxu1 %vm277_vm0, %v234_v50  ;;  %1861 = vmatprep.mubr.msk.f32.mxu0 %vm277_vm0, %v171_v51  ;;  %v266_v50 = vld [vmem:[%s2076_s19 + $0x3b8] sm:$0xff]  ;;  %v203_v51 = vld [vmem:[%s2076_s19 + $0x1c0] sm:$0xff] }
  0x40   : > { %1957 = vmatprep.mubr.msk.f32.mxu1 %vm277_vm0, %v235_v52  ;;  %v267_v52 = vld [vmem:[%s2076_s19 + $0x3c0] sm:$0xff] }
  0x42   : > { %1862 = vmatmul.mubr.msk.f32.gmra.mrb[24].mxu0 %vm277_vm0, %v172_v53  ;;  %v204_v53 = vld [vmem:[%s2076_s19 + $0x1c8] sm:$0xff] }
  0x43   : > { %1958 = vmatmul.mubr.msk.f32.gmra.mrb[24].mxu1 %vm277_vm0, %v236_v54  ;;  %1864 = vmatprep.mubr.msk.f32.mxu0 %vm277_vm0, %v173_v55  ;;  %v268_v54 = vld [vmem:[%s2076_s19 + $0x3c8] sm:$0xff]  ;;  %v205_v55 = vld [vmem:[%s2076_s19 + $0x1d0] sm:$0xff] }
  0x44   : > { %1960 = vmatprep.mubr.msk.f32.mxu1 %vm277_vm0, %v237_v56  ;;  %v269_v56 = vld [vmem:[%s2076_s19 + $0x3d0] sm:$0xff] }
  0x46   : > { %1865 = vmatmul.mubr.msk.f32.gmra.mrb[26].mxu0 %vm277_vm0, %v174_v57  ;;  %v206_v57 = vld [vmem:[%s2076_s19 + $0x1d8] sm:$0xff] }
  0x47   : > { %1961 = vmatmul.mubr.msk.f32.gmra.mrb[26].mxu1 %vm277_vm0, %v238_v58  ;;  %1867 = vmatprep.mubr.msk.f32.mxu0 %vm277_vm0, %v175_v59  ;;  %v270_v58 = vld [vmem:[%s2076_s19 + $0x3d8] sm:$0xff]  ;;  %v207_v59 = vld [vmem:[%s2076_s19 + $0x1e0] sm:$0xff] }
  0x48   : > { %1963 = vmatprep.mubr.msk.f32.mxu1 %vm277_vm0, %v239_v60  ;;  %v271_v60 = vld [vmem:[%s2076_s19 + $0x3e0] sm:$0xff] }
  0x4a   : > { %1868 = vmatmul.mubr.msk.f32.gmra.mrb[28].mxu0 %vm277_vm0, %v176_v61  ;;  %v208_v61 = vld [vmem:[%s2076_s19 + $0x1e8] sm:$0xff] }
  0x4b   : > { %1964 = vmatmul.mubr.msk.f32.gmra.mrb[28].mxu1 %vm277_vm0, %v240_v62  ;;  %1870 = vmatprep.mubr.msk.f32.mxu0 %vm277_vm0, %v177_v63  ;;  %v272_v62 = vld [vmem:[%s2076_s19 + $0x3e8] sm:$0xff]  ;;  %v209_v63 = vld [vmem:[%s2076_s19 + $0x1f0] sm:$0xff] }
  0x4c   : > { %1966 = vmatprep.mubr.msk.f32.mxu1 %vm277_vm0, %v241_v0  ;;  %v273_v0 = vld [vmem:[%s2076_s19 + $0x3f0] sm:$0xff] }
  0x4e   : > { %1871 = vmatmul.mubr.msk.f32.gmra.mrb[30].mxu0 %vm277_vm0, %v178_v1  ;;  %v210_v1 = vld [vmem:[%s2076_s19 + $0x1f8] sm:$0xff] }
  0x4f   : > { %1967 = vmatmul.mubr.msk.f32.gmra.mrb[30].mxu1 %vm277_vm0, %v242_v2  ;;  %1873 = vmatprep.mubr.msk.f32.mxu0 %vm277_vm0, %v179_v3  ;;  %v274_v2 = vld [vmem:[%s2076_s19 + $0x3f8] sm:$0xff] }
  0x50   : > { %1969 = vmatprep.mubr.msk.f32.mxu1 %vm277_vm0, %v243_v4 }
  0x52   : > { %1874 = vmatmul.mubr.msk.f32.gmra.mrb[32].mxu0 %vm277_vm0, %v180_v5 }
  0x53   : > { %1970 = vmatmul.mubr.msk.f32.gmra.mrb[32].mxu1 %vm277_vm0, %v244_v6  ;;  %1876 = vmatprep.mubr.msk.f32.mxu0 %vm277_vm0, %v181_v7 }
  0x54   : > { %1972 = vmatprep.mubr.msk.f32.mxu1 %vm277_vm0, %v245_v8 }
  0x56   : > { %1877 = vmatmul.mubr.msk.f32.gmra.mrb[34].mxu0 %vm277_vm0, %v182_v9 }
  0x57   : > { %1973 = vmatmul.mubr.msk.f32.gmra.mrb[34].mxu1 %vm277_vm0, %v246_v10  ;;  %1879 = vmatprep.mubr.msk.f32.mxu0 %vm277_vm0, %v183_v11 }
  0x58   : > { %1975 = vmatprep.mubr.msk.f32.mxu1 %vm277_vm0, %v247_v12 }
  0x5a   : > { %1880 = vmatmul.mubr.msk.f32.gmra.mrb[36].mxu0 %vm277_vm0, %v184_v13 }
  0x5b   : > { %1976 = vmatmul.mubr.msk.f32.gmra.mrb[36].mxu1 %vm277_vm0, %v248_v14  ;;  %1882 = vmatprep.mubr.msk.f32.mxu0 %vm277_vm0, %v185_v15 }
  0x5c   : > { %1978 = vmatprep.mubr.msk.f32.mxu1 %vm277_vm0, %v249_v16 }
  0x5e   : > { %1883 = vmatmul.mubr.msk.f32.gmra.mrb[38].mxu0 %vm277_vm0, %v186_v17 }
  0x5f   : > { %1979 = vmatmul.mubr.msk.f32.gmra.mrb[38].mxu1 %vm277_vm0, %v250_v18  ;;  %1885 = vmatprep.mubr.msk.f32.mxu0 %vm277_vm0, %v187_v19 }
  0x60   : > { %1981 = vmatprep.mubr.msk.f32.mxu1 %vm277_vm0, %v251_v20 }
  0x62   : > { %1886 = vmatmul.mubr.msk.f32.gmra.mrb[40].mxu0 %vm277_vm0, %v188_v21 }
  0x63   : > { %1982 = vmatmul.mubr.msk.f32.gmra.mrb[40].mxu1 %vm277_vm0, %v252_v22  ;;  %1888 = vmatprep.mubr.msk.f32.mxu0 %vm277_vm0, %v189_v23 }
  0x64   : > { %1984 = vmatprep.mubr.msk.f32.mxu1 %vm277_vm0, %v253_v24 }
  0x66   : > { %1889 = vmatmul.mubr.msk.f32.gmra.mrb[42].mxu0 %vm277_vm0, %v190_v25 }
  0x67   : > { %1985 = vmatmul.mubr.msk.f32.gmra.mrb[42].mxu1 %vm277_vm0, %v254_v26  ;;  %1891 = vmatprep.mubr.msk.f32.mxu0 %vm277_vm0, %v191_v27 }
  0x68   : > { %1987 = vmatprep.mubr.msk.f32.mxu1 %vm277_vm0, %v255_v28 }
  0x6a   : > { %1892 = vmatmul.mubr.msk.f32.gmra.mrb[44].mxu0 %vm277_vm0, %v192_v29 }
  0x6b   : > { %1988 = vmatmul.mubr.msk.f32.gmra.mrb[44].mxu1 %vm277_vm0, %v256_v30  ;;  %1894 = vmatprep.mubr.msk.f32.mxu0 %vm277_vm0, %v193_v31 }
  0x6c   : > { %1990 = vmatprep.mubr.msk.f32.mxu1 %vm277_vm0, %v257_v32 }
  0x6e   : > { %1895 = vmatmul.mubr.msk.f32.gmra.mrb[46].mxu0 %vm277_vm0, %v194_v33 }
  0x6f   : > { %1991 = vmatmul.mubr.msk.f32.gmra.mrb[46].mxu1 %vm277_vm0, %v258_v34  ;;  %1897 = vmatprep.mubr.msk.f32.mxu0 %vm277_vm0, %v195_v35 }
  0x70   : > { %1993 = vmatprep.mubr.msk.f32.mxu1 %vm277_vm0, %v259_v36 }
  0x72   : > { %1898 = vmatmul.mubr.msk.f32.gmra.mrb[48].mxu0 %vm277_vm0, %v196_v37 }
  0x73   : > { %1994 = vmatmul.mubr.msk.f32.gmra.mrb[48].mxu1 %vm277_vm0, %v260_v38  ;;  %1900 = vmatprep.mubr.msk.f32.mxu0 %vm277_vm0, %v197_v39 }
  0x74   : > { %1996 = vmatprep.mubr.msk.f32.mxu1 %vm277_vm0, %v261_v40 }
  0x76   : > { %1901 = vmatmul.mubr.msk.f32.gmra.mrb[50].mxu0 %vm277_vm0, %v198_v41 }
  0x77   : > { %1997 = vmatmul.mubr.msk.f32.gmra.mrb[50].mxu1 %vm277_vm0, %v262_v42  ;;  %1903 = vmatprep.mubr.msk.f32.mxu0 %vm277_vm0, %v199_v43 }
  0x78   : > { %1999 = vmatprep.mubr.msk.f32.mxu1 %vm277_vm0, %v263_v44 }
  0x7a   : > { %1904 = vmatmul.mubr.msk.f32.gmra.mrb[52].mxu0 %vm277_vm0, %v200_v45 }
  0x7b   : > { %2000 = vmatmul.mubr.msk.f32.gmra.mrb[52].mxu1 %vm277_vm0, %v264_v46  ;;  %1906 = vmatprep.mubr.msk.f32.mxu0 %vm277_vm0, %v201_v47 }
  0x7c   : > { %2002 = vmatprep.mubr.msk.f32.mxu1 %vm277_vm0, %v265_v48 }
  0x7e   : > { %1907 = vmatmul.mubr.msk.f32.gmra.mrb[54].mxu0 %vm277_vm0, %v202_v49 }
  0x7f   : > { %2003 = vmatmul.mubr.msk.f32.gmra.mrb[54].mxu1 %vm277_vm0, %v266_v50  ;;  %1909 = vmatprep.mubr.msk.f32.mxu0 %vm277_vm0, %v203_v51 }
  0x80   : > { %2005 = vmatprep.mubr.msk.f32.mxu1 %vm277_vm0, %v267_v52 }
  0x82   : > { %1910 = vmatmul.mubr.msk.f32.gmra.mrb[56].mxu0 %vm277_vm0, %v204_v53 }
  0x83   : > { %2006 = vmatmul.mubr.msk.f32.gmra.mrb[56].mxu1 %vm277_vm0, %v268_v54  ;;  %1912 = vmatprep.mubr.msk.f32.mxu0 %vm277_vm0, %v205_v55 }
  0x84   : > { %2008 = vmatprep.mubr.msk.f32.mxu1 %vm277_vm0, %v269_v56 }
  0x86   : > { %1913 = vmatmul.mubr.msk.f32.gmra.mrb[58].mxu0 %vm277_vm0, %v206_v57 }
  0x87   : > { %2009 = vmatmul.mubr.msk.f32.gmra.mrb[58].mxu1 %vm277_vm0, %v270_v58  ;;  %1915 = vmatprep.mubr.msk.f32.mxu0 %vm277_vm0, %v207_v59 }
  0x88   : > { %2011 = vmatprep.mubr.msk.f32.mxu1 %vm277_vm0, %v271_v60 }
  0x8a   : > { %1916 = vmatmul.mubr.msk.f32.gmra.mrb[60].mxu0 %vm277_vm0, %v208_v61 }
  0x8b   : > { %2012 = vmatmul.mubr.msk.f32.gmra.mrb[60].mxu1 %vm277_vm0, %v272_v62  ;;  %1918 = vmatprep.mubr.msk.f32.mxu0 %vm277_vm0, %v209_v63 }
  0x8c   : > { %2014 = vmatprep.mubr.msk.f32.mxu1 %vm277_vm0, %v273_v0 }
  0x8e   : > { %1919 = vmatmul.mubr.msk.f32.gmra.mrb[62].mxu0 %vm277_vm0, %v210_v1 }
  0x8f   : > { %2015 = vmatmul.mubr.msk.f32.gmra.mrb[62].mxu1 %vm277_vm0, %v274_v2 }
  0xe5   : > { %v1827_v3 = vpop.f32.mrb[0].mxu0 }
  0xe6   : > { %v1923_v4 = vpop.f32.mrb[0].mxu1  ;;  %1369 = vst.msk [vmem:[%s2339_s22 + $0x8] sm:$0xff] %vm1367_vm1, %v1827_v3  ;;  %v728_v5 = vpop.f32.mrb[1].mxu0 }
  0xe7   : > { %1433 = vst.msk [vmem:[%s2339_s22 + $0x208] sm:$0xff] %vm1367_vm1, %v1923_v4  ;;  %v1048_v6 = vpop.f32.mrb[1].mxu1  ;;  %1368 = vst.msk [vmem:[%s2339_s22] sm:$0xff] %vm1367_vm1, %v728_v5 }
  0xe8   : > { %1432 = vst.msk [vmem:[%s2339_s22 + $0x200] sm:$0xff] %vm1367_vm1, %v1048_v6 }
  0xe9   : > { %v1830_v7 = vpop.f32.mrb[2].mxu0 }
  0xea   : > { %v1926_v8 = vpop.f32.mrb[2].mxu1  ;;  %1371 = vst.msk [vmem:[%s2339_s22 + $0x18] sm:$0xff] %vm1367_vm1, %v1830_v7  ;;  %v738_v9 = vpop.f32.mrb[3].mxu0 }
  0xeb   : > { %1435 = vst.msk [vmem:[%s2339_s22 + $0x218] sm:$0xff] %vm1367_vm1, %v1926_v8  ;;  %v1058_v10 = vpop.f32.mrb[3].mxu1  ;;  %1370 = vst.msk [vmem:[%s2339_s22 + $0x10] sm:$0xff] %vm1367_vm1, %v738_v9 }
  0xec   : > { %1434 = vst.msk [vmem:[%s2339_s22 + $0x210] sm:$0xff] %vm1367_vm1, %v1058_v10 }
  0xed   : > { %v1833_v11 = vpop.f32.mrb[4].mxu0 }
  0xee   : > { %v1929_v12 = vpop.f32.mrb[4].mxu1  ;;  %1373 = vst.msk [vmem:[%s2339_s22 + $0x28] sm:$0xff] %vm1367_vm1, %v1833_v11  ;;  %v748_v13 = vpop.f32.mrb[5].mxu0 }
  0xef   : > { %1437 = vst.msk [vmem:[%s2339_s22 + $0x228] sm:$0xff] %vm1367_vm1, %v1929_v12  ;;  %v1068_v14 = vpop.f32.mrb[5].mxu1  ;;  %1372 = vst.msk [vmem:[%s2339_s22 + $0x20] sm:$0xff] %vm1367_vm1, %v748_v13 }
  0xf0   : > { %1436 = vst.msk [vmem:[%s2339_s22 + $0x220] sm:$0xff] %vm1367_vm1, %v1068_v14 }
  0xf1   : > { %v1836_v15 = vpop.f32.mrb[6].mxu0 }
  0xf2   : > { %v1932_v16 = vpop.f32.mrb[6].mxu1  ;;  %1375 = vst.msk [vmem:[%s2339_s22 + $0x38] sm:$0xff] %vm1367_vm1, %v1836_v15  ;;  %v758_v17 = vpop.f32.mrb[7].mxu0 }
  0xf3   : > { %1439 = vst.msk [vmem:[%s2339_s22 + $0x238] sm:$0xff] %vm1367_vm1, %v1932_v16  ;;  %v1078_v18 = vpop.f32.mrb[7].mxu1  ;;  %1374 = vst.msk [vmem:[%s2339_s22 + $0x30] sm:$0xff] %vm1367_vm1, %v758_v17 }
  0xf4   : > { %1438 = vst.msk [vmem:[%s2339_s22 + $0x230] sm:$0xff] %vm1367_vm1, %v1078_v18 }
  0xf5   : > { %v1839_v19 = vpop.f32.mrb[8].mxu0 }
  0xf6   : > { %v1935_v20 = vpop.f32.mrb[8].mxu1  ;;  %1377 = vst.msk [vmem:[%s2339_s22 + $0x48] sm:$0xff] %vm1367_vm1, %v1839_v19  ;;  %v768_v21 = vpop.f32.mrb[9].mxu0 }
  0xf7   : > { %1441 = vst.msk [vmem:[%s2339_s22 + $0x248] sm:$0xff] %vm1367_vm1, %v1935_v20  ;;  %v1088_v22 = vpop.f32.mrb[9].mxu1  ;;  %1376 = vst.msk [vmem:[%s2339_s22 + $0x40] sm:$0xff] %vm1367_vm1, %v768_v21 }
  0xf8   : > { %1440 = vst.msk [vmem:[%s2339_s22 + $0x240] sm:$0xff] %vm1367_vm1, %v1088_v22 }
  0xf9   : > { %v1842_v23 = vpop.f32.mrb[10].mxu0 }
  0xfa   : > { %v1938_v24 = vpop.f32.mrb[10].mxu1  ;;  %1379 = vst.msk [vmem:[%s2339_s22 + $0x58] sm:$0xff] %vm1367_vm1, %v1842_v23  ;;  %v778_v25 = vpop.f32.mrb[11].mxu0 }
  0xfb   : > { %1443 = vst.msk [vmem:[%s2339_s22 + $0x258] sm:$0xff] %vm1367_vm1, %v1938_v24  ;;  %v1098_v26 = vpop.f32.mrb[11].mxu1  ;;  %1378 = vst.msk [vmem:[%s2339_s22 + $0x50] sm:$0xff] %vm1367_vm1, %v778_v25 }
  0xfc   : > { %1442 = vst.msk [vmem:[%s2339_s22 + $0x250] sm:$0xff] %vm1367_vm1, %v1098_v26 }
  0xfd   : > { %v1845_v27 = vpop.f32.mrb[12].mxu0 }
  0xfe   : > { %v1941_v28 = vpop.f32.mrb[12].mxu1  ;;  %1381 = vst.msk [vmem:[%s2339_s22 + $0x68] sm:$0xff] %vm1367_vm1, %v1845_v27  ;;  %v788_v29 = vpop.f32.mrb[13].mxu0 }
  0xff   : > { %1445 = vst.msk [vmem:[%s2339_s22 + $0x268] sm:$0xff] %vm1367_vm1, %v1941_v28  ;;  %v1108_v30 = vpop.f32.mrb[13].mxu1  ;;  %1380 = vst.msk [vmem:[%s2339_s22 + $0x60] sm:$0xff] %vm1367_vm1, %v788_v29 }
 0x100   : > { %1444 = vst.msk [vmem:[%s2339_s22 + $0x260] sm:$0xff] %vm1367_vm1, %v1108_v30 }
 0x101   : > { %v1848_v31 = vpop.f32.mrb[14].mxu0 }
 0x102   : > { %v1944_v32 = vpop.f32.mrb[14].mxu1  ;;  %1383 = vst.msk [vmem:[%s2339_s22 + $0x78] sm:$0xff] %vm1367_vm1, %v1848_v31  ;;  %v798_v33 = vpop.f32.mrb[15].mxu0 }
 0x103   : > { %1447 = vst.msk [vmem:[%s2339_s22 + $0x278] sm:$0xff] %vm1367_vm1, %v1944_v32  ;;  %v1118_v34 = vpop.f32.mrb[15].mxu1  ;;  %1382 = vst.msk [vmem:[%s2339_s22 + $0x70] sm:$0xff] %vm1367_vm1, %v798_v33 }
 0x104   : > { %1446 = vst.msk [vmem:[%s2339_s22 + $0x270] sm:$0xff] %vm1367_vm1, %v1118_v34 }
 0x105   : > { %v1851_v35 = vpop.f32.mrb[16].mxu0 }
 0x106   : > { %v1947_v36 = vpop.f32.mrb[16].mxu1  ;;  %1385 = vst.msk [vmem:[%s2339_s22 + $0x88] sm:$0xff] %vm1367_vm1, %v1851_v35  ;;  %v808_v37 = vpop.f32.mrb[17].mxu0 }
 0x107   : > { %1449 = vst.msk [vmem:[%s2339_s22 + $0x288] sm:$0xff] %vm1367_vm1, %v1947_v36  ;;  %v1128_v38 = vpop.f32.mrb[17].mxu1  ;;  %1384 = vst.msk [vmem:[%s2339_s22 + $0x80] sm:$0xff] %vm1367_vm1, %v808_v37 }
 0x108   : > { %1448 = vst.msk [vmem:[%s2339_s22 + $0x280] sm:$0xff] %vm1367_vm1, %v1128_v38 }
 0x109   : > { %v1854_v39 = vpop.f32.mrb[18].mxu0 }
 0x10a   : > { %v1950_v40 = vpop.f32.mrb[18].mxu1  ;;  %1387 = vst.msk [vmem:[%s2339_s22 + $0x98] sm:$0xff] %vm1367_vm1, %v1854_v39  ;;  %v818_v41 = vpop.f32.mrb[19].mxu0 }
 0x10b   : > { %1451 = vst.msk [vmem:[%s2339_s22 + $0x298] sm:$0xff] %vm1367_vm1, %v1950_v40  ;;  %v1138_v42 = vpop.f32.mrb[19].mxu1  ;;  %1386 = vst.msk [vmem:[%s2339_s22 + $0x90] sm:$0xff] %vm1367_vm1, %v818_v41 }
 0x10c   : > { %1450 = vst.msk [vmem:[%s2339_s22 + $0x290] sm:$0xff] %vm1367_vm1, %v1138_v42 }
 0x10d   : > { %v1857_v43 = vpop.f32.mrb[20].mxu0 }
 0x10e   : > { %v1953_v44 = vpop.f32.mrb[20].mxu1  ;;  %1389 = vst.msk [vmem:[%s2339_s22 + $0xa8] sm:$0xff] %vm1367_vm1, %v1857_v43  ;;  %v828_v45 = vpop.f32.mrb[21].mxu0 }
 0x10f   : > { %1453 = vst.msk [vmem:[%s2339_s22 + $0x2a8] sm:$0xff] %vm1367_vm1, %v1953_v44  ;;  %v1148_v46 = vpop.f32.mrb[21].mxu1  ;;  %1388 = vst.msk [vmem:[%s2339_s22 + $0xa0] sm:$0xff] %vm1367_vm1, %v828_v45 }
 0x110   : > { %1452 = vst.msk [vmem:[%s2339_s22 + $0x2a0] sm:$0xff] %vm1367_vm1, %v1148_v46 }
 0x111   : > { %v1860_v47 = vpop.f32.mrb[22].mxu0 }
 0x112   : > { %v1956_v48 = vpop.f32.mrb[22].mxu1  ;;  %1391 = vst.msk [vmem:[%s2339_s22 + $0xb8] sm:$0xff] %vm1367_vm1, %v1860_v47  ;;  %v838_v49 = vpop.f32.mrb[23].mxu0 }
 0x113   : > { %1455 = vst.msk [vmem:[%s2339_s22 + $0x2b8] sm:$0xff] %vm1367_vm1, %v1956_v48  ;;  %v1158_v50 = vpop.f32.mrb[23].mxu1  ;;  %1390 = vst.msk [vmem:[%s2339_s22 + $0xb0] sm:$0xff] %vm1367_vm1, %v838_v49 }
 0x114   : > { %1454 = vst.msk [vmem:[%s2339_s22 + $0x2b0] sm:$0xff] %vm1367_vm1, %v1158_v50 }
 0x115   : > { %v1863_v51 = vpop.f32.mrb[24].mxu0 }
 0x116   : > { %v1959_v52 = vpop.f32.mrb[24].mxu1  ;;  %1393 = vst.msk [vmem:[%s2339_s22 + $0xc8] sm:$0xff] %vm1367_vm1, %v1863_v51  ;;  %v848_v53 = vpop.f32.mrb[25].mxu0 }
 0x117   : > { %1457 = vst.msk [vmem:[%s2339_s22 + $0x2c8] sm:$0xff] %vm1367_vm1, %v1959_v52  ;;  %v1168_v54 = vpop.f32.mrb[25].mxu1  ;;  %1392 = vst.msk [vmem:[%s2339_s22 + $0xc0] sm:$0xff] %vm1367_vm1, %v848_v53 }
 0x118   : > { %1456 = vst.msk [vmem:[%s2339_s22 + $0x2c0] sm:$0xff] %vm1367_vm1, %v1168_v54 }
 0x119   : > { %v1866_v55 = vpop.f32.mrb[26].mxu0 }
 0x11a   : > { %v1962_v56 = vpop.f32.mrb[26].mxu1  ;;  %1395 = vst.msk [vmem:[%s2339_s22 + $0xd8] sm:$0xff] %vm1367_vm1, %v1866_v55  ;;  %v858_v57 = vpop.f32.mrb[27].mxu0 }
 0x11b   : > { %1459 = vst.msk [vmem:[%s2339_s22 + $0x2d8] sm:$0xff] %vm1367_vm1, %v1962_v56  ;;  %v1178_v58 = vpop.f32.mrb[27].mxu1  ;;  %1394 = vst.msk [vmem:[%s2339_s22 + $0xd0] sm:$0xff] %vm1367_vm1, %v858_v57 }
 0x11c   : > { %1458 = vst.msk [vmem:[%s2339_s22 + $0x2d0] sm:$0xff] %vm1367_vm1, %v1178_v58 }
 0x11d   : > { %v1869_v59 = vpop.f32.mrb[28].mxu0 }
 0x11e   : > { %v1965_v60 = vpop.f32.mrb[28].mxu1  ;;  %1397 = vst.msk [vmem:[%s2339_s22 + $0xe8] sm:$0xff] %vm1367_vm1, %v1869_v59  ;;  %v868_v61 = vpop.f32.mrb[29].mxu0 }
 0x11f   : > { %1461 = vst.msk [vmem:[%s2339_s22 + $0x2e8] sm:$0xff] %vm1367_vm1, %v1965_v60  ;;  %v1188_v62 = vpop.f32.mrb[29].mxu1  ;;  %1396 = vst.msk [vmem:[%s2339_s22 + $0xe0] sm:$0xff] %vm1367_vm1, %v868_v61 }
 0x120   : > { %1460 = vst.msk [vmem:[%s2339_s22 + $0x2e0] sm:$0xff] %vm1367_vm1, %v1188_v62 }
 0x121   : > { %v1872_v63 = vpop.f32.mrb[30].mxu0 }
 0x122   : > { %v1968_v0 = vpop.f32.mrb[30].mxu1  ;;  %1399 = vst.msk [vmem:[%s2339_s22 + $0xf8] sm:$0xff] %vm1367_vm1, %v1872_v63  ;;  %v878_v1 = vpop.f32.mrb[31].mxu0 }
 0x123   : > { %1463 = vst.msk [vmem:[%s2339_s22 + $0x2f8] sm:$0xff] %vm1367_vm1, %v1968_v0  ;;  %v1198_v2 = vpop.f32.mrb[31].mxu1  ;;  %1398 = vst.msk [vmem:[%s2339_s22 + $0xf0] sm:$0xff] %vm1367_vm1, %v878_v1 }
 0x124   : > { %1462 = vst.msk [vmem:[%s2339_s22 + $0x2f0] sm:$0xff] %vm1367_vm1, %v1198_v2 }
 0x125   : > { %v1875_v3 = vpop.f32.mrb[32].mxu0 }
 0x126   : > { %v1971_v4 = vpop.f32.mrb[32].mxu1  ;;  %1401 = vst.msk [vmem:[%s2339_s22 + $0x108] sm:$0xff] %vm1367_vm1, %v1875_v3  ;;  %v888_v5 = vpop.f32.mrb[33].mxu0 }
 0x127   : > { %1465 = vst.msk [vmem:[%s2339_s22 + $0x308] sm:$0xff] %vm1367_vm1, %v1971_v4  ;;  %v1208_v6 = vpop.f32.mrb[33].mxu1  ;;  %1400 = vst.msk [vmem:[%s2339_s22 + $0x100] sm:$0xff] %vm1367_vm1, %v888_v5 }
 0x128   : > { %1464 = vst.msk [vmem:[%s2339_s22 + $0x300] sm:$0xff] %vm1367_vm1, %v1208_v6 }
 0x129   : > { %v1878_v7 = vpop.f32.mrb[34].mxu0 }
 0x12a   : > { %v1974_v8 = vpop.f32.mrb[34].mxu1  ;;  %1403 = vst.msk [vmem:[%s2339_s22 + $0x118] sm:$0xff] %vm1367_vm1, %v1878_v7  ;;  %v898_v9 = vpop.f32.mrb[35].mxu0 }
 0x12b   : > { %1467 = vst.msk [vmem:[%s2339_s22 + $0x318] sm:$0xff] %vm1367_vm1, %v1974_v8  ;;  %v1218_v10 = vpop.f32.mrb[35].mxu1  ;;  %1402 = vst.msk [vmem:[%s2339_s22 + $0x110] sm:$0xff] %vm1367_vm1, %v898_v9 }
 0x12c   : > { %1466 = vst.msk [vmem:[%s2339_s22 + $0x310] sm:$0xff] %vm1367_vm1, %v1218_v10 }
 0x12d   : > { %v1881_v11 = vpop.f32.mrb[36].mxu0 }
 0x12e   : > { %v1977_v12 = vpop.f32.mrb[36].mxu1  ;;  %1405 = vst.msk [vmem:[%s2339_s22 + $0x128] sm:$0xff] %vm1367_vm1, %v1881_v11  ;;  %v908_v13 = vpop.f32.mrb[37].mxu0 }
 0x12f   : > { %1469 = vst.msk [vmem:[%s2339_s22 + $0x328] sm:$0xff] %vm1367_vm1, %v1977_v12  ;;  %v1228_v14 = vpop.f32.mrb[37].mxu1  ;;  %1404 = vst.msk [vmem:[%s2339_s22 + $0x120] sm:$0xff] %vm1367_vm1, %v908_v13 }
 0x130   : > { %1468 = vst.msk [vmem:[%s2339_s22 + $0x320] sm:$0xff] %vm1367_vm1, %v1228_v14 }
 0x131   : > { %v1884_v15 = vpop.f32.mrb[38].mxu0 }
 0x132   : > { %v1980_v16 = vpop.f32.mrb[38].mxu1  ;;  %1407 = vst.msk [vmem:[%s2339_s22 + $0x138] sm:$0xff] %vm1367_vm1, %v1884_v15  ;;  %v918_v17 = vpop.f32.mrb[39].mxu0 }
 0x133   : > { %1471 = vst.msk [vmem:[%s2339_s22 + $0x338] sm:$0xff] %vm1367_vm1, %v1980_v16  ;;  %v1238_v18 = vpop.f32.mrb[39].mxu1  ;;  %1406 = vst.msk [vmem:[%s2339_s22 + $0x130] sm:$0xff] %vm1367_vm1, %v918_v17 }
 0x134   : > { %1470 = vst.msk [vmem:[%s2339_s22 + $0x330] sm:$0xff] %vm1367_vm1, %v1238_v18 }
 0x135   : > { %v1887_v19 = vpop.f32.mrb[40].mxu0 }
 0x136   : > { %v1983_v20 = vpop.f32.mrb[40].mxu1  ;;  %1409 = vst.msk [vmem:[%s2339_s22 + $0x148] sm:$0xff] %vm1367_vm1, %v1887_v19  ;;  %v928_v21 = vpop.f32.mrb[41].mxu0 }
 0x137   : > { %1473 = vst.msk [vmem:[%s2339_s22 + $0x348] sm:$0xff] %vm1367_vm1, %v1983_v20  ;;  %v1248_v22 = vpop.f32.mrb[41].mxu1  ;;  %1408 = vst.msk [vmem:[%s2339_s22 + $0x140] sm:$0xff] %vm1367_vm1, %v928_v21 }
 0x138   : > { %1472 = vst.msk [vmem:[%s2339_s22 + $0x340] sm:$0xff] %vm1367_vm1, %v1248_v22 }
 0x139   : > { %v1890_v23 = vpop.f32.mrb[42].mxu0 }
 0x13a   : > { %v1986_v24 = vpop.f32.mrb[42].mxu1  ;;  %1411 = vst.msk [vmem:[%s2339_s22 + $0x158] sm:$0xff] %vm1367_vm1, %v1890_v23  ;;  %v938_v25 = vpop.f32.mrb[43].mxu0 }
 0x13b   : > { %1475 = vst.msk [vmem:[%s2339_s22 + $0x358] sm:$0xff] %vm1367_vm1, %v1986_v24  ;;  %v1258_v26 = vpop.f32.mrb[43].mxu1  ;;  %1410 = vst.msk [vmem:[%s2339_s22 + $0x150] sm:$0xff] %vm1367_vm1, %v938_v25 }
 0x13c   : > { %1474 = vst.msk [vmem:[%s2339_s22 + $0x350] sm:$0xff] %vm1367_vm1, %v1258_v26 }
 0x13d   : > { %v1893_v27 = vpop.f32.mrb[44].mxu0 }
 0x13e   : > { %v1989_v28 = vpop.f32.mrb[44].mxu1  ;;  %1413 = vst.msk [vmem:[%s2339_s22 + $0x168] sm:$0xff] %vm1367_vm1, %v1893_v27  ;;  %v948_v29 = vpop.f32.mrb[45].mxu0 }
 0x13f   : > { %1477 = vst.msk [vmem:[%s2339_s22 + $0x368] sm:$0xff] %vm1367_vm1, %v1989_v28  ;;  %v1268_v30 = vpop.f32.mrb[45].mxu1  ;;  %1412 = vst.msk [vmem:[%s2339_s22 + $0x160] sm:$0xff] %vm1367_vm1, %v948_v29 }
 0x140   : > { %1476 = vst.msk [vmem:[%s2339_s22 + $0x360] sm:$0xff] %vm1367_vm1, %v1268_v30 }
 0x141   : > { %v1896_v31 = vpop.f32.mrb[46].mxu0 }
 0x142   : > { %v1992_v32 = vpop.f32.mrb[46].mxu1  ;;  %1415 = vst.msk [vmem:[%s2339_s22 + $0x178] sm:$0xff] %vm1367_vm1, %v1896_v31  ;;  %v958_v33 = vpop.f32.mrb[47].mxu0 }
 0x143   : > { %1479 = vst.msk [vmem:[%s2339_s22 + $0x378] sm:$0xff] %vm1367_vm1, %v1992_v32  ;;  %v1278_v34 = vpop.f32.mrb[47].mxu1  ;;  %1414 = vst.msk [vmem:[%s2339_s22 + $0x170] sm:$0xff] %vm1367_vm1, %v958_v33 }
 0x144   : > { %1478 = vst.msk [vmem:[%s2339_s22 + $0x370] sm:$0xff] %vm1367_vm1, %v1278_v34 }
 0x145   : > { %v1899_v35 = vpop.f32.mrb[48].mxu0 }
 0x146   : > { %v1995_v36 = vpop.f32.mrb[48].mxu1  ;;  %1417 = vst.msk [vmem:[%s2339_s22 + $0x188] sm:$0xff] %vm1367_vm1, %v1899_v35  ;;  %v968_v37 = vpop.f32.mrb[49].mxu0 }
 0x147   : > { %1481 = vst.msk [vmem:[%s2339_s22 + $0x388] sm:$0xff] %vm1367_vm1, %v1995_v36  ;;  %v1288_v38 = vpop.f32.mrb[49].mxu1  ;;  %1416 = vst.msk [vmem:[%s2339_s22 + $0x180] sm:$0xff] %vm1367_vm1, %v968_v37 }
 0x148   : > { %1480 = vst.msk [vmem:[%s2339_s22 + $0x380] sm:$0xff] %vm1367_vm1, %v1288_v38 }
 0x149   : > { %v1902_v39 = vpop.f32.mrb[50].mxu0 }
 0x14a   : > { %v1998_v40 = vpop.f32.mrb[50].mxu1  ;;  %1419 = vst.msk [vmem:[%s2339_s22 + $0x198] sm:$0xff] %vm1367_vm1, %v1902_v39  ;;  %v978_v41 = vpop.f32.mrb[51].mxu0 }
 0x14b   : > { %1483 = vst.msk [vmem:[%s2339_s22 + $0x398] sm:$0xff] %vm1367_vm1, %v1998_v40  ;;  %v1298_v42 = vpop.f32.mrb[51].mxu1  ;;  %1418 = vst.msk [vmem:[%s2339_s22 + $0x190] sm:$0xff] %vm1367_vm1, %v978_v41 }
 0x14c   : > { %1482 = vst.msk [vmem:[%s2339_s22 + $0x390] sm:$0xff] %vm1367_vm1, %v1298_v42 }
 0x14d   : > { %v1905_v43 = vpop.f32.mrb[52].mxu0 }
 0x14e   : > { %v2001_v44 = vpop.f32.mrb[52].mxu1  ;;  %1421 = vst.msk [vmem:[%s2339_s22 + $0x1a8] sm:$0xff] %vm1367_vm1, %v1905_v43  ;;  %v988_v45 = vpop.f32.mrb[53].mxu0 }
 0x14f   : > { %1485 = vst.msk [vmem:[%s2339_s22 + $0x3a8] sm:$0xff] %vm1367_vm1, %v2001_v44  ;;  %v1308_v46 = vpop.f32.mrb[53].mxu1  ;;  %1420 = vst.msk [vmem:[%s2339_s22 + $0x1a0] sm:$0xff] %vm1367_vm1, %v988_v45 }
 0x150   : > { %1484 = vst.msk [vmem:[%s2339_s22 + $0x3a0] sm:$0xff] %vm1367_vm1, %v1308_v46 }
 0x151   : > { %v1908_v47 = vpop.f32.mrb[54].mxu0 }
 0x152   : > { %v2004_v48 = vpop.f32.mrb[54].mxu1  ;;  %1423 = vst.msk [vmem:[%s2339_s22 + $0x1b8] sm:$0xff] %vm1367_vm1, %v1908_v47  ;;  %v998_v49 = vpop.f32.mrb[55].mxu0 }
 0x153   : > { %1487 = vst.msk [vmem:[%s2339_s22 + $0x3b8] sm:$0xff] %vm1367_vm1, %v2004_v48  ;;  %v1318_v50 = vpop.f32.mrb[55].mxu1  ;;  %1422 = vst.msk [vmem:[%s2339_s22 + $0x1b0] sm:$0xff] %vm1367_vm1, %v998_v49 }
 0x154   : > { %1486 = vst.msk [vmem:[%s2339_s22 + $0x3b0] sm:$0xff] %vm1367_vm1, %v1318_v50 }
 0x155   : > { %v1911_v51 = vpop.f32.mrb[56].mxu0 }
 0x156   : > { %v2007_v52 = vpop.f32.mrb[56].mxu1  ;;  %1425 = vst.msk [vmem:[%s2339_s22 + $0x1c8] sm:$0xff] %vm1367_vm1, %v1911_v51  ;;  %v1008_v53 = vpop.f32.mrb[57].mxu0 }
 0x157   : > { %1489 = vst.msk [vmem:[%s2339_s22 + $0x3c8] sm:$0xff] %vm1367_vm1, %v2007_v52  ;;  %v1328_v54 = vpop.f32.mrb[57].mxu1  ;;  %1424 = vst.msk [vmem:[%s2339_s22 + $0x1c0] sm:$0xff] %vm1367_vm1, %v1008_v53 }
 0x158   : > { %1488 = vst.msk [vmem:[%s2339_s22 + $0x3c0] sm:$0xff] %vm1367_vm1, %v1328_v54 }
 0x159   : > { %v1914_v55 = vpop.f32.mrb[58].mxu0 }
 0x15a   : > { %v2010_v56 = vpop.f32.mrb[58].mxu1  ;;  %1427 = vst.msk [vmem:[%s2339_s22 + $0x1d8] sm:$0xff] %vm1367_vm1, %v1914_v55  ;;  %v1018_v57 = vpop.f32.mrb[59].mxu0 }
 0x15b   : > { %1491 = vst.msk [vmem:[%s2339_s22 + $0x3d8] sm:$0xff] %vm1367_vm1, %v2010_v56  ;;  %v1338_v58 = vpop.f32.mrb[59].mxu1  ;;  %1426 = vst.msk [vmem:[%s2339_s22 + $0x1d0] sm:$0xff] %vm1367_vm1, %v1018_v57 }
 0x15c   : > { %1490 = vst.msk [vmem:[%s2339_s22 + $0x3d0] sm:$0xff] %vm1367_vm1, %v1338_v58 }
 0x15d   : > { %v1917_v59 = vpop.f32.mrb[60].mxu0 }
 0x15e   : > { %v2013_v60 = vpop.f32.mrb[60].mxu1  ;;  %1429 = vst.msk [vmem:[%s2339_s22 + $0x1e8] sm:$0xff] %vm1367_vm1, %v1917_v59  ;;  %v1028_v61 = vpop.f32.mrb[61].mxu0 }
 0x15f   : > { %1493 = vst.msk [vmem:[%s2339_s22 + $0x3e8] sm:$0xff] %vm1367_vm1, %v2013_v60  ;;  %v1348_v62 = vpop.f32.mrb[61].mxu1  ;;  %1428 = vst.msk [vmem:[%s2339_s22 + $0x1e0] sm:$0xff] %vm1367_vm1, %v1028_v61 }
 0x160   : > { %1492 = vst.msk [vmem:[%s2339_s22 + $0x3e0] sm:$0xff] %vm1367_vm1, %v1348_v62 }
 0x161   : > { %v1920_v63 = vpop.f32.mrb[62].mxu0 }
 0x162   : > { %v2016_v0 = vpop.f32.mrb[62].mxu1  ;;  %1431 = vst.msk [vmem:[%s2339_s22 + $0x1f8] sm:$0xff] %vm1367_vm1, %v1920_v63  ;;  %v1038_v1 = vpop.f32.mrb[63].mxu0 }
 0x163   : > { %1495 = vst.msk [vmem:[%s2339_s22 + $0x3f8] sm:$0xff] %vm1367_vm1, %v2016_v0  ;;  %v1358_v2 = vpop.f32.mrb[63].mxu1  ;;  %1430 = vst.msk [vmem:[%s2339_s22 + $0x1f0] sm:$0xff] %vm1367_vm1, %v1038_v1 }
 0x164   : > { %1494 = vst.msk [vmem:[%s2339_s22 + $0x3f0] sm:$0xff] %vm1367_vm1, %v1358_v2 }
 0x165 PF: > { %s12_s9 = sadd.s32 1, %s2037_s9  }
 0x166   : > { %p9_p4 = scmp.ge.s32.totalorder %s12_s9, 4  }
 0x168   :  { %11 = sbr.rel (!%p9_p4) target bundleno = 1 (0x1), region = 58 }

// kernel: solo_inference.58
= control target key start
LH: loop header
LB: loop body
LE: loop exit
PB: predicated region body
PF: predicated region fallthrough
CT: control target
= control target key end

     0   :  { %s478_s12 = smov 0   ;;  %s480_s13 = smov 0   ;;  %s525_s0 = inlined_call_operand.vmem [shape: f32[2,3,64], index: 0, kind: input, shape index: {}]   ;;  %s526_s1 = inlined_call_operand.vmem [shape: f32[16,3], index: 1, kind: input, shape index: {}]   ;;  %s527_s2 = inlined_call_operand.vmem [shape: f32[16,1], index: 2, kind: input, shape index: {}]   ;;  %s528_s3 = inlined_call_operand.vmem [shape: f32[2,16,64], index: 3, kind: output, shape index: {}]  }
   0x1   :  { %s482_s14 = smov 0  }
   0x2 LB: > { %s25_s15 = sadd.s32 1, %s451_s13  ;;  %p389_p0 = scmp.ge.s32.totalorder %s455_s14, 1  ;;  %s455_s14 = sphi %s482_s14, %s13_s14   ;;  %s451_s13 = sphi %s480_s13, %s530_s13   ;;  %s447_s12 = sphi %s478_s12, %s529_s12  }
   0x3   : > { %p27_p1 = scmp.ge.s32.totalorder %s25_s15, 2  ;;  %p155_p2 = scmp.lt.s32.totalorder %s455_s14, 3 }
   0x5   : > { %s532_s15 = smov (%p27_p1, %s25_s15), 0  ;;  %p156_p3 = pnand %p389_p0, %p155_p2 }
   0x6   : > { %p184_p4 = scmp.lt.s32.totalorder (!%p156_p3), %s447_s12, 1  ;;  %v199_v0 = vld [vmem:[%s526_s1] sm:$0xff] (!%p156_p3)  ;;  %vm214_vm0 = vcmask (!%p156_p3), 23552   ;;  %v457_v1 = vmov (!%p156_p3), 0   ;;  %v203_v3 = vld [vmem:[%s527_s2 + $0x8] sm:$0xff] (!%p156_p3)  ;;  %vm221_vm1 = vcmask (!%p156_p3), 1042432  }
   0x7   : > { %159 = sbr.rel (%p156_p3) target bundleno = 238 (0xee), region = 32  ;;  %404 = vmatprep.mubr.msk.f32.mxu0 (!%p156_p3), %vm214_vm0, %v199_v0  ;;  %432 = vset.pattern.permute.xlu0 (!%p156_p3), %v457_v1  ;;  %v202_v2 = vld [vmem:[%s527_s2] sm:$0xff] (!%p156_p3)  ;;  %v200_v5 = vld [vmem:[%s526_s1 + $0x8] sm:$0xff] (!%p156_p3)  ;;  %vm302_vm2 = vcmask (!%p156_p3), 523264  }
   0x8   : > { %206 = vperm.xlu0 (!%p156_p3), %432, %v202_v2  }
   0xc   : > { %211 = vperm.xlu0 (!%p156_p3), %432, %v203_v3  }
   0xe   : > { %s534_s12 = smov (!%p184_p4, %s447_s12), 1 }
   0xf   : > { %s390_s22 = sshll.u32 %s534_s12, 2  ;;  %s398_s28 = sshll.u32 %s534_s12, 4 }
  0x10   : > { %s190_s25 = scalar_lea.vmem %s525_s0, %s390_s22  ;;  %s198_s4 = scalar_lea.vmem %s528_s3, %s398_s28 }
  0x11   : > { %v201_v4 = vld [vmem:[%s190_s25] sm:$0x7] }
  0x12   : > { %402 = vmatprep.subr.msk.mxu0 %vm221_vm1, %v201_v4 }
  0x13   : > { %403 = vmatpush3.msk.msra.mxu0 %vm221_vm1, %v201_v4 }
  0x14   : > { %405 = vmatmul.mubr.msk.f32.vlgmr.msra.gmra.mrb[0].mxu0 %vm214_vm0, %v200_v5 }
  0x87   : > { %v207_v6 = vpop.permute.xlu0 %206 }
  0x8b   : > { %v212_v7 = vpop.permute.xlu0 %211 }
  0xe7   : > { %v406_v8 = vpop.f32.mrb[0].mxu0 }
  0xe8   : > { %v297_v9 = vadd.f32 %v406_v8, %v212_v7  ;;  %v291_v10 = vpop.f32.mrb[1].mxu0 }
  0xe9   : > { %v292_v11 = vadd.f32 %v291_v10, %v207_v6 }
  0xea   : > { %v301_v12 = vmax.f32 %v297_v9, 0.0 }
  0xeb   : > { %v300_v13 = vmax.f32 %v292_v11, 0.0 }
  0xec   : > { %304 = vst.msk [vmem:[%s198_s4 + $0x8] sm:$0xff] %vm302_vm2, %v301_v12 }
  0xed   : > { %303 = vst.msk [vmem:[%s198_s4] sm:$0xff] %vm302_vm2, %v300_v13 }
  0xee PF: > { %s13_s14 = sadd.s32 1, %s455_s14   ;;  %s529_s12 = smov %s451_s13 }
  0xef   : > { %p10_p5 = scmp.ge.s32.totalorder %s13_s14, 4   ;;  %s530_s13 = smov %s532_s15 }
  0xf1   :  { %12 = sbr.rel (!%p10_p5) target bundleno = 2 (0x2), region = 62 }

// kernel: solo_inference.64
= control target key start
LH: loop header
LB: loop body
LE: loop exit
PB: predicated region body
PF: predicated region fallthrough
CT: control target
= control target key end

     0   :  { %s650_s18 = smov 0   ;;  %s803_s0 = inlined_call_operand.vmem [shape: f32[2,144,64], index: 0, kind: input, shape index: {}]   ;;  %s804_s1 = inlined_call_operand.vmem [shape: f32[32,144], index: 1, kind: input, shape index: {}]   ;;  %s805_s2 = inlined_call_operand.vmem [shape: f32[32,1], index: 2, kind: input, shape index: {}]   ;;  %s806_s3 = inlined_call_operand.vmem [shape: f32[32,1], index: 3, kind: input, shape index: {}]   ;;  %s807_s4 = inlined_call_operand.vmem [shape: f32[32,1], index: 4, kind: input, shape index: {}]   ;;  %s808_s5 = inlined_call_operand.vmem [shape: f32[2,32,64], index: 5, kind: output, shape index: {}]  }
   0x1 LB: > { %s529_s2 = sadd.s32 4294967295, %s616_s18   ;;  %p533_p0 = scmp.ge.s32.totalorder %s616_s18, 1  ;;  %s616_s18 = sphi %s650_s18, %s15_s18  }
   0x2   : > { %p187_p1 = scmp.lt.s32.totalorder %s616_s18, 3 }
   0x4   : > { %p188_p2 = pnand %p533_p0, %p187_p1 }
   0x5   : > { %p215_p3 = scmp.lt.s32.totalorder (!%p188_p2), %s529_s2, 1  ;;  %v226_v0 = vld [vmem:[%s804_s1 + $0x8] sm:$0xff] (!%p188_p2)  ;;  %vm251_vm0 = vcmask (!%p188_p2), 130048   ;;  %v618_v2 = vmov (!%p188_p2), 0.0|0.0   ;;  %v225_v30 = vld [vmem:[%s804_s1] sm:$0xff] (!%p188_p2)  ;;  %v228_v32 = vld [vmem:[%s804_s1 + $0x18] sm:$0xff] (!%p188_p2) }
   0x6   : > { %191 = sbr.rel (%p188_p2) target bundleno = 517 (0x205), region = 40  ;;  %v230_v1 = vld [vmem:[%s804_s1 + $0x28] sm:$0xff] (!%p188_p2)  ;;  %544 = vmatprep.subr.bf16.mxu0 (!%p188_p2), %v618_v2  ;;  %571 = vmatprep.subr.bf16.mxu1 (!%p188_p2), %v618_v2  ;;  %v229_v31 = vld [vmem:[%s804_s1 + $0x20] sm:$0xff] (!%p188_p2)  ;;  %v232_v33 = vld [vmem:[%s804_s1 + $0x38] sm:$0xff] (!%p188_p2)  ;;  %v619_v36 = vmov (!%p188_p2), 0   ;;  %vm349_vm1 = vcmask (!%p188_p2), 523264  }
   0x7   : > { %537 = vmatprep.mubr.msk.f32.mxu0 (!%p188_p2), %vm251_vm0, %v226_v0  ;;  %539 = vmatprep.mubr.msk.f32.mxu1 (!%p188_p2), %vm251_vm0, %v230_v1  ;;  %v227_v34 = vld [vmem:[%s804_s1 + $0x10] sm:$0xff] (!%p188_p2)  ;;  %v411_v52 = vld [vmem:[%s806_s3 + $0x8] sm:$0xff] (!%p188_p2)  ;;  %v413_v54 = vld [vmem:[%s806_s3 + $0x18] sm:$0xff] (!%p188_p2) }
   0x8   : > { %v231_v35 = vld [vmem:[%s804_s1 + $0x30] sm:$0xff] (!%p188_p2)  ;;  %601 = vset.pattern.permute.xlu1 (!%p188_p2), %v619_v36  ;;  %600 = vset.pattern.permute.xlu0 (!%p188_p2), %v619_v36  ;;  %v438_v55 = vld [vmem:[%s807_s4] sm:$0xff] (!%p188_p2)  ;;  %v439_v56 = vld [vmem:[%s807_s4 + $0x8] sm:$0xff] (!%p188_p2) }
   0x9   : > { %v412_v53 = vld [vmem:[%s806_s3 + $0x10] sm:$0xff] (!%p188_p2)  ;;  %v410_v57 = vld [vmem:[%s806_s3] sm:$0xff] (!%p188_p2)  ;;  %v441_v0 = vld [vmem:[%s807_s4 + $0x18] sm:$0xff] (!%p188_p2) }
   0xa   : > { %v440_v58 = vld [vmem:[%s807_s4 + $0x10] sm:$0xff] (!%p188_p2) }
   0xd   : > { %s810_s2 = smov (!%p215_p3, %s529_s2), 1 }
   0xe   : > { %s589_s23 = smul.u32 144, %s810_s2  ;;  %s543_s6 = sshll.u32 %s810_s2, 5 }
   0xf   : > { %s788_s9 = scalar_lea.vmem %s808_s5, %s543_s6 }
  0x10   : > { %s674_s26 = scalar_lea.vmem %s803_s0, %s589_s23 }
  0x11   : > { %v233_v3 = vld [vmem:[%s674_s26] sm:$0xff]  ;;  %v234_v4 = vld [vmem:[%s674_s26 + $0x8] sm:$0xff]  ;;  %v235_v5 = vld [vmem:[%s674_s26 + $0x10] sm:$0xff] }
  0x12   : > { %v545_v6 = vpack.c.bf16 %v234_v4, %v233_v3  ;;  %v236_v7 = vld [vmem:[%s674_s26 + $0x18] sm:$0xff]  ;;  %v237_v9 = vld [vmem:[%s674_s26 + $0x20] sm:$0xff]  ;;  %v238_v10 = vld [vmem:[%s674_s26 + $0x28] sm:$0xff] }
  0x13   : > { %v548_v8 = vpack.c.bf16 %v236_v7, %v235_v5  ;;  %v551_v11 = vpack.c.bf16 %v238_v10, %v237_v9  ;;  %v239_v12 = vld [vmem:[%s674_s26 + $0x30] sm:$0xff]  ;;  %v240_v13 = vld [vmem:[%s674_s26 + $0x38] sm:$0xff]  ;;  %v241_v15 = vld [vmem:[%s674_s26 + $0x40] sm:$0xff] }
  0x14   : > { %546 = vmatpush1.bf16.msra.mxu0 %v545_v6  ;;  %580 = vmatpush1.bf16.msra.mxu1 %v545_v6  ;;  %v554_v14 = vpack.c.bf16 %v240_v13, %v239_v12  ;;  %v242_v16 = vld [vmem:[%s674_s26 + $0x48] sm:$0xff]  ;;  %v243_v18 = vld [vmem:[%s674_s26 + $0x50] sm:$0xff]  ;;  %v244_v19 = vld [vmem:[%s674_s26 + $0x58] sm:$0xff] }
  0x15   : > { %547 = vmatprep.subr.bf16.mxu0 %v618_v2  ;;  %572 = vmatprep.subr.bf16.mxu1 %v618_v2  ;;  %v557_v17 = vpack.c.bf16 %v242_v16, %v241_v15  ;;  %v560_v20 = vpack.c.bf16 %v244_v19, %v243_v18  ;;  %v245_v21 = vld [vmem:[%s674_s26 + $0x60] sm:$0xff]  ;;  %v246_v22 = vld [vmem:[%s674_s26 + $0x68] sm:$0xff]  ;;  %v247_v24 = vld [vmem:[%s674_s26 + $0x70] sm:$0xff] }
  0x16   : > { %v563_v23 = vpack.c.bf16 %v246_v22, %v245_v21  ;;  %v248_v25 = vld [vmem:[%s674_s26 + $0x78] sm:$0xff]  ;;  %v249_v27 = vld [vmem:[%s674_s26 + $0x80] sm:$0xff]  ;;  %v250_v28 = vld [vmem:[%s674_s26 + $0x88] sm:$0xff] }
  0x17   : > { %v566_v26 = vpack.c.bf16 %v248_v25, %v247_v24  ;;  %v569_v29 = vpack.c.bf16 %v250_v28, %v249_v27 }
  0x18   : > { %549 = vmatpush1.bf16.msra.mxu0 %v548_v8  ;;  %581 = vmatpush1.bf16.msra.mxu1 %v548_v8 }
  0x19   : > { %550 = vmatprep.subr.bf16.mxu0 %v618_v2  ;;  %573 = vmatprep.subr.bf16.mxu1 %v618_v2 }
  0x1c   : > { %552 = vmatpush1.bf16.msra.mxu0 %v551_v11  ;;  %582 = vmatpush1.bf16.msra.mxu1 %v551_v11 }
  0x1d   : > { %553 = vmatprep.subr.bf16.mxu0 %v618_v2  ;;  %574 = vmatprep.subr.bf16.mxu1 %v618_v2 }
  0x20   : > { %555 = vmatpush1.bf16.msra.mxu0 %v554_v14  ;;  %583 = vmatpush1.bf16.msra.mxu1 %v554_v14 }
  0x21   : > { %556 = vmatprep.subr.bf16.mxu0 %v618_v2  ;;  %575 = vmatprep.subr.bf16.mxu1 %v618_v2 }
  0x24   : > { %558 = vmatpush1.bf16.msra.mxu0 %v557_v17  ;;  %584 = vmatpush1.bf16.msra.mxu1 %v557_v17 }
  0x25   : > { %559 = vmatprep.subr.bf16.mxu0 %v618_v2  ;;  %576 = vmatprep.subr.bf16.mxu1 %v618_v2 }
  0x28   : > { %561 = vmatpush1.bf16.msra.mxu0 %v560_v20  ;;  %585 = vmatpush1.bf16.msra.mxu1 %v560_v20 }
  0x29   : > { %562 = vmatprep.subr.bf16.mxu0 %v618_v2  ;;  %577 = vmatprep.subr.bf16.mxu1 %v618_v2 }
  0x2c   : > { %564 = vmatpush1.bf16.msra.mxu0 %v563_v23  ;;  %586 = vmatpush1.bf16.msra.mxu1 %v563_v23 }
  0x2d   : > { %565 = vmatprep.subr.bf16.mxu0 %v618_v2  ;;  %578 = vmatprep.subr.bf16.mxu1 %v618_v2 }
  0x30   : > { %567 = vmatpush1.bf16.msra.mxu0 %v566_v26  ;;  %587 = vmatpush1.bf16.msra.mxu1 %v566_v26 }
  0x31   : > { %568 = vmatprep.subr.bf16.mxu0 %v618_v2  ;;  %579 = vmatprep.subr.bf16.mxu1 %v618_v2 }
  0x34   : > { %570 = vmatpush1.bf16.msra.mxu0 %v569_v29  ;;  %588 = vmatpush1.bf16.msra.mxu1 %v569_v29 }
  0x37   : > { %329 = vmatmul.mubr.f32.vlgmr.msra.gmra.mrb[0].mxu0 %v225_v30  ;;  %339 = vmatmul.mubr.f32.vlgmr.msra.gmra.mrb[0].mxu1 %v229_v31 }
  0x38   : > { %538 = vmatprep.mubr.msk.f32.mxu0 %vm251_vm0, %v228_v32  ;;  %540 = vmatprep.mubr.msk.f32.mxu1 %vm251_vm0, %v232_v33 }
  0x3b   : > { %334 = vmatmul.mubr.f32.gmra.mrb[2].mxu0 %v227_v34  ;;  %344 = vmatmul.mubr.f32.gmra.mrb[2].mxu1 %v231_v35 }
 0x10a   : > { %v730_v37 = vpop.f32.mrb[0].mxu0  ;;  %v732_v38 = vpop.f32.mrb[0].mxu1 }
 0x10b   : > { %v342_v39 = vpop.f32.mrb[1].mxu1  ;;  %v356_v40 = vsel %vm349_vm1, %v732_v38, 0.0  ;;  %v350_v41 = vsel %vm349_vm1, %v730_v37, 0.0  ;;  %v366_v42 = vmul.f32 %v730_v37, %v730_v37  ;;  %v332_v43 = vpop.f32.mrb[1].mxu0  ;;  %v368_v47 = vmul.f32 %v732_v38, %v732_v38 }
 0x10c   : > { %357 = vadd.xlane.f32.xlu1 %v356_v40  ;;  %351 = vadd.xlane.f32.xlu0 %v350_v41 }
 0x10d   : > { %v370_v44 = vsel %vm349_vm1, %v366_v42, 0.0  ;;  %v376_v50 = vsel %vm349_vm1, %v368_v47, 0.0 }
 0x10e   : > { %v741_v45 = vpop.f32.mrb[2].mxu0  ;;  %v743_v46 = vpop.f32.mrb[2].mxu1 }
 0x10f   : > { %v347_v48 = vpop.f32.mrb[3].mxu1  ;;  %v337_v49 = vpop.f32.mrb[3].mxu0  ;;  %v353_v51 = vsel %vm349_vm1, %v741_v45, 0.0  ;;  %v359_v59 = vsel %vm349_vm1, %v743_v46, 0.0  ;;  %v367_v60 = vmul.f32 %v741_v45, %v741_v45  ;;  %v369_v62 = vmul.f32 %v743_v46, %v743_v46 }
 0x110   : > { %371 = vadd.xlane.f32.xlu0 %v370_v44 }
 0x111   : > { %v373_v61 = vsel %vm349_vm1, %v367_v60, 0.0  ;;  %v379_v63 = vsel %vm349_vm1, %v369_v62, 0.0 }
 0x114   : > { %377 = vadd.xlane.f32.xlu0 %v376_v50 }
 0x118   : > { %354 = vadd.xlane.f32.xlu0 %v353_v51 }
 0x11d   : > { %421 = vperm.xlu1 %601, %v411_v52  }
 0x121   : > { %426 = vperm.xlu1 %601, %v412_v53  }
 0x125   : > { %431 = vperm.xlu1 %601, %v413_v54  }
 0x129   : > { %444 = vperm.xlu1 %601, %v438_v55  }
 0x12d   : > { %449 = vperm.xlu1 %601, %v439_v56  }
 0x12e   : > { %416 = vperm.xlu0 %600, %v410_v57  }
 0x131   : > { %454 = vperm.xlu1 %601, %v440_v58  }
 0x155   : > { %360 = vadd.xlane.f32.xlu1 %v359_v59 }
 0x159   : > { %374 = vadd.xlane.f32.xlu1 %v373_v61 }
 0x15d   : > { %380 = vadd.xlane.f32.xlu1 %v379_v63 }
 0x16e   : > { %459 = vperm.xlu1 %601, %v441_v0  }
 0x199   : > { %v358_v1 = vpop.xlane.xlu1 %357  ;;  %v352_v2 = vpop.xlane.xlu0 %351 }
 0x19a   : > { %v362_v3 = vmul.f32 0.015625, %v352_v2  ;;  %v364_v7 = vmul.f32 0.015625, %v358_v1 }
 0x19c   : > { %v386_v4 = vmul.f32 %v362_v3, %v362_v3  ;;  %v388_v12 = vmul.f32 %v364_v7, %v364_v7  ;;  %v394_v20 = vsub.f32 %v730_v37, %v362_v3  ;;  %v396_v25 = vsub.f32 %v732_v38, %v364_v7 }
 0x19d   : > { %v422_v5 = vpop.permute.xlu1 %421  ;;  %v372_v6 = vpop.xlane.xlu0 %371 }
 0x19e   : > { %v382_v8 = vmul.f32 0.015625, %v372_v6 }
 0x1a0   : > { %v390_v9 = vsub.f32 %v382_v8, %v386_v4 }
 0x1a1   : > { %v427_v10 = vpop.permute.xlu1 %426  ;;  %v378_v11 = vpop.xlane.xlu0 %377 }
 0x1a2   : > { %v398_v13 = vadd.f32 1e-05, %v390_v9  ;;  %v384_v14 = vmul.f32 0.015625, %v378_v11 }
 0x1a4   : > { %602 = vrsqrt.f32 %v398_v13  ;;  %v392_v15 = vsub.f32 %v384_v14, %v388_v12 }
 0x1a5   : > { %v432_v16 = vpop.permute.xlu1 %431  ;;  %v355_v18 = vpop.xlane.xlu0 %354 }
 0x1a6   : > { %v400_v17 = vadd.f32 1e-05, %v392_v15  ;;  %v363_v36 = vmul.f32 0.015625, %v355_v18 }
 0x1a8   : > { %604 = vrsqrt.f32 %v400_v17  ;;  %v387_v37 = vmul.f32 %v363_v36, %v363_v36  ;;  %v395_v50 = vsub.f32 %v741_v45, %v363_v36 }
 0x1a9   : > { %v445_v19 = vpop.permute.xlu1 %444 }
 0x1ad   : > { %v417_v22 = vpop.permute.xlu0 %416  ;;  %v450_v24 = vpop.permute.xlu1 %449 }
 0x1ae   : > { %v603_v21 = vpop.eup %602 }
 0x1af   : > { %v406_v23 = vmul.f32 %v603_v21, %v394_v20 }
 0x1b1   : > { %v434_v26 = vmul.f32 %v417_v22, %v406_v23  ;;  %v455_v32 = vpop.permute.xlu1 %454 }
 0x1b2   : > { %v605_v27 = vpop.eup %604 }
 0x1b3   : > { %v462_v28 = vadd.f32 %v445_v19, %v434_v26  ;;  %v408_v29 = vmul.f32 %v605_v27, %v396_v25 }
 0x1b5   : > { %v466_v30 = vmax.f32 %v462_v28, 0.0  ;;  %v436_v31 = vmul.f32 %v427_v10, %v408_v29 }
 0x1b7   : > { %470 = vst.msk [vmem:[%s788_s9] sm:$0xff] %vm349_vm1, %v466_v30  ;;  %v464_v33 = vadd.f32 %v455_v32, %v436_v31 }
 0x1b9   : > { %v468_v34 = vmax.f32 %v464_v33, 0.0 }
 0x1bb   : > { %472 = vst.msk [vmem:[%s788_s9 + $0x10] sm:$0xff] %vm349_vm1, %v468_v34 }
 0x1e2   : > { %v361_v35 = vpop.xlane.xlu1 %360 }
 0x1e3   : > { %v365_v39 = vmul.f32 0.015625, %v361_v35 }
 0x1e5   : > { %v389_v43 = vmul.f32 %v365_v39, %v365_v39  ;;  %v397_v53 = vsub.f32 %v743_v46, %v365_v39 }
 0x1e6   : > { %v375_v38 = vpop.xlane.xlu1 %374 }
 0x1e7   : > { %v383_v40 = vmul.f32 0.015625, %v375_v38 }
 0x1e9   : > { %v391_v41 = vsub.f32 %v383_v40, %v387_v37 }
 0x1ea   : > { %v381_v42 = vpop.xlane.xlu1 %380 }
 0x1eb   : > { %v399_v44 = vadd.f32 1e-05, %v391_v41  ;;  %v385_v47 = vmul.f32 0.015625, %v381_v42 }
 0x1ed   : > { %606 = vrsqrt.f32 %v399_v44  ;;  %v393_v48 = vsub.f32 %v385_v47, %v389_v43 }
 0x1ee   : > { %v460_v60 = vpop.permute.xlu1 %459 }
 0x1ef   : > { %v401_v49 = vadd.f32 1e-05, %v393_v48 }
 0x1f1   : > { %608 = vrsqrt.f32 %v401_v49 }
 0x1f7   : > { %v607_v51 = vpop.eup %606 }
 0x1f8   : > { %v407_v52 = vmul.f32 %v607_v51, %v395_v50 }
 0x1fa   : > { %v435_v54 = vmul.f32 %v422_v5, %v407_v52 }
 0x1fb   : > { %v609_v55 = vpop.eup %608 }
 0x1fc   : > { %v463_v56 = vadd.f32 %v450_v24, %v435_v54  ;;  %v409_v57 = vmul.f32 %v609_v55, %v397_v53 }
 0x1fe   : > { %v467_v58 = vmax.f32 %v463_v56, 0.0  ;;  %v437_v59 = vmul.f32 %v432_v16, %v409_v57 }
 0x200   : > { %471 = vst.msk [vmem:[%s788_s9 + $0x8] sm:$0xff] %vm349_vm1, %v467_v58  ;;  %v465_v61 = vadd.f32 %v460_v60, %v437_v59 }
 0x202   : > { %v469_v62 = vmax.f32 %v465_v61, 0.0 }
 0x204   : > { %473 = vst.msk [vmem:[%s788_s9 + $0x18] sm:$0xff] %vm349_vm1, %v469_v62 }
 0x205 PF: > { %s15_s18 = sadd.s32 1, %s616_s18  }
 0x206   : > { %p12_p4 = scmp.ge.s32.totalorder %s15_s18, 4  }
 0x208   :  { %14 = sbr.rel (!%p12_p4) target bundleno = 1 (0x1), region = 70 }

// kernel: solo_inference.56
= control target key start
LH: loop header
LB: loop body
LE: loop exit
PB: predicated region body
PF: predicated region fallthrough
CT: control target
= control target key end

     0   :  { %s793_s12 = smov 0   ;;  %s795_s13 = smov 0   ;;  %s876_s0 = inlined_call_operand.vmem [shape: f32[2,3,1024], index: 0, kind: input, shape index: {}]   ;;  %s877_s1 = inlined_call_operand.vmem [shape: f32[16,3], index: 1, kind: input, shape index: {}]   ;;  %s878_s2 = inlined_call_operand.vmem [shape: f32[16,1], index: 2, kind: input, shape index: {}]   ;;  %s879_s3 = inlined_call_operand.vmem [shape: f32[2,16,1024], index: 3, kind: output, shape index: {}]  }
   0x1   :  { %s797_s14 = smov 0  }
   0x2 LB: > { %s25_s15 = sadd.s32 1, %s765_s13  ;;  %p691_p0 = scmp.ge.s32.totalorder %s769_s14, 1  ;;  %s769_s14 = sphi %s797_s14, %s13_s14   ;;  %s765_s13 = sphi %s795_s13, %s881_s13   ;;  %s761_s12 = sphi %s793_s12, %s880_s12  }
   0x3   : > { %p27_p1 = scmp.ge.s32.totalorder %s25_s15, 2  ;;  %p158_p2 = scmp.lt.s32.totalorder %s769_s14, 3 }
   0x5   : > { %s883_s15 = smov (%p27_p1, %s25_s15), 0  ;;  %p159_p3 = pnand %p691_p0, %p158_p2 }
   0x6   : > { %p191_p4 = scmp.lt.s32.totalorder (!%p159_p3), %s761_s12, 1  ;;  %v771_v0 = vmov (!%p159_p3), 0.0   ;;  %v216_v1 = vld [vmem:[%s878_s2] sm:$0xff] (!%p159_p3)  ;;  %v772_v2 = vmov (!%p159_p3), 0   ;;  %v217_v3 = vld [vmem:[%s878_s2 + $0x8] sm:$0xff] (!%p159_p3)  ;;  %vm243_vm0 = vcmask (!%p159_p3), 1042432  }
   0x7   : > { %162 = sbr.rel (%p159_p3) target bundleno = 252 (0xfc), region = 32  ;;  %324 = vmatprep.mubr.f32.mxu0 (!%p159_p3), %v771_v0  ;;  %401 = vmatprep.mubr.f32.mxu1 (!%p159_p3), %v771_v0  ;;  %v210_v10 = vld [vmem:[%s877_s1] sm:$0xff] (!%p159_p3)  ;;  %vm236_vm1 = vcmask (!%p159_p3), 23552   ;;  %v211_v13 = vld [vmem:[%s877_s1 + $0x8] sm:$0xff] (!%p159_p3) }
   0x8   : > { %742 = vset.pattern.permute.xlu0 (!%p159_p3), %v772_v2 }
   0x9   : > { %220 = vperm.xlu0 (!%p159_p3), %742, %v216_v1  }
   0xd   : > { %225 = vperm.xlu0 (!%p159_p3), %742, %v217_v3  }
   0xe   : > { %s885_s12 = smov (!%p191_p4, %s761_s12), 1 }
   0xf   : > { %s714_s18 = sshll.u32 %s885_s12, 5  ;;  %s715_s28 = sshll.u32 %s885_s12, 7 }
  0x10   : > { %s198_s23 = scalar_lea.vmem %s876_s0, %s714_s18  ;;  %s849_s4 = scalar_lea.vmem %s879_s3, %s715_s28 }
  0x11   : > { %v212_v4 = vld [vmem:[%s198_s23] sm:$0x77]  ;;  %v213_v5 = vld [vmem:[%s198_s23 + $0x8] sm:$0x77]  ;;  %v214_v6 = vld [vmem:[%s198_s23 + $0x10] sm:$0x77] }
  0x12   : > { %v232_v7 = vcombine.high %v212_v4, %v212_v4  ;;  %v233_v8 = vcombine.high %v213_v5, %v213_v5  ;;  %v215_v9 = vld [vmem:[%s198_s23 + $0x18] sm:$0x77]  ;;  %v234_v11 = vcombine.high %v214_v6, %v214_v6 }
  0x13   : > { %v235_v12 = vcombine.high %v215_v9, %v215_v9 }
  0x14   : > { %696 = vmatprep.subr.msk.mxu0 %vm243_vm0, %v232_v7  ;;  %700 = vmatprep.subr.msk.mxu1 %vm243_vm0, %v233_v8 }
  0x15   : > { %697 = vmatpush1.msk.msra.mxu0 %vm243_vm0, %v212_v4  ;;  %701 = vmatpush1.msk.msra.mxu1 %vm243_vm0, %v213_v5 }
  0x16   : > { %698 = vmatmul.mubr.msk.f32.vlgmr.msra.gmra.mrb[0].mxu0 %vm236_vm1, %v210_v10  ;;  %702 = vmatmul.mubr.msk.f32.vlgmr.msra.gmra.mrb[0].mxu1 %vm236_vm1, %v210_v10 }
  0x17   : > { %704 = vmatprep.subr.msk.mxu0 %vm243_vm0, %v234_v11  ;;  %708 = vmatprep.subr.msk.mxu1 %vm243_vm0, %v235_v12 }
  0x18   : > { %705 = vmatpush1.msk.msra.mxu0 %vm243_vm0, %v214_v6  ;;  %709 = vmatpush1.msk.msra.mxu1 %vm243_vm0, %v215_v9 }
  0x19   : > { %330 = vmatprep.mubr.f32.mxu0 %v771_v0  ;;  %407 = vmatprep.mubr.f32.mxu1 %v771_v0 }
  0x1a   : > { %699 = vmatmul.mubr.msk.f32.gmra.mrb[2].mxu0 %vm236_vm1, %v211_v13  ;;  %703 = vmatmul.mubr.msk.f32.gmra.mrb[2].mxu1 %vm236_vm1, %v211_v13 }
  0x1b   : > { %478 = vmatprep.mubr.f32.mxu0 %v771_v0  ;;  %555 = vmatprep.mubr.f32.mxu1 %v771_v0 }
  0x1e   : > { %706 = vmatmul.mubr.msk.f32.vlgmr.msra.gmra.mrb[4].mxu0 %vm236_vm1, %v210_v10  ;;  %710 = vmatmul.mubr.msk.f32.vlgmr.msra.gmra.mrb[4].mxu1 %vm236_vm1, %v210_v10 }
  0x1f   : > { %484 = vmatprep.mubr.f32.mxu0 %v771_v0  ;;  %561 = vmatprep.mubr.f32.mxu1 %v771_v0 }
  0x22   : > { %707 = vmatmul.mubr.msk.f32.gmra.mrb[6].mxu0 %vm236_vm1, %v211_v13  ;;  %711 = vmatmul.mubr.msk.f32.gmra.mrb[6].mxu1 %vm236_vm1, %v211_v13 }
  0x88   : > { %v221_v14 = vpop.permute.xlu0 %220 }
  0x8c   : > { %v226_v23 = vpop.permute.xlu0 %225 }
  0xe9   : > { %v326_v15 = vpop.f32.mrb[0].mxu0  ;;  %v403_v16 = vpop.f32.mrb[0].mxu1 }
  0xea   : > { %v327_v17 = vadd.f32 %v326_v15, %v221_v14  ;;  %v404_v18 = vadd.f32 %v403_v16, %v221_v14  ;;  %v328_v19 = vpop.f32.mrb[1].mxu0  ;;  %v405_v20 = vpop.f32.mrb[1].mxu1 }
  0xeb   : > { %v329_v21 = vadd.f32 %v328_v19, %v221_v14  ;;  %v406_v22 = vadd.f32 %v405_v20, %v221_v14 }
  0xec   : > { %v568_v24 = vmax.f32 %v327_v17, 0.0  ;;  %v570_v25 = vmax.f32 %v404_v18, 0.0 }
  0xed   : > { %v569_v26 = vmax.f32 %v329_v21, 0.0  ;;  %v571_v27 = vmax.f32 %v406_v22, 0.0  ;;  %v332_v28 = vpop.f32.mrb[2].mxu0  ;;  %v409_v29 = vpop.f32.mrb[2].mxu1 }
  0xee   : > { %584 = vst [vmem:[%s849_s4] sm:$0xff] %v568_v24  ;;  %586 = vst [vmem:[%s849_s4 + $0x10] sm:$0xff] %v570_v25  ;;  %v333_v30 = vadd.f32 %v332_v28, %v226_v23  ;;  %v410_v31 = vadd.f32 %v409_v29, %v226_v23  ;;  %v334_v32 = vpop.f32.mrb[3].mxu0  ;;  %v411_v33 = vpop.f32.mrb[3].mxu1 }
  0xef   : > { %585 = vst [vmem:[%s849_s4 + $0x8] sm:$0xff] %v569_v26  ;;  %587 = vst [vmem:[%s849_s4 + $0x18] sm:$0xff] %v571_v27  ;;  %v335_v34 = vadd.f32 %v334_v32, %v226_v23  ;;  %v412_v35 = vadd.f32 %v411_v33, %v226_v23 }
  0xf0   : > { %v576_v36 = vmax.f32 %v333_v30, 0.0  ;;  %v578_v37 = vmax.f32 %v410_v31, 0.0 }
  0xf1   : > { %v577_v38 = vmax.f32 %v335_v34, 0.0  ;;  %v579_v39 = vmax.f32 %v412_v35, 0.0  ;;  %v480_v40 = vpop.f32.mrb[4].mxu0  ;;  %v557_v41 = vpop.f32.mrb[4].mxu1 }
  0xf2   : > { %592 = vst [vmem:[%s849_s4 + $0x40] sm:$0xff] %v576_v36  ;;  %594 = vst [vmem:[%s849_s4 + $0x50] sm:$0xff] %v578_v37  ;;  %v481_v42 = vadd.f32 %v480_v40, %v221_v14  ;;  %v558_v43 = vadd.f32 %v557_v41, %v221_v14  ;;  %v482_v44 = vpop.f32.mrb[5].mxu0  ;;  %v559_v45 = vpop.f32.mrb[5].mxu1 }
  0xf3   : > { %593 = vst [vmem:[%s849_s4 + $0x48] sm:$0xff] %v577_v38  ;;  %595 = vst [vmem:[%s849_s4 + $0x58] sm:$0xff] %v579_v39  ;;  %v483_v46 = vadd.f32 %v482_v44, %v221_v14  ;;  %v560_v47 = vadd.f32 %v559_v45, %v221_v14 }
  0xf4   : > { %v572_v48 = vmax.f32 %v481_v42, 0.0  ;;  %v574_v49 = vmax.f32 %v558_v43, 0.0 }
  0xf5   : > { %v573_v50 = vmax.f32 %v483_v46, 0.0  ;;  %v575_v51 = vmax.f32 %v560_v47, 0.0  ;;  %v486_v52 = vpop.f32.mrb[6].mxu0  ;;  %v563_v53 = vpop.f32.mrb[6].mxu1 }
  0xf6   : > { %588 = vst [vmem:[%s849_s4 + $0x20] sm:$0xff] %v572_v48  ;;  %590 = vst [vmem:[%s849_s4 + $0x30] sm:$0xff] %v574_v49  ;;  %v487_v54 = vadd.f32 %v486_v52, %v226_v23  ;;  %v564_v55 = vadd.f32 %v563_v53, %v226_v23  ;;  %v488_v56 = vpop.f32.mrb[7].mxu0  ;;  %v565_v57 = vpop.f32.mrb[7].mxu1 }
  0xf7   : > { %589 = vst [vmem:[%s849_s4 + $0x28] sm:$0xff] %v573_v50  ;;  %591 = vst [vmem:[%s849_s4 + $0x38] sm:$0xff] %v575_v51  ;;  %v489_v58 = vadd.f32 %v488_v56, %v226_v23  ;;  %v566_v59 = vadd.f32 %v565_v57, %v226_v23 }
  0xf8   : > { %v580_v60 = vmax.f32 %v487_v54, 0.0  ;;  %v582_v61 = vmax.f32 %v564_v55, 0.0 }
  0xf9   : > { %v581_v62 = vmax.f32 %v489_v58, 0.0  ;;  %v583_v63 = vmax.f32 %v566_v59, 0.0 }
  0xfa   : > { %596 = vst [vmem:[%s849_s4 + $0x60] sm:$0xff] %v580_v60  ;;  %598 = vst [vmem:[%s849_s4 + $0x70] sm:$0xff] %v582_v61 }
  0xfb   : > { %597 = vst [vmem:[%s849_s4 + $0x68] sm:$0xff] %v581_v62  ;;  %599 = vst [vmem:[%s849_s4 + $0x78] sm:$0xff] %v583_v63 }
  0xfc PF: > { %s13_s14 = sadd.s32 1, %s769_s14   ;;  %s880_s12 = smov %s765_s13 }
  0xfd   : > { %p10_p5 = scmp.ge.s32.totalorder %s13_s14, 4   ;;  %s881_s13 = smov %s883_s15 }
  0xff   :  { %12 = sbr.rel (!%p10_p5) target bundleno = 2 (0x2), region = 62 }

// kernel: solo_inference.60
= control target key start
LH: loop header
LB: loop body
LE: loop exit
PB: predicated region body
PF: predicated region fallthrough
CT: control target
= control target key end

     0   :  { %s1399_s18 = smov 0   ;;  %s1958_s0 = inlined_call_operand.vmem [shape: f32[2,144,1024], index: 0, kind: input, shape index: {}]   ;;  %s1959_s1 = inlined_call_operand.vmem [shape: f32[32,144], index: 1, kind: input, shape index: {}]   ;;  %s1960_s2 = inlined_call_operand.vmem [shape: f32[32,1], index: 2, kind: input, shape index: {}]   ;;  %s1961_s3 = inlined_call_operand.vmem [shape: f32[32,1], index: 3, kind: input, shape index: {}]   ;;  %s1962_s4 = inlined_call_operand.vmem [shape: f32[32,1], index: 4, kind: input, shape index: {}]   ;;  %s1963_s5 = inlined_call_operand.vmem [shape: f32[2,32,1024], index: 5, kind: output, shape index: {}]  }
   0x1 LB: > { %s1169_s2 = sadd.s32 4294967295, %s1366_s18   ;;  %p1173_p0 = scmp.ge.s32.totalorder %s1366_s18, 1  ;;  %s1366_s18 = sphi %s1399_s18, %s15_s18  }
   0x2   : > { %p187_p1 = scmp.lt.s32.totalorder %s1366_s18, 3 }
   0x4   : > { %p188_p2 = pnand %p1173_p0, %p187_p1 }
   0x5   : > { %p215_p3 = scmp.lt.s32.totalorder (!%p188_p2), %s1169_s2, 1  ;;  %v1410_v0 = vld [vmem:[%s1959_s1 + $0x8] sm:$0xff] (!%p188_p2)  ;;  %vm377_vm0 = vcmask (!%p188_p2), 130048  }
   0x6   : > { %191 = sbr.rel (%p188_p2) target bundleno = 571 (0x23b), region = 40  ;;  %1177 = vmatprep.mubr.msk.f32.mxu0 (!%p188_p2), %vm377_vm0, %v1410_v0  ;;  %1181 = vmatprep.mubr.msk.f32.mxu1 (!%p188_p2), %vm377_vm0, %v1410_v0 }
   0xd   : > { %s1965_s2 = smov (!%p215_p3, %s1169_s2), 1 }
   0xe   : > { %s1340_s21 = smul.u32 1152, %s1965_s2  ;;  %s1195_s6 = sshll.u32 %s1965_s2, 8 }
   0xf   : > { %s1905_s2 = scalar_lea.vmem %s1963_s5, %s1195_s6 }
  0x10   : > { %s1422_s24 = scalar_lea.vmem %s1958_s0, %s1340_s21 }
  0x11   : > { %v234_v1 = vld [vmem:[%s1422_s24 + $0x8] sm:$0xff]  ;;  %v233_v3 = vld [vmem:[%s1422_s24] sm:$0xff]  ;;  %v236_v6 = vld [vmem:[%s1422_s24 + $0x18] sm:$0xff] }
  0x12   : > { %v242_v2 = vld [vmem:[%s1422_s24 + $0x48] sm:$0xff]  ;;  %v241_v5 = vld [vmem:[%s1422_s24 + $0x40] sm:$0xff]  ;;  %v244_v7 = vld [vmem:[%s1422_s24 + $0x58] sm:$0xff] }
  0x13   : > { %v1196_v4 = vpack.c.bf16 %v242_v2, %v234_v1  ;;  %v1198_v8 = vpack.c.bf16 %v241_v5, %v233_v3  ;;  %v1232_v9 = vpack.c.bf16 %v244_v7, %v236_v6  ;;  %v250_v10 = vld [vmem:[%s1422_s24 + $0x88] sm:$0xff]  ;;  %v235_v12 = vld [vmem:[%s1422_s24 + $0x10] sm:$0xff]  ;;  %v249_v15 = vld [vmem:[%s1422_s24 + $0x80] sm:$0xff] }
  0x14   : > { %v258_v11 = vld [vmem:[%s1422_s24 + $0xc8] sm:$0xff]  ;;  %v243_v14 = vld [vmem:[%s1422_s24 + $0x50] sm:$0xff]  ;;  %v257_v16 = vld [vmem:[%s1422_s24 + $0xc0] sm:$0xff] }
  0x15   : > { %1197 = vmatprep.subr.bf16.mxu0 %v1196_v4  ;;  %v1200_v13 = vpack.c.bf16 %v258_v11, %v250_v10  ;;  %1233 = vmatprep.subr.bf16.mxu1 %v1232_v9  ;;  %v1234_v17 = vpack.c.bf16 %v243_v14, %v235_v12  ;;  %v1202_v18 = vpack.c.bf16 %v257_v16, %v249_v15  ;;  %v252_v19 = vld [vmem:[%s1422_s24 + $0x98] sm:$0xff]  ;;  %v266_v21 = vld [vmem:[%s1422_s24 + $0x108] sm:$0xff]  ;;  %v251_v24 = vld [vmem:[%s1422_s24 + $0x90] sm:$0xff] }
  0x16   : > { %1199 = vmatpush1.bf16.msra.mxu0 %v1198_v8  ;;  %v260_v20 = vld [vmem:[%s1422_s24 + $0xd8] sm:$0xff]  ;;  %v274_v23 = vld [vmem:[%s1422_s24 + $0x148] sm:$0xff]  ;;  %v259_v25 = vld [vmem:[%s1422_s24 + $0xd0] sm:$0xff] }
  0x17   : > { %1201 = vmatprep.subr.bf16.mxu0 %v1200_v13  ;;  %v1236_v22 = vpack.c.bf16 %v260_v20, %v252_v19  ;;  %1235 = vmatpush1.bf16.msra.mxu1 %v1234_v17  ;;  %v1204_v26 = vpack.c.bf16 %v274_v23, %v266_v21  ;;  %v1238_v27 = vpack.c.bf16 %v259_v25, %v251_v24  ;;  %v265_v28 = vld [vmem:[%s1422_s24 + $0x100] sm:$0xff]  ;;  %v268_v30 = vld [vmem:[%s1422_s24 + $0x118] sm:$0xff]  ;;  %v282_v32 = vld [vmem:[%s1422_s24 + $0x188] sm:$0xff] }
  0x18   : > { %v273_v29 = vld [vmem:[%s1422_s24 + $0x140] sm:$0xff]  ;;  %v276_v31 = vld [vmem:[%s1422_s24 + $0x158] sm:$0xff]  ;;  %v290_v33 = vld [vmem:[%s1422_s24 + $0x1c8] sm:$0xff] }
  0x19   : > { %1237 = vmatprep.subr.bf16.mxu1 %v1236_v22  ;;  %v1206_v34 = vpack.c.bf16 %v273_v29, %v265_v28  ;;  %v1240_v35 = vpack.c.bf16 %v276_v31, %v268_v30  ;;  %v267_v36 = vld [vmem:[%s1422_s24 + $0x110] sm:$0xff]  ;;  %v281_v38 = vld [vmem:[%s1422_s24 + $0x180] sm:$0xff]  ;;  %v1208_v39 = vpack.c.bf16 %v290_v33, %v282_v32  ;;  %v284_v41 = vld [vmem:[%s1422_s24 + $0x198] sm:$0xff] }
  0x1a   : > { %1203 = vmatpush1.bf16.msra.mxu0 %v1202_v18  ;;  %v275_v37 = vld [vmem:[%s1422_s24 + $0x150] sm:$0xff]  ;;  %v289_v40 = vld [vmem:[%s1422_s24 + $0x1c0] sm:$0xff]  ;;  %v292_v42 = vld [vmem:[%s1422_s24 + $0x1d8] sm:$0xff] }
  0x1b   : > { %1205 = vmatprep.subr.bf16.mxu0 %v1204_v26  ;;  %1239 = vmatpush1.bf16.msra.mxu1 %v1238_v27  ;;  %v1242_v43 = vpack.c.bf16 %v275_v37, %v267_v36  ;;  %v298_v44 = vld [vmem:[%s1422_s24 + $0x208] sm:$0xff]  ;;  %v1244_v46 = vpack.c.bf16 %v292_v42, %v284_v41  ;;  %v283_v47 = vld [vmem:[%s1422_s24 + $0x190] sm:$0xff]  ;;  %v1210_v49 = vpack.c.bf16 %v289_v40, %v281_v38  ;;  %v300_v50 = vld [vmem:[%s1422_s24 + $0x218] sm:$0xff] }
  0x1c   : > { %v306_v45 = vld [vmem:[%s1422_s24 + $0x248] sm:$0xff]  ;;  %1241 = vmatprep.subr.bf16.mxu1 %v1240_v35  ;;  %v291_v48 = vld [vmem:[%s1422_s24 + $0x1d0] sm:$0xff]  ;;  %v308_v51 = vld [vmem:[%s1422_s24 + $0x258] sm:$0xff] }
  0x1d   : > { %v1212_v52 = vpack.c.bf16 %v306_v45, %v298_v44  ;;  %v297_v53 = vld [vmem:[%s1422_s24 + $0x200] sm:$0xff]  ;;  %v1246_v55 = vpack.c.bf16 %v291_v48, %v283_v47  ;;  %v314_v56 = vld [vmem:[%s1422_s24 + $0x288] sm:$0xff]  ;;  %v1248_v58 = vpack.c.bf16 %v308_v51, %v300_v50  ;;  %v299_v59 = vld [vmem:[%s1422_s24 + $0x210] sm:$0xff] }
  0x1e   : > { %1207 = vmatpush1.bf16.msra.mxu0 %v1206_v34  ;;  %v305_v54 = vld [vmem:[%s1422_s24 + $0x240] sm:$0xff]  ;;  %v322_v57 = vld [vmem:[%s1422_s24 + $0x2c8] sm:$0xff]  ;;  %v307_v60 = vld [vmem:[%s1422_s24 + $0x250] sm:$0xff] }
  0x1f   : > { %1209 = vmatprep.subr.bf16.mxu0 %v1208_v39  ;;  %1243 = vmatpush1.bf16.msra.mxu1 %v1242_v43  ;;  %v1214_v61 = vpack.c.bf16 %v305_v54, %v297_v53  ;;  %v316_v62 = vld [vmem:[%s1422_s24 + $0x298] sm:$0xff]  ;;  %v1216_v1 = vpack.c.bf16 %v322_v57, %v314_v56  ;;  %v313_v2 = vld [vmem:[%s1422_s24 + $0x280] sm:$0xff]  ;;  %v1250_v4 = vpack.c.bf16 %v307_v60, %v299_v59  ;;  %v330_v5 = vld [vmem:[%s1422_s24 + $0x308] sm:$0xff] }
  0x20   : > { %1245 = vmatprep.subr.bf16.mxu1 %v1244_v46  ;;  %v324_v63 = vld [vmem:[%s1422_s24 + $0x2d8] sm:$0xff]  ;;  %v321_v3 = vld [vmem:[%s1422_s24 + $0x2c0] sm:$0xff]  ;;  %v338_v6 = vld [vmem:[%s1422_s24 + $0x348] sm:$0xff] }
  0x21   : > { %v1252_v7 = vpack.c.bf16 %v324_v63, %v316_v62  ;;  %v315_v8 = vld [vmem:[%s1422_s24 + $0x290] sm:$0xff]  ;;  %v1218_v10 = vpack.c.bf16 %v321_v3, %v313_v2  ;;  %v332_v11 = vld [vmem:[%s1422_s24 + $0x318] sm:$0xff]  ;;  %v1220_v13 = vpack.c.bf16 %v338_v6, %v330_v5  ;;  %v329_v14 = vld [vmem:[%s1422_s24 + $0x300] sm:$0xff] }
  0x22   : > { %1211 = vmatpush1.bf16.msra.mxu0 %v1210_v49  ;;  %v323_v9 = vld [vmem:[%s1422_s24 + $0x2d0] sm:$0xff]  ;;  %v340_v12 = vld [vmem:[%s1422_s24 + $0x358] sm:$0xff]  ;;  %v337_v15 = vld [vmem:[%s1422_s24 + $0x340] sm:$0xff] }
  0x23   : > { %1213 = vmatprep.subr.bf16.mxu0 %v1212_v52  ;;  %1247 = vmatpush1.bf16.msra.mxu1 %v1246_v55  ;;  %v1254_v16 = vpack.c.bf16 %v323_v9, %v315_v8  ;;  %v346_v17 = vld [vmem:[%s1422_s24 + $0x388] sm:$0xff]  ;;  %v1256_v19 = vpack.c.bf16 %v340_v12, %v332_v11  ;;  %v331_v20 = vld [vmem:[%s1422_s24 + $0x310] sm:$0xff]  ;;  %v1222_v22 = vpack.c.bf16 %v337_v15, %v329_v14  ;;  %v348_v23 = vld [vmem:[%s1422_s24 + $0x398] sm:$0xff] }
  0x24   : > { %1249 = vmatprep.subr.bf16.mxu1 %v1248_v58  ;;  %v354_v18 = vld [vmem:[%s1422_s24 + $0x3c8] sm:$0xff]  ;;  %v339_v21 = vld [vmem:[%s1422_s24 + $0x350] sm:$0xff]  ;;  %v356_v24 = vld [vmem:[%s1422_s24 + $0x3d8] sm:$0xff] }
  0x25   : > { %v1224_v25 = vpack.c.bf16 %v354_v18, %v346_v17  ;;  %v345_v26 = vld [vmem:[%s1422_s24 + $0x380] sm:$0xff]  ;;  %v1258_v28 = vpack.c.bf16 %v339_v21, %v331_v20  ;;  %v362_v29 = vld [vmem:[%s1422_s24 + $0x408] sm:$0xff]  ;;  %v1260_v31 = vpack.c.bf16 %v356_v24, %v348_v23  ;;  %v347_v32 = vld [vmem:[%s1422_s24 + $0x390] sm:$0xff] }
  0x26   : > { %1215 = vmatpush1.bf16.msra.mxu0 %v1214_v61  ;;  %v353_v27 = vld [vmem:[%s1422_s24 + $0x3c0] sm:$0xff]  ;;  %v370_v30 = vld [vmem:[%s1422_s24 + $0x448] sm:$0xff]  ;;  %v355_v33 = vld [vmem:[%s1422_s24 + $0x3d0] sm:$0xff] }
  0x27   : > { %1217 = vmatprep.subr.bf16.mxu0 %v1216_v1  ;;  %1251 = vmatpush1.bf16.msra.mxu1 %v1250_v4  ;;  %v1226_v34 = vpack.c.bf16 %v353_v27, %v345_v26  ;;  %v364_v35 = vld [vmem:[%s1422_s24 + $0x418] sm:$0xff]  ;;  %v1228_v37 = vpack.c.bf16 %v370_v30, %v362_v29  ;;  %v361_v38 = vld [vmem:[%s1422_s24 + $0x400] sm:$0xff]  ;;  %v1262_v40 = vpack.c.bf16 %v355_v33, %v347_v32  ;;  %v238_v41 = vld [vmem:[%s1422_s24 + $0x28] sm:$0xff] }
  0x28   : > { %1253 = vmatprep.subr.bf16.mxu1 %v1252_v7  ;;  %v372_v36 = vld [vmem:[%s1422_s24 + $0x458] sm:$0xff]  ;;  %v369_v39 = vld [vmem:[%s1422_s24 + $0x440] sm:$0xff]  ;;  %v246_v42 = vld [vmem:[%s1422_s24 + $0x68] sm:$0xff] }
  0x29   : > { %v1264_v43 = vpack.c.bf16 %v372_v36, %v364_v35  ;;  %v363_v44 = vld [vmem:[%s1422_s24 + $0x410] sm:$0xff]  ;;  %v1230_v46 = vpack.c.bf16 %v369_v39, %v361_v38  ;;  %v240_v47 = vld [vmem:[%s1422_s24 + $0x38] sm:$0xff]  ;;  %v1268_v49 = vpack.c.bf16 %v246_v42, %v238_v41  ;;  %v237_v50 = vld [vmem:[%s1422_s24 + $0x20] sm:$0xff] }
  0x2a   : > { %1219 = vmatpush1.bf16.msra.mxu0 %v1218_v10  ;;  %v371_v45 = vld [vmem:[%s1422_s24 + $0x450] sm:$0xff]  ;;  %v248_v48 = vld [vmem:[%s1422_s24 + $0x78] sm:$0xff]  ;;  %v245_v51 = vld [vmem:[%s1422_s24 + $0x60] sm:$0xff] }
  0x2b   : > { %1221 = vmatprep.subr.bf16.mxu0 %v1220_v13  ;;  %1255 = vmatpush1.bf16.msra.mxu1 %v1254_v16  ;;  %v1266_v52 = vpack.c.bf16 %v371_v45, %v363_v44  ;;  %v254_v53 = vld [vmem:[%s1422_s24 + $0xa8] sm:$0xff]  ;;  %v1304_v55 = vpack.c.bf16 %v248_v48, %v240_v47  ;;  %v239_v56 = vld [vmem:[%s1422_s24 + $0x30] sm:$0xff]  ;;  %v1509_v58 = vld [vmem:[%s1959_s1] sm:$0xff]  ;;  %v1270_v59 = vpack.c.bf16 %v245_v51, %v237_v50 }
  0x2c   : > { %1257 = vmatprep.subr.bf16.mxu1 %v1256_v19  ;;  %v262_v54 = vld [vmem:[%s1422_s24 + $0xe8] sm:$0xff]  ;;  %v247_v57 = vld [vmem:[%s1422_s24 + $0x70] sm:$0xff]  ;;  %v256_v60 = vld [vmem:[%s1422_s24 + $0xb8] sm:$0xff] }
  0x2d   : > { %v264_v61 = vld [vmem:[%s1422_s24 + $0xf8] sm:$0xff]  ;;  %v1272_v62 = vpack.c.bf16 %v262_v54, %v254_v53  ;;  %v253_v63 = vld [vmem:[%s1422_s24 + $0xa0] sm:$0xff]  ;;  %v1306_v3 = vpack.c.bf16 %v247_v57, %v239_v56  ;;  %v270_v4 = vld [vmem:[%s1422_s24 + $0x128] sm:$0xff] }
  0x2e   : > { %1223 = vmatpush1.bf16.msra.mxu0 %v1222_v22  ;;  %v261_v1 = vld [vmem:[%s1422_s24 + $0xe0] sm:$0xff]  ;;  %v1518_v2 = vld [vmem:[%s1959_s1 + $0x18] sm:$0xff]  ;;  %v278_v5 = vld [vmem:[%s1422_s24 + $0x168] sm:$0xff]  ;;  %v1308_v6 = vpack.c.bf16 %v264_v61, %v256_v60 }
  0x2f   : > { %1225 = vmatprep.subr.bf16.mxu0 %v1224_v25  ;;  %1259 = vmatpush1.bf16.msra.mxu1 %v1258_v28  ;;  %v255_v7 = vld [vmem:[%s1422_s24 + $0xb0] sm:$0xff]  ;;  %v1274_v9 = vpack.c.bf16 %v261_v1, %v253_v63  ;;  %v272_v10 = vld [vmem:[%s1422_s24 + $0x138] sm:$0xff]  ;;  %v1276_v13 = vpack.c.bf16 %v278_v5, %v270_v4  ;;  %v269_v14 = vld [vmem:[%s1422_s24 + $0x120] sm:$0xff] }
  0x30   : > { %1261 = vmatprep.subr.bf16.mxu1 %v1260_v31  ;;  %v263_v8 = vld [vmem:[%s1422_s24 + $0xf0] sm:$0xff]  ;;  %v280_v11 = vld [vmem:[%s1422_s24 + $0x178] sm:$0xff]  ;;  %v277_v15 = vld [vmem:[%s1422_s24 + $0x160] sm:$0xff] }
  0x31   : > { %v1532_v12 = vld [vmem:[%s1959_s1 + $0x10] sm:$0xff]  ;;  %v1540_v16 = vld [vmem:[%s1959_s1 + $0x28] sm:$0xff]  ;;  %v1310_v17 = vpack.c.bf16 %v263_v8, %v255_v7  ;;  %v1312_v20 = vpack.c.bf16 %v280_v11, %v272_v10  ;;  %v1278_v23 = vpack.c.bf16 %v277_v15, %v269_v14  ;;  %v288_v24 = vld [vmem:[%s1422_s24 + $0x1b8] sm:$0xff] }
  0x32   : > { %1227 = vmatpush1.bf16.msra.mxu0 %v1226_v34  ;;  %v286_v18 = vld [vmem:[%s1422_s24 + $0x1a8] sm:$0xff]  ;;  %v271_v21 = vld [vmem:[%s1422_s24 + $0x130] sm:$0xff]  ;;  %v296_v25 = vld [vmem:[%s1422_s24 + $0x1f8] sm:$0xff] }
  0x33   : > { %1229 = vmatprep.subr.bf16.mxu0 %v1228_v37  ;;  %1263 = vmatpush1.bf16.msra.mxu1 %v1262_v40  ;;  %v294_v19 = vld [vmem:[%s1422_s24 + $0x1e8] sm:$0xff]  ;;  %v279_v22 = vld [vmem:[%s1422_s24 + $0x170] sm:$0xff]  ;;  %v1556_v26 = vld [vmem:[%s1959_s1 + $0x20] sm:$0xff]  ;;  %v1316_v34 = vpack.c.bf16 %v296_v25, %v288_v24 }
  0x34   : > { %1265 = vmatprep.subr.bf16.mxu1 %v1264_v43  ;;  %v1280_v27 = vpack.c.bf16 %v294_v19, %v286_v18  ;;  %v285_v28 = vld [vmem:[%s1422_s24 + $0x1a0] sm:$0xff]  ;;  %v1564_v30 = vld [vmem:[%s1959_s1 + $0x38] sm:$0xff]  ;;  %v1314_v31 = vpack.c.bf16 %v279_v22, %v271_v21  ;;  %v302_v32 = vld [vmem:[%s1422_s24 + $0x228] sm:$0xff] }
  0x35   : > { %v293_v29 = vld [vmem:[%s1422_s24 + $0x1e0] sm:$0xff]  ;;  %v310_v33 = vld [vmem:[%s1422_s24 + $0x268] sm:$0xff]  ;;  %v287_v35 = vld [vmem:[%s1422_s24 + $0x1b0] sm:$0xff] }
  0x36   : > { %1231 = vmatpush1.bf16.msra.mxu0 %v1230_v46  ;;  %v295_v36 = vld [vmem:[%s1422_s24 + $0x1f0] sm:$0xff]  ;;  %v1282_v37 = vpack.c.bf16 %v293_v29, %v285_v28  ;;  %v304_v38 = vld [vmem:[%s1422_s24 + $0x238] sm:$0xff]  ;;  %v1284_v41 = vpack.c.bf16 %v310_v33, %v302_v32  ;;  %v301_v42 = vld [vmem:[%s1422_s24 + $0x220] sm:$0xff] }
  0x37   : > { %1269 = vmatprep.subr.bf16.mxu0 %v1268_v49  ;;  %1267 = vmatpush1.bf16.msra.mxu1 %v1266_v52  ;;  %v312_v39 = vld [vmem:[%s1422_s24 + $0x278] sm:$0xff]  ;;  %v1580_v40 = vld [vmem:[%s1959_s1 + $0x30] sm:$0xff]  ;;  %v309_v43 = vld [vmem:[%s1422_s24 + $0x260] sm:$0xff]  ;;  %v1318_v44 = vpack.c.bf16 %v295_v36, %v287_v35 }
  0x38   : > { %1305 = vmatprep.subr.bf16.mxu1 %v1304_v55  ;;  %v318_v45 = vld [vmem:[%s1422_s24 + $0x2a8] sm:$0xff]  ;;  %v1320_v47 = vpack.c.bf16 %v312_v39, %v304_v38  ;;  %v303_v48 = vld [vmem:[%s1422_s24 + $0x230] sm:$0xff]  ;;  %v1286_v50 = vpack.c.bf16 %v309_v43, %v301_v42  ;;  %v320_v51 = vld [vmem:[%s1422_s24 + $0x2b8] sm:$0xff] }
  0x39   : > { %455 = vmatmul.mubr.f32.vlgmr.msra.gmra.mrb[0].mxu0 %v1509_v58  ;;  %v326_v46 = vld [vmem:[%s1422_s24 + $0x2e8] sm:$0xff]  ;;  %v311_v49 = vld [vmem:[%s1422_s24 + $0x270] sm:$0xff]  ;;  %v328_v52 = vld [vmem:[%s1422_s24 + $0x2f8] sm:$0xff] }
  0x3a   : > { %1271 = vmatpush1.bf16.msra.mxu0 %v1270_v59  ;;  %1178 = vmatprep.mubr.msk.f32.mxu0 %vm377_vm0, %v1518_v2  ;;  %v1288_v53 = vpack.c.bf16 %v326_v46, %v318_v45  ;;  %v317_v54 = vld [vmem:[%s1422_s24 + $0x2a0] sm:$0xff]  ;;  %v1322_v56 = vpack.c.bf16 %v311_v49, %v303_v48  ;;  %v334_v57 = vld [vmem:[%s1422_s24 + $0x328] sm:$0xff]  ;;  %v1324_v60 = vpack.c.bf16 %v328_v52, %v320_v51  ;;  %v319_v61 = vld [vmem:[%s1422_s24 + $0x2b0] sm:$0xff] }
  0x3b   : > { %544 = vmatmul.mubr.f32.vlgmr.msra.gmra.mrb[0].mxu1 %v1509_v58  ;;  %1273 = vmatprep.subr.bf16.mxu0 %v1272_v62  ;;  %v325_v55 = vld [vmem:[%s1422_s24 + $0x2e0] sm:$0xff]  ;;  %v342_v59 = vld [vmem:[%s1422_s24 + $0x368] sm:$0xff]  ;;  %v327_v62 = vld [vmem:[%s1422_s24 + $0x2f0] sm:$0xff] }
  0x3c   : > { %1307 = vmatpush1.bf16.msra.mxu1 %v1306_v3  ;;  %1182 = vmatprep.mubr.msk.f32.mxu1 %vm377_vm0, %v1518_v2  ;;  %v1290_v63 = vpack.c.bf16 %v325_v55, %v317_v54  ;;  %v336_v1 = vld [vmem:[%s1422_s24 + $0x338] sm:$0xff]  ;;  %v1292_v4 = vpack.c.bf16 %v342_v59, %v334_v57  ;;  %v333_v5 = vld [vmem:[%s1422_s24 + $0x320] sm:$0xff]  ;;  %v350_v7 = vld [vmem:[%s1422_s24 + $0x3a8] sm:$0xff] }
  0x3d   : > { %1309 = vmatprep.subr.bf16.mxu1 %v1308_v6  ;;  %461 = vmatmul.mubr.f32.gmra.mrb[2].mxu0 %v1532_v12  ;;  %v344_v3 = vld [vmem:[%s1422_s24 + $0x378] sm:$0xff]  ;;  %v341_v6 = vld [vmem:[%s1422_s24 + $0x360] sm:$0xff]  ;;  %v358_v8 = vld [vmem:[%s1422_s24 + $0x3e8] sm:$0xff] }
  0x3e   : > { %1275 = vmatpush1.bf16.msra.mxu0 %v1274_v9  ;;  %1179 = vmatprep.mubr.msk.f32.mxu0 %vm377_vm0, %v1540_v16  ;;  %v1328_v9 = vpack.c.bf16 %v344_v3, %v336_v1  ;;  %v335_v10 = vld [vmem:[%s1422_s24 + $0x330] sm:$0xff]  ;;  %v352_v14 = vld [vmem:[%s1422_s24 + $0x3b8] sm:$0xff]  ;;  %v349_v18 = vld [vmem:[%s1422_s24 + $0x3a0] sm:$0xff] }
  0x3f   : > { %1277 = vmatprep.subr.bf16.mxu0 %v1276_v13  ;;  %550 = vmatmul.mubr.f32.gmra.mrb[2].mxu1 %v1532_v12  ;;  %v343_v11 = vld [vmem:[%s1422_s24 + $0x370] sm:$0xff]  ;;  %v1294_v13 = vpack.c.bf16 %v341_v6, %v333_v5  ;;  %v360_v15 = vld [vmem:[%s1422_s24 + $0x3f8] sm:$0xff]  ;;  %v357_v19 = vld [vmem:[%s1422_s24 + $0x3e0] sm:$0xff] }
  0x40   : > { %1311 = vmatpush1.bf16.msra.mxu1 %v1310_v17  ;;  %1183 = vmatprep.mubr.msk.f32.mxu1 %vm377_vm0, %v1540_v16  ;;  %v1296_v17 = vpack.c.bf16 %v358_v8, %v350_v7  ;;  %v366_v21 = vld [vmem:[%s1422_s24 + $0x428] sm:$0xff]  ;;  %v351_v24 = vld [vmem:[%s1422_s24 + $0x3b0] sm:$0xff]  ;;  %v368_v28 = vld [vmem:[%s1422_s24 + $0x438] sm:$0xff] }
  0x41   : > { %1313 = vmatprep.subr.bf16.mxu1 %v1312_v20  ;;  %467 = vmatmul.mubr.f32.gmra.mrb[4].mxu0 %v1556_v26  ;;  %v1330_v20 = vpack.c.bf16 %v343_v11, %v335_v10  ;;  %v374_v22 = vld [vmem:[%s1422_s24 + $0x468] sm:$0xff]  ;;  %v359_v25 = vld [vmem:[%s1422_s24 + $0x3f0] sm:$0xff]  ;;  %v376_v29 = vld [vmem:[%s1422_s24 + $0x478] sm:$0xff] }
  0x42   : > { %1279 = vmatpush1.bf16.msra.mxu0 %v1278_v23  ;;  %1180 = vmatprep.mubr.msk.f32.mxu0 %vm377_vm0, %v1564_v30  ;;  %v1332_v23 = vpack.c.bf16 %v360_v15, %v352_v14  ;;  %v365_v32 = vld [vmem:[%s1422_s24 + $0x420] sm:$0xff]  ;;  %v1336_v35 = vpack.c.bf16 %v376_v29, %v368_v28  ;;  %v367_v36 = vld [vmem:[%s1422_s24 + $0x430] sm:$0xff] }
  0x43   : > { %1281 = vmatprep.subr.bf16.mxu0 %v1280_v27  ;;  %556 = vmatmul.mubr.f32.gmra.mrb[4].mxu1 %v1556_v26  ;;  %v1298_v27 = vpack.c.bf16 %v357_v19, %v349_v18  ;;  %v373_v33 = vld [vmem:[%s1422_s24 + $0x460] sm:$0xff] }
  0x44   : > { %1315 = vmatpush1.bf16.msra.mxu1 %v1314_v31  ;;  %1184 = vmatprep.mubr.msk.f32.mxu1 %vm377_vm0, %v1564_v30  ;;  %v1300_v31 = vpack.c.bf16 %v374_v22, %v366_v21  ;;  %v1302_v38 = vpack.c.bf16 %v373_v33, %v365_v32 }
  0x45   : > { %1317 = vmatprep.subr.bf16.mxu1 %v1316_v34  ;;  %473 = vmatmul.mubr.f32.gmra.mrb[6].mxu0 %v1580_v40  ;;  %v1334_v34 = vpack.c.bf16 %v359_v25, %v351_v24 }
  0x46   : > { %1283 = vmatpush1.bf16.msra.mxu0 %v1282_v37  ;;  %1185 = vmatprep.mubr.msk.f32.mxu0 %vm377_vm0, %v1410_v0  ;;  %v375_v37 = vld [vmem:[%s1422_s24 + $0x470] sm:$0xff] }
  0x47   : > { %1285 = vmatprep.subr.bf16.mxu0 %v1284_v41  ;;  %562 = vmatmul.mubr.f32.gmra.mrb[6].mxu1 %v1580_v40  ;;  %v1338_v39 = vpack.c.bf16 %v375_v37, %v367_v36 }
  0x48   : > { %1319 = vmatpush1.bf16.msra.mxu1 %v1318_v44  ;;  %1189 = vmatprep.mubr.msk.f32.mxu1 %vm377_vm0, %v1410_v0  ;;  %v1326_v0 = vpack.c.bf16 %v327_v62, %v319_v61 }
  0x49   : > { %1321 = vmatprep.subr.bf16.mxu1 %v1320_v47 }
  0x4a   : > { %1287 = vmatpush1.bf16.msra.mxu0 %v1286_v50 }
  0x4b   : > { %1289 = vmatprep.subr.bf16.mxu0 %v1288_v53 }
  0x4c   : > { %1323 = vmatpush1.bf16.msra.mxu1 %v1322_v56 }
  0x4d   : > { %1325 = vmatprep.subr.bf16.mxu1 %v1324_v60 }
  0x4e   : > { %1291 = vmatpush1.bf16.msra.mxu0 %v1290_v63 }
  0x4f   : > { %1293 = vmatprep.subr.bf16.mxu0 %v1292_v4 }
  0x50   : > { %1327 = vmatpush1.bf16.msra.mxu1 %v1326_v0 }
  0x51   : > { %1329 = vmatprep.subr.bf16.mxu1 %v1328_v9 }
  0x52   : > { %1295 = vmatpush1.bf16.msra.mxu0 %v1294_v13 }
  0x53   : > { %1297 = vmatprep.subr.bf16.mxu0 %v1296_v17 }
  0x54   : > { %1331 = vmatpush1.bf16.msra.mxu1 %v1330_v20 }
  0x55   : > { %1333 = vmatprep.subr.bf16.mxu1 %v1332_v23 }
  0x56   : > { %1299 = vmatpush1.bf16.msra.mxu0 %v1298_v27 }
  0x57   : > { %1301 = vmatprep.subr.bf16.mxu0 %v1300_v31 }
  0x58   : > { %1335 = vmatpush1.bf16.msra.mxu1 %v1334_v34 }
  0x59   : > { %1337 = vmatprep.subr.bf16.mxu1 %v1336_v35 }
  0x5a   : > { %1303 = vmatpush1.bf16.msra.mxu0 %v1302_v38 }
  0x5c   : > { %1339 = vmatpush1.bf16.msra.mxu1 %v1338_v39 }
  0x5d   : > { %633 = vmatmul.mubr.f32.vlgmr.msra.gmra.mrb[8].mxu0 %v1509_v58 }
  0x5e   : > { %1186 = vmatprep.mubr.msk.f32.mxu0 %vm377_vm0, %v1518_v2 }
  0x5f   : > { %722 = vmatmul.mubr.f32.vlgmr.msra.gmra.mrb[8].mxu1 %v1509_v58  ;;  %v1368_v58 = vmov 0  }
  0x60   : > { %1190 = vmatprep.mubr.msk.f32.mxu1 %vm377_vm0, %v1518_v2  ;;  %1351 = vset.pattern.permute.xlu1 %v1368_v58 }
  0x61   : > { %639 = vmatmul.mubr.f32.gmra.mrb[10].mxu0 %v1532_v12  ;;  %1350 = vset.pattern.permute.xlu0 %v1368_v58 }
  0x62   : > { %1187 = vmatprep.mubr.msk.f32.mxu0 %vm377_vm0, %v1540_v16 }
  0x63   : > { %728 = vmatmul.mubr.f32.gmra.mrb[10].mxu1 %v1532_v12 }
  0x64   : > { %1191 = vmatprep.mubr.msk.f32.mxu1 %vm377_vm0, %v1540_v16 }
  0x65   : > { %645 = vmatmul.mubr.f32.gmra.mrb[12].mxu0 %v1556_v26 }
  0x66   : > { %1188 = vmatprep.mubr.msk.f32.mxu0 %vm377_vm0, %v1564_v30 }
  0x67   : > { %734 = vmatmul.mubr.f32.gmra.mrb[12].mxu1 %v1556_v26 }
  0x68   : > { %1192 = vmatprep.mubr.msk.f32.mxu1 %vm377_vm0, %v1564_v30 }
  0x69   : > { %651 = vmatmul.mubr.f32.gmra.mrb[14].mxu0 %v1580_v40 }
  0x6b   : > { %740 = vmatmul.mubr.f32.gmra.mrb[14].mxu1 %v1580_v40 }
 0x10c   : > { %v1647_v2 = vpop.f32.mrb[0].mxu0 }
 0x10d   : > { %v786_v12 = vmul.f32 %v1647_v2, %v1647_v2  ;;  %v1651_v16 = vpop.f32.mrb[1].mxu0 }
 0x10e   : > { %v746_v26 = vadd.f32 %v1651_v16, %v1647_v2  ;;  %v787_v30 = vmul.f32 %v1651_v16, %v1651_v16  ;;  %v1657_v41 = vpop.f32.mrb[0].mxu1 }
 0x10f   : > { %v788_v40 = vmul.f32 %v1657_v41, %v1657_v41  ;;  %v1661_v42 = vpop.f32.mrb[1].mxu1 }
 0x110   : > { %v818_v43 = vadd.f32 %v787_v30, %v786_v12  ;;  %v747_v44 = vadd.f32 %v746_v26, %v1657_v41  ;;  %v789_v45 = vmul.f32 %v1661_v42, %v1661_v42  ;;  %v1666_v46 = vpop.f32.mrb[2].mxu0 }
 0x111   : > { %v794_v47 = vmul.f32 %v1666_v46, %v1666_v46  ;;  %v1670_v48 = vpop.f32.mrb[3].mxu0 }
 0x112   : > { %v819_v49 = vadd.f32 %v818_v43, %v788_v40  ;;  %v748_v50 = vadd.f32 %v747_v44, %v1661_v42  ;;  %v755_v51 = vadd.f32 %v1670_v48, %v1666_v46  ;;  %v795_v52 = vmul.f32 %v1670_v48, %v1670_v48  ;;  %v1677_v53 = vpop.f32.mrb[2].mxu1 }
 0x113   : > { %v796_v54 = vmul.f32 %v1677_v53, %v1677_v53  ;;  %v1681_v55 = vpop.f32.mrb[3].mxu1 }
 0x114   : > { %v820_v56 = vadd.f32 %v819_v49, %v789_v45  ;;  %v827_v57 = vadd.f32 %v795_v52, %v794_v47  ;;  %v756_v59 = vadd.f32 %v755_v51, %v1677_v53  ;;  %v1684_v60 = vpop.f32.mrb[4].mxu0  ;;  %v797_v61 = vmul.f32 %v1681_v55, %v1681_v55 }
 0x115   : > { %v802_v62 = vmul.f32 %v1684_v60, %v1684_v60  ;;  %v1690_v63 = vpop.f32.mrb[5].mxu0 }
 0x116   : > { %v828_v1 = vadd.f32 %v827_v57, %v796_v54  ;;  %v764_v3 = vadd.f32 %v1690_v63, %v1684_v60  ;;  %v803_v4 = vmul.f32 %v1690_v63, %v1690_v63  ;;  %v757_v5 = vadd.f32 %v756_v59, %v1681_v55  ;;  %v1697_v6 = vpop.f32.mrb[4].mxu1 }
 0x117   : > { %v804_v0 = vmul.f32 %v1697_v6, %v1697_v6  ;;  %v1701_v7 = vpop.f32.mrb[5].mxu1 }
 0x118   : > { %v836_v8 = vadd.f32 %v803_v4, %v802_v62  ;;  %v829_v9 = vadd.f32 %v828_v1, %v797_v61  ;;  %v765_v10 = vadd.f32 %v764_v3, %v1697_v6  ;;  %v1704_v11 = vpop.f32.mrb[6].mxu0  ;;  %v805_v13 = vmul.f32 %v1701_v7, %v1701_v7 }
 0x119   : > { %v810_v14 = vmul.f32 %v1704_v11, %v1704_v11  ;;  %v1710_v15 = vpop.f32.mrb[7].mxu0 }
 0x11a   : > { %v837_v17 = vadd.f32 %v836_v8, %v804_v0  ;;  %v773_v18 = vadd.f32 %v1710_v15, %v1704_v11  ;;  %v811_v19 = vmul.f32 %v1710_v15, %v1710_v15  ;;  %v766_v20 = vadd.f32 %v765_v10, %v1701_v7  ;;  %v1717_v21 = vpop.f32.mrb[6].mxu1 }
 0x11b   : > { %v812_v22 = vmul.f32 %v1717_v21, %v1717_v21  ;;  %v1721_v23 = vpop.f32.mrb[7].mxu1 }
 0x11c   : > { %v845_v24 = vadd.f32 %v811_v19, %v810_v14  ;;  %v838_v25 = vadd.f32 %v837_v17, %v805_v13  ;;  %v774_v27 = vadd.f32 %v773_v18, %v1717_v21  ;;  %v813_v28 = vmul.f32 %v1721_v23, %v1721_v23 }
 0x11e   : > { %v846_v29 = vadd.f32 %v845_v24, %v812_v22  ;;  %v775_v31 = vadd.f32 %v774_v27, %v1721_v23 }
 0x120   : > { %v847_v32 = vadd.f32 %v846_v29, %v813_v28 }
 0x130   : > { %v1727_v33 = vpop.f32.mrb[8].mxu0 }
 0x131   : > { %v749_v34 = vadd.f32 %v748_v50, %v1727_v33  ;;  %v790_v35 = vmul.f32 %v1727_v33, %v1727_v33  ;;  %v1732_v36 = vpop.f32.mrb[9].mxu0 }
 0x132   : > { %v791_v37 = vmul.f32 %v1732_v36, %v1732_v36  ;;  %v1736_v38 = vpop.f32.mrb[8].mxu1 }
 0x133   : > { %v821_v39 = vadd.f32 %v820_v56, %v790_v35  ;;  %v750_v58 = vadd.f32 %v749_v34, %v1732_v36  ;;  %v1739_v12 = vpop.f32.mrb[9].mxu1  ;;  %v792_v26 = vmul.f32 %v1736_v38, %v1736_v38 }
 0x134   : > { %v1743_v30 = vpop.f32.mrb[10].mxu0  ;;  %v793_v61 = vmul.f32 %v1739_v12, %v1739_v12 }
 0x135   : > { %v758_v40 = vadd.f32 %v757_v5, %v1743_v30  ;;  %v798_v43 = vmul.f32 %v1743_v30, %v1743_v30  ;;  %v1748_v44 = vpop.f32.mrb[11].mxu0  ;;  %v751_v45 = vadd.f32 %v750_v58, %v1736_v38  ;;  %v822_v47 = vadd.f32 %v821_v39, %v791_v37 }
 0x136   : > { %v799_v49 = vmul.f32 %v1748_v44, %v1748_v44  ;;  %v1753_v50 = vpop.f32.mrb[10].mxu1 }
 0x137   : > { %v830_v51 = vadd.f32 %v829_v9, %v798_v43  ;;  %v759_v52 = vadd.f32 %v758_v40, %v1748_v44  ;;  %v800_v54 = vmul.f32 %v1753_v50, %v1753_v50  ;;  %v1758_v56 = vpop.f32.mrb[11].mxu1  ;;  %v752_v57 = vadd.f32 %v751_v45, %v1739_v12 }
 0x138   : > { %v1761_v59 = vpop.f32.mrb[12].mxu0  ;;  %v823_v62 = vadd.f32 %v822_v47, %v792_v26  ;;  %v801_v18 = vmul.f32 %v1758_v56, %v1758_v56 }
 0x139   : > { %v767_v1 = vadd.f32 %v766_v20, %v1761_v59  ;;  %v806_v3 = vmul.f32 %v1761_v59, %v1761_v59  ;;  %753 = vadd.xlane.f32.xlu0 %v752_v57  ;;  %v1768_v4 = vpop.f32.mrb[13].mxu0  ;;  %v831_v5 = vadd.f32 %v830_v51, %v799_v49  ;;  %v760_v0 = vadd.f32 %v759_v52, %v1753_v50 }
 0x13a   : > { %v807_v8 = vmul.f32 %v1768_v4, %v1768_v4  ;;  %v1773_v9 = vpop.f32.mrb[12].mxu1  ;;  %v824_v10 = vadd.f32 %v823_v62, %v793_v61  ;;  %v939_v62 = vld [vmem:[%s1961_s3 + $0x8] sm:$0xff] }
 0x13b   : > { %v839_v13 = vadd.f32 %v838_v25, %v806_v3  ;;  %v768_v14 = vadd.f32 %v767_v1, %v1768_v4  ;;  %v1776_v17 = vpop.f32.mrb[13].mxu1  ;;  %v832_v19 = vadd.f32 %v831_v5, %v800_v54  ;;  %v808_v22 = vmul.f32 %v1773_v9, %v1773_v9  ;;  %v940_v1 = vld [vmem:[%s1961_s3 + $0x10] sm:$0xff]  ;;  %v938_v3 = vld [vmem:[%s1961_s3] sm:$0xff]  ;;  %v941_v5 = vld [vmem:[%s1961_s3 + $0x18] sm:$0xff] }
 0x13c   : > { %v1780_v20 = vpop.f32.mrb[14].mxu0  ;;  %v761_v24 = vadd.f32 %v760_v0, %v1758_v56  ;;  %v809_v39 = vmul.f32 %v1776_v17, %v1776_v17  ;;  %v994_v0 = vld [vmem:[%s1962_s4] sm:$0xff] }
 0x13d   : > { %v776_v27 = vadd.f32 %v775_v31, %v1780_v20  ;;  %v814_v25 = vmul.f32 %v1780_v20, %v1780_v20  ;;  %825 = vadd.xlane.f32.xlu0 %v824_v10  ;;  %v1788_v28 = vpop.f32.mrb[15].mxu0  ;;  %v833_v29 = vadd.f32 %v832_v19, %v801_v18  ;;  %v769_v34 = vadd.f32 %v768_v14, %v1773_v9  ;;  %v996_v10 = vld [vmem:[%s1962_s4 + $0x10] sm:$0xff] }
 0x13e   : > { %v815_v35 = vmul.f32 %v1788_v28, %v1788_v28  ;;  %v1793_v37 = vpop.f32.mrb[14].mxu1  ;;  %v840_v58 = vadd.f32 %v839_v13, %v807_v8  ;;  %v995_v8 = vld [vmem:[%s1962_s4 + $0x8] sm:$0xff]  ;;  %v997_v13 = vld [vmem:[%s1962_s4 + $0x18] sm:$0xff] }
 0x13f   : > { %v848_v26 = vadd.f32 %v847_v32, %v814_v25  ;;  %v777_v31 = vadd.f32 %v776_v27, %v1788_v28  ;;  %834 = vadd.xlane.f32.xlu1 %v833_v29  ;;  %v816_v40 = vmul.f32 %v1793_v37, %v1793_v37  ;;  %v1800_v43 = vpop.f32.mrb[15].mxu1  ;;  %v770_v45 = vadd.f32 %v769_v34, %v1776_v17 }
 0x140   : > { %v841_v47 = vadd.f32 %v840_v58, %v808_v22  ;;  %v817_v51 = vmul.f32 %v1800_v43, %v1800_v43 }
 0x141   : > { %v849_v49 = vadd.f32 %v848_v26, %v815_v35  ;;  %762 = vadd.xlane.f32.xlu0 %v761_v24  ;;  %v778_v52 = vadd.f32 %v777_v31, %v1793_v37 }
 0x142   : > { %v842_v54 = vadd.f32 %v841_v47, %v809_v39 }
 0x143   : > { %771 = vadd.xlane.f32.xlu1 %v770_v45  ;;  %v779_v32 = vadd.f32 %v778_v52, %v1800_v43  ;;  %v850_v57 = vadd.f32 %v849_v49, %v816_v40 }
 0x145   : > { %843 = vadd.xlane.f32.xlu0 %v842_v54  ;;  %v851_v61 = vadd.f32 %v850_v57, %v817_v51 }
 0x154   : > { %949 = vperm.xlu1 %1351, %v939_v62  }
 0x158   : > { %954 = vperm.xlu1 %1351, %v940_v1  }
 0x15b   : > { %944 = vperm.xlu0 %1350, %v938_v3  }
 0x15c   : > { %959 = vperm.xlu1 %1351, %v941_v5  }
 0x160   : > { %1000 = vperm.xlu1 %1351, %v994_v0  }
 0x164   : > { %1005 = vperm.xlu1 %1351, %v995_v8  }
 0x168   : > { %1010 = vperm.xlu1 %1351, %v996_v10  }
 0x18c   : > { %780 = vadd.xlane.f32.xlu1 %v779_v32 }
 0x190   : > { %852 = vadd.xlane.f32.xlu1 %v851_v61 }
 0x1a1   : > { %1015 = vperm.xlu1 %1351, %v997_v13  }
 0x1c6   : > { %v754_v14 = vpop.xlane.xlu0 %753 }
 0x1c7   : > { %v782_v18 = vmul.f32 0.0009765625, %v754_v14 }
 0x1c9   : > { %v858_v22 = vmul.f32 %v782_v18, %v782_v18  ;;  %v866_v32 = vsub.f32 %v1647_v2, %v782_v18  ;;  %v867_v57 = vsub.f32 %v1651_v16, %v782_v18  ;;  %v868_v61 = vsub.f32 %v1657_v41, %v782_v18 }
 0x1ca   : > { %v826_v19 = vpop.xlane.xlu0 %825  ;;  %v869_v1 = vsub.f32 %v1661_v42, %v782_v18  ;;  %v870_v3 = vsub.f32 %v1727_v33, %v782_v18  ;;  %v871_v8 = vsub.f32 %v1732_v36, %v782_v18  ;;  %v872_v10 = vsub.f32 %v1736_v38, %v782_v18 }
 0x1cb   : > { %v854_v24 = vmul.f32 0.0009765625, %v826_v19  ;;  %v873_v2 = vsub.f32 %v1739_v12, %v782_v18 }
 0x1cc   : > { %v835_v27 = vpop.xlane.xlu1 %834 }
 0x1cd   : > { %v862_v25 = vsub.f32 %v854_v24, %v858_v22  ;;  %v855_v58 = vmul.f32 0.0009765625, %v835_v27 }
 0x1ce   : > { %v763_v29 = vpop.xlane.xlu0 %762 }
 0x1cf   : > { %v898_v34 = vadd.f32 1e-05, %v862_v25  ;;  %v1831_v35 = vmul.f32 0.0009765625, %v763_v29 }
 0x1d0   : > { %v772_v39 = vpop.xlane.xlu1 %771 }
 0x1d1   : > { %1352 = vrsqrt.f32 %v898_v34  ;;  %v859_v26 = vmul.f32 %v1831_v35, %v1831_v35  ;;  %v1835_v31 = vmul.f32 0.0009765625, %v772_v39  ;;  %v874_v5 = vsub.f32 %v1666_v46, %v1831_v35 }
 0x1d2   : > { %v844_v40 = vpop.xlane.xlu0 %843  ;;  %v875_v16 = vsub.f32 %v1670_v48, %v1831_v35  ;;  %v876_v41 = vsub.f32 %v1677_v53, %v1831_v35  ;;  %v877_v42 = vsub.f32 %v1681_v55, %v1831_v35  ;;  %v878_v46 = vsub.f32 %v1743_v30, %v1831_v35 }
 0x1d3   : > { %v863_v45 = vsub.f32 %v855_v58, %v859_v26  ;;  %v856_v47 = vmul.f32 0.0009765625, %v844_v40  ;;  %v860_v49 = vmul.f32 %v1835_v31, %v1835_v31  ;;  %v879_v33 = vsub.f32 %v1748_v44, %v1831_v35 }
 0x1d4   : > { %v1839_v51 = vpop.permute.xlu1 %949  ;;  %v880_v36 = vsub.f32 %v1753_v50, %v1831_v35  ;;  %v881_v38 = vsub.f32 %v1758_v56, %v1831_v35  ;;  %v882_v48 = vsub.f32 %v1684_v60, %v1835_v31  ;;  %v883_v53 = vsub.f32 %v1690_v63, %v1835_v31 }
 0x1d5   : > { %v899_v52 = vadd.f32 1e-05, %v863_v45  ;;  %v864_v54 = vsub.f32 %v856_v47, %v860_v49  ;;  %v884_v55 = vsub.f32 %v1697_v6, %v1835_v31  ;;  %v885_v30 = vsub.f32 %v1701_v7, %v1835_v31 }
 0x1d6   : > { %v886_v6 = vsub.f32 %v1761_v59, %v1835_v31  ;;  %v887_v7 = vsub.f32 %v1768_v4, %v1835_v31  ;;  %v888_v34 = vsub.f32 %v1773_v9, %v1835_v31  ;;  %v889_v35 = vsub.f32 %v1776_v17, %v1835_v31 }
 0x1d7   : > { %1354 = vrsqrt.f32 %v899_v52  ;;  %v900_v62 = vadd.f32 1e-05, %v864_v54 }
 0x1d8   : > { %v1848_v0 = vpop.permute.xlu1 %954 }
 0x1d9   : > { %1356 = vrsqrt.f32 %v900_v62 }
 0x1da   : > { %v945_v44 = vpop.permute.xlu0 %944 }
 0x1db   : > { %v1353_v12 = vpop.eup %1352 }
 0x1dc   : > { %v1875_v13 = vpop.permute.xlu1 %959  ;;  %v906_v50 = vmul.f32 %v1353_v12, %v866_v32  ;;  %v907_v14 = vmul.f32 %v1353_v12, %v867_v57  ;;  %v908_v18 = vmul.f32 %v1353_v12, %v868_v61  ;;  %v909_v56 = vmul.f32 %v1353_v12, %v869_v1 }
 0x1dd   : > { %v910_v19 = vmul.f32 %v1353_v12, %v870_v3  ;;  %v911_v22 = vmul.f32 %v1353_v12, %v871_v8  ;;  %v912_v24 = vmul.f32 %v1353_v12, %v872_v10  ;;  %v913_v60 = vmul.f32 %v1353_v12, %v873_v2 }
 0x1de   : > { %v962_v27 = vmul.f32 %v945_v44, %v906_v50  ;;  %v963_v25 = vmul.f32 %v945_v44, %v907_v14  ;;  %v964_v63 = vmul.f32 %v945_v44, %v908_v18  ;;  %v965_v29 = vmul.f32 %v945_v44, %v909_v56 }
 0x1df   : > { %v966_v39 = vmul.f32 %v945_v44, %v910_v19  ;;  %v967_v58 = vmul.f32 %v945_v44, %v911_v22  ;;  %v968_v26 = vmul.f32 %v945_v44, %v912_v24  ;;  %v969_v40 = vmul.f32 %v945_v44, %v913_v60 }
 0x1e0   : > { %v1001_v45 = vpop.permute.xlu1 %1000 }
 0x1e1   : > { %v1355_v47 = vpop.eup %1354  ;;  %v1018_v49 = vadd.f32 %v1001_v45, %v962_v27  ;;  %v1019_v52 = vadd.f32 %v1001_v45, %v963_v25  ;;  %v1020_v54 = vadd.f32 %v1001_v45, %v964_v63  ;;  %v1021_v32 = vadd.f32 %v1001_v45, %v965_v29 }
 0x1e2   : > { %v914_v59 = vmul.f32 %v1355_v47, %v874_v5  ;;  %v915_v57 = vmul.f32 %v1355_v47, %v875_v16  ;;  %v916_v61 = vmul.f32 %v1355_v47, %v876_v41  ;;  %v917_v4 = vmul.f32 %v1355_v47, %v877_v42 }
 0x1e3   : > { %v1357_v62 = vpop.eup %1356  ;;  %v918_v1 = vmul.f32 %v1355_v47, %v878_v46  ;;  %v919_v9 = vmul.f32 %v1355_v47, %v879_v33  ;;  %v920_v3 = vmul.f32 %v1355_v47, %v880_v36  ;;  %v921_v8 = vmul.f32 %v1355_v47, %v881_v38 }
 0x1e4   : > { %v970_v17 = vmul.f32 %v1839_v51, %v914_v59  ;;  %v971_v31 = vmul.f32 %v1839_v51, %v915_v57  ;;  %v972_v10 = vmul.f32 %v1839_v51, %v916_v61  ;;  %v973_v2 = vmul.f32 %v1839_v51, %v917_v4  ;;  %v1006_v24 = vpop.permute.xlu1 %1005 }
 0x1e5   : > { %v974_v12 = vmul.f32 %v1839_v51, %v918_v1  ;;  %v975_v5 = vmul.f32 %v1839_v51, %v919_v9  ;;  %v976_v16 = vmul.f32 %v1839_v51, %v920_v3  ;;  %v977_v41 = vmul.f32 %v1839_v51, %v921_v8 }
 0x1e6   : > { %v922_v42 = vmul.f32 %v1357_v62, %v882_v48  ;;  %v923_v46 = vmul.f32 %v1357_v62, %v883_v53  ;;  %v924_v33 = vmul.f32 %v1357_v62, %v884_v55  ;;  %v925_v36 = vmul.f32 %v1357_v62, %v885_v30 }
 0x1e7   : > { %v926_v38 = vmul.f32 %v1357_v62, %v886_v6  ;;  %v927_v44 = vmul.f32 %v1357_v62, %v887_v7  ;;  %v928_v50 = vmul.f32 %v1357_v62, %v888_v34  ;;  %v929_v14 = vmul.f32 %v1357_v62, %v889_v35 }
 0x1e8   : > { %v978_v18 = vmul.f32 %v1848_v0, %v922_v42  ;;  %v979_v56 = vmul.f32 %v1848_v0, %v923_v46  ;;  %v980_v19 = vmul.f32 %v1848_v0, %v924_v33  ;;  %v981_v22 = vmul.f32 %v1848_v0, %v925_v36 }
 0x1e9   : > { %v982_v51 = vmul.f32 %v1848_v0, %v926_v38  ;;  %v983_v48 = vmul.f32 %v1848_v0, %v927_v44  ;;  %v984_v53 = vmul.f32 %v1848_v0, %v928_v50  ;;  %v985_v55 = vmul.f32 %v1848_v0, %v929_v14 }
 0x1ea   : > { %v1022_v30 = vadd.f32 %v1001_v45, %v966_v39  ;;  %v1023_v60 = vadd.f32 %v1001_v45, %v967_v58  ;;  %v1024_v27 = vadd.f32 %v1001_v45, %v968_v26  ;;  %v1025_v25 = vadd.f32 %v1001_v45, %v969_v40 }
 0x1eb   : > { %v1050_v63 = vmax.f32 %v1018_v49, 0.0  ;;  %v1051_v29 = vmax.f32 %v1019_v52, 0.0  ;;  %v1052_v6 = vmax.f32 %v1020_v54, 0.0  ;;  %v1053_v0 = vmax.f32 %v1021_v32, 0.0  ;;  %v1011_v32 = vpop.permute.xlu1 %1010 }
 0x1ec   : > { %v1054_v7 = vmax.f32 %v1022_v30, 0.0  ;;  %v1055_v34 = vmax.f32 %v1023_v60, 0.0  ;;  %v1056_v35 = vmax.f32 %v1024_v27, 0.0  ;;  %v1057_v47 = vmax.f32 %v1025_v25, 0.0 }
 0x1ed   : > { %1082 = vst [vmem:[%s1905_s2] sm:$0xff] %v1050_v63  ;;  %1083 = vst [vmem:[%s1905_s2 + $0x8] sm:$0xff] %v1051_v29  ;;  %v1026_v39 = vadd.f32 %v1006_v24, %v970_v17  ;;  %v1027_v58 = vadd.f32 %v1006_v24, %v971_v31  ;;  %v1028_v26 = vadd.f32 %v1006_v24, %v972_v10 }
 0x1ee   : > { %1084 = vst [vmem:[%s1905_s2 + $0x10] sm:$0xff] %v1052_v6  ;;  %1085 = vst [vmem:[%s1905_s2 + $0x18] sm:$0xff] %v1053_v0  ;;  %v1029_v40 = vadd.f32 %v1006_v24, %v973_v2  ;;  %v1030_v45 = vadd.f32 %v1006_v24, %v974_v12  ;;  %v1031_v49 = vadd.f32 %v1006_v24, %v975_v5 }
 0x1ef   : > { %1086 = vst [vmem:[%s1905_s2 + $0x20] sm:$0xff] %v1054_v7  ;;  %1087 = vst [vmem:[%s1905_s2 + $0x28] sm:$0xff] %v1055_v34  ;;  %v1032_v52 = vadd.f32 %v1006_v24, %v976_v16  ;;  %v1033_v54 = vadd.f32 %v1006_v24, %v977_v41  ;;  %v1058_v59 = vmax.f32 %v1026_v39, 0.0  ;;  %v1059_v57 = vmax.f32 %v1027_v58, 0.0 }
 0x1f0   : > { %1088 = vst [vmem:[%s1905_s2 + $0x30] sm:$0xff] %v1056_v35  ;;  %1089 = vst [vmem:[%s1905_s2 + $0x38] sm:$0xff] %v1057_v47  ;;  %v1060_v61 = vmax.f32 %v1028_v26, 0.0  ;;  %v1061_v4 = vmax.f32 %v1029_v40, 0.0  ;;  %v1062_v62 = vmax.f32 %v1030_v45, 0.0  ;;  %v1063_v1 = vmax.f32 %v1031_v49, 0.0 }
 0x1f1   : > { %v1064_v9 = vmax.f32 %v1032_v52, 0.0  ;;  %v1065_v3 = vmax.f32 %v1033_v54, 0.0  ;;  %1090 = vst [vmem:[%s1905_s2 + $0x40] sm:$0xff] %v1058_v59  ;;  %1091 = vst [vmem:[%s1905_s2 + $0x48] sm:$0xff] %v1059_v57  ;;  %v1034_v8 = vadd.f32 %v1011_v32, %v978_v18  ;;  %v1035_v17 = vadd.f32 %v1011_v32, %v979_v56 }
 0x1f2   : > { %1092 = vst [vmem:[%s1905_s2 + $0x50] sm:$0xff] %v1060_v61  ;;  %1093 = vst [vmem:[%s1905_s2 + $0x58] sm:$0xff] %v1061_v4  ;;  %v1036_v31 = vadd.f32 %v1011_v32, %v980_v19  ;;  %v1037_v10 = vadd.f32 %v1011_v32, %v981_v22  ;;  %v1038_v2 = vadd.f32 %v1011_v32, %v982_v51 }
 0x1f3   : > { %1094 = vst [vmem:[%s1905_s2 + $0x60] sm:$0xff] %v1062_v62  ;;  %1095 = vst [vmem:[%s1905_s2 + $0x68] sm:$0xff] %v1063_v1  ;;  %v1039_v12 = vadd.f32 %v1011_v32, %v983_v48  ;;  %v1040_v5 = vadd.f32 %v1011_v32, %v984_v53  ;;  %v1041_v16 = vadd.f32 %v1011_v32, %v985_v55  ;;  %v1066_v41 = vmax.f32 %v1034_v8, 0.0 }
 0x1f4   : > { %1096 = vst [vmem:[%s1905_s2 + $0x70] sm:$0xff] %v1064_v9  ;;  %1097 = vst [vmem:[%s1905_s2 + $0x78] sm:$0xff] %v1065_v3  ;;  %v1067_v42 = vmax.f32 %v1035_v17, 0.0  ;;  %v1068_v46 = vmax.f32 %v1036_v31, 0.0  ;;  %v1069_v33 = vmax.f32 %v1037_v10, 0.0  ;;  %v1070_v36 = vmax.f32 %v1038_v2, 0.0 }
 0x1f5   : > { %v1071_v38 = vmax.f32 %v1039_v12, 0.0  ;;  %v1072_v44 = vmax.f32 %v1040_v5, 0.0  ;;  %v1073_v50 = vmax.f32 %v1041_v16, 0.0  ;;  %1098 = vst [vmem:[%s1905_s2 + $0x80] sm:$0xff] %v1066_v41 }
 0x1f6   : > { %1099 = vst [vmem:[%s1905_s2 + $0x88] sm:$0xff] %v1067_v42  ;;  %1100 = vst [vmem:[%s1905_s2 + $0x90] sm:$0xff] %v1068_v46 }
 0x1f7   : > { %1101 = vst [vmem:[%s1905_s2 + $0x98] sm:$0xff] %v1069_v33  ;;  %1102 = vst [vmem:[%s1905_s2 + $0xa0] sm:$0xff] %v1070_v36 }
 0x1f8   : > { %1103 = vst [vmem:[%s1905_s2 + $0xa8] sm:$0xff] %v1071_v38  ;;  %1104 = vst [vmem:[%s1905_s2 + $0xb0] sm:$0xff] %v1072_v44 }
 0x1f9   : > { %1105 = vst [vmem:[%s1905_s2 + $0xb8] sm:$0xff] %v1073_v50 }
 0x219   : > { %v781_v14 = vpop.xlane.xlu1 %780 }
 0x21a   : > { %v785_v18 = vmul.f32 0.0009765625, %v781_v14 }
 0x21c   : > { %v861_v19 = vmul.f32 %v785_v18, %v785_v18  ;;  %v890_v48 = vsub.f32 %v1704_v11, %v785_v18  ;;  %v891_v53 = vsub.f32 %v1710_v15, %v785_v18  ;;  %v892_v55 = vsub.f32 %v1717_v21, %v785_v18 }
 0x21d   : > { %v853_v56 = vpop.xlane.xlu1 %852  ;;  %v893_v30 = vsub.f32 %v1721_v23, %v785_v18  ;;  %v894_v27 = vsub.f32 %v1780_v20, %v785_v18  ;;  %v895_v25 = vsub.f32 %v1788_v28, %v785_v18  ;;  %v896_v63 = vsub.f32 %v1793_v37, %v785_v18 }
 0x21e   : > { %v857_v22 = vmul.f32 0.0009765625, %v853_v56  ;;  %v897_v29 = vsub.f32 %v1800_v43, %v785_v18 }
 0x220   : > { %v865_v24 = vsub.f32 %v857_v22, %v861_v19 }
 0x221   : > { %v1016_v26 = vpop.permute.xlu1 %1015 }
 0x222   : > { %v901_v51 = vadd.f32 1e-05, %v865_v24 }
 0x224   : > { %1358 = vrsqrt.f32 %v901_v51 }
 0x22e   : > { %v1359_v60 = vpop.eup %1358 }
 0x22f   : > { %v930_v6 = vmul.f32 %v1359_v60, %v890_v48  ;;  %v931_v0 = vmul.f32 %v1359_v60, %v891_v53  ;;  %v932_v7 = vmul.f32 %v1359_v60, %v892_v55  ;;  %v933_v34 = vmul.f32 %v1359_v60, %v893_v30 }
 0x230   : > { %v934_v11 = vmul.f32 %v1359_v60, %v894_v27  ;;  %v935_v35 = vmul.f32 %v1359_v60, %v895_v25  ;;  %v936_v15 = vmul.f32 %v1359_v60, %v896_v63  ;;  %v937_v47 = vmul.f32 %v1359_v60, %v897_v29 }
 0x231   : > { %v986_v21 = vmul.f32 %v1875_v13, %v930_v6  ;;  %v987_v23 = vmul.f32 %v1875_v13, %v931_v0  ;;  %v988_v20 = vmul.f32 %v1875_v13, %v932_v7  ;;  %v989_v28 = vmul.f32 %v1875_v13, %v933_v34 }
 0x232   : > { %v990_v37 = vmul.f32 %v1875_v13, %v934_v11  ;;  %v991_v43 = vmul.f32 %v1875_v13, %v935_v35  ;;  %v992_v39 = vmul.f32 %v1875_v13, %v936_v15  ;;  %v993_v58 = vmul.f32 %v1875_v13, %v937_v47 }
 0x233   : > { %v1042_v40 = vadd.f32 %v1016_v26, %v986_v21  ;;  %v1043_v45 = vadd.f32 %v1016_v26, %v987_v23  ;;  %v1044_v49 = vadd.f32 %v1016_v26, %v988_v20  ;;  %v1045_v52 = vadd.f32 %v1016_v26, %v989_v28 }
 0x234   : > { %v1046_v54 = vadd.f32 %v1016_v26, %v990_v37  ;;  %v1047_v32 = vadd.f32 %v1016_v26, %v991_v43  ;;  %v1048_v59 = vadd.f32 %v1016_v26, %v992_v39  ;;  %v1049_v57 = vadd.f32 %v1016_v26, %v993_v58 }
 0x235   : > { %v1074_v61 = vmax.f32 %v1042_v40, 0.0  ;;  %v1075_v4 = vmax.f32 %v1043_v45, 0.0  ;;  %v1076_v13 = vmax.f32 %v1044_v49, 0.0  ;;  %v1077_v62 = vmax.f32 %v1045_v52, 0.0 }
 0x236   : > { %v1078_v1 = vmax.f32 %v1046_v54, 0.0  ;;  %v1079_v9 = vmax.f32 %v1047_v32, 0.0  ;;  %v1080_v3 = vmax.f32 %v1048_v59, 0.0  ;;  %v1081_v8 = vmax.f32 %v1049_v57, 0.0 }
 0x237   : > { %1106 = vst [vmem:[%s1905_s2 + $0xc0] sm:$0xff] %v1074_v61  ;;  %1107 = vst [vmem:[%s1905_s2 + $0xc8] sm:$0xff] %v1075_v4 }
 0x238   : > { %1108 = vst [vmem:[%s1905_s2 + $0xd0] sm:$0xff] %v1076_v13  ;;  %1109 = vst [vmem:[%s1905_s2 + $0xd8] sm:$0xff] %v1077_v62 }
 0x239   : > { %1110 = vst [vmem:[%s1905_s2 + $0xe0] sm:$0xff] %v1078_v1  ;;  %1111 = vst [vmem:[%s1905_s2 + $0xe8] sm:$0xff] %v1079_v9 }
 0x23a   : > { %1112 = vst [vmem:[%s1905_s2 + $0xf0] sm:$0xff] %v1080_v3  ;;  %1113 = vst [vmem:[%s1905_s2 + $0xf8] sm:$0xff] %v1081_v8 }
 0x23b PF: > { %s15_s18 = sadd.s32 1, %s1366_s18  }
 0x23c   : > { %p12_p4 = scmp.ge.s32.totalorder %s15_s18, 4  }
 0x23e   :  { %14 = sbr.rel (!%p12_p4) target bundleno = 1 (0x1), region = 70 }

// kernel: solo_inference.57
= control target key start
LH: loop header
LB: loop body
LE: loop exit
PB: predicated region body
PF: predicated region fallthrough
CT: control target
= control target key end

     0   :  { %s504_s12 = smov 0   ;;  %s506_s13 = smov 0   ;;  %s553_s0 = inlined_call_operand.vmem [shape: f32[2,3,256], index: 0, kind: input, shape index: {}]   ;;  %s554_s1 = inlined_call_operand.vmem [shape: f32[16,3], index: 1, kind: input, shape index: {}]   ;;  %s555_s2 = inlined_call_operand.vmem [shape: f32[16,1], index: 2, kind: input, shape index: {}]   ;;  %s556_s3 = inlined_call_operand.vmem [shape: f32[2,16,256], index: 3, kind: output, shape index: {}]  }
   0x1   :  { %s508_s14 = smov 0  }
   0x2 LB: > { %s25_s15 = sadd.s32 1, %s476_s13  ;;  %p415_p0 = scmp.ge.s32.totalorder %s480_s14, 1  ;;  %s480_s14 = sphi %s508_s14, %s13_s14   ;;  %s476_s13 = sphi %s506_s13, %s558_s13   ;;  %s472_s12 = sphi %s504_s12, %s557_s12  }
   0x3   : > { %p27_p1 = scmp.ge.s32.totalorder %s25_s15, 2  ;;  %p158_p2 = scmp.lt.s32.totalorder %s480_s14, 3 }
   0x5   : > { %s560_s15 = smov (%p27_p1, %s25_s15), 0  ;;  %p159_p3 = pnand %p415_p0, %p158_p2 }
   0x6   : > { %p191_p4 = scmp.lt.s32.totalorder (!%p159_p3), %s472_s12, 1  ;;  %v482_v0 = vmov (!%p159_p3), 0.0   ;;  %v213_v1 = vld [vmem:[%s555_s2] sm:$0xff] (!%p159_p3)  ;;  %v483_v2 = vmov (!%p159_p3), 0   ;;  %v214_v3 = vld [vmem:[%s555_s2 + $0x8] sm:$0xff] (!%p159_p3)  ;;  %vm234_vm0 = vcmask (!%p159_p3), 1042432  }
   0x7   : > { %162 = sbr.rel (%p159_p3) target bundleno = 240 (0xf0), region = 32  ;;  %303 = vmatprep.mubr.f32.mxu0 (!%p159_p3), %v482_v0  ;;  %309 = vmatprep.mubr.f32.mxu1 (!%p159_p3), %v482_v0  ;;  %v210_v6 = vld [vmem:[%s554_s1] sm:$0xff] (!%p159_p3)  ;;  %vm227_vm1 = vcmask (!%p159_p3), 23552   ;;  %v211_v7 = vld [vmem:[%s554_s1 + $0x8] sm:$0xff] (!%p159_p3) }
   0x8   : > { %456 = vset.pattern.permute.xlu0 (!%p159_p3), %v483_v2 }
   0x9   : > { %217 = vperm.xlu0 (!%p159_p3), %456, %v213_v1  }
   0xd   : > { %222 = vperm.xlu0 (!%p159_p3), %456, %v214_v3  }
   0xe   : > { %s562_s12 = smov (!%p191_p4, %s472_s12), 1 }
   0xf   : > { %s426_s18 = sshll.u32 %s562_s12, 3  ;;  %s427_s28 = sshll.u32 %s562_s12, 5 }
  0x10   : > { %s198_s23 = scalar_lea.vmem %s553_s0, %s426_s18  ;;  %s208_s4 = scalar_lea.vmem %s556_s3, %s427_s28 }
  0x11   : > { %v212_v4 = vld [vmem:[%s198_s23] sm:$0x77] }
  0x12   : > { %v226_v5 = vcombine.high %v212_v4, %v212_v4 }
  0x14   : > { %420 = vmatprep.subr.msk.mxu0 %vm234_vm0, %v226_v5  ;;  %428 = vmatprep.subr.msk.mxu1 %vm234_vm0, %v226_v5 }
  0x15   : > { %421 = vmatpush1.msk.msra.mxu0 %vm234_vm0, %v212_v4  ;;  %429 = vmatpush1.msk.msra.mxu1 %vm234_vm0, %v212_v4 }
  0x16   : > { %422 = vmatmul.mubr.msk.f32.vlgmr.msra.gmra.mrb[0].mxu0 %vm227_vm1, %v210_v6  ;;  %423 = vmatmul.mubr.msk.f32.vlgmr.msra.gmra.mrb[0].mxu1 %vm227_vm1, %v211_v7 }
  0x88   : > { %v218_v8 = vpop.permute.xlu0 %217 }
  0x8c   : > { %v223_v9 = vpop.permute.xlu0 %222 }
  0xe9   : > { %v305_v10 = vpop.f32.mrb[0].mxu0  ;;  %v311_v11 = vpop.f32.mrb[0].mxu1 }
  0xea   : > { %v306_v12 = vadd.f32 %v305_v10, %v218_v8  ;;  %v312_v13 = vadd.f32 %v311_v11, %v223_v9  ;;  %v307_v14 = vpop.f32.mrb[1].mxu0  ;;  %v313_v15 = vpop.f32.mrb[1].mxu1 }
  0xeb   : > { %v308_v16 = vadd.f32 %v307_v14, %v218_v8  ;;  %v314_v17 = vadd.f32 %v313_v15, %v223_v9 }
  0xec   : > { %v316_v18 = vmax.f32 %v306_v12, 0.0  ;;  %v318_v19 = vmax.f32 %v312_v13, 0.0 }
  0xed   : > { %v317_v20 = vmax.f32 %v308_v16, 0.0  ;;  %v319_v21 = vmax.f32 %v314_v17, 0.0 }
  0xee   : > { %320 = vst [vmem:[%s208_s4] sm:$0xff] %v316_v18  ;;  %322 = vst [vmem:[%s208_s4 + $0x10] sm:$0xff] %v318_v19 }
  0xef   : > { %321 = vst [vmem:[%s208_s4 + $0x8] sm:$0xff] %v317_v20  ;;  %323 = vst [vmem:[%s208_s4 + $0x18] sm:$0xff] %v319_v21 }
  0xf0 PF: > { %s13_s14 = sadd.s32 1, %s480_s14   ;;  %s557_s12 = smov %s476_s13 }
  0xf1   : > { %p10_p5 = scmp.ge.s32.totalorder %s13_s14, 4   ;;  %s558_s13 = smov %s560_s15 }
  0xf3   :  { %12 = sbr.rel (!%p10_p5) target bundleno = 2 (0x2), region = 62 }

// kernel: solo_inference.61
= control target key start
LH: loop header
LB: loop body
LE: loop exit
PB: predicated region body
PF: predicated region fallthrough
CT: control target
= control target key end

     0   :  { %s706_s18 = smov 0   ;;  %s883_s0 = inlined_call_operand.vmem [shape: f32[2,144,256], index: 0, kind: input, shape index: {}]   ;;  %s884_s1 = inlined_call_operand.vmem [shape: f32[32,144], index: 1, kind: input, shape index: {}]   ;;  %s885_s2 = inlined_call_operand.vmem [shape: f32[32,1], index: 2, kind: input, shape index: {}]   ;;  %s886_s3 = inlined_call_operand.vmem [shape: f32[32,1], index: 3, kind: input, shape index: {}]   ;;  %s887_s4 = inlined_call_operand.vmem [shape: f32[32,1], index: 4, kind: input, shape index: {}]   ;;  %s888_s5 = inlined_call_operand.vmem [shape: f32[2,32,256], index: 5, kind: output, shape index: {}]  }
   0x1 LB: > { %s578_s2 = sadd.s32 4294967295, %s673_s18   ;;  %p582_p0 = scmp.ge.s32.totalorder %s673_s18, 1  ;;  %s673_s18 = sphi %s706_s18, %s15_s18  }
   0x2   : > { %p187_p1 = scmp.lt.s32.totalorder %s673_s18, 3 }
   0x4   : > { %p188_p2 = pnand %p582_p0, %p187_p1 }
   0x5   : > { %p215_p3 = scmp.lt.s32.totalorder (!%p188_p2), %s578_s2, 1  ;;  %v226_v0 = vld [vmem:[%s884_s1 + $0x8] sm:$0xff] (!%p188_p2)  ;;  %vm269_vm0 = vcmask (!%p188_p2), 130048   ;;  %v225_v56 = vld [vmem:[%s884_s1] sm:$0xff] (!%p188_p2)  ;;  %v228_v58 = vld [vmem:[%s884_s1 + $0x18] sm:$0xff] (!%p188_p2)  ;;  %v675_v62 = vmov (!%p188_p2), 0  }
   0x6   : > { %191 = sbr.rel (%p188_p2) target bundleno = 520 (0x208), region = 40  ;;  %v230_v1 = vld [vmem:[%s884_s1 + $0x28] sm:$0xff] (!%p188_p2)  ;;  %586 = vmatprep.mubr.msk.f32.mxu0 (!%p188_p2), %vm269_vm0, %v226_v0  ;;  %v229_v57 = vld [vmem:[%s884_s1 + $0x20] sm:$0xff] (!%p188_p2)  ;;  %v232_v59 = vld [vmem:[%s884_s1 + $0x38] sm:$0xff] (!%p188_p2)  ;;  %658 = vset.pattern.permute.xlu1 (!%p188_p2), %v675_v62 }
   0x7   : > { %588 = vmatprep.mubr.msk.f32.mxu1 (!%p188_p2), %vm269_vm0, %v230_v1  ;;  %v227_v60 = vld [vmem:[%s884_s1 + $0x10] sm:$0xff] (!%p188_p2)  ;;  %657 = vset.pattern.permute.xlu0 (!%p188_p2), %v675_v62 }
   0x8   : > { %v231_v61 = vld [vmem:[%s884_s1 + $0x30] sm:$0xff] (!%p188_p2) }
   0xd   : > { %s890_s2 = smov (!%p215_p3, %s578_s2), 1 }
   0xe   : > { %s647_s23 = smul.u32 288, %s890_s2  ;;  %s592_s6 = sshll.u32 %s890_s2, 6 }
   0xf   : > { %s862_s9 = scalar_lea.vmem %s888_s5, %s592_s6 }
  0x10   : > { %s728_s26 = scalar_lea.vmem %s883_s0, %s647_s23 }
  0x11   : > { %v234_v2 = vld [vmem:[%s728_s26 + $0x8] sm:$0xff]  ;;  %v236_v3 = vld [vmem:[%s728_s26 + $0x18] sm:$0xff]  ;;  %v233_v4 = vld [vmem:[%s728_s26] sm:$0xff] }
  0x12   : > { %v593_v5 = vpack.c.bf16 %v236_v3, %v234_v2  ;;  %v235_v6 = vld [vmem:[%s728_s26 + $0x10] sm:$0xff]  ;;  %v238_v7 = vld [vmem:[%s728_s26 + $0x28] sm:$0xff]  ;;  %v240_v8 = vld [vmem:[%s728_s26 + $0x38] sm:$0xff] }
  0x13   : > { %v595_v9 = vpack.c.bf16 %v235_v6, %v233_v4  ;;  %v597_v10 = vpack.c.bf16 %v240_v8, %v238_v7  ;;  %v237_v11 = vld [vmem:[%s728_s26 + $0x20] sm:$0xff]  ;;  %v239_v12 = vld [vmem:[%s728_s26 + $0x30] sm:$0xff]  ;;  %v242_v13 = vld [vmem:[%s728_s26 + $0x48] sm:$0xff] }
  0x14   : > { %594 = vmatprep.subr.bf16.mxu0 %v593_v5  ;;  %629 = vmatprep.subr.bf16.mxu1 %v593_v5  ;;  %v244_v14 = vld [vmem:[%s728_s26 + $0x58] sm:$0xff]  ;;  %v599_v15 = vpack.c.bf16 %v239_v12, %v237_v11  ;;  %v241_v17 = vld [vmem:[%s728_s26 + $0x40] sm:$0xff]  ;;  %v243_v18 = vld [vmem:[%s728_s26 + $0x50] sm:$0xff] }
  0x15   : > { %596 = vmatpush1.bf16.msra.mxu0 %v595_v9  ;;  %638 = vmatpush1.bf16.msra.mxu1 %v595_v9  ;;  %v601_v16 = vpack.c.bf16 %v244_v14, %v242_v13  ;;  %v246_v19 = vld [vmem:[%s728_s26 + $0x68] sm:$0xff]  ;;  %v248_v20 = vld [vmem:[%s728_s26 + $0x78] sm:$0xff]  ;;  %v603_v21 = vpack.c.bf16 %v243_v18, %v241_v17  ;;  %v245_v23 = vld [vmem:[%s728_s26 + $0x60] sm:$0xff] }
  0x16   : > { %598 = vmatprep.subr.bf16.mxu0 %v597_v10  ;;  %630 = vmatprep.subr.bf16.mxu1 %v597_v10  ;;  %v605_v22 = vpack.c.bf16 %v248_v20, %v246_v19  ;;  %v247_v24 = vld [vmem:[%s728_s26 + $0x70] sm:$0xff]  ;;  %v250_v25 = vld [vmem:[%s728_s26 + $0x88] sm:$0xff]  ;;  %v252_v26 = vld [vmem:[%s728_s26 + $0x98] sm:$0xff] }
  0x17   : > { %v607_v27 = vpack.c.bf16 %v247_v24, %v245_v23  ;;  %v609_v28 = vpack.c.bf16 %v252_v26, %v250_v25  ;;  %v249_v29 = vld [vmem:[%s728_s26 + $0x80] sm:$0xff]  ;;  %v251_v30 = vld [vmem:[%s728_s26 + $0x90] sm:$0xff]  ;;  %v254_v31 = vld [vmem:[%s728_s26 + $0xa8] sm:$0xff] }
  0x18   : > { %v256_v32 = vld [vmem:[%s728_s26 + $0xb8] sm:$0xff]  ;;  %v611_v33 = vpack.c.bf16 %v251_v30, %v249_v29  ;;  %v253_v35 = vld [vmem:[%s728_s26 + $0xa0] sm:$0xff]  ;;  %v255_v36 = vld [vmem:[%s728_s26 + $0xb0] sm:$0xff] }
  0x19   : > { %600 = vmatpush1.bf16.msra.mxu0 %v599_v15  ;;  %639 = vmatpush1.bf16.msra.mxu1 %v599_v15  ;;  %v613_v34 = vpack.c.bf16 %v256_v32, %v254_v31  ;;  %v258_v37 = vld [vmem:[%s728_s26 + $0xc8] sm:$0xff]  ;;  %v260_v38 = vld [vmem:[%s728_s26 + $0xd8] sm:$0xff]  ;;  %v615_v39 = vpack.c.bf16 %v255_v36, %v253_v35  ;;  %v257_v41 = vld [vmem:[%s728_s26 + $0xc0] sm:$0xff] }
  0x1a   : > { %602 = vmatprep.subr.bf16.mxu0 %v601_v16  ;;  %631 = vmatprep.subr.bf16.mxu1 %v601_v16  ;;  %v617_v40 = vpack.c.bf16 %v260_v38, %v258_v37  ;;  %v259_v42 = vld [vmem:[%s728_s26 + $0xd0] sm:$0xff]  ;;  %v262_v43 = vld [vmem:[%s728_s26 + $0xe8] sm:$0xff]  ;;  %v264_v44 = vld [vmem:[%s728_s26 + $0xf8] sm:$0xff] }
  0x1b   : > { %v619_v45 = vpack.c.bf16 %v259_v42, %v257_v41  ;;  %v621_v46 = vpack.c.bf16 %v264_v44, %v262_v43  ;;  %v261_v47 = vld [vmem:[%s728_s26 + $0xe0] sm:$0xff]  ;;  %v263_v48 = vld [vmem:[%s728_s26 + $0xf0] sm:$0xff]  ;;  %v266_v49 = vld [vmem:[%s728_s26 + $0x108] sm:$0xff] }
  0x1c   : > { %v268_v50 = vld [vmem:[%s728_s26 + $0x118] sm:$0xff]  ;;  %v623_v51 = vpack.c.bf16 %v263_v48, %v261_v47  ;;  %v265_v53 = vld [vmem:[%s728_s26 + $0x100] sm:$0xff]  ;;  %v267_v54 = vld [vmem:[%s728_s26 + $0x110] sm:$0xff] }
  0x1d   : > { %604 = vmatpush1.bf16.msra.mxu0 %v603_v21  ;;  %640 = vmatpush1.bf16.msra.mxu1 %v603_v21  ;;  %v625_v52 = vpack.c.bf16 %v268_v50, %v266_v49  ;;  %v627_v55 = vpack.c.bf16 %v267_v54, %v265_v53  ;;  %v444_v23 = vld [vmem:[%s886_s3 + $0x8] sm:$0xff]  ;;  %v445_v24 = vld [vmem:[%s886_s3 + $0x10] sm:$0xff]  ;;  %v446_v25 = vld [vmem:[%s886_s3 + $0x18] sm:$0xff] }
  0x1e   : > { %606 = vmatprep.subr.bf16.mxu0 %v605_v22  ;;  %632 = vmatprep.subr.bf16.mxu1 %v605_v22  ;;  %v475_v26 = vld [vmem:[%s887_s4] sm:$0xff]  ;;  %v477_v29 = vld [vmem:[%s887_s4 + $0x10] sm:$0xff]  ;;  %v478_v30 = vld [vmem:[%s887_s4 + $0x18] sm:$0xff] }
  0x21   : > { %608 = vmatpush1.bf16.msra.mxu0 %v607_v27  ;;  %641 = vmatpush1.bf16.msra.mxu1 %v607_v27  ;;  %v476_v27 = vld [vmem:[%s887_s4 + $0x8] sm:$0xff] }
  0x22   : > { %610 = vmatprep.subr.bf16.mxu0 %v609_v28  ;;  %633 = vmatprep.subr.bf16.mxu1 %v609_v28  ;;  %v443_v28 = vld [vmem:[%s886_s3] sm:$0xff] }
  0x25   : > { %612 = vmatpush1.bf16.msra.mxu0 %v611_v33  ;;  %642 = vmatpush1.bf16.msra.mxu1 %v611_v33 }
  0x26   : > { %614 = vmatprep.subr.bf16.mxu0 %v613_v34  ;;  %634 = vmatprep.subr.bf16.mxu1 %v613_v34 }
  0x29   : > { %616 = vmatpush1.bf16.msra.mxu0 %v615_v39  ;;  %643 = vmatpush1.bf16.msra.mxu1 %v615_v39 }
  0x2a   : > { %618 = vmatprep.subr.bf16.mxu0 %v617_v40  ;;  %635 = vmatprep.subr.bf16.mxu1 %v617_v40 }
  0x2d   : > { %620 = vmatpush1.bf16.msra.mxu0 %v619_v45  ;;  %644 = vmatpush1.bf16.msra.mxu1 %v619_v45 }
  0x2e   : > { %622 = vmatprep.subr.bf16.mxu0 %v621_v46  ;;  %636 = vmatprep.subr.bf16.mxu1 %v621_v46 }
  0x31   : > { %624 = vmatpush1.bf16.msra.mxu0 %v623_v51  ;;  %645 = vmatpush1.bf16.msra.mxu1 %v623_v51 }
  0x32   : > { %626 = vmatprep.subr.bf16.mxu0 %v625_v52  ;;  %637 = vmatprep.subr.bf16.mxu1 %v625_v52 }
  0x35   : > { %628 = vmatpush1.bf16.msra.mxu0 %v627_v55  ;;  %646 = vmatpush1.bf16.msra.mxu1 %v627_v55 }
  0x38   : > { %347 = vmatmul.mubr.f32.vlgmr.msra.gmra.mrb[0].mxu0 %v225_v56  ;;  %359 = vmatmul.mubr.f32.vlgmr.msra.gmra.mrb[0].mxu1 %v229_v57 }
  0x39   : > { %587 = vmatprep.mubr.msk.f32.mxu0 %vm269_vm0, %v228_v58  ;;  %589 = vmatprep.mubr.msk.f32.mxu1 %vm269_vm0, %v232_v59 }
  0x3c   : > { %353 = vmatmul.mubr.f32.gmra.mrb[2].mxu0 %v227_v60  ;;  %365 = vmatmul.mubr.f32.gmra.mrb[2].mxu1 %v231_v61 }
 0x10b   : > { %v786_v63 = vpop.f32.mrb[0].mxu0  ;;  %v788_v0 = vpop.f32.mrb[0].mxu1 }
 0x10c   : > { %v790_v1 = vpop.f32.mrb[1].mxu0  ;;  %v792_v2 = vpop.f32.mrb[1].mxu1  ;;  %v387_v3 = vmul.f32 %v786_v63, %v786_v63  ;;  %v391_v4 = vmul.f32 %v788_v0, %v788_v0 }
 0x10d   : > { %v377_v5 = vadd.f32 %v792_v2, %v788_v0  ;;  %v371_v6 = vadd.f32 %v790_v1, %v786_v63  ;;  %v388_v7 = vmul.f32 %v790_v1, %v790_v1  ;;  %v392_v8 = vmul.f32 %v792_v2, %v792_v2 }
 0x10f   : > { %378 = vadd.xlane.f32.xlu1 %v377_v5  ;;  %372 = vadd.xlane.f32.xlu0 %v371_v6  ;;  %v395_v9 = vadd.f32 %v388_v7, %v387_v3  ;;  %v401_v10 = vadd.f32 %v392_v8, %v391_v4  ;;  %v806_v11 = vpop.f32.mrb[2].mxu0  ;;  %v808_v12 = vpop.f32.mrb[2].mxu1 }
 0x110   : > { %v810_v13 = vpop.f32.mrb[3].mxu0  ;;  %v812_v14 = vpop.f32.mrb[3].mxu1  ;;  %v389_v15 = vmul.f32 %v806_v11, %v806_v11  ;;  %v393_v16 = vmul.f32 %v808_v12, %v808_v12 }
 0x111   : > { %v390_v17 = vmul.f32 %v810_v13, %v810_v13  ;;  %v374_v18 = vadd.f32 %v810_v13, %v806_v11  ;;  %v394_v19 = vmul.f32 %v812_v14, %v812_v14  ;;  %v380_v20 = vadd.f32 %v812_v14, %v808_v12 }
 0x113   : > { %396 = vadd.xlane.f32.xlu0 %v395_v9  ;;  %v398_v21 = vadd.f32 %v390_v17, %v389_v15  ;;  %v404_v22 = vadd.f32 %v394_v19, %v393_v16 }
 0x117   : > { %402 = vadd.xlane.f32.xlu0 %v401_v10 }
 0x11b   : > { %375 = vadd.xlane.f32.xlu0 %v374_v18 }
 0x120   : > { %454 = vperm.xlu1 %658, %v444_v23  }
 0x124   : > { %459 = vperm.xlu1 %658, %v445_v24  }
 0x128   : > { %464 = vperm.xlu1 %658, %v446_v25  }
 0x12c   : > { %481 = vperm.xlu1 %658, %v475_v26  }
 0x130   : > { %486 = vperm.xlu1 %658, %v476_v27  }
 0x131   : > { %449 = vperm.xlu0 %657, %v443_v28  }
 0x134   : > { %491 = vperm.xlu1 %658, %v477_v29  }
 0x158   : > { %381 = vadd.xlane.f32.xlu1 %v380_v20 }
 0x15c   : > { %399 = vadd.xlane.f32.xlu1 %v398_v21 }
 0x160   : > { %405 = vadd.xlane.f32.xlu1 %v404_v22 }
 0x171   : > { %496 = vperm.xlu1 %658, %v478_v30  }
 0x19c   : > { %v379_v31 = vpop.xlane.xlu1 %378  ;;  %v373_v32 = vpop.xlane.xlu0 %372 }
 0x19d   : > { %v383_v33 = vmul.f32 0.00390625, %v373_v32  ;;  %v385_v37 = vmul.f32 0.00390625, %v379_v31 }
 0x19f   : > { %v411_v34 = vmul.f32 %v383_v33, %v383_v33  ;;  %v413_v43 = vmul.f32 %v385_v37, %v385_v37  ;;  %v419_v50 = vsub.f32 %v786_v63, %v383_v33  ;;  %v420_v51 = vsub.f32 %v790_v1, %v383_v33 }
 0x1a0   : > { %v850_v35 = vpop.permute.xlu1 %454  ;;  %v397_v36 = vpop.xlane.xlu0 %396  ;;  %v423_v57 = vsub.f32 %v788_v0, %v385_v37  ;;  %v424_v58 = vsub.f32 %v792_v2, %v385_v37 }
 0x1a1   : > { %v407_v38 = vmul.f32 0.00390625, %v397_v36 }
 0x1a3   : > { %v415_v39 = vsub.f32 %v407_v38, %v411_v34 }
 0x1a4   : > { %v460_v40 = vpop.permute.xlu1 %459  ;;  %v403_v41 = vpop.xlane.xlu0 %402 }
 0x1a5   : > { %v427_v42 = vadd.f32 1e-05, %v415_v39  ;;  %v409_v44 = vmul.f32 0.00390625, %v403_v41 }
 0x1a7   : > { %659 = vrsqrt.f32 %v427_v42  ;;  %v417_v45 = vsub.f32 %v409_v44, %v413_v43 }
 0x1a8   : > { %v852_v46 = vpop.permute.xlu1 %464  ;;  %v376_v48 = vpop.xlane.xlu0 %375 }
 0x1a9   : > { %v429_v47 = vadd.f32 1e-05, %v417_v45  ;;  %v384_v16 = vmul.f32 0.00390625, %v376_v48 }
 0x1ab   : > { %661 = vrsqrt.f32 %v429_v47  ;;  %v412_v17 = vmul.f32 %v384_v16, %v384_v16  ;;  %v421_v28 = vsub.f32 %v806_v11, %v384_v16  ;;  %v422_v29 = vsub.f32 %v810_v13, %v384_v16 }
 0x1ac   : > { %v482_v49 = vpop.permute.xlu1 %481 }
 0x1b0   : > { %v450_v53 = vpop.permute.xlu0 %449  ;;  %v487_v56 = vpop.permute.xlu1 %486 }
 0x1b1   : > { %v660_v52 = vpop.eup %659 }
 0x1b2   : > { %v435_v54 = vmul.f32 %v660_v52, %v419_v50  ;;  %v436_v55 = vmul.f32 %v660_v52, %v420_v51 }
 0x1b4   : > { %v467_v59 = vmul.f32 %v450_v53, %v435_v54  ;;  %v468_v60 = vmul.f32 %v450_v53, %v436_v55  ;;  %v492_v6 = vpop.permute.xlu1 %491 }
 0x1b5   : > { %v662_v61 = vpop.eup %661 }
 0x1b6   : > { %v499_v62 = vadd.f32 %v482_v49, %v467_v59  ;;  %v500_v3 = vadd.f32 %v482_v49, %v468_v60  ;;  %v439_v4 = vmul.f32 %v662_v61, %v423_v57  ;;  %v440_v5 = vmul.f32 %v662_v61, %v424_v58 }
 0x1b8   : > { %v507_v63 = vmax.f32 %v499_v62, 0.0  ;;  %v508_v0 = vmax.f32 %v500_v3, 0.0  ;;  %v471_v1 = vmul.f32 %v460_v40, %v439_v4  ;;  %v472_v2 = vmul.f32 %v460_v40, %v440_v5 }
 0x1ba   : > { %515 = vst [vmem:[%s862_s9] sm:$0xff] %v507_v63  ;;  %516 = vst [vmem:[%s862_s9 + $0x8] sm:$0xff] %v508_v0  ;;  %v503_v7 = vadd.f32 %v492_v6, %v471_v1  ;;  %v504_v8 = vadd.f32 %v492_v6, %v472_v2 }
 0x1bc   : > { %v511_v9 = vmax.f32 %v503_v7, 0.0  ;;  %v512_v10 = vmax.f32 %v504_v8, 0.0 }
 0x1be   : > { %519 = vst [vmem:[%s862_s9 + $0x20] sm:$0xff] %v511_v9  ;;  %520 = vst [vmem:[%s862_s9 + $0x28] sm:$0xff] %v512_v10 }
 0x1e5   : > { %v382_v15 = vpop.xlane.xlu1 %381 }
 0x1e6   : > { %v386_v19 = vmul.f32 0.00390625, %v382_v15 }
 0x1e8   : > { %v414_v24 = vmul.f32 %v386_v19, %v386_v19  ;;  %v425_v33 = vsub.f32 %v808_v12, %v386_v19  ;;  %v426_v34 = vsub.f32 %v812_v14, %v386_v19 }
 0x1e9   : > { %v400_v18 = vpop.xlane.xlu1 %399 }
 0x1ea   : > { %v408_v20 = vmul.f32 0.00390625, %v400_v18 }
 0x1ec   : > { %v416_v21 = vsub.f32 %v408_v20, %v412_v17 }
 0x1ed   : > { %v406_v22 = vpop.xlane.xlu1 %405 }
 0x1ee   : > { %v428_v23 = vadd.f32 1e-05, %v416_v21  ;;  %v410_v25 = vmul.f32 0.00390625, %v406_v22 }
 0x1f0   : > { %663 = vrsqrt.f32 %v428_v23  ;;  %v418_v26 = vsub.f32 %v410_v25, %v414_v24 }
 0x1f1   : > { %v497_v12 = vpop.permute.xlu1 %496 }
 0x1f2   : > { %v430_v27 = vadd.f32 1e-05, %v418_v26 }
 0x1f4   : > { %665 = vrsqrt.f32 %v430_v27 }
 0x1fa   : > { %v664_v30 = vpop.eup %663 }
 0x1fb   : > { %v437_v31 = vmul.f32 %v664_v30, %v421_v28  ;;  %v438_v32 = vmul.f32 %v664_v30, %v422_v29 }
 0x1fd   : > { %v469_v36 = vmul.f32 %v850_v35, %v437_v31  ;;  %v470_v37 = vmul.f32 %v850_v35, %v438_v32 }
 0x1fe   : > { %v666_v38 = vpop.eup %665 }
 0x1ff   : > { %v501_v39 = vadd.f32 %v487_v56, %v469_v36  ;;  %v502_v11 = vadd.f32 %v487_v56, %v470_v37  ;;  %v441_v40 = vmul.f32 %v666_v38, %v425_v33  ;;  %v442_v13 = vmul.f32 %v666_v38, %v426_v34 }
 0x201   : > { %v509_v41 = vmax.f32 %v501_v39, 0.0  ;;  %v510_v42 = vmax.f32 %v502_v11, 0.0  ;;  %v473_v43 = vmul.f32 %v852_v46, %v441_v40  ;;  %v474_v44 = vmul.f32 %v852_v46, %v442_v13 }
 0x203   : > { %517 = vst [vmem:[%s862_s9 + $0x10] sm:$0xff] %v509_v41  ;;  %518 = vst [vmem:[%s862_s9 + $0x18] sm:$0xff] %v510_v42  ;;  %v505_v14 = vadd.f32 %v497_v12, %v473_v43  ;;  %v506_v45 = vadd.f32 %v497_v12, %v474_v44 }
 0x205   : > { %v513_v47 = vmax.f32 %v505_v14, 0.0  ;;  %v514_v35 = vmax.f32 %v506_v45, 0.0 }
 0x207   : > { %521 = vst [vmem:[%s862_s9 + $0x30] sm:$0xff] %v513_v47  ;;  %522 = vst [vmem:[%s862_s9 + $0x38] sm:$0xff] %v514_v35 }
 0x208 PF: > { %s15_s18 = sadd.s32 1, %s673_s18  }
 0x209   : > { %p12_p4 = scmp.ge.s32.totalorder %s15_s18, 4  }
 0x20b   :  { %14 = sbr.rel (!%p12_p4) target bundleno = 1 (0x1), region = 70 }

// kernel: solo_inference.79
= control target key start
LH: loop header
LB: loop body
LE: loop exit
PB: predicated region body
PF: predicated region fallthrough
CT: control target
= control target key end

     0   :  { %s754_s12 = smov 0   ;;  %s756_s13 = smov 0   ;;  %s839_s0 = inlined_call_operand.vmem [shape: f32[2,32,1024], index: 0, kind: input, shape index: {}]   ;;  %s840_s1 = inlined_call_operand.vmem [shape: f32[8,32], index: 1, kind: input, shape index: {}]   ;;  %s841_s2 = inlined_call_operand.vmem [shape: f32[8,1], index: 2, kind: input, shape index: {}]   ;;  %s842_s3 = inlined_call_operand.vmem [shape: f32[2,8,1024], index: 3, kind: output, shape index: {}]  }
   0x1   :  { %s758_s14 = smov 0  }
   0x2 LB: > { %s25_s15 = sadd.s32 1, %s726_s13  ;;  %p636_p0 = scmp.ge.s32.totalorder %s730_s14, 1  ;;  %s730_s14 = sphi %s758_s14, %s13_s14   ;;  %s726_s13 = sphi %s756_s13, %s844_s13   ;;  %s722_s12 = sphi %s754_s12, %s843_s12  }
   0x3   : > { %p27_p1 = scmp.ge.s32.totalorder %s25_s15, 2  ;;  %p158_p2 = scmp.lt.s32.totalorder %s730_s14, 3 }
   0x5   : > { %s846_s15 = smov (%p27_p1, %s25_s15), 0  ;;  %p159_p3 = pnand %p636_p0, %p158_p2 }
   0x6   : > { %p191_p4 = scmp.lt.s32.totalorder (!%p159_p3), %s722_s12, 1  ;;  %v243_v0 = vld [vmem:[%s841_s2] sm:$0xff] (!%p159_p3)  ;;  %v732_v1 = vmov (!%p159_p3), 0.0   ;;  %v733_v2 = vmov (!%p159_p3), 0   ;;  %vm249_vm0 = vcmask (!%p159_p3), 261120  }
   0x7   : > { %162 = sbr.rel (%p159_p3) target bundleno = 254 (0xfe), region = 32  ;;  %317 = vmatprep.mubr.f32.mxu0 (!%p159_p3), %v732_v1  ;;  %388 = vmatprep.mubr.f32.mxu1 (!%p159_p3), %v732_v1  ;;  %v210_v29 = vld [vmem:[%s840_s1] sm:$0xff] (!%p159_p3) }
   0x8   : > { %707 = vset.pattern.permute.xlu0 (!%p159_p3), %v733_v2 }
   0x9   : > { %246 = vperm.xlu0 (!%p159_p3), %707, %v243_v0  }
   0xe   : > { %s848_s12 = smov (!%p191_p4, %s722_s12), 1 }
   0xf   : > { %s647_s18 = sshll.u32 %s848_s12, 8  ;;  %s648_s24 = sshll.u32 %s848_s12, 6 }
  0x10   : > { %s783_s21 = scalar_lea.vmem %s839_s0, %s647_s18  ;;  %s208_s27 = scalar_lea.vmem %s842_s3, %s648_s24 }
  0x11   : > { %v212_v3 = vld [vmem:[%s783_s21 + $0x8] sm:$0xff]  ;;  %v214_v5 = vld [vmem:[%s783_s21 + $0x18] sm:$0xff]  ;;  %v211_v8 = vld [vmem:[%s783_s21] sm:$0xff] }
  0x12   : > { %v220_v4 = vld [vmem:[%s783_s21 + $0x48] sm:$0xff]  ;;  %v222_v7 = vld [vmem:[%s783_s21 + $0x58] sm:$0xff]  ;;  %v219_v9 = vld [vmem:[%s783_s21 + $0x40] sm:$0xff] }
  0x13   : > { %v649_v6 = vpack.c.bf16 %v220_v4, %v212_v3  ;;  %v657_v10 = vpack.c.bf16 %v222_v7, %v214_v5  ;;  %v651_v11 = vpack.c.bf16 %v219_v9, %v211_v8  ;;  %v213_v12 = vld [vmem:[%s783_s21 + $0x10] sm:$0xff]  ;;  %v228_v14 = vld [vmem:[%s783_s21 + $0x88] sm:$0xff]  ;;  %v230_v17 = vld [vmem:[%s783_s21 + $0x98] sm:$0xff] }
  0x14   : > { %v221_v13 = vld [vmem:[%s783_s21 + $0x50] sm:$0xff]  ;;  %v236_v16 = vld [vmem:[%s783_s21 + $0xc8] sm:$0xff]  ;;  %v238_v18 = vld [vmem:[%s783_s21 + $0xd8] sm:$0xff] }
  0x15   : > { %650 = vmatprep.subr.bf16.mxu0 %v649_v6  ;;  %v659_v15 = vpack.c.bf16 %v221_v13, %v213_v12  ;;  %658 = vmatprep.subr.bf16.mxu1 %v657_v10  ;;  %v653_v19 = vpack.c.bf16 %v236_v16, %v228_v14  ;;  %v661_v20 = vpack.c.bf16 %v238_v18, %v230_v17  ;;  %v227_v21 = vld [vmem:[%s783_s21 + $0x80] sm:$0xff]  ;;  %v229_v23 = vld [vmem:[%s783_s21 + $0x90] sm:$0xff]  ;;  %v216_v26 = vld [vmem:[%s783_s21 + $0x28] sm:$0xff] }
  0x16   : > { %652 = vmatpush1.bf16.msra.mxu0 %v651_v11  ;;  %v235_v22 = vld [vmem:[%s783_s21 + $0xc0] sm:$0xff]  ;;  %v237_v25 = vld [vmem:[%s783_s21 + $0xd0] sm:$0xff]  ;;  %v224_v27 = vld [vmem:[%s783_s21 + $0x68] sm:$0xff] }
  0x17   : > { %660 = vmatpush1.bf16.msra.mxu1 %v659_v15  ;;  %v655_v24 = vpack.c.bf16 %v235_v22, %v227_v21  ;;  %654 = vmatprep.subr.bf16.mxu0 %v653_v19  ;;  %v663_v28 = vpack.c.bf16 %v237_v25, %v229_v23  ;;  %v665_v30 = vpack.c.bf16 %v224_v27, %v216_v26  ;;  %v218_v31 = vld [vmem:[%s783_s21 + $0x38] sm:$0xff]  ;;  %v215_v33 = vld [vmem:[%s783_s21 + $0x20] sm:$0xff]  ;;  %v217_v36 = vld [vmem:[%s783_s21 + $0x30] sm:$0xff] }
  0x18   : > { %662 = vmatprep.subr.bf16.mxu1 %v661_v20  ;;  %v226_v32 = vld [vmem:[%s783_s21 + $0x78] sm:$0xff]  ;;  %v223_v35 = vld [vmem:[%s783_s21 + $0x60] sm:$0xff]  ;;  %v225_v37 = vld [vmem:[%s783_s21 + $0x70] sm:$0xff] }
  0x19   : > { %v673_v34 = vpack.c.bf16 %v226_v32, %v218_v31  ;;  %v667_v38 = vpack.c.bf16 %v223_v35, %v215_v33  ;;  %v232_v39 = vld [vmem:[%s783_s21 + $0xa8] sm:$0xff]  ;;  %v234_v41 = vld [vmem:[%s783_s21 + $0xb8] sm:$0xff]  ;;  %v675_v42 = vpack.c.bf16 %v225_v37, %v217_v36  ;;  %v231_v45 = vld [vmem:[%s783_s21 + $0xa0] sm:$0xff] }
  0x1a   : > { %656 = vmatpush1.bf16.msra.mxu0 %v655_v24  ;;  %v240_v40 = vld [vmem:[%s783_s21 + $0xe8] sm:$0xff]  ;;  %v242_v44 = vld [vmem:[%s783_s21 + $0xf8] sm:$0xff]  ;;  %v239_v46 = vld [vmem:[%s783_s21 + $0xe0] sm:$0xff] }
  0x1b   : > { %664 = vmatpush1.bf16.msra.mxu1 %v663_v28  ;;  %666 = vmatprep.subr.bf16.mxu0 %v665_v30  ;;  %v669_v43 = vpack.c.bf16 %v240_v40, %v232_v39  ;;  %v677_v47 = vpack.c.bf16 %v242_v44, %v234_v41  ;;  %v233_v48 = vld [vmem:[%s783_s21 + $0xb0] sm:$0xff]  ;;  %v671_v50 = vpack.c.bf16 %v239_v46, %v231_v45 }
  0x1c   : > { %674 = vmatprep.subr.bf16.mxu1 %v673_v34  ;;  %v241_v49 = vld [vmem:[%s783_s21 + $0xf0] sm:$0xff] }
  0x1d   : > { %641 = vmatmul.mubr.msk.f32.vlgmr.msra.gmra.mrb[0].mxu0 %vm249_vm0, %v210_v29  ;;  %v679_v51 = vpack.c.bf16 %v241_v49, %v233_v48 }
  0x1e   : > { %642 = vmatmul.mubr.msk.f32.vlgmr.msra.gmra.mrb[0].mxu1 %vm249_vm0, %v210_v29  ;;  %668 = vmatpush1.bf16.msra.mxu0 %v667_v38 }
  0x1f   : > { %676 = vmatpush1.bf16.msra.mxu1 %v675_v42  ;;  %670 = vmatprep.subr.bf16.mxu0 %v669_v43 }
  0x20   : > { %678 = vmatprep.subr.bf16.mxu1 %v677_v47  ;;  %459 = vmatprep.mubr.f32.mxu0 %v732_v1 }
  0x21   : > { %530 = vmatprep.mubr.f32.mxu1 %v732_v1 }
  0x22   : > { %672 = vmatpush1.bf16.msra.mxu0 %v671_v50 }
  0x23   : > { %680 = vmatpush1.bf16.msra.mxu1 %v679_v51 }
  0x25   : > { %643 = vmatmul.mubr.msk.f32.vlgmr.msra.gmra.mrb[2].mxu0 %vm249_vm0, %v210_v29 }
  0x26   : > { %644 = vmatmul.mubr.msk.f32.vlgmr.msra.gmra.mrb[2].mxu1 %vm249_vm0, %v210_v29 }
  0x88   : > { %v247_v52 = vpop.permute.xlu0 %246 }
  0xf0   : > { %v319_v53 = vpop.f32.mrb[0].mxu0 }
  0xf1   : > { %v390_v54 = vpop.f32.mrb[0].mxu1  ;;  %v320_v55 = vadd.f32 %v319_v53, %v247_v52  ;;  %v321_v56 = vpop.f32.mrb[1].mxu0 }
  0xf2   : > { %v391_v57 = vadd.f32 %v390_v54, %v247_v52  ;;  %v322_v58 = vadd.f32 %v321_v56, %v247_v52  ;;  %v392_v59 = vpop.f32.mrb[1].mxu1 }
  0xf3   : > { %537 = vst [vmem:[%s208_s27] sm:$0xff] %v320_v55  ;;  %v393_v60 = vadd.f32 %v392_v59, %v247_v52 }
  0xf4   : > { %539 = vst [vmem:[%s208_s27 + $0x10] sm:$0xff] %v391_v57  ;;  %538 = vst [vmem:[%s208_s27 + $0x8] sm:$0xff] %v322_v58 }
  0xf5   : > { %540 = vst [vmem:[%s208_s27 + $0x18] sm:$0xff] %v393_v60 }
  0xf8   : > { %v461_v61 = vpop.f32.mrb[2].mxu0 }
  0xf9   : > { %v462_v62 = vadd.f32 %v461_v61, %v247_v52  ;;  %v532_v63 = vpop.f32.mrb[2].mxu1  ;;  %v463_v0 = vpop.f32.mrb[3].mxu0 }
  0xfa   : > { %v533_v1 = vadd.f32 %v532_v63, %v247_v52  ;;  %v464_v2 = vadd.f32 %v463_v0, %v247_v52  ;;  %v534_v3 = vpop.f32.mrb[3].mxu1 }
  0xfb   : > { %541 = vst [vmem:[%s208_s27 + $0x20] sm:$0xff] %v462_v62  ;;  %v535_v4 = vadd.f32 %v534_v3, %v247_v52 }
  0xfc   : > { %543 = vst [vmem:[%s208_s27 + $0x30] sm:$0xff] %v533_v1  ;;  %542 = vst [vmem:[%s208_s27 + $0x28] sm:$0xff] %v464_v2 }
  0xfd   : > { %544 = vst [vmem:[%s208_s27 + $0x38] sm:$0xff] %v535_v4 }
  0xfe PF: > { %s13_s14 = sadd.s32 1, %s730_s14   ;;  %s843_s12 = smov %s726_s13 }
  0xff   : > { %p10_p5 = scmp.ge.s32.totalorder %s13_s14, 4   ;;  %s844_s13 = smov %s846_s15 }
 0x101   :  { %12 = sbr.rel (!%p10_p5) target bundleno = 2 (0x2), region = 62 }

// kernel: solo_inference.80
= control target key start
LH: loop header
LB: loop body
LE: loop exit
PB: predicated region body
PF: predicated region fallthrough
CT: control target
= control target key end

     0   :  { %s771_s9 = smov 0   ;;  %s907_s0 = inlined_call_operand.vmem [shape: f32[512,32], index: 0, kind: input, shape index: {}]   ;;  %s908_s1 = inlined_call_operand.vmem [shape: f32[32,128], index: 1, kind: input, shape index: {}]   ;;  %s909_s2 = inlined_call_operand.vmem [shape: f32[512,128], index: 2, kind: output, shape index: {}]  }
   0x1 LB: > { %s593_s10 = sadd.s32 4294967295, %s754_s9   ;;  %p597_p0 = scmp.ge.s32.totalorder %s754_s9, 1  ;;  %s754_s9 = sphi %s771_s9, %s12_s9  }
   0x2   : > { %p113_p1 = scmp.lt.s32.totalorder %s754_s9, 3 }
   0x4   : > { %p114_p2 = pnand %p597_p0, %p113_p1 }
   0x5   : > { %v179_v0 = vld [vmem:[%s908_s1] sm:$0xff] (!%p114_p2)  ;;  %v180_v1 = vld [vmem:[%s908_s1 + $0x8] sm:$0xff] (!%p114_p2)  ;;  %v181_v2 = vld [vmem:[%s908_s1 + $0x10] sm:$0xff] (!%p114_p2)  ;;  %s598_s17 = sshll.u32 (!%p114_p2), %s593_s10, 5  ;;  %vm183_vm0 = vcmask (!%p114_p2), 261120  }
   0x6   : > { %117 = sbr.rel (%p114_p2) target bundleno = 261 (0x105), region = 28  ;;  %v728_v3 = vpack.c.bf16 (!%p114_p2), %v180_v1, %v179_v0  ;;  %v182_v4 = vld [vmem:[%s908_s1 + $0x18] sm:$0xff] (!%p114_p2)  ;;  %p136_p3 = scmp.lt.s32.totalorder (!%p114_p2), %s598_s17, 63 }
   0x7   : > { %v732_v5 = vpack.c.bf16 (!%p114_p2), %v182_v4, %v181_v2 }
   0x8   : > { %729 = vmatprep.subr.bf16.mxu0 (!%p114_p2), %v728_v3  ;;  %736 = vmatprep.subr.bf16.mxu1 (!%p114_p2), %v728_v3 }
   0x9   : > { %731 = vmatpush3.bf16.msra.mxu0 (!%p114_p2), %v728_v3  ;;  %738 = vmatpush3.bf16.msra.mxu1 (!%p114_p2), %v728_v3 }
   0xa   : > { %733 = vmatprep.subr.bf16.mxu0 (!%p114_p2), %v732_v5  ;;  %737 = vmatprep.subr.bf16.mxu1 (!%p114_p2), %v732_v5 }
   0xd   : > { %s911_s17 = smov (!%p136_p3, %s598_s17), 63  ;;  %735 = vmatpush3.bf16.msra.mxu0 %v732_v5  ;;  %739 = vmatpush3.bf16.msra.mxu1 %v732_v5 }
   0xe   : > { %s599_s20 = sshll.u32 %s911_s17, 3 }
   0xf   : > { %s799_s23 = scalar_lea.vmem %s907_s0, %s599_s20  ;;  %s870_s26 = scalar_lea.vmem %s909_s2, %s599_s20 }
  0x10   : > { %v147_v6 = vld [vmem:[%s799_s23] sm:$0xff]  ;;  %v148_v8 = vld [vmem:[%s799_s23 + $0x8] sm:$0xff]  ;;  %v149_v10 = vld [vmem:[%s799_s23 + $0x10] sm:$0xff] }
  0x11   : > { %v163_v7 = vld [vmem:[%s799_s23 + $0x80] sm:$0xff]  ;;  %v164_v9 = vld [vmem:[%s799_s23 + $0x88] sm:$0xff]  ;;  %680 = vmatprep.mubr.msk.f32.mxu0 %vm183_vm0, %v147_v6  ;;  %v165_v11 = vld [vmem:[%s799_s23 + $0x90] sm:$0xff] }
  0x12   : > { %704 = vmatprep.mubr.msk.f32.mxu1 %vm183_vm0, %v163_v7  ;;  %681 = vmatmul.mubr.msk.f32.vlgmr.msra.gmra.mrb[0].mxu0 %vm183_vm0, %v148_v8  ;;  %v150_v12 = vld [vmem:[%s799_s23 + $0x18] sm:$0xff]  ;;  %v151_v14 = vld [vmem:[%s799_s23 + $0x20] sm:$0xff]  ;;  %v152_v16 = vld [vmem:[%s799_s23 + $0x28] sm:$0xff] }
  0x13   : > { %705 = vmatmul.mubr.msk.f32.vlgmr.msra.gmra.mrb[0].mxu1 %vm183_vm0, %v164_v9  ;;  %683 = vmatprep.mubr.msk.f32.mxu0 %vm183_vm0, %v149_v10  ;;  %v166_v13 = vld [vmem:[%s799_s23 + $0x98] sm:$0xff]  ;;  %v167_v15 = vld [vmem:[%s799_s23 + $0xa0] sm:$0xff]  ;;  %v168_v17 = vld [vmem:[%s799_s23 + $0xa8] sm:$0xff] }
  0x14   : > { %707 = vmatprep.mubr.msk.f32.mxu1 %vm183_vm0, %v165_v11  ;;  %v153_v18 = vld [vmem:[%s799_s23 + $0x30] sm:$0xff]  ;;  %v154_v20 = vld [vmem:[%s799_s23 + $0x38] sm:$0xff]  ;;  %v155_v22 = vld [vmem:[%s799_s23 + $0x40] sm:$0xff] }
  0x15   : > { %v169_v19 = vld [vmem:[%s799_s23 + $0xb0] sm:$0xff]  ;;  %v170_v21 = vld [vmem:[%s799_s23 + $0xb8] sm:$0xff]  ;;  %v171_v23 = vld [vmem:[%s799_s23 + $0xc0] sm:$0xff] }
  0x16   : > { %684 = vmatmul.mubr.msk.f32.gmra.mrb[2].mxu0 %vm183_vm0, %v150_v12  ;;  %v156_v24 = vld [vmem:[%s799_s23 + $0x48] sm:$0xff]  ;;  %v157_v26 = vld [vmem:[%s799_s23 + $0x50] sm:$0xff]  ;;  %v158_v28 = vld [vmem:[%s799_s23 + $0x58] sm:$0xff] }
  0x17   : > { %708 = vmatmul.mubr.msk.f32.gmra.mrb[2].mxu1 %vm183_vm0, %v166_v13  ;;  %686 = vmatprep.mubr.msk.f32.mxu0 %vm183_vm0, %v151_v14  ;;  %v172_v25 = vld [vmem:[%s799_s23 + $0xc8] sm:$0xff]  ;;  %v173_v27 = vld [vmem:[%s799_s23 + $0xd0] sm:$0xff]  ;;  %v174_v29 = vld [vmem:[%s799_s23 + $0xd8] sm:$0xff] }
  0x18   : > { %710 = vmatprep.mubr.msk.f32.mxu1 %vm183_vm0, %v167_v15  ;;  %v159_v30 = vld [vmem:[%s799_s23 + $0x60] sm:$0xff]  ;;  %v160_v32 = vld [vmem:[%s799_s23 + $0x68] sm:$0xff]  ;;  %v161_v34 = vld [vmem:[%s799_s23 + $0x70] sm:$0xff] }
  0x19   : > { %v175_v31 = vld [vmem:[%s799_s23 + $0xe0] sm:$0xff]  ;;  %v176_v33 = vld [vmem:[%s799_s23 + $0xe8] sm:$0xff]  ;;  %v177_v35 = vld [vmem:[%s799_s23 + $0xf0] sm:$0xff] }
  0x1a   : > { %687 = vmatmul.mubr.msk.f32.gmra.mrb[4].mxu0 %vm183_vm0, %v152_v16  ;;  %v162_v36 = vld [vmem:[%s799_s23 + $0x78] sm:$0xff] }
  0x1b   : > { %711 = vmatmul.mubr.msk.f32.gmra.mrb[4].mxu1 %vm183_vm0, %v168_v17  ;;  %689 = vmatprep.mubr.msk.f32.mxu0 %vm183_vm0, %v153_v18  ;;  %v178_v37 = vld [vmem:[%s799_s23 + $0xf8] sm:$0xff] }
  0x1c   : > { %713 = vmatprep.mubr.msk.f32.mxu1 %vm183_vm0, %v169_v19 }
  0x1e   : > { %690 = vmatmul.mubr.msk.f32.gmra.mrb[6].mxu0 %vm183_vm0, %v154_v20 }
  0x1f   : > { %714 = vmatmul.mubr.msk.f32.gmra.mrb[6].mxu1 %vm183_vm0, %v170_v21  ;;  %692 = vmatprep.mubr.msk.f32.mxu0 %vm183_vm0, %v155_v22 }
  0x20   : > { %716 = vmatprep.mubr.msk.f32.mxu1 %vm183_vm0, %v171_v23 }
  0x22   : > { %693 = vmatmul.mubr.msk.f32.gmra.mrb[8].mxu0 %vm183_vm0, %v156_v24 }
  0x23   : > { %717 = vmatmul.mubr.msk.f32.gmra.mrb[8].mxu1 %vm183_vm0, %v172_v25  ;;  %695 = vmatprep.mubr.msk.f32.mxu0 %vm183_vm0, %v157_v26 }
  0x24   : > { %719 = vmatprep.mubr.msk.f32.mxu1 %vm183_vm0, %v173_v27 }
  0x26   : > { %696 = vmatmul.mubr.msk.f32.gmra.mrb[10].mxu0 %vm183_vm0, %v158_v28 }
  0x27   : > { %720 = vmatmul.mubr.msk.f32.gmra.mrb[10].mxu1 %vm183_vm0, %v174_v29  ;;  %698 = vmatprep.mubr.msk.f32.mxu0 %vm183_vm0, %v159_v30 }
  0x28   : > { %722 = vmatprep.mubr.msk.f32.mxu1 %vm183_vm0, %v175_v31 }
  0x2a   : > { %699 = vmatmul.mubr.msk.f32.gmra.mrb[12].mxu0 %vm183_vm0, %v160_v32 }
  0x2b   : > { %723 = vmatmul.mubr.msk.f32.gmra.mrb[12].mxu1 %vm183_vm0, %v176_v33  ;;  %701 = vmatprep.mubr.msk.f32.mxu0 %vm183_vm0, %v161_v34 }
  0x2c   : > { %725 = vmatprep.mubr.msk.f32.mxu1 %vm183_vm0, %v177_v35 }
  0x2e   : > { %702 = vmatmul.mubr.msk.f32.gmra.mrb[14].mxu0 %vm183_vm0, %v162_v36 }
  0x2f   : > { %726 = vmatmul.mubr.msk.f32.gmra.mrb[14].mxu1 %vm183_vm0, %v178_v37 }
  0xe5   : > { %v682_v38 = vpop.f32.mrb[0].mxu0 }
  0xe6   : > { %v706_v39 = vpop.f32.mrb[0].mxu1  ;;  %506 = vst [vmem:[%s870_s26 + $0x8] sm:$0xff] %v682_v38  ;;  %v346_v40 = vpop.f32.mrb[1].mxu0 }
  0xe7   : > { %522 = vst [vmem:[%s870_s26 + $0x88] sm:$0xff] %v706_v39  ;;  %v426_v41 = vpop.f32.mrb[1].mxu1  ;;  %505 = vst [vmem:[%s870_s26] sm:$0xff] %v346_v40 }
  0xe8   : > { %521 = vst [vmem:[%s870_s26 + $0x80] sm:$0xff] %v426_v41 }
  0xe9   : > { %v685_v42 = vpop.f32.mrb[2].mxu0 }
  0xea   : > { %v709_v43 = vpop.f32.mrb[2].mxu1  ;;  %508 = vst [vmem:[%s870_s26 + $0x18] sm:$0xff] %v685_v42  ;;  %v356_v44 = vpop.f32.mrb[3].mxu0 }
  0xeb   : > { %524 = vst [vmem:[%s870_s26 + $0x98] sm:$0xff] %v709_v43  ;;  %v436_v45 = vpop.f32.mrb[3].mxu1  ;;  %507 = vst [vmem:[%s870_s26 + $0x10] sm:$0xff] %v356_v44 }
  0xec   : > { %523 = vst [vmem:[%s870_s26 + $0x90] sm:$0xff] %v436_v45 }
  0xed   : > { %v688_v46 = vpop.f32.mrb[4].mxu0 }
  0xee   : > { %v712_v47 = vpop.f32.mrb[4].mxu1  ;;  %510 = vst [vmem:[%s870_s26 + $0x28] sm:$0xff] %v688_v46  ;;  %v366_v48 = vpop.f32.mrb[5].mxu0 }
  0xef   : > { %526 = vst [vmem:[%s870_s26 + $0xa8] sm:$0xff] %v712_v47  ;;  %v446_v49 = vpop.f32.mrb[5].mxu1  ;;  %509 = vst [vmem:[%s870_s26 + $0x20] sm:$0xff] %v366_v48 }
  0xf0   : > { %525 = vst [vmem:[%s870_s26 + $0xa0] sm:$0xff] %v446_v49 }
  0xf1   : > { %v691_v50 = vpop.f32.mrb[6].mxu0 }
  0xf2   : > { %v715_v51 = vpop.f32.mrb[6].mxu1  ;;  %512 = vst [vmem:[%s870_s26 + $0x38] sm:$0xff] %v691_v50  ;;  %v376_v52 = vpop.f32.mrb[7].mxu0 }
  0xf3   : > { %528 = vst [vmem:[%s870_s26 + $0xb8] sm:$0xff] %v715_v51  ;;  %v456_v53 = vpop.f32.mrb[7].mxu1  ;;  %511 = vst [vmem:[%s870_s26 + $0x30] sm:$0xff] %v376_v52 }
  0xf4   : > { %527 = vst [vmem:[%s870_s26 + $0xb0] sm:$0xff] %v456_v53 }
  0xf5   : > { %v694_v54 = vpop.f32.mrb[8].mxu0 }
  0xf6   : > { %v718_v55 = vpop.f32.mrb[8].mxu1  ;;  %514 = vst [vmem:[%s870_s26 + $0x48] sm:$0xff] %v694_v54  ;;  %v386_v56 = vpop.f32.mrb[9].mxu0 }
  0xf7   : > { %530 = vst [vmem:[%s870_s26 + $0xc8] sm:$0xff] %v718_v55  ;;  %v466_v57 = vpop.f32.mrb[9].mxu1  ;;  %513 = vst [vmem:[%s870_s26 + $0x40] sm:$0xff] %v386_v56 }
  0xf8   : > { %529 = vst [vmem:[%s870_s26 + $0xc0] sm:$0xff] %v466_v57 }
  0xf9   : > { %v697_v58 = vpop.f32.mrb[10].mxu0 }
  0xfa   : > { %v721_v59 = vpop.f32.mrb[10].mxu1  ;;  %516 = vst [vmem:[%s870_s26 + $0x58] sm:$0xff] %v697_v58  ;;  %v396_v60 = vpop.f32.mrb[11].mxu0 }
  0xfb   : > { %532 = vst [vmem:[%s870_s26 + $0xd8] sm:$0xff] %v721_v59  ;;  %v476_v61 = vpop.f32.mrb[11].mxu1  ;;  %515 = vst [vmem:[%s870_s26 + $0x50] sm:$0xff] %v396_v60 }
  0xfc   : > { %531 = vst [vmem:[%s870_s26 + $0xd0] sm:$0xff] %v476_v61 }
  0xfd   : > { %v700_v62 = vpop.f32.mrb[12].mxu0 }
  0xfe   : > { %v724_v63 = vpop.f32.mrb[12].mxu1  ;;  %518 = vst [vmem:[%s870_s26 + $0x68] sm:$0xff] %v700_v62  ;;  %v406_v0 = vpop.f32.mrb[13].mxu0 }
  0xff   : > { %534 = vst [vmem:[%s870_s26 + $0xe8] sm:$0xff] %v724_v63  ;;  %v486_v1 = vpop.f32.mrb[13].mxu1  ;;  %517 = vst [vmem:[%s870_s26 + $0x60] sm:$0xff] %v406_v0 }
 0x100   : > { %533 = vst [vmem:[%s870_s26 + $0xe0] sm:$0xff] %v486_v1 }
 0x101   : > { %v703_v2 = vpop.f32.mrb[14].mxu0 }
 0x102   : > { %v727_v3 = vpop.f32.mrb[14].mxu1  ;;  %520 = vst [vmem:[%s870_s26 + $0x78] sm:$0xff] %v703_v2  ;;  %v416_v4 = vpop.f32.mrb[15].mxu0 }
 0x103   : > { %536 = vst [vmem:[%s870_s26 + $0xf8] sm:$0xff] %v727_v3  ;;  %v496_v5 = vpop.f32.mrb[15].mxu1  ;;  %519 = vst [vmem:[%s870_s26 + $0x70] sm:$0xff] %v416_v4 }
 0x104   : > { %535 = vst [vmem:[%s870_s26 + $0xf0] sm:$0xff] %v496_v5 }
 0x105 PF: > { %s12_s9 = sadd.s32 1, %s754_s9  }
 0x106   : > { %p9_p4 = scmp.ge.s32.totalorder %s12_s9, 4  }
 0x108   :  { %11 = sbr.rel (!%p9_p4) target bundleno = 1 (0x1), region = 58 }

// kernel: solo_inference.81
= control target key start
LH: loop header
LB: loop body
LE: loop exit
PB: predicated region body
PF: predicated region fallthrough
CT: control target
= control target key end

     0   :  { %s2067_s9 = smov 0   ;;  %s2491_s0 = inlined_call_operand.vmem [shape: f32[2048,32], index: 0, kind: input, shape index: {}]   ;;  %s2492_s1 = inlined_call_operand.vmem [shape: f32[32,128], index: 1, kind: input, shape index: {}]   ;;  %s2493_s2 = inlined_call_operand.vmem [shape: f32[2048,128], index: 2, kind: output, shape index: {}]  }
   0x1 LB: > { %s1553_s10 = sadd.s32 4294967295, %s2050_s9   ;;  %p1557_p0 = scmp.ge.s32.totalorder %s2050_s9, 1  ;;  %s2050_s9 = sphi %s2067_s9, %s12_s9  }
   0x2   : > { %p113_p1 = scmp.lt.s32.totalorder %s2050_s9, 3 }
   0x4   : > { %p114_p2 = pnand %p1557_p0, %p113_p1 }
   0x5   : > { %v275_v0 = vld [vmem:[%s2492_s1] sm:$0xff] (!%p114_p2)  ;;  %v276_v1 = vld [vmem:[%s2492_s1 + $0x8] sm:$0xff] (!%p114_p2)  ;;  %v277_v2 = vld [vmem:[%s2492_s1 + $0x10] sm:$0xff] (!%p114_p2)  ;;  %s1558_s17 = sshll.u32 (!%p114_p2), %s1553_s10, 7  ;;  %vm279_vm0 = vcmask (!%p114_p2), 261120  }
   0x6   : > { %117 = sbr.rel (%p114_p2) target bundleno = 357 (0x165), region = 28  ;;  %v2024_v3 = vpack.c.bf16 (!%p114_p2), %v276_v1, %v275_v0  ;;  %v278_v4 = vld [vmem:[%s2492_s1 + $0x18] sm:$0xff] (!%p114_p2)  ;;  %p136_p3 = scmp.lt.s32.totalorder (!%p114_p2), %s1558_s17, 255 }
   0x7   : > { %v2028_v5 = vpack.c.bf16 (!%p114_p2), %v278_v4, %v277_v2 }
   0x8   : > { %2025 = vmatprep.subr.bf16.mxu0 (!%p114_p2), %v2024_v3  ;;  %2032 = vmatprep.subr.bf16.mxu1 (!%p114_p2), %v2024_v3 }
   0x9   : > { %2027 = vmatpush3.bf16.msra.mxu0 (!%p114_p2), %v2024_v3  ;;  %2034 = vmatpush3.bf16.msra.mxu1 (!%p114_p2), %v2024_v3 }
   0xa   : > { %2029 = vmatprep.subr.bf16.mxu0 (!%p114_p2), %v2028_v5  ;;  %2033 = vmatprep.subr.bf16.mxu1 (!%p114_p2), %v2028_v5 }
   0xd   : > { %s2495_s17 = smov (!%p136_p3, %s1558_s17), 255  ;;  %2031 = vmatpush3.bf16.msra.mxu0 %v2028_v5  ;;  %2035 = vmatpush3.bf16.msra.mxu1 %v2028_v5 }
   0xe   : > { %s1559_s20 = sshll.u32 %s2495_s17, 3 }
   0xf   : > { %s2095_s23 = scalar_lea.vmem %s2491_s0, %s1559_s20  ;;  %s2358_s26 = scalar_lea.vmem %s2493_s2, %s1559_s20 }
  0x10   : > { %v147_v6 = vld [vmem:[%s2095_s23] sm:$0xff]  ;;  %v148_v8 = vld [vmem:[%s2095_s23 + $0x8] sm:$0xff]  ;;  %v149_v10 = vld [vmem:[%s2095_s23 + $0x10] sm:$0xff] }
  0x11   : > { %v211_v7 = vld [vmem:[%s2095_s23 + $0x200] sm:$0xff]  ;;  %v212_v9 = vld [vmem:[%s2095_s23 + $0x208] sm:$0xff]  ;;  %1832 = vmatprep.mubr.msk.f32.mxu0 %vm279_vm0, %v147_v6  ;;  %v213_v11 = vld [vmem:[%s2095_s23 + $0x210] sm:$0xff] }
  0x12   : > { %1928 = vmatprep.mubr.msk.f32.mxu1 %vm279_vm0, %v211_v7  ;;  %1833 = vmatmul.mubr.msk.f32.vlgmr.msra.gmra.mrb[0].mxu0 %vm279_vm0, %v148_v8  ;;  %v150_v12 = vld [vmem:[%s2095_s23 + $0x18] sm:$0xff]  ;;  %v151_v14 = vld [vmem:[%s2095_s23 + $0x20] sm:$0xff]  ;;  %v152_v16 = vld [vmem:[%s2095_s23 + $0x28] sm:$0xff] }
  0x13   : > { %1929 = vmatmul.mubr.msk.f32.vlgmr.msra.gmra.mrb[0].mxu1 %vm279_vm0, %v212_v9  ;;  %1835 = vmatprep.mubr.msk.f32.mxu0 %vm279_vm0, %v149_v10  ;;  %v214_v13 = vld [vmem:[%s2095_s23 + $0x218] sm:$0xff]  ;;  %v215_v15 = vld [vmem:[%s2095_s23 + $0x220] sm:$0xff]  ;;  %v216_v17 = vld [vmem:[%s2095_s23 + $0x228] sm:$0xff] }
  0x14   : > { %1931 = vmatprep.mubr.msk.f32.mxu1 %vm279_vm0, %v213_v11  ;;  %v153_v18 = vld [vmem:[%s2095_s23 + $0x30] sm:$0xff]  ;;  %v154_v20 = vld [vmem:[%s2095_s23 + $0x38] sm:$0xff]  ;;  %v155_v22 = vld [vmem:[%s2095_s23 + $0x40] sm:$0xff] }
  0x15   : > { %v217_v19 = vld [vmem:[%s2095_s23 + $0x230] sm:$0xff]  ;;  %v218_v21 = vld [vmem:[%s2095_s23 + $0x238] sm:$0xff]  ;;  %v219_v23 = vld [vmem:[%s2095_s23 + $0x240] sm:$0xff] }
  0x16   : > { %1836 = vmatmul.mubr.msk.f32.gmra.mrb[2].mxu0 %vm279_vm0, %v150_v12  ;;  %v156_v24 = vld [vmem:[%s2095_s23 + $0x48] sm:$0xff]  ;;  %v157_v26 = vld [vmem:[%s2095_s23 + $0x50] sm:$0xff]  ;;  %v158_v28 = vld [vmem:[%s2095_s23 + $0x58] sm:$0xff] }
  0x17   : > { %1932 = vmatmul.mubr.msk.f32.gmra.mrb[2].mxu1 %vm279_vm0, %v214_v13  ;;  %1838 = vmatprep.mubr.msk.f32.mxu0 %vm279_vm0, %v151_v14  ;;  %v220_v25 = vld [vmem:[%s2095_s23 + $0x248] sm:$0xff]  ;;  %v221_v27 = vld [vmem:[%s2095_s23 + $0x250] sm:$0xff]  ;;  %v222_v29 = vld [vmem:[%s2095_s23 + $0x258] sm:$0xff] }
  0x18   : > { %1934 = vmatprep.mubr.msk.f32.mxu1 %vm279_vm0, %v215_v15  ;;  %v159_v30 = vld [vmem:[%s2095_s23 + $0x60] sm:$0xff]  ;;  %v160_v32 = vld [vmem:[%s2095_s23 + $0x68] sm:$0xff]  ;;  %v161_v34 = vld [vmem:[%s2095_s23 + $0x70] sm:$0xff] }
  0x19   : > { %v223_v31 = vld [vmem:[%s2095_s23 + $0x260] sm:$0xff]  ;;  %v224_v33 = vld [vmem:[%s2095_s23 + $0x268] sm:$0xff]  ;;  %v225_v35 = vld [vmem:[%s2095_s23 + $0x270] sm:$0xff] }
  0x1a   : > { %1839 = vmatmul.mubr.msk.f32.gmra.mrb[4].mxu0 %vm279_vm0, %v152_v16  ;;  %v162_v36 = vld [vmem:[%s2095_s23 + $0x78] sm:$0xff]  ;;  %v163_v38 = vld [vmem:[%s2095_s23 + $0x80] sm:$0xff]  ;;  %v164_v40 = vld [vmem:[%s2095_s23 + $0x88] sm:$0xff] }
  0x1b   : > { %1935 = vmatmul.mubr.msk.f32.gmra.mrb[4].mxu1 %vm279_vm0, %v216_v17  ;;  %1841 = vmatprep.mubr.msk.f32.mxu0 %vm279_vm0, %v153_v18  ;;  %v226_v37 = vld [vmem:[%s2095_s23 + $0x278] sm:$0xff]  ;;  %v227_v39 = vld [vmem:[%s2095_s23 + $0x280] sm:$0xff]  ;;  %v228_v41 = vld [vmem:[%s2095_s23 + $0x288] sm:$0xff] }
  0x1c   : > { %1937 = vmatprep.mubr.msk.f32.mxu1 %vm279_vm0, %v217_v19  ;;  %v165_v42 = vld [vmem:[%s2095_s23 + $0x90] sm:$0xff]  ;;  %v166_v44 = vld [vmem:[%s2095_s23 + $0x98] sm:$0xff]  ;;  %v167_v46 = vld [vmem:[%s2095_s23 + $0xa0] sm:$0xff] }
  0x1d   : > { %v229_v43 = vld [vmem:[%s2095_s23 + $0x290] sm:$0xff]  ;;  %v230_v45 = vld [vmem:[%s2095_s23 + $0x298] sm:$0xff]  ;;  %v231_v47 = vld [vmem:[%s2095_s23 + $0x2a0] sm:$0xff] }
  0x1e   : > { %1842 = vmatmul.mubr.msk.f32.gmra.mrb[6].mxu0 %vm279_vm0, %v154_v20  ;;  %v168_v48 = vld [vmem:[%s2095_s23 + $0xa8] sm:$0xff]  ;;  %v169_v50 = vld [vmem:[%s2095_s23 + $0xb0] sm:$0xff]  ;;  %v170_v52 = vld [vmem:[%s2095_s23 + $0xb8] sm:$0xff] }
  0x1f   : > { %1938 = vmatmul.mubr.msk.f32.gmra.mrb[6].mxu1 %vm279_vm0, %v218_v21  ;;  %1844 = vmatprep.mubr.msk.f32.mxu0 %vm279_vm0, %v155_v22  ;;  %v232_v49 = vld [vmem:[%s2095_s23 + $0x2a8] sm:$0xff]  ;;  %v233_v51 = vld [vmem:[%s2095_s23 + $0x2b0] sm:$0xff]  ;;  %v234_v53 = vld [vmem:[%s2095_s23 + $0x2b8] sm:$0xff] }
  0x20   : > { %1940 = vmatprep.mubr.msk.f32.mxu1 %vm279_vm0, %v219_v23  ;;  %v171_v54 = vld [vmem:[%s2095_s23 + $0xc0] sm:$0xff]  ;;  %v172_v56 = vld [vmem:[%s2095_s23 + $0xc8] sm:$0xff]  ;;  %v173_v58 = vld [vmem:[%s2095_s23 + $0xd0] sm:$0xff] }
  0x21   : > { %v235_v55 = vld [vmem:[%s2095_s23 + $0x2c0] sm:$0xff]  ;;  %v236_v57 = vld [vmem:[%s2095_s23 + $0x2c8] sm:$0xff]  ;;  %v237_v59 = vld [vmem:[%s2095_s23 + $0x2d0] sm:$0xff] }
  0x22   : > { %1845 = vmatmul.mubr.msk.f32.gmra.mrb[8].mxu0 %vm279_vm0, %v156_v24  ;;  %v174_v60 = vld [vmem:[%s2095_s23 + $0xd8] sm:$0xff]  ;;  %v175_v62 = vld [vmem:[%s2095_s23 + $0xe0] sm:$0xff]  ;;  %v176_v0 = vld [vmem:[%s2095_s23 + $0xe8] sm:$0xff] }
  0x23   : > { %1941 = vmatmul.mubr.msk.f32.gmra.mrb[8].mxu1 %vm279_vm0, %v220_v25  ;;  %1847 = vmatprep.mubr.msk.f32.mxu0 %vm279_vm0, %v157_v26  ;;  %v238_v61 = vld [vmem:[%s2095_s23 + $0x2d8] sm:$0xff]  ;;  %v239_v63 = vld [vmem:[%s2095_s23 + $0x2e0] sm:$0xff]  ;;  %v240_v1 = vld [vmem:[%s2095_s23 + $0x2e8] sm:$0xff] }
  0x24   : > { %1943 = vmatprep.mubr.msk.f32.mxu1 %vm279_vm0, %v221_v27  ;;  %v177_v2 = vld [vmem:[%s2095_s23 + $0xf0] sm:$0xff]  ;;  %v178_v4 = vld [vmem:[%s2095_s23 + $0xf8] sm:$0xff]  ;;  %v179_v6 = vld [vmem:[%s2095_s23 + $0x100] sm:$0xff] }
  0x25   : > { %v241_v3 = vld [vmem:[%s2095_s23 + $0x2f0] sm:$0xff]  ;;  %v242_v5 = vld [vmem:[%s2095_s23 + $0x2f8] sm:$0xff]  ;;  %v243_v7 = vld [vmem:[%s2095_s23 + $0x300] sm:$0xff] }
  0x26   : > { %1848 = vmatmul.mubr.msk.f32.gmra.mrb[10].mxu0 %vm279_vm0, %v158_v28  ;;  %v180_v8 = vld [vmem:[%s2095_s23 + $0x108] sm:$0xff]  ;;  %v181_v10 = vld [vmem:[%s2095_s23 + $0x110] sm:$0xff]  ;;  %v182_v12 = vld [vmem:[%s2095_s23 + $0x118] sm:$0xff] }
  0x27   : > { %1944 = vmatmul.mubr.msk.f32.gmra.mrb[10].mxu1 %vm279_vm0, %v222_v29  ;;  %1850 = vmatprep.mubr.msk.f32.mxu0 %vm279_vm0, %v159_v30  ;;  %v244_v9 = vld [vmem:[%s2095_s23 + $0x308] sm:$0xff]  ;;  %v245_v11 = vld [vmem:[%s2095_s23 + $0x310] sm:$0xff]  ;;  %v246_v13 = vld [vmem:[%s2095_s23 + $0x318] sm:$0xff] }
  0x28   : > { %1946 = vmatprep.mubr.msk.f32.mxu1 %vm279_vm0, %v223_v31  ;;  %v183_v14 = vld [vmem:[%s2095_s23 + $0x120] sm:$0xff]  ;;  %v184_v16 = vld [vmem:[%s2095_s23 + $0x128] sm:$0xff]  ;;  %v185_v18 = vld [vmem:[%s2095_s23 + $0x130] sm:$0xff] }
  0x29   : > { %v247_v15 = vld [vmem:[%s2095_s23 + $0x320] sm:$0xff]  ;;  %v248_v17 = vld [vmem:[%s2095_s23 + $0x328] sm:$0xff]  ;;  %v249_v19 = vld [vmem:[%s2095_s23 + $0x330] sm:$0xff] }
  0x2a   : > { %1851 = vmatmul.mubr.msk.f32.gmra.mrb[12].mxu0 %vm279_vm0, %v160_v32  ;;  %v186_v20 = vld [vmem:[%s2095_s23 + $0x138] sm:$0xff]  ;;  %v187_v22 = vld [vmem:[%s2095_s23 + $0x140] sm:$0xff]  ;;  %v188_v24 = vld [vmem:[%s2095_s23 + $0x148] sm:$0xff] }
  0x2b   : > { %1947 = vmatmul.mubr.msk.f32.gmra.mrb[12].mxu1 %vm279_vm0, %v224_v33  ;;  %1853 = vmatprep.mubr.msk.f32.mxu0 %vm279_vm0, %v161_v34  ;;  %v250_v21 = vld [vmem:[%s2095_s23 + $0x338] sm:$0xff]  ;;  %v251_v23 = vld [vmem:[%s2095_s23 + $0x340] sm:$0xff]  ;;  %v252_v25 = vld [vmem:[%s2095_s23 + $0x348] sm:$0xff] }
  0x2c   : > { %1949 = vmatprep.mubr.msk.f32.mxu1 %vm279_vm0, %v225_v35  ;;  %v189_v26 = vld [vmem:[%s2095_s23 + $0x150] sm:$0xff]  ;;  %v190_v28 = vld [vmem:[%s2095_s23 + $0x158] sm:$0xff]  ;;  %v191_v30 = vld [vmem:[%s2095_s23 + $0x160] sm:$0xff] }
  0x2d   : > { %v253_v27 = vld [vmem:[%s2095_s23 + $0x350] sm:$0xff]  ;;  %v254_v29 = vld [vmem:[%s2095_s23 + $0x358] sm:$0xff]  ;;  %v255_v31 = vld [vmem:[%s2095_s23 + $0x360] sm:$0xff] }
  0x2e   : > { %1854 = vmatmul.mubr.msk.f32.gmra.mrb[14].mxu0 %vm279_vm0, %v162_v36  ;;  %v192_v32 = vld [vmem:[%s2095_s23 + $0x168] sm:$0xff]  ;;  %v193_v34 = vld [vmem:[%s2095_s23 + $0x170] sm:$0xff]  ;;  %v194_v36 = vld [vmem:[%s2095_s23 + $0x178] sm:$0xff] }
  0x2f   : > { %1950 = vmatmul.mubr.msk.f32.gmra.mrb[14].mxu1 %vm279_vm0, %v226_v37  ;;  %1856 = vmatprep.mubr.msk.f32.mxu0 %vm279_vm0, %v163_v38  ;;  %v256_v33 = vld [vmem:[%s2095_s23 + $0x368] sm:$0xff]  ;;  %v257_v35 = vld [vmem:[%s2095_s23 + $0x370] sm:$0xff]  ;;  %v258_v37 = vld [vmem:[%s2095_s23 + $0x378] sm:$0xff] }
  0x30   : > { %1952 = vmatprep.mubr.msk.f32.mxu1 %vm279_vm0, %v227_v39  ;;  %v195_v38 = vld [vmem:[%s2095_s23 + $0x180] sm:$0xff] }
  0x31   : > { %v259_v39 = vld [vmem:[%s2095_s23 + $0x380] sm:$0xff] }
  0x32   : > { %1857 = vmatmul.mubr.msk.f32.gmra.mrb[16].mxu0 %vm279_vm0, %v164_v40  ;;  %v196_v40 = vld [vmem:[%s2095_s23 + $0x188] sm:$0xff] }
  0x33   : > { %1953 = vmatmul.mubr.msk.f32.gmra.mrb[16].mxu1 %vm279_vm0, %v228_v41  ;;  %1859 = vmatprep.mubr.msk.f32.mxu0 %vm279_vm0, %v165_v42  ;;  %v260_v41 = vld [vmem:[%s2095_s23 + $0x388] sm:$0xff]  ;;  %v197_v42 = vld [vmem:[%s2095_s23 + $0x190] sm:$0xff] }
  0x34   : > { %1955 = vmatprep.mubr.msk.f32.mxu1 %vm279_vm0, %v229_v43  ;;  %v261_v43 = vld [vmem:[%s2095_s23 + $0x390] sm:$0xff] }
  0x36   : > { %1860 = vmatmul.mubr.msk.f32.gmra.mrb[18].mxu0 %vm279_vm0, %v166_v44  ;;  %v198_v44 = vld [vmem:[%s2095_s23 + $0x198] sm:$0xff] }
  0x37   : > { %1956 = vmatmul.mubr.msk.f32.gmra.mrb[18].mxu1 %vm279_vm0, %v230_v45  ;;  %1862 = vmatprep.mubr.msk.f32.mxu0 %vm279_vm0, %v167_v46  ;;  %v262_v45 = vld [vmem:[%s2095_s23 + $0x398] sm:$0xff]  ;;  %v199_v46 = vld [vmem:[%s2095_s23 + $0x1a0] sm:$0xff] }
  0x38   : > { %1958 = vmatprep.mubr.msk.f32.mxu1 %vm279_vm0, %v231_v47  ;;  %v263_v47 = vld [vmem:[%s2095_s23 + $0x3a0] sm:$0xff] }
  0x3a   : > { %1863 = vmatmul.mubr.msk.f32.gmra.mrb[20].mxu0 %vm279_vm0, %v168_v48  ;;  %v200_v48 = vld [vmem:[%s2095_s23 + $0x1a8] sm:$0xff] }
  0x3b   : > { %1959 = vmatmul.mubr.msk.f32.gmra.mrb[20].mxu1 %vm279_vm0, %v232_v49  ;;  %1865 = vmatprep.mubr.msk.f32.mxu0 %vm279_vm0, %v169_v50  ;;  %v264_v49 = vld [vmem:[%s2095_s23 + $0x3a8] sm:$0xff]  ;;  %v201_v50 = vld [vmem:[%s2095_s23 + $0x1b0] sm:$0xff] }
  0x3c   : > { %1961 = vmatprep.mubr.msk.f32.mxu1 %vm279_vm0, %v233_v51  ;;  %v265_v51 = vld [vmem:[%s2095_s23 + $0x3b0] sm:$0xff] }
  0x3e   : > { %1866 = vmatmul.mubr.msk.f32.gmra.mrb[22].mxu0 %vm279_vm0, %v170_v52  ;;  %v202_v52 = vld [vmem:[%s2095_s23 + $0x1b8] sm:$0xff] }
  0x3f   : > { %1962 = vmatmul.mubr.msk.f32.gmra.mrb[22].mxu1 %vm279_vm0, %v234_v53  ;;  %1868 = vmatprep.mubr.msk.f32.mxu0 %vm279_vm0, %v171_v54  ;;  %v266_v53 = vld [vmem:[%s2095_s23 + $0x3b8] sm:$0xff]  ;;  %v203_v54 = vld [vmem:[%s2095_s23 + $0x1c0] sm:$0xff] }
  0x40   : > { %1964 = vmatprep.mubr.msk.f32.mxu1 %vm279_vm0, %v235_v55  ;;  %v267_v55 = vld [vmem:[%s2095_s23 + $0x3c0] sm:$0xff] }
  0x42   : > { %1869 = vmatmul.mubr.msk.f32.gmra.mrb[24].mxu0 %vm279_vm0, %v172_v56  ;;  %v204_v56 = vld [vmem:[%s2095_s23 + $0x1c8] sm:$0xff] }
  0x43   : > { %1965 = vmatmul.mubr.msk.f32.gmra.mrb[24].mxu1 %vm279_vm0, %v236_v57  ;;  %1871 = vmatprep.mubr.msk.f32.mxu0 %vm279_vm0, %v173_v58  ;;  %v268_v57 = vld [vmem:[%s2095_s23 + $0x3c8] sm:$0xff]  ;;  %v205_v58 = vld [vmem:[%s2095_s23 + $0x1d0] sm:$0xff] }
  0x44   : > { %1967 = vmatprep.mubr.msk.f32.mxu1 %vm279_vm0, %v237_v59  ;;  %v269_v59 = vld [vmem:[%s2095_s23 + $0x3d0] sm:$0xff] }
  0x46   : > { %1872 = vmatmul.mubr.msk.f32.gmra.mrb[26].mxu0 %vm279_vm0, %v174_v60  ;;  %v206_v60 = vld [vmem:[%s2095_s23 + $0x1d8] sm:$0xff] }
  0x47   : > { %1968 = vmatmul.mubr.msk.f32.gmra.mrb[26].mxu1 %vm279_vm0, %v238_v61  ;;  %1874 = vmatprep.mubr.msk.f32.mxu0 %vm279_vm0, %v175_v62  ;;  %v270_v61 = vld [vmem:[%s2095_s23 + $0x3d8] sm:$0xff]  ;;  %v207_v62 = vld [vmem:[%s2095_s23 + $0x1e0] sm:$0xff] }
  0x48   : > { %1970 = vmatprep.mubr.msk.f32.mxu1 %vm279_vm0, %v239_v63  ;;  %v271_v63 = vld [vmem:[%s2095_s23 + $0x3e0] sm:$0xff] }
  0x4a   : > { %1875 = vmatmul.mubr.msk.f32.gmra.mrb[28].mxu0 %vm279_vm0, %v176_v0  ;;  %v208_v0 = vld [vmem:[%s2095_s23 + $0x1e8] sm:$0xff] }
  0x4b   : > { %1971 = vmatmul.mubr.msk.f32.gmra.mrb[28].mxu1 %vm279_vm0, %v240_v1  ;;  %1877 = vmatprep.mubr.msk.f32.mxu0 %vm279_vm0, %v177_v2  ;;  %v272_v1 = vld [vmem:[%s2095_s23 + $0x3e8] sm:$0xff]  ;;  %v209_v2 = vld [vmem:[%s2095_s23 + $0x1f0] sm:$0xff] }
  0x4c   : > { %1973 = vmatprep.mubr.msk.f32.mxu1 %vm279_vm0, %v241_v3  ;;  %v273_v3 = vld [vmem:[%s2095_s23 + $0x3f0] sm:$0xff] }
  0x4e   : > { %1878 = vmatmul.mubr.msk.f32.gmra.mrb[30].mxu0 %vm279_vm0, %v178_v4  ;;  %v210_v4 = vld [vmem:[%s2095_s23 + $0x1f8] sm:$0xff] }
  0x4f   : > { %1974 = vmatmul.mubr.msk.f32.gmra.mrb[30].mxu1 %vm279_vm0, %v242_v5  ;;  %1880 = vmatprep.mubr.msk.f32.mxu0 %vm279_vm0, %v179_v6  ;;  %v274_v5 = vld [vmem:[%s2095_s23 + $0x3f8] sm:$0xff] }
  0x50   : > { %1976 = vmatprep.mubr.msk.f32.mxu1 %vm279_vm0, %v243_v7 }
  0x52   : > { %1881 = vmatmul.mubr.msk.f32.gmra.mrb[32].mxu0 %vm279_vm0, %v180_v8 }
  0x53   : > { %1977 = vmatmul.mubr.msk.f32.gmra.mrb[32].mxu1 %vm279_vm0, %v244_v9  ;;  %1883 = vmatprep.mubr.msk.f32.mxu0 %vm279_vm0, %v181_v10 }
  0x54   : > { %1979 = vmatprep.mubr.msk.f32.mxu1 %vm279_vm0, %v245_v11 }
  0x56   : > { %1884 = vmatmul.mubr.msk.f32.gmra.mrb[34].mxu0 %vm279_vm0, %v182_v12 }
  0x57   : > { %1980 = vmatmul.mubr.msk.f32.gmra.mrb[34].mxu1 %vm279_vm0, %v246_v13  ;;  %1886 = vmatprep.mubr.msk.f32.mxu0 %vm279_vm0, %v183_v14 }
  0x58   : > { %1982 = vmatprep.mubr.msk.f32.mxu1 %vm279_vm0, %v247_v15 }
  0x5a   : > { %1887 = vmatmul.mubr.msk.f32.gmra.mrb[36].mxu0 %vm279_vm0, %v184_v16 }
  0x5b   : > { %1983 = vmatmul.mubr.msk.f32.gmra.mrb[36].mxu1 %vm279_vm0, %v248_v17  ;;  %1889 = vmatprep.mubr.msk.f32.mxu0 %vm279_vm0, %v185_v18 }
  0x5c   : > { %1985 = vmatprep.mubr.msk.f32.mxu1 %vm279_vm0, %v249_v19 }
  0x5e   : > { %1890 = vmatmul.mubr.msk.f32.gmra.mrb[38].mxu0 %vm279_vm0, %v186_v20 }
  0x5f   : > { %1986 = vmatmul.mubr.msk.f32.gmra.mrb[38].mxu1 %vm279_vm0, %v250_v21  ;;  %1892 = vmatprep.mubr.msk.f32.mxu0 %vm279_vm0, %v187_v22 }
  0x60   : > { %1988 = vmatprep.mubr.msk.f32.mxu1 %vm279_vm0, %v251_v23 }
  0x62   : > { %1893 = vmatmul.mubr.msk.f32.gmra.mrb[40].mxu0 %vm279_vm0, %v188_v24 }
  0x63   : > { %1989 = vmatmul.mubr.msk.f32.gmra.mrb[40].mxu1 %vm279_vm0, %v252_v25  ;;  %1895 = vmatprep.mubr.msk.f32.mxu0 %vm279_vm0, %v189_v26 }
  0x64   : > { %1991 = vmatprep.mubr.msk.f32.mxu1 %vm279_vm0, %v253_v27 }
  0x66   : > { %1896 = vmatmul.mubr.msk.f32.gmra.mrb[42].mxu0 %vm279_vm0, %v190_v28 }
  0x67   : > { %1992 = vmatmul.mubr.msk.f32.gmra.mrb[42].mxu1 %vm279_vm0, %v254_v29  ;;  %1898 = vmatprep.mubr.msk.f32.mxu0 %vm279_vm0, %v191_v30 }
  0x68   : > { %1994 = vmatprep.mubr.msk.f32.mxu1 %vm279_vm0, %v255_v31 }
  0x6a   : > { %1899 = vmatmul.mubr.msk.f32.gmra.mrb[44].mxu0 %vm279_vm0, %v192_v32 }
  0x6b   : > { %1995 = vmatmul.mubr.msk.f32.gmra.mrb[44].mxu1 %vm279_vm0, %v256_v33  ;;  %1901 = vmatprep.mubr.msk.f32.mxu0 %vm279_vm0, %v193_v34 }
  0x6c   : > { %1997 = vmatprep.mubr.msk.f32.mxu1 %vm279_vm0, %v257_v35 }
  0x6e   : > { %1902 = vmatmul.mubr.msk.f32.gmra.mrb[46].mxu0 %vm279_vm0, %v194_v36 }
  0x6f   : > { %1998 = vmatmul.mubr.msk.f32.gmra.mrb[46].mxu1 %vm279_vm0, %v258_v37  ;;  %1904 = vmatprep.mubr.msk.f32.mxu0 %vm279_vm0, %v195_v38 }
  0x70   : > { %2000 = vmatprep.mubr.msk.f32.mxu1 %vm279_vm0, %v259_v39 }
  0x72   : > { %1905 = vmatmul.mubr.msk.f32.gmra.mrb[48].mxu0 %vm279_vm0, %v196_v40 }
  0x73   : > { %2001 = vmatmul.mubr.msk.f32.gmra.mrb[48].mxu1 %vm279_vm0, %v260_v41  ;;  %1907 = vmatprep.mubr.msk.f32.mxu0 %vm279_vm0, %v197_v42 }
  0x74   : > { %2003 = vmatprep.mubr.msk.f32.mxu1 %vm279_vm0, %v261_v43 }
  0x76   : > { %1908 = vmatmul.mubr.msk.f32.gmra.mrb[50].mxu0 %vm279_vm0, %v198_v44 }
  0x77   : > { %2004 = vmatmul.mubr.msk.f32.gmra.mrb[50].mxu1 %vm279_vm0, %v262_v45  ;;  %1910 = vmatprep.mubr.msk.f32.mxu0 %vm279_vm0, %v199_v46 }
  0x78   : > { %2006 = vmatprep.mubr.msk.f32.mxu1 %vm279_vm0, %v263_v47 }
  0x7a   : > { %1911 = vmatmul.mubr.msk.f32.gmra.mrb[52].mxu0 %vm279_vm0, %v200_v48 }
  0x7b   : > { %2007 = vmatmul.mubr.msk.f32.gmra.mrb[52].mxu1 %vm279_vm0, %v264_v49  ;;  %1913 = vmatprep.mubr.msk.f32.mxu0 %vm279_vm0, %v201_v50 }
  0x7c   : > { %2009 = vmatprep.mubr.msk.f32.mxu1 %vm279_vm0, %v265_v51 }
  0x7e   : > { %1914 = vmatmul.mubr.msk.f32.gmra.mrb[54].mxu0 %vm279_vm0, %v202_v52 }
  0x7f   : > { %2010 = vmatmul.mubr.msk.f32.gmra.mrb[54].mxu1 %vm279_vm0, %v266_v53  ;;  %1916 = vmatprep.mubr.msk.f32.mxu0 %vm279_vm0, %v203_v54 }
  0x80   : > { %2012 = vmatprep.mubr.msk.f32.mxu1 %vm279_vm0, %v267_v55 }
  0x82   : > { %1917 = vmatmul.mubr.msk.f32.gmra.mrb[56].mxu0 %vm279_vm0, %v204_v56 }
  0x83   : > { %2013 = vmatmul.mubr.msk.f32.gmra.mrb[56].mxu1 %vm279_vm0, %v268_v57  ;;  %1919 = vmatprep.mubr.msk.f32.mxu0 %vm279_vm0, %v205_v58 }
  0x84   : > { %2015 = vmatprep.mubr.msk.f32.mxu1 %vm279_vm0, %v269_v59 }
  0x86   : > { %1920 = vmatmul.mubr.msk.f32.gmra.mrb[58].mxu0 %vm279_vm0, %v206_v60 }
  0x87   : > { %2016 = vmatmul.mubr.msk.f32.gmra.mrb[58].mxu1 %vm279_vm0, %v270_v61  ;;  %1922 = vmatprep.mubr.msk.f32.mxu0 %vm279_vm0, %v207_v62 }
  0x88   : > { %2018 = vmatprep.mubr.msk.f32.mxu1 %vm279_vm0, %v271_v63 }
  0x8a   : > { %1923 = vmatmul.mubr.msk.f32.gmra.mrb[60].mxu0 %vm279_vm0, %v208_v0 }
  0x8b   : > { %2019 = vmatmul.mubr.msk.f32.gmra.mrb[60].mxu1 %vm279_vm0, %v272_v1  ;;  %1925 = vmatprep.mubr.msk.f32.mxu0 %vm279_vm0, %v209_v2 }
  0x8c   : > { %2021 = vmatprep.mubr.msk.f32.mxu1 %vm279_vm0, %v273_v3 }
  0x8e   : > { %1926 = vmatmul.mubr.msk.f32.gmra.mrb[62].mxu0 %vm279_vm0, %v210_v4 }
  0x8f   : > { %2022 = vmatmul.mubr.msk.f32.gmra.mrb[62].mxu1 %vm279_vm0, %v274_v5 }
  0xe5   : > { %v1834_v6 = vpop.f32.mrb[0].mxu0 }
  0xe6   : > { %v1930_v7 = vpop.f32.mrb[0].mxu1  ;;  %1370 = vst [vmem:[%s2358_s26 + $0x8] sm:$0xff] %v1834_v6  ;;  %v730_v8 = vpop.f32.mrb[1].mxu0 }
  0xe7   : > { %1434 = vst [vmem:[%s2358_s26 + $0x208] sm:$0xff] %v1930_v7  ;;  %v1050_v9 = vpop.f32.mrb[1].mxu1  ;;  %1369 = vst [vmem:[%s2358_s26] sm:$0xff] %v730_v8 }
  0xe8   : > { %1433 = vst [vmem:[%s2358_s26 + $0x200] sm:$0xff] %v1050_v9 }
  0xe9   : > { %v1837_v10 = vpop.f32.mrb[2].mxu0 }
  0xea   : > { %v1933_v11 = vpop.f32.mrb[2].mxu1  ;;  %1372 = vst [vmem:[%s2358_s26 + $0x18] sm:$0xff] %v1837_v10  ;;  %v740_v12 = vpop.f32.mrb[3].mxu0 }
  0xeb   : > { %1436 = vst [vmem:[%s2358_s26 + $0x218] sm:$0xff] %v1933_v11  ;;  %v1060_v13 = vpop.f32.mrb[3].mxu1  ;;  %1371 = vst [vmem:[%s2358_s26 + $0x10] sm:$0xff] %v740_v12 }
  0xec   : > { %1435 = vst [vmem:[%s2358_s26 + $0x210] sm:$0xff] %v1060_v13 }
  0xed   : > { %v1840_v14 = vpop.f32.mrb[4].mxu0 }
  0xee   : > { %v1936_v15 = vpop.f32.mrb[4].mxu1  ;;  %1374 = vst [vmem:[%s2358_s26 + $0x28] sm:$0xff] %v1840_v14  ;;  %v750_v16 = vpop.f32.mrb[5].mxu0 }
  0xef   : > { %1438 = vst [vmem:[%s2358_s26 + $0x228] sm:$0xff] %v1936_v15  ;;  %v1070_v17 = vpop.f32.mrb[5].mxu1  ;;  %1373 = vst [vmem:[%s2358_s26 + $0x20] sm:$0xff] %v750_v16 }
  0xf0   : > { %1437 = vst [vmem:[%s2358_s26 + $0x220] sm:$0xff] %v1070_v17 }
  0xf1   : > { %v1843_v18 = vpop.f32.mrb[6].mxu0 }
  0xf2   : > { %v1939_v19 = vpop.f32.mrb[6].mxu1  ;;  %1376 = vst [vmem:[%s2358_s26 + $0x38] sm:$0xff] %v1843_v18  ;;  %v760_v20 = vpop.f32.mrb[7].mxu0 }
  0xf3   : > { %1440 = vst [vmem:[%s2358_s26 + $0x238] sm:$0xff] %v1939_v19  ;;  %v1080_v21 = vpop.f32.mrb[7].mxu1  ;;  %1375 = vst [vmem:[%s2358_s26 + $0x30] sm:$0xff] %v760_v20 }
  0xf4   : > { %1439 = vst [vmem:[%s2358_s26 + $0x230] sm:$0xff] %v1080_v21 }
  0xf5   : > { %v1846_v22 = vpop.f32.mrb[8].mxu0 }
  0xf6   : > { %v1942_v23 = vpop.f32.mrb[8].mxu1  ;;  %1378 = vst [vmem:[%s2358_s26 + $0x48] sm:$0xff] %v1846_v22  ;;  %v770_v24 = vpop.f32.mrb[9].mxu0 }
  0xf7   : > { %1442 = vst [vmem:[%s2358_s26 + $0x248] sm:$0xff] %v1942_v23  ;;  %v1090_v25 = vpop.f32.mrb[9].mxu1  ;;  %1377 = vst [vmem:[%s2358_s26 + $0x40] sm:$0xff] %v770_v24 }
  0xf8   : > { %1441 = vst [vmem:[%s2358_s26 + $0x240] sm:$0xff] %v1090_v25 }
  0xf9   : > { %v1849_v26 = vpop.f32.mrb[10].mxu0 }
  0xfa   : > { %v1945_v27 = vpop.f32.mrb[10].mxu1  ;;  %1380 = vst [vmem:[%s2358_s26 + $0x58] sm:$0xff] %v1849_v26  ;;  %v780_v28 = vpop.f32.mrb[11].mxu0 }
  0xfb   : > { %1444 = vst [vmem:[%s2358_s26 + $0x258] sm:$0xff] %v1945_v27  ;;  %v1100_v29 = vpop.f32.mrb[11].mxu1  ;;  %1379 = vst [vmem:[%s2358_s26 + $0x50] sm:$0xff] %v780_v28 }
  0xfc   : > { %1443 = vst [vmem:[%s2358_s26 + $0x250] sm:$0xff] %v1100_v29 }
  0xfd   : > { %v1852_v30 = vpop.f32.mrb[12].mxu0 }
  0xfe   : > { %v1948_v31 = vpop.f32.mrb[12].mxu1  ;;  %1382 = vst [vmem:[%s2358_s26 + $0x68] sm:$0xff] %v1852_v30  ;;  %v790_v32 = vpop.f32.mrb[13].mxu0 }
  0xff   : > { %1446 = vst [vmem:[%s2358_s26 + $0x268] sm:$0xff] %v1948_v31  ;;  %v1110_v33 = vpop.f32.mrb[13].mxu1  ;;  %1381 = vst [vmem:[%s2358_s26 + $0x60] sm:$0xff] %v790_v32 }
 0x100   : > { %1445 = vst [vmem:[%s2358_s26 + $0x260] sm:$0xff] %v1110_v33 }
 0x101   : > { %v1855_v34 = vpop.f32.mrb[14].mxu0 }
 0x102   : > { %v1951_v35 = vpop.f32.mrb[14].mxu1  ;;  %1384 = vst [vmem:[%s2358_s26 + $0x78] sm:$0xff] %v1855_v34  ;;  %v800_v36 = vpop.f32.mrb[15].mxu0 }
 0x103   : > { %1448 = vst [vmem:[%s2358_s26 + $0x278] sm:$0xff] %v1951_v35  ;;  %v1120_v37 = vpop.f32.mrb[15].mxu1  ;;  %1383 = vst [vmem:[%s2358_s26 + $0x70] sm:$0xff] %v800_v36 }
 0x104   : > { %1447 = vst [vmem:[%s2358_s26 + $0x270] sm:$0xff] %v1120_v37 }
 0x105   : > { %v1858_v38 = vpop.f32.mrb[16].mxu0 }
 0x106   : > { %v1954_v39 = vpop.f32.mrb[16].mxu1  ;;  %1386 = vst [vmem:[%s2358_s26 + $0x88] sm:$0xff] %v1858_v38  ;;  %v810_v40 = vpop.f32.mrb[17].mxu0 }
 0x107   : > { %1450 = vst [vmem:[%s2358_s26 + $0x288] sm:$0xff] %v1954_v39  ;;  %v1130_v41 = vpop.f32.mrb[17].mxu1  ;;  %1385 = vst [vmem:[%s2358_s26 + $0x80] sm:$0xff] %v810_v40 }
 0x108   : > { %1449 = vst [vmem:[%s2358_s26 + $0x280] sm:$0xff] %v1130_v41 }
 0x109   : > { %v1861_v42 = vpop.f32.mrb[18].mxu0 }
 0x10a   : > { %v1957_v43 = vpop.f32.mrb[18].mxu1  ;;  %1388 = vst [vmem:[%s2358_s26 + $0x98] sm:$0xff] %v1861_v42  ;;  %v820_v44 = vpop.f32.mrb[19].mxu0 }
 0x10b   : > { %1452 = vst [vmem:[%s2358_s26 + $0x298] sm:$0xff] %v1957_v43  ;;  %v1140_v45 = vpop.f32.mrb[19].mxu1  ;;  %1387 = vst [vmem:[%s2358_s26 + $0x90] sm:$0xff] %v820_v44 }
 0x10c   : > { %1451 = vst [vmem:[%s2358_s26 + $0x290] sm:$0xff] %v1140_v45 }
 0x10d   : > { %v1864_v46 = vpop.f32.mrb[20].mxu0 }
 0x10e   : > { %v1960_v47 = vpop.f32.mrb[20].mxu1  ;;  %1390 = vst [vmem:[%s2358_s26 + $0xa8] sm:$0xff] %v1864_v46  ;;  %v830_v48 = vpop.f32.mrb[21].mxu0 }
 0x10f   : > { %1454 = vst [vmem:[%s2358_s26 + $0x2a8] sm:$0xff] %v1960_v47  ;;  %v1150_v49 = vpop.f32.mrb[21].mxu1  ;;  %1389 = vst [vmem:[%s2358_s26 + $0xa0] sm:$0xff] %v830_v48 }
 0x110   : > { %1453 = vst [vmem:[%s2358_s26 + $0x2a0] sm:$0xff] %v1150_v49 }
 0x111   : > { %v1867_v50 = vpop.f32.mrb[22].mxu0 }
 0x112   : > { %v1963_v51 = vpop.f32.mrb[22].mxu1  ;;  %1392 = vst [vmem:[%s2358_s26 + $0xb8] sm:$0xff] %v1867_v50  ;;  %v840_v52 = vpop.f32.mrb[23].mxu0 }
 0x113   : > { %1456 = vst [vmem:[%s2358_s26 + $0x2b8] sm:$0xff] %v1963_v51  ;;  %v1160_v53 = vpop.f32.mrb[23].mxu1  ;;  %1391 = vst [vmem:[%s2358_s26 + $0xb0] sm:$0xff] %v840_v52 }
 0x114   : > { %1455 = vst [vmem:[%s2358_s26 + $0x2b0] sm:$0xff] %v1160_v53 }
 0x115   : > { %v1870_v54 = vpop.f32.mrb[24].mxu0 }
 0x116   : > { %v1966_v55 = vpop.f32.mrb[24].mxu1  ;;  %1394 = vst [vmem:[%s2358_s26 + $0xc8] sm:$0xff] %v1870_v54  ;;  %v850_v56 = vpop.f32.mrb[25].mxu0 }
 0x117   : > { %1458 = vst [vmem:[%s2358_s26 + $0x2c8] sm:$0xff] %v1966_v55  ;;  %v1170_v57 = vpop.f32.mrb[25].mxu1  ;;  %1393 = vst [vmem:[%s2358_s26 + $0xc0] sm:$0xff] %v850_v56 }
 0x118   : > { %1457 = vst [vmem:[%s2358_s26 + $0x2c0] sm:$0xff] %v1170_v57 }
 0x119   : > { %v1873_v58 = vpop.f32.mrb[26].mxu0 }
 0x11a   : > { %v1969_v59 = vpop.f32.mrb[26].mxu1  ;;  %1396 = vst [vmem:[%s2358_s26 + $0xd8] sm:$0xff] %v1873_v58  ;;  %v860_v60 = vpop.f32.mrb[27].mxu0 }
 0x11b   : > { %1460 = vst [vmem:[%s2358_s26 + $0x2d8] sm:$0xff] %v1969_v59  ;;  %v1180_v61 = vpop.f32.mrb[27].mxu1  ;;  %1395 = vst [vmem:[%s2358_s26 + $0xd0] sm:$0xff] %v860_v60 }
 0x11c   : > { %1459 = vst [vmem:[%s2358_s26 + $0x2d0] sm:$0xff] %v1180_v61 }
 0x11d   : > { %v1876_v62 = vpop.f32.mrb[28].mxu0 }
 0x11e   : > { %v1972_v63 = vpop.f32.mrb[28].mxu1  ;;  %1398 = vst [vmem:[%s2358_s26 + $0xe8] sm:$0xff] %v1876_v62  ;;  %v870_v0 = vpop.f32.mrb[29].mxu0 }
 0x11f   : > { %1462 = vst [vmem:[%s2358_s26 + $0x2e8] sm:$0xff] %v1972_v63  ;;  %v1190_v1 = vpop.f32.mrb[29].mxu1  ;;  %1397 = vst [vmem:[%s2358_s26 + $0xe0] sm:$0xff] %v870_v0 }
 0x120   : > { %1461 = vst [vmem:[%s2358_s26 + $0x2e0] sm:$0xff] %v1190_v1 }
 0x121   : > { %v1879_v2 = vpop.f32.mrb[30].mxu0 }
 0x122   : > { %v1975_v3 = vpop.f32.mrb[30].mxu1  ;;  %1400 = vst [vmem:[%s2358_s26 + $0xf8] sm:$0xff] %v1879_v2  ;;  %v880_v4 = vpop.f32.mrb[31].mxu0 }
 0x123   : > { %1464 = vst [vmem:[%s2358_s26 + $0x2f8] sm:$0xff] %v1975_v3  ;;  %v1200_v5 = vpop.f32.mrb[31].mxu1  ;;  %1399 = vst [vmem:[%s2358_s26 + $0xf0] sm:$0xff] %v880_v4 }
 0x124   : > { %1463 = vst [vmem:[%s2358_s26 + $0x2f0] sm:$0xff] %v1200_v5 }
 0x125   : > { %v1882_v6 = vpop.f32.mrb[32].mxu0 }
 0x126   : > { %v1978_v7 = vpop.f32.mrb[32].mxu1  ;;  %1402 = vst [vmem:[%s2358_s26 + $0x108] sm:$0xff] %v1882_v6  ;;  %v890_v8 = vpop.f32.mrb[33].mxu0 }
 0x127   : > { %1466 = vst [vmem:[%s2358_s26 + $0x308] sm:$0xff] %v1978_v7  ;;  %v1210_v9 = vpop.f32.mrb[33].mxu1  ;;  %1401 = vst [vmem:[%s2358_s26 + $0x100] sm:$0xff] %v890_v8 }
 0x128   : > { %1465 = vst [vmem:[%s2358_s26 + $0x300] sm:$0xff] %v1210_v9 }
 0x129   : > { %v1885_v10 = vpop.f32.mrb[34].mxu0 }
 0x12a   : > { %v1981_v11 = vpop.f32.mrb[34].mxu1  ;;  %1404 = vst [vmem:[%s2358_s26 + $0x118] sm:$0xff] %v1885_v10  ;;  %v900_v12 = vpop.f32.mrb[35].mxu0 }
 0x12b   : > { %1468 = vst [vmem:[%s2358_s26 + $0x318] sm:$0xff] %v1981_v11  ;;  %v1220_v13 = vpop.f32.mrb[35].mxu1  ;;  %1403 = vst [vmem:[%s2358_s26 + $0x110] sm:$0xff] %v900_v12 }
 0x12c   : > { %1467 = vst [vmem:[%s2358_s26 + $0x310] sm:$0xff] %v1220_v13 }
 0x12d   : > { %v1888_v14 = vpop.f32.mrb[36].mxu0 }
 0x12e   : > { %v1984_v15 = vpop.f32.mrb[36].mxu1  ;;  %1406 = vst [vmem:[%s2358_s26 + $0x128] sm:$0xff] %v1888_v14  ;;  %v910_v16 = vpop.f32.mrb[37].mxu0 }
 0x12f   : > { %1470 = vst [vmem:[%s2358_s26 + $0x328] sm:$0xff] %v1984_v15  ;;  %v1230_v17 = vpop.f32.mrb[37].mxu1  ;;  %1405 = vst [vmem:[%s2358_s26 + $0x120] sm:$0xff] %v910_v16 }
 0x130   : > { %1469 = vst [vmem:[%s2358_s26 + $0x320] sm:$0xff] %v1230_v17 }
 0x131   : > { %v1891_v18 = vpop.f32.mrb[38].mxu0 }
 0x132   : > { %v1987_v19 = vpop.f32.mrb[38].mxu1  ;;  %1408 = vst [vmem:[%s2358_s26 + $0x138] sm:$0xff] %v1891_v18  ;;  %v920_v20 = vpop.f32.mrb[39].mxu0 }
 0x133   : > { %1472 = vst [vmem:[%s2358_s26 + $0x338] sm:$0xff] %v1987_v19  ;;  %v1240_v21 = vpop.f32.mrb[39].mxu1  ;;  %1407 = vst [vmem:[%s2358_s26 + $0x130] sm:$0xff] %v920_v20 }
 0x134   : > { %1471 = vst [vmem:[%s2358_s26 + $0x330] sm:$0xff] %v1240_v21 }
 0x135   : > { %v1894_v22 = vpop.f32.mrb[40].mxu0 }
 0x136   : > { %v1990_v23 = vpop.f32.mrb[40].mxu1  ;;  %1410 = vst [vmem:[%s2358_s26 + $0x148] sm:$0xff] %v1894_v22  ;;  %v930_v24 = vpop.f32.mrb[41].mxu0 }
 0x137   : > { %1474 = vst [vmem:[%s2358_s26 + $0x348] sm:$0xff] %v1990_v23  ;;  %v1250_v25 = vpop.f32.mrb[41].mxu1  ;;  %1409 = vst [vmem:[%s2358_s26 + $0x140] sm:$0xff] %v930_v24 }
 0x138   : > { %1473 = vst [vmem:[%s2358_s26 + $0x340] sm:$0xff] %v1250_v25 }
 0x139   : > { %v1897_v26 = vpop.f32.mrb[42].mxu0 }
 0x13a   : > { %v1993_v27 = vpop.f32.mrb[42].mxu1  ;;  %1412 = vst [vmem:[%s2358_s26 + $0x158] sm:$0xff] %v1897_v26  ;;  %v940_v28 = vpop.f32.mrb[43].mxu0 }
 0x13b   : > { %1476 = vst [vmem:[%s2358_s26 + $0x358] sm:$0xff] %v1993_v27  ;;  %v1260_v29 = vpop.f32.mrb[43].mxu1  ;;  %1411 = vst [vmem:[%s2358_s26 + $0x150] sm:$0xff] %v940_v28 }
 0x13c   : > { %1475 = vst [vmem:[%s2358_s26 + $0x350] sm:$0xff] %v1260_v29 }
 0x13d   : > { %v1900_v30 = vpop.f32.mrb[44].mxu0 }
 0x13e   : > { %v1996_v31 = vpop.f32.mrb[44].mxu1  ;;  %1414 = vst [vmem:[%s2358_s26 + $0x168] sm:$0xff] %v1900_v30  ;;  %v950_v32 = vpop.f32.mrb[45].mxu0 }
 0x13f   : > { %1478 = vst [vmem:[%s2358_s26 + $0x368] sm:$0xff] %v1996_v31  ;;  %v1270_v33 = vpop.f32.mrb[45].mxu1  ;;  %1413 = vst [vmem:[%s2358_s26 + $0x160] sm:$0xff] %v950_v32 }
 0x140   : > { %1477 = vst [vmem:[%s2358_s26 + $0x360] sm:$0xff] %v1270_v33 }
 0x141   : > { %v1903_v34 = vpop.f32.mrb[46].mxu0 }
 0x142   : > { %v1999_v35 = vpop.f32.mrb[46].mxu1  ;;  %1416 = vst [vmem:[%s2358_s26 + $0x178] sm:$0xff] %v1903_v34  ;;  %v960_v36 = vpop.f32.mrb[47].mxu0 }
 0x143   : > { %1480 = vst [vmem:[%s2358_s26 + $0x378] sm:$0xff] %v1999_v35  ;;  %v1280_v37 = vpop.f32.mrb[47].mxu1  ;;  %1415 = vst [vmem:[%s2358_s26 + $0x170] sm:$0xff] %v960_v36 }
 0x144   : > { %1479 = vst [vmem:[%s2358_s26 + $0x370] sm:$0xff] %v1280_v37 }
 0x145   : > { %v1906_v38 = vpop.f32.mrb[48].mxu0 }
 0x146   : > { %v2002_v39 = vpop.f32.mrb[48].mxu1  ;;  %1418 = vst [vmem:[%s2358_s26 + $0x188] sm:$0xff] %v1906_v38  ;;  %v970_v40 = vpop.f32.mrb[49].mxu0 }
 0x147   : > { %1482 = vst [vmem:[%s2358_s26 + $0x388] sm:$0xff] %v2002_v39  ;;  %v1290_v41 = vpop.f32.mrb[49].mxu1  ;;  %1417 = vst [vmem:[%s2358_s26 + $0x180] sm:$0xff] %v970_v40 }
 0x148   : > { %1481 = vst [vmem:[%s2358_s26 + $0x380] sm:$0xff] %v1290_v41 }
 0x149   : > { %v1909_v42 = vpop.f32.mrb[50].mxu0 }
 0x14a   : > { %v2005_v43 = vpop.f32.mrb[50].mxu1  ;;  %1420 = vst [vmem:[%s2358_s26 + $0x198] sm:$0xff] %v1909_v42  ;;  %v980_v44 = vpop.f32.mrb[51].mxu0 }
 0x14b   : > { %1484 = vst [vmem:[%s2358_s26 + $0x398] sm:$0xff] %v2005_v43  ;;  %v1300_v45 = vpop.f32.mrb[51].mxu1  ;;  %1419 = vst [vmem:[%s2358_s26 + $0x190] sm:$0xff] %v980_v44 }
 0x14c   : > { %1483 = vst [vmem:[%s2358_s26 + $0x390] sm:$0xff] %v1300_v45 }
 0x14d   : > { %v1912_v46 = vpop.f32.mrb[52].mxu0 }
 0x14e   : > { %v2008_v47 = vpop.f32.mrb[52].mxu1  ;;  %1422 = vst [vmem:[%s2358_s26 + $0x1a8] sm:$0xff] %v1912_v46  ;;  %v990_v48 = vpop.f32.mrb[53].mxu0 }
 0x14f   : > { %1486 = vst [vmem:[%s2358_s26 + $0x3a8] sm:$0xff] %v2008_v47  ;;  %v1310_v49 = vpop.f32.mrb[53].mxu1  ;;  %1421 = vst [vmem:[%s2358_s26 + $0x1a0] sm:$0xff] %v990_v48 }
 0x150   : > { %1485 = vst [vmem:[%s2358_s26 + $0x3a0] sm:$0xff] %v1310_v49 }
 0x151   : > { %v1915_v50 = vpop.f32.mrb[54].mxu0 }
 0x152   : > { %v2011_v51 = vpop.f32.mrb[54].mxu1  ;;  %1424 = vst [vmem:[%s2358_s26 + $0x1b8] sm:$0xff] %v1915_v50  ;;  %v1000_v52 = vpop.f32.mrb[55].mxu0 }
 0x153   : > { %1488 = vst [vmem:[%s2358_s26 + $0x3b8] sm:$0xff] %v2011_v51  ;;  %v1320_v53 = vpop.f32.mrb[55].mxu1  ;;  %1423 = vst [vmem:[%s2358_s26 + $0x1b0] sm:$0xff] %v1000_v52 }
 0x154   : > { %1487 = vst [vmem:[%s2358_s26 + $0x3b0] sm:$0xff] %v1320_v53 }
 0x155   : > { %v1918_v54 = vpop.f32.mrb[56].mxu0 }
 0x156   : > { %v2014_v55 = vpop.f32.mrb[56].mxu1  ;;  %1426 = vst [vmem:[%s2358_s26 + $0x1c8] sm:$0xff] %v1918_v54  ;;  %v1010_v56 = vpop.f32.mrb[57].mxu0 }
 0x157   : > { %1490 = vst [vmem:[%s2358_s26 + $0x3c8] sm:$0xff] %v2014_v55  ;;  %v1330_v57 = vpop.f32.mrb[57].mxu1  ;;  %1425 = vst [vmem:[%s2358_s26 + $0x1c0] sm:$0xff] %v1010_v56 }
 0x158   : > { %1489 = vst [vmem:[%s2358_s26 + $0x3c0] sm:$0xff] %v1330_v57 }
 0x159   : > { %v1921_v58 = vpop.f32.mrb[58].mxu0 }
 0x15a   : > { %v2017_v59 = vpop.f32.mrb[58].mxu1  ;;  %1428 = vst [vmem:[%s2358_s26 + $0x1d8] sm:$0xff] %v1921_v58  ;;  %v1020_v60 = vpop.f32.mrb[59].mxu0 }
 0x15b   : > { %1492 = vst [vmem:[%s2358_s26 + $0x3d8] sm:$0xff] %v2017_v59  ;;  %v1340_v61 = vpop.f32.mrb[59].mxu1  ;;  %1427 = vst [vmem:[%s2358_s26 + $0x1d0] sm:$0xff] %v1020_v60 }
 0x15c   : > { %1491 = vst [vmem:[%s2358_s26 + $0x3d0] sm:$0xff] %v1340_v61 }
 0x15d   : > { %v1924_v62 = vpop.f32.mrb[60].mxu0 }
 0x15e   : > { %v2020_v63 = vpop.f32.mrb[60].mxu1  ;;  %1430 = vst [vmem:[%s2358_s26 + $0x1e8] sm:$0xff] %v1924_v62  ;;  %v1030_v0 = vpop.f32.mrb[61].mxu0 }
 0x15f   : > { %1494 = vst [vmem:[%s2358_s26 + $0x3e8] sm:$0xff] %v2020_v63  ;;  %v1350_v1 = vpop.f32.mrb[61].mxu1  ;;  %1429 = vst [vmem:[%s2358_s26 + $0x1e0] sm:$0xff] %v1030_v0 }
 0x160   : > { %1493 = vst [vmem:[%s2358_s26 + $0x3e0] sm:$0xff] %v1350_v1 }
 0x161   : > { %v1927_v2 = vpop.f32.mrb[62].mxu0 }
 0x162   : > { %v2023_v3 = vpop.f32.mrb[62].mxu1  ;;  %1432 = vst [vmem:[%s2358_s26 + $0x1f8] sm:$0xff] %v1927_v2  ;;  %v1040_v4 = vpop.f32.mrb[63].mxu0 }
 0x163   : > { %1496 = vst [vmem:[%s2358_s26 + $0x3f8] sm:$0xff] %v2023_v3  ;;  %v1360_v5 = vpop.f32.mrb[63].mxu1  ;;  %1431 = vst [vmem:[%s2358_s26 + $0x1f0] sm:$0xff] %v1040_v4 }
 0x164   : > { %1495 = vst [vmem:[%s2358_s26 + $0x3f0] sm:$0xff] %v1360_v5 }
 0x165 PF: > { %s12_s9 = sadd.s32 1, %s2050_s9  }
 0x166   : > { %p9_p4 = scmp.ge.s32.totalorder %s12_s9, 4  }
 0x168   :  { %11 = sbr.rel (!%p9_p4) target bundleno = 1 (0x1), region = 58 }

// kernel: solo_inference.109
= control target key start
LH: loop header
LB: loop body
LE: loop exit
PB: predicated region body
PF: predicated region fallthrough
CT: control target
= control target key end

     0   :  { %s717_s6 = smov 0   ;;  %s719_s7 = smov 0   ;;  %s985_s0 = inlined_call_operand.vmem [shape: f32[2,8,16384], index: 0, kind: input, shape index: {}]   ;;  %s986_s1 = inlined_call_operand.vmem [shape: f32[2,8,16384], index: 1, kind: output, shape index: {}]  }
   0x1   :  { %s721_s8 = smov 0   ;;  %s723_s9 = smov 0  }
   0x2   :  { %s725_s10 = smov 0  }
   0x3 LB: > { %s20_s11 = sadd.s32 1, %s697_s8  ;;  %s23_s12 = sadd.s32 1, %s701_s9  ;;  %s705_s10 = sphi %s725_s10, %s11_s10   ;;  %s701_s9 = sphi %s723_s9, %s990_s9   ;;  %s697_s8 = sphi %s721_s8, %s989_s8   ;;  %s693_s7 = sphi %s719_s7, %s988_s7   ;;  %s689_s6 = sphi %s717_s6, %s987_s6  }
   0x4   : > { %p21_p0 = scmp.ge.s32.totalorder %s20_s11, 8  ;;  %p554_p1 = scmp.ge.s32.totalorder %s705_s10, 1 }
   0x5   : > { %p108_p2 = scmp.lt.s32.totalorder %s705_s10, 17 }
   0x6   : > { %s992_s11 = smov (%p21_p0, %s20_s11), 0  ;;  %s994_s12 = smov (!%p21_p0, %s23_s12), %s701_s9 }
   0x7   : > { %p109_p3 = pnand %p554_p1, %p108_p2  ;;  %p25_p4 = scmp.ge.s32.totalorder %s994_s12, 2 }
   0x8   : > { %s555_s13 = sshll.u32 (!%p109_p3), %s689_s6, 4  ;;  %p137_p5 = scmp.lt.s32.totalorder (!%p109_p3), %s693_s7, 1 }
   0x9   : > { %s996_s12 = smov (%p25_p4, %s994_s12), 0  ;;  %112 = sbr.rel (%p109_p3) target bundleno = 118 (0x76), region = 24 }
   0xa   : > { %p139_p6 = scmp.lt.s32.totalorder (!%p109_p3), %s555_s13, 127 }
  0x10   : > { %s998_s7 = smov (!%p137_p5, %s693_s7), 1  ;;  %s1000_s13 = smov (!%p139_p6, %s555_s13), 127 }
  0x11   : > { %s556_s14 = sshll.u32 %s998_s7, 7 }
  0x12   : > { %s747_s15 = sadd.s32 %s556_s14, %s1000_s13 }
  0x13   : > { %s557_s16 = sshll.u32 %s747_s15, 3 }
  0x14   : > { %s755_s19 = scalar_lea.vmem %s985_s0, %s557_s16  ;;  %s916_s22 = scalar_lea.vmem %s986_s1, %s557_s16 }
  0x15   : > { %v758_v0 = vld [vmem:[%s755_s19] sm:$0xff]  ;;  %v761_v1 = vld [vmem:[%s755_s19 + $0x8] sm:$0xff]  ;;  %v764_v2 = vld [vmem:[%s755_s19 + $0x10] sm:$0xff] }
  0x16   : > { %v172_v3 = vrot.slane %v758_v0, 4  ;;  %v178_v4 = vrot.slane %v761_v1, 4  ;;  %v184_v5 = vrot.slane %v764_v2, 4  ;;  %v770_v6 = vld [vmem:[%s755_s19 + $0x18] sm:$0xff]  ;;  %v773_v7 = vld [vmem:[%s755_s19 + $0x20] sm:$0xff]  ;;  %v776_v8 = vld [vmem:[%s755_s19 + $0x28] sm:$0xff] }
  0x17   : > { %v190_v9 = vrot.slane %v770_v6, 4  ;;  %v196_v10 = vrot.slane %v773_v7, 4  ;;  %v202_v11 = vrot.slane %v776_v8, 4  ;;  %v782_v12 = vld [vmem:[%s755_s19 + $0x30] sm:$0xff]  ;;  %v785_v13 = vld [vmem:[%s755_s19 + $0x38] sm:$0xff]  ;;  %v801_v58 = vld [vmem:[%s755_s19 + $0x40] sm:$0xff] }
  0x18   : > { %v173_v14 = vmax.f32 %v758_v0, %v172_v3  ;;  %v179_v15 = vmax.f32 %v761_v1, %v178_v4  ;;  %v185_v16 = vmax.f32 %v764_v2, %v184_v5  ;;  %v208_v17 = vrot.slane %v782_v12, 4  ;;  %v804_v59 = vld [vmem:[%s755_s19 + $0x48] sm:$0xff]  ;;  %v810_v3 = vld [vmem:[%s755_s19 + $0x50] sm:$0xff] }
  0x19   : > { %v191_v18 = vmax.f32 %v770_v6, %v190_v9  ;;  %v197_v19 = vmax.f32 %v773_v7, %v196_v10  ;;  %v203_v20 = vmax.f32 %v776_v8, %v202_v11  ;;  %v214_v21 = vrot.slane %v785_v13, 4 }
  0x1a   : > { %v174_v22 = vrot.slane %v173_v14, 2  ;;  %v180_v23 = vrot.slane %v179_v15, 2  ;;  %v186_v24 = vrot.slane %v185_v16, 2  ;;  %v209_v25 = vmax.f32 %v782_v12, %v208_v17 }
  0x1b   : > { %v192_v26 = vrot.slane %v191_v18, 2  ;;  %v198_v27 = vrot.slane %v197_v19, 2  ;;  %v204_v28 = vrot.slane %v203_v20, 2  ;;  %v215_v29 = vmax.f32 %v785_v13, %v214_v21 }
  0x1c   : > { %v175_v30 = vmax.f32 %v173_v14, %v174_v22  ;;  %v181_v31 = vmax.f32 %v179_v15, %v180_v23  ;;  %v187_v32 = vmax.f32 %v185_v16, %v186_v24  ;;  %v210_v33 = vrot.slane %v209_v25, 2  ;;  %v823_v16 = vld [vmem:[%s755_s19 + $0x68] sm:$0xff] }
  0x1d   : > { %v193_v34 = vmax.f32 %v191_v18, %v192_v26  ;;  %v199_v35 = vmax.f32 %v197_v19, %v198_v27  ;;  %v205_v36 = vmax.f32 %v203_v20, %v204_v28  ;;  %v216_v37 = vrot.slane %v215_v29, 2 }
  0x1e   : > { %v176_v38 = vrot.slane %v175_v30, 1  ;;  %v182_v39 = vrot.slane %v181_v31, 1  ;;  %v188_v40 = vrot.slane %v187_v32, 1  ;;  %v211_v41 = vmax.f32 %v209_v25, %v210_v33 }
  0x1f   : > { %v194_v42 = vrot.slane %v193_v34, 1  ;;  %v200_v43 = vrot.slane %v199_v35, 1  ;;  %v206_v44 = vrot.slane %v205_v36, 1  ;;  %v217_v45 = vmax.f32 %v215_v29, %v216_v37  ;;  %v839_v37 = vld [vmem:[%s755_s19 + $0x78] sm:$0xff] }
  0x20   : > { %v177_v46 = vmax.f32 %v175_v30, %v176_v38  ;;  %v183_v47 = vmax.f32 %v181_v31, %v182_v39  ;;  %v189_v48 = vmax.f32 %v187_v32, %v188_v40  ;;  %v212_v49 = vrot.slane %v211_v41, 1  ;;  %v836_v30 = vld [vmem:[%s755_s19 + $0x70] sm:$0xff] }
  0x21   : > { %v195_v50 = vmax.f32 %v193_v34, %v194_v42  ;;  %v201_v51 = vmax.f32 %v199_v35, %v200_v43  ;;  %v207_v52 = vmax.f32 %v205_v36, %v206_v44  ;;  %v218_v53 = vrot.slane %v217_v45, 1 }
  0x22   : > { %v268_v54 = vsub.f32 %v758_v0, %v177_v46  ;;  %v269_v55 = vsub.f32 %v761_v1, %v183_v47  ;;  %v270_v56 = vsub.f32 %v764_v2, %v189_v48  ;;  %v213_v57 = vmax.f32 %v211_v41, %v212_v49  ;;  %v813_v0 = vld [vmem:[%s755_s19 + $0x58] sm:$0xff]  ;;  %v816_v1 = vld [vmem:[%s755_s19 + $0x60] sm:$0xff] }
  0x23   : > { %v271_v60 = vsub.f32 %v770_v6, %v195_v50  ;;  %v272_v61 = vsub.f32 %v773_v7, %v201_v51  ;;  %v273_v62 = vsub.f32 %v776_v8, %v207_v52  ;;  %v219_v63 = vmax.f32 %v217_v45, %v218_v53 }
  0x24   : > { %v284_v2 = vmul.f32 1.442695, %v268_v54  ;;  %v286_v4 = vmul.f32 1.442695, %v269_v55  ;;  %v288_v5 = vmul.f32 1.442695, %v270_v56  ;;  %v274_v9 = vsub.f32 %v782_v12, %v213_v57 }
  0x25   : > { %v290_v10 = vmul.f32 1.442695, %v271_v60  ;;  %v292_v11 = vmul.f32 1.442695, %v272_v61  ;;  %v294_v6 = vmul.f32 1.442695, %v273_v62  ;;  %v275_v7 = vsub.f32 %v785_v13, %v219_v63 }
  0x26   : > { %603 = vpow2.f32 %v284_v2  ;;  %v296_v8 = vmul.f32 1.442695, %v274_v9  ;;  %v220_v14 = vrot.slane %v801_v58, 4  ;;  %v226_v15 = vrot.slane %v804_v59, 4 }
  0x27   : > { %605 = vpow2.f32 %v286_v4  ;;  %v298_v17 = vmul.f32 1.442695, %v275_v7  ;;  %v232_v18 = vrot.slane %v810_v3, 4  ;;  %v238_v19 = vrot.slane %v813_v0, 4 }
  0x28   : > { %607 = vpow2.f32 %v288_v5  ;;  %v221_v12 = vmax.f32 %v801_v58, %v220_v14  ;;  %v227_v13 = vmax.f32 %v804_v59, %v226_v15  ;;  %v244_v20 = vrot.slane %v816_v1, 4 }
  0x29   : > { %609 = vpow2.f32 %v290_v10  ;;  %v233_v21 = vmax.f32 %v810_v3, %v232_v18  ;;  %v239_v22 = vmax.f32 %v813_v0, %v238_v19  ;;  %v250_v23 = vrot.slane %v823_v16, 4 }
  0x2a   : > { %611 = vpow2.f32 %v292_v11  ;;  %v222_v24 = vrot.slane %v221_v12, 2  ;;  %v228_v25 = vrot.slane %v227_v13, 2  ;;  %v245_v26 = vmax.f32 %v816_v1, %v244_v20 }
  0x2b   : > { %613 = vpow2.f32 %v294_v6  ;;  %v234_v27 = vrot.slane %v233_v21, 2  ;;  %v240_v28 = vrot.slane %v239_v22, 2  ;;  %v251_v29 = vmax.f32 %v823_v16, %v250_v23 }
  0x2c   : > { %615 = vpow2.f32 %v296_v8  ;;  %v223_v31 = vmax.f32 %v221_v12, %v222_v24  ;;  %v229_v32 = vmax.f32 %v227_v13, %v228_v25  ;;  %v246_v33 = vrot.slane %v245_v26, 2 }
  0x2d   : > { %617 = vpow2.f32 %v298_v17  ;;  %v235_v34 = vmax.f32 %v233_v21, %v234_v27  ;;  %v241_v35 = vmax.f32 %v239_v22, %v240_v28  ;;  %v252_v36 = vrot.slane %v251_v29, 2 }
  0x2e   : > { %v224_v38 = vrot.slane %v223_v31, 1  ;;  %v230_v39 = vrot.slane %v229_v32, 1  ;;  %v247_v40 = vmax.f32 %v245_v26, %v246_v33  ;;  %v256_v41 = vrot.slane %v836_v30, 4 }
  0x2f   : > { %v236_v42 = vrot.slane %v235_v34, 1  ;;  %v242_v43 = vrot.slane %v241_v35, 1  ;;  %v842_v44 = vmax.f32 %v251_v29, %v252_v36  ;;  %v262_v49 = vrot.slane %v839_v37, 4 }
  0x30   : > { %v844_v45 = vpop.eup %603  ;;  %v225_v46 = vmax.f32 %v223_v31, %v224_v38  ;;  %v231_v47 = vmax.f32 %v229_v32, %v230_v39  ;;  %v248_v48 = vrot.slane %v247_v40, 1  ;;  %v855_v54 = vmax.f32 %v836_v30, %v256_v41 }
  0x31   : > { %v847_v50 = vpop.eup %605  ;;  %v316_v51 = vrot.slane %v844_v45, 4  ;;  %v850_v52 = vmax.f32 %v235_v34, %v236_v42  ;;  %v852_v53 = vmax.f32 %v241_v35, %v242_v43  ;;  %v254_v61 = vrot.slane %v842_v44, 1 }
  0x32   : > { %v857_v55 = vpop.eup %607  ;;  %v322_v56 = vrot.slane %v847_v50, 4  ;;  %v276_v57 = vsub.f32 %v801_v58, %v225_v46  ;;  %v277_v60 = vsub.f32 %v804_v59, %v231_v47  ;;  %v869_v5 = vmax.f32 %v247_v40, %v248_v48 }
  0x33   : > { %v863_v62 = vpop.eup %609  ;;  %v317_v63 = vadd.f32 %v844_v45, %v316_v51  ;;  %v328_v2 = vrot.slane %v857_v55, 4  ;;  %v278_v4 = vsub.f32 %v810_v3, %v850_v52  ;;  %v279_v11 = vsub.f32 %v813_v0, %v852_v53 }
  0x34   : > { %v871_v9 = vpop.eup %611  ;;  %v323_v10 = vadd.f32 %v847_v50, %v322_v56  ;;  %v334_v58 = vrot.slane %v863_v62, 4  ;;  %v300_v59 = vmul.f32 1.442695, %v276_v57  ;;  %v881_v3 = vmul.f32 1.442695, %v277_v60 }
  0x35   : > { %v877_v6 = vpop.eup %613  ;;  %v318_v7 = vrot.slane %v317_v63, 2  ;;  %v329_v8 = vadd.f32 %v857_v55, %v328_v2  ;;  %v340_v14 = vrot.slane %v871_v9, 4  ;;  %v304_v60 = vmul.f32 1.442695, %v278_v4 }
  0x36   : > { %v883_v15 = vpop.eup %615  ;;  %v324_v17 = vrot.slane %v323_v10, 2  ;;  %v335_v18 = vadd.f32 %v863_v62, %v334_v58  ;;  %v346_v19 = vrot.slane %v877_v6, 4  ;;  %619 = vpow2.f32 %v300_v59 }
  0x37   : > { %v887_v12 = vpop.eup %617  ;;  %v319_v0 = vadd.f32 %v318_v7, %v317_v63  ;;  %v330_v13 = vrot.slane %v329_v8, 2  ;;  %v341_v20 = vadd.f32 %v871_v9, %v340_v14  ;;  %v352_v21 = vrot.slane %v883_v15, 4 }
  0x38   : > { %v325_v22 = vadd.f32 %v324_v17, %v323_v10  ;;  %v336_v23 = vrot.slane %v335_v18, 2  ;;  %v347_v24 = vadd.f32 %v877_v6, %v346_v19  ;;  %v358_v25 = vrot.slane %v887_v12, 4 }
  0x39   : > { %v320_v26 = vrot.slane %v319_v0, 1  ;;  %v331_v27 = vadd.f32 %v330_v13, %v329_v8  ;;  %v342_v28 = vrot.slane %v341_v20, 2  ;;  %v353_v29 = vadd.f32 %v883_v15, %v352_v21 }
  0x3a   : > { %v326_v31 = vrot.slane %v325_v22, 1  ;;  %v337_v32 = vadd.f32 %v336_v23, %v335_v18  ;;  %v348_v33 = vrot.slane %v347_v24, 2  ;;  %v359_v34 = vadd.f32 %v887_v12, %v358_v25 }
  0x3b   : > { %v321_v35 = vadd.f32 %v320_v26, %v319_v0  ;;  %v332_v36 = vrot.slane %v331_v27, 1  ;;  %v343_v38 = vadd.f32 %v342_v28, %v341_v20  ;;  %v354_v39 = vrot.slane %v353_v29, 2 }
  0x3c   : > { %v327_v40 = vadd.f32 %v326_v31, %v325_v22  ;;  %v338_v41 = vrot.slane %v337_v32, 1  ;;  %v349_v42 = vadd.f32 %v348_v33, %v347_v24  ;;  %v360_v43 = vrot.slane %v359_v34, 2 }
  0x3d   : > { %621 = vrcp.f32 %v321_v35  ;;  %v333_v46 = vadd.f32 %v332_v36, %v331_v27  ;;  %v344_v47 = vrot.slane %v343_v38, 1  ;;  %v355_v48 = vadd.f32 %v354_v39, %v353_v29 }
  0x3e   : > { %623 = vrcp.f32 %v327_v40  ;;  %v339_v51 = vadd.f32 %v338_v41, %v337_v32  ;;  %v350_v52 = vrot.slane %v349_v42, 1  ;;  %v361_v53 = vadd.f32 %v360_v43, %v359_v34 }
  0x3f   : > { %625 = vrcp.f32 %v333_v46  ;;  %v345_v56 = vadd.f32 %v344_v47, %v343_v38  ;;  %v356_v57 = vrot.slane %v355_v48, 1  ;;  %v280_v58 = vsub.f32 %v816_v1, %v869_v5 }
  0x40   : > { %v895_v63 = vpop.eup %619  ;;  %627 = vrcp.f32 %v339_v51  ;;  %v351_v2 = vadd.f32 %v350_v52, %v349_v42  ;;  %v362_v10 = vrot.slane %v361_v53, 1  ;;  %v255_v8 = vmax.f32 %v842_v44, %v254_v61 }
  0x41   : > { %629 = vrcp.f32 %v345_v56  ;;  %v357_v59 = vadd.f32 %v356_v57, %v355_v48  ;;  %v364_v7 = vrot.slane %v895_v63, 4  ;;  %v306_v17 = vmul.f32 1.442695, %v279_v11 }
  0x42   : > { %631 = vrcp.f32 %v351_v2  ;;  %v363_v14 = vadd.f32 %v362_v10, %v361_v53  ;;  %v258_v4 = vrot.slane %v855_v54, 2  ;;  %v281_v19 = vsub.f32 %v823_v16, %v255_v8 }
  0x43   : > { %633 = vrcp.f32 %v357_v59  ;;  %v365_v18 = vadd.f32 %v895_v63, %v364_v7  ;;  %v263_v1 = vmax.f32 %v839_v37, %v262_v49  ;;  %v308_v5 = vmul.f32 1.442695, %v280_v58 }
  0x44   : > { %635 = vrcp.f32 %v363_v14  ;;  %v259_v0 = vmax.f32 %v855_v54, %v258_v4  ;;  %v310_v61 = vmul.f32 1.442695, %v281_v19 }
  0x45   : > { %v366_v44 = vrot.slane %v365_v18, 2  ;;  %637 = vpow2.f32 %v881_v3  ;;  %v264_v11 = vrot.slane %v263_v1, 2 }
  0x46   : > { %639 = vpow2.f32 %v304_v60  ;;  %v260_v13 = vrot.slane %v259_v0, 1 }
  0x47   : > { %v622_v20 = vpop.eup %621  ;;  %v367_v16 = vadd.f32 %v366_v44, %v365_v18  ;;  %641 = vpow2.f32 %v306_v17  ;;  %v265_v49 = vmax.f32 %v263_v1, %v264_v11 }
  0x48   : > { %v624_v54 = vpop.eup %623  ;;  %v428_v21 = vmul.f32 %v622_v20, %v844_v45  ;;  %643 = vpow2.f32 %v308_v5  ;;  %v261_v3 = vmax.f32 %v259_v0, %v260_v13 }
  0x49   : > { %v626_v22 = vpop.eup %625  ;;  %v429_v23 = vmul.f32 %v624_v54, %v847_v50  ;;  %v368_v24 = vrot.slane %v367_v16, 1  ;;  %645 = vpow2.f32 %v310_v61  ;;  %v266_v25 = vrot.slane %v265_v49, 1 }
  0x4a   : > { %v628_v26 = vpop.eup %627  ;;  %444 = vst [vmem:[%s916_s22] sm:$0xff] %v428_v21  ;;  %v430_v27 = vmul.f32 %v626_v22, %v857_v55  ;;  %v282_v28 = vsub.f32 %v836_v30, %v261_v3 }
  0x4b   : > { %v630_v29 = vpop.eup %629  ;;  %445 = vst [vmem:[%s916_s22 + $0x8] sm:$0xff] %v429_v23  ;;  %v431_v45 = vmul.f32 %v628_v26, %v863_v62  ;;  %v369_v31 = vadd.f32 %v368_v24, %v367_v16  ;;  %v267_v32 = vmax.f32 %v265_v49, %v266_v25 }
  0x4c   : > { %v632_v33 = vpop.eup %631  ;;  %446 = vst [vmem:[%s916_s22 + $0x10] sm:$0xff] %v430_v27  ;;  %v432_v50 = vmul.f32 %v630_v29, %v871_v9  ;;  %v312_v34 = vmul.f32 1.442695, %v282_v28 }
  0x4d   : > { %v634_v35 = vpop.eup %633  ;;  %447 = vst [vmem:[%s916_s22 + $0x18] sm:$0xff] %v431_v45  ;;  %v433_v55 = vmul.f32 %v632_v33, %v877_v6  ;;  %647 = vrcp.f32 %v369_v31  ;;  %v283_v30 = vsub.f32 %v839_v37, %v267_v32 }
  0x4e   : > { %v636_v36 = vpop.eup %635  ;;  %448 = vst [vmem:[%s916_s22 + $0x20] sm:$0xff] %v432_v50  ;;  %v434_v62 = vmul.f32 %v634_v35, %v883_v15  ;;  %649 = vpow2.f32 %v312_v34 }
  0x4f   : > { %v932_v38 = vpop.eup %637  ;;  %449 = vst [vmem:[%s916_s22 + $0x28] sm:$0xff] %v433_v55  ;;  %v435_v9 = vmul.f32 %v636_v36, %v887_v12  ;;  %v314_v39 = vmul.f32 1.442695, %v283_v30 }
  0x50   : > { %v936_v40 = vpop.eup %639  ;;  %450 = vst [vmem:[%s916_s22 + $0x30] sm:$0xff] %v434_v62  ;;  %v370_v41 = vrot.slane %v932_v38, 4 }
  0x51   : > { %v940_v6 = vpop.eup %641  ;;  %451 = vst [vmem:[%s916_s22 + $0x38] sm:$0xff] %v435_v9  ;;  %v376_v37 = vrot.slane %v936_v40, 4  ;;  %651 = vpow2.f32 %v314_v39 }
  0x52   : > { %v944_v42 = vpop.eup %643  ;;  %v371_v15 = vadd.f32 %v932_v38, %v370_v41  ;;  %v382_v43 = vrot.slane %v940_v6, 4 }
  0x53   : > { %v948_v46 = vpop.eup %645  ;;  %v377_v12 = vadd.f32 %v936_v40, %v376_v37  ;;  %v388_v47 = vrot.slane %v944_v42, 4 }
  0x54   : > { %v372_v48 = vrot.slane %v371_v15, 2  ;;  %v383_v51 = vadd.f32 %v940_v6, %v382_v43  ;;  %v394_v52 = vrot.slane %v948_v46, 4 }
  0x55   : > { %v378_v53 = vrot.slane %v377_v12, 2  ;;  %v389_v56 = vadd.f32 %v944_v42, %v388_v47 }
  0x56   : > { %v373_v57 = vadd.f32 %v372_v48, %v371_v15  ;;  %v384_v60 = vrot.slane %v383_v51, 2  ;;  %v395_v2 = vadd.f32 %v948_v46, %v394_v52 }
  0x57   : > { %v648_v10 = vpop.eup %647  ;;  %v379_v58 = vadd.f32 %v378_v53, %v377_v12  ;;  %v390_v59 = vrot.slane %v389_v56, 2 }
  0x58   : > { %v650_v7 = vpop.eup %649  ;;  %v436_v8 = vmul.f32 %v648_v10, %v895_v63  ;;  %v374_v14 = vrot.slane %v373_v57, 1  ;;  %v385_v17 = vadd.f32 %v384_v60, %v383_v51  ;;  %v396_v4 = vrot.slane %v395_v2, 2 }
  0x59   : > { %v380_v18 = vrot.slane %v379_v58, 1  ;;  %v391_v19 = vadd.f32 %v390_v59, %v389_v56  ;;  %v400_v1 = vrot.slane %v650_v7, 4 }
  0x5a   : > { %452 = vst [vmem:[%s916_s22 + $0x40] sm:$0xff] %v436_v8  ;;  %v375_v5 = vadd.f32 %v374_v14, %v373_v57  ;;  %v386_v0 = vrot.slane %v385_v17, 1  ;;  %v397_v44 = vadd.f32 %v396_v4, %v395_v2 }
  0x5b   : > { %v652_v61 = vpop.eup %651  ;;  %v381_v11 = vadd.f32 %v380_v18, %v379_v58  ;;  %v392_v13 = vrot.slane %v391_v19, 1  ;;  %v401_v20 = vadd.f32 %v650_v7, %v400_v1 }
  0x5c   : > { %653 = vrcp.f32 %v375_v5  ;;  %v387_v16 = vadd.f32 %v386_v0, %v385_v17  ;;  %v398_v49 = vrot.slane %v397_v44, 1  ;;  %v406_v54 = vrot.slane %v652_v61, 4 }
  0x5d   : > { %655 = vrcp.f32 %v381_v11  ;;  %v393_v63 = vadd.f32 %v392_v13, %v391_v19  ;;  %v402_v21 = vrot.slane %v401_v20, 2 }
  0x5e   : > { %657 = vrcp.f32 %v387_v16  ;;  %v399_v3 = vadd.f32 %v398_v49, %v397_v44  ;;  %v407_v22 = vadd.f32 %v652_v61, %v406_v54 }
  0x5f   : > { %659 = vrcp.f32 %v393_v63  ;;  %v403_v23 = vadd.f32 %v402_v21, %v401_v20 }
  0x60   : > { %661 = vrcp.f32 %v399_v3  ;;  %v408_v24 = vrot.slane %v407_v22, 2 }
  0x61   : > { %v404_v25 = vrot.slane %v403_v23, 1 }
  0x62   : > { %v409_v26 = vadd.f32 %v408_v24, %v407_v22 }
  0x63   : > { %v405_v27 = vadd.f32 %v404_v25, %v403_v23 }
  0x64   : > { %v410_v28 = vrot.slane %v409_v26, 1 }
  0x65   : > { %663 = vrcp.f32 %v405_v27 }
  0x66   : > { %v654_v29 = vpop.eup %653  ;;  %v411_v45 = vadd.f32 %v410_v28, %v409_v26 }
  0x67   : > { %v656_v31 = vpop.eup %655  ;;  %v437_v32 = vmul.f32 %v654_v29, %v932_v38 }
  0x68   : > { %v658_v33 = vpop.eup %657  ;;  %v438_v50 = vmul.f32 %v656_v31, %v936_v40  ;;  %665 = vrcp.f32 %v411_v45 }
  0x69   : > { %v660_v34 = vpop.eup %659  ;;  %453 = vst [vmem:[%s916_s22 + $0x48] sm:$0xff] %v437_v32  ;;  %v439_v35 = vmul.f32 %v658_v33, %v940_v6 }
  0x6a   : > { %v662_v55 = vpop.eup %661  ;;  %454 = vst [vmem:[%s916_s22 + $0x50] sm:$0xff] %v438_v50  ;;  %v440_v30 = vmul.f32 %v660_v34, %v944_v42 }
  0x6b   : > { %455 = vst [vmem:[%s916_s22 + $0x58] sm:$0xff] %v439_v35  ;;  %v441_v36 = vmul.f32 %v662_v55, %v948_v46 }
  0x6c   : > { %456 = vst [vmem:[%s916_s22 + $0x60] sm:$0xff] %v440_v30 }
  0x6d   : > { %457 = vst [vmem:[%s916_s22 + $0x68] sm:$0xff] %v441_v36 }
  0x6f   : > { %v664_v62 = vpop.eup %663 }
  0x70   : > { %v442_v38 = vmul.f32 %v664_v62, %v650_v7 }
  0x72   : > { %v666_v9 = vpop.eup %665  ;;  %458 = vst [vmem:[%s916_s22 + $0x70] sm:$0xff] %v442_v38 }
  0x73   : > { %v443_v39 = vmul.f32 %v666_v9, %v652_v61 }
  0x75   : > { %459 = vst [vmem:[%s916_s22 + $0x78] sm:$0xff] %v443_v39 }
  0x76 PF: > { %s11_s10 = sadd.s32 1, %s705_s10   ;;  %s987_s6 = smov %s697_s8 }
  0x77   : > { %p8_p7 = scmp.ge.s32.totalorder %s11_s10, 18   ;;  %s988_s7 = smov %s701_s9 }
  0x78   : > { %s989_s8 = smov %s992_s11  ;;  %s990_s9 = smov %s996_s12 }
  0x79   :  { %10 = sbr.rel (!%p8_p7) target bundleno = 3 (0x3), region = 54 }

// kernel: solo_inference.102
= control target key start
LH: loop header
LB: loop body
LE: loop exit
PB: predicated region body
PF: predicated region fallthrough
CT: control target
= control target key end

     0   :  { %s465_s18 = smov 0   ;;  %s512_s0 = inlined_call_operand.vmem [shape: f32[2,72,225], index: 0, kind: input, shape index: {}]   ;;  %s513_s1 = inlined_call_operand.vmem [shape: f32[8,72], index: 1, kind: input, shape index: {}]   ;;  %s514_s2 = inlined_call_operand.vmem [shape: f32[8,1], index: 2, kind: input, shape index: {}]   ;;  %s515_s3 = inlined_call_operand.vmem [shape: f32[8,1], index: 3, kind: input, shape index: {}]   ;;  %s516_s4 = inlined_call_operand.vmem [shape: f32[8,1], index: 4, kind: input, shape index: {}]   ;;  %s517_s5 = inlined_call_operand.vmem [shape: f32[2,8,225], index: 5, kind: output, shape index: {}]  }
   0x1 LB: > { %s385_s19 = sadd.s32 4294967295, %s431_s18   ;;  %p389_p0 = scmp.ge.s32.totalorder %s431_s18, 1  ;;  %s431_s18 = sphi %s465_s18, %s15_s18  }
   0x2   : > { %p187_p1 = scmp.lt.s32.totalorder %s431_s18, 3 }
   0x4   : > { %p188_p2 = pnand %p389_p0, %p187_p1 }
   0x5   : > { %p215_p3 = scmp.lt.s32.totalorder (!%p188_p2), %s385_s19, 1  ;;  %v244_v0 = vld [vmem:[%s514_s2] sm:$0xff] (!%p188_p2)  ;;  %v433_v1 = vmov (!%p188_p2), 0.0   ;;  %v434_v2 = vmov (!%p188_p2), 0   ;;  %vm250_vm0 = vcmask (!%p188_p2), 588800   ;;  %vm328_vm1 = vcmask (!%p188_p2), 793600  }
   0x6   : > { %191 = sbr.rel (%p188_p2) target bundleno = 256 (0x100), region = 40  ;;  %318 = vmatprep.mubr.f32.mxu0 (!%p188_p2), %v433_v1  ;;  %424 = vset.pattern.permute.xlu0 (!%p188_p2), %v434_v2  ;;  %v225_v29 = vld [vmem:[%s513_s1] sm:$0xff] (!%p188_p2) }
   0x7   : > { %247 = vperm.xlu0 (!%p188_p2), %424, %v244_v0  }
   0xd   : > { %s519_s19 = smov (!%p215_p3, %s385_s19), 1 }
   0xe   : > { %s413_s20 = smul.u32 144, %s519_s19  ;;  %s396_s26 = sshll.u32 %s519_s19, 4 }
   0xf   : > { %s224_s29 = scalar_lea.vmem %s517_s5, %s396_s26 }
  0x10   : > { %s482_s23 = scalar_lea.vmem %s512_s0, %s413_s20 }
  0x11   : > { %v227_v3 = vld [vmem:[%s482_s23 + $0x8] sm:$0xff]  ;;  %v229_v4 = vld [vmem:[%s482_s23 + $0x18] sm:$0xff]  ;;  %v226_v5 = vld [vmem:[%s482_s23] sm:$0xff] }
  0x12   : > { %v397_v6 = vpack.c.bf16 %v229_v4, %v227_v3  ;;  %v228_v7 = vld [vmem:[%s482_s23 + $0x10] sm:$0xff]  ;;  %v231_v8 = vld [vmem:[%s482_s23 + $0x28] sm:$0xff]  ;;  %v233_v9 = vld [vmem:[%s482_s23 + $0x38] sm:$0xff] }
  0x13   : > { %v399_v10 = vpack.c.bf16 %v228_v7, %v226_v5  ;;  %v401_v11 = vpack.c.bf16 %v233_v9, %v231_v8  ;;  %v230_v12 = vld [vmem:[%s482_s23 + $0x20] sm:$0xff]  ;;  %v232_v13 = vld [vmem:[%s482_s23 + $0x30] sm:$0xff]  ;;  %v235_v14 = vld [vmem:[%s482_s23 + $0x48] sm:$0xff] }
  0x14   : > { %398 = vmatprep.subr.bf16.mxu0 %v397_v6  ;;  %v237_v15 = vld [vmem:[%s482_s23 + $0x58] sm:$0xff]  ;;  %v403_v16 = vpack.c.bf16 %v232_v13, %v230_v12  ;;  %v234_v18 = vld [vmem:[%s482_s23 + $0x40] sm:$0xff]  ;;  %v236_v19 = vld [vmem:[%s482_s23 + $0x50] sm:$0xff] }
  0x15   : > { %400 = vmatpush1.bf16.msra.mxu0 %v399_v10  ;;  %v405_v17 = vpack.c.bf16 %v237_v15, %v235_v14  ;;  %v239_v20 = vld [vmem:[%s482_s23 + $0x68] sm:$0xff]  ;;  %v241_v21 = vld [vmem:[%s482_s23 + $0x78] sm:$0xff]  ;;  %v407_v22 = vpack.c.bf16 %v236_v19, %v234_v18  ;;  %v238_v24 = vld [vmem:[%s482_s23 + $0x60] sm:$0xff] }
  0x16   : > { %402 = vmatprep.subr.bf16.mxu0 %v401_v11  ;;  %v409_v23 = vpack.c.bf16 %v241_v21, %v239_v20  ;;  %v240_v25 = vld [vmem:[%s482_s23 + $0x70] sm:$0xff]  ;;  %v243_v27 = vld [vmem:[%s482_s23 + $0x88] sm:$0xff]  ;;  %v242_v28 = vld [vmem:[%s482_s23 + $0x80] sm:$0xff] }
  0x17   : > { %v411_v26 = vpack.c.bf16 %v240_v25, %v238_v24 }
  0x19   : > { %404 = vmatpush1.bf16.msra.mxu0 %v403_v16 }
  0x1a   : > { %406 = vmatprep.subr.bf16.mxu0 %v405_v17 }
  0x1d   : > { %408 = vmatpush1.bf16.msra.mxu0 %v407_v22 }
  0x1e   : > { %410 = vmatprep.subr.bf16.mxu0 %v409_v23 }
  0x21   : > { %412 = vmatpush1.bf16.msra.mxu0 %v411_v26 }
  0x22   : > { %270 = vmatprep.subr.mxu0 %v243_v27 }
  0x25   : > { %271 = vmatpush1.msra.mxu0 %v242_v28 }
  0x26   : > { %393 = vmatmul.mubr.msk.f32.vlgmr.msra.gmra.mrb[0].mxu0 %vm250_vm0, %v225_v29 }
  0x86   : > { %v248_v30 = vpop.permute.xlu0 %247 }
  0xf9   : > { %v320_v31 = vpop.f32.mrb[0].mxu0 }
  0xfa   : > { %v321_v32 = vadd.f32 %v320_v31, %v248_v30  ;;  %v322_v33 = vpop.f32.mrb[1].mxu0 }
  0xfb   : > { %v323_v34 = vadd.f32 %v322_v33, %v248_v30 }
  0xfc   : > { %v325_v35 = vmax.f32 %v321_v32, 0.0 }
  0xfd   : > { %v326_v36 = vmax.f32 %v323_v34, 0.0 }
  0xfe   : > { %327 = vst [vmem:[%s224_s29] sm:$0xff] %v325_v35 }
  0xff   : > { %329 = vst.msk [vmem:[%s224_s29 + $0x8] sm:$0xff] %vm328_vm1, %v326_v36 }
 0x100 PF: > { %s15_s18 = sadd.s32 1, %s431_s18  }
 0x101   : > { %p12_p4 = scmp.ge.s32.totalorder %s15_s18, 4  }
 0x103   :  { %14 = sbr.rel (!%p12_p4) target bundleno = 1 (0x1), region = 70 }

// kernel: solo_inference.103
= control target key start
LH: loop header
LB: loop body
LE: loop exit
PB: predicated region body
PF: predicated region fallthrough
CT: control target
= control target key end

     0   :  { %s478_s18 = smov 0   ;;  %s505_s0 = inlined_call_operand.vmem [shape: f32[2,72,49], index: 0, kind: input, shape index: {}]   ;;  %s506_s1 = inlined_call_operand.vmem [shape: f32[8,72], index: 1, kind: input, shape index: {}]   ;;  %s507_s2 = inlined_call_operand.vmem [shape: f32[8,1], index: 2, kind: input, shape index: {}]   ;;  %s508_s3 = inlined_call_operand.vmem [shape: f32[8,1], index: 3, kind: input, shape index: {}]   ;;  %s509_s4 = inlined_call_operand.vmem [shape: f32[8,1], index: 4, kind: input, shape index: {}]   ;;  %s510_s5 = inlined_call_operand.vmem [shape: f32[2,8,49], index: 5, kind: output, shape index: {}]  }
   0x1 LB: > { %s369_s19 = sadd.s32 4294967295, %s442_s18   ;;  %p373_p0 = scmp.ge.s32.totalorder %s442_s18, 1  ;;  %s442_s18 = sphi %s478_s18, %s15_s18  }
   0x2   : > { %p187_p1 = scmp.lt.s32.totalorder %s442_s18, 3 }
   0x4   : > { %p188_p2 = pnand %p373_p0, %p187_p1 }
   0x5   : > { %p214_p3 = scmp.lt.s32.totalorder (!%p188_p2), %s369_s19, 1  ;;  %v444_v0 = vmov (!%p188_p2), 0.0|0.0   ;;  %vm445_vm0 = vmmov (!%p188_p2), 0   ;;  %v446_v1 = vmov (!%p188_p2), 0.0   ;;  %v233_v2 = vld [vmem:[%s507_s2] sm:$0xff] (!%p188_p2)  ;;  %v447_v3 = vmov (!%p188_p2), 0  }
   0x6   : > { %191 = sbr.rel (%p188_p2) target bundleno = 254 (0xfe), region = 40  ;;  %410 = vmatprep.subr.bf16.mxu0 (!%p188_p2), %v444_v0  ;;  %407 = vmatprep.mubr.msk.f32.mxu0 (!%p188_p2), %vm445_vm0, %v446_v1  ;;  %v223_v17 = vld [vmem:[%s506_s1] sm:$0xff] (!%p188_p2)  ;;  %vm239_vm1 = vcmask (!%p188_p2), 588800   ;;  %vm314_vm2 = vcmask (!%p188_p2), 400384  }
   0x7   : > { %435 = vset.pattern.permute.xlu0 (!%p188_p2), %v447_v3 }
   0x8   : > { %236 = vperm.xlu0 (!%p188_p2), %435, %v233_v2  }
   0xd   : > { %s512_s19 = smov (!%p214_p3, %s369_s19), 1 }
   0xe   : > { %s422_s20 = smul.u32 72, %s512_s19  ;;  %s375_s26 = sshll.u32 %s512_s19, 3 }
   0xf   : > { %s222_s29 = scalar_lea.vmem %s510_s5, %s375_s26 }
  0x10   : > { %s218_s23 = scalar_lea.vmem %s505_s0, %s422_s20 }
  0x11   : > { %v224_v4 = vld [vmem:[%s218_s23] sm:$0xff]  ;;  %v225_v5 = vld [vmem:[%s218_s23 + $0x8] sm:$0xff]  ;;  %v226_v6 = vld [vmem:[%s218_s23 + $0x10] sm:$0xff] }
  0x12   : > { %v411_v7 = vpack.c.bf16 %v225_v5, %v224_v4  ;;  %v227_v8 = vld [vmem:[%s218_s23 + $0x18] sm:$0xff]  ;;  %v228_v10 = vld [vmem:[%s218_s23 + $0x20] sm:$0xff]  ;;  %v229_v11 = vld [vmem:[%s218_s23 + $0x28] sm:$0xff] }
  0x13   : > { %v414_v9 = vpack.c.bf16 %v227_v8, %v226_v6  ;;  %v417_v12 = vpack.c.bf16 %v229_v11, %v228_v10  ;;  %v230_v13 = vld [vmem:[%s218_s23 + $0x30] sm:$0xff]  ;;  %v231_v14 = vld [vmem:[%s218_s23 + $0x38] sm:$0xff]  ;;  %v232_v16 = vld [vmem:[%s218_s23 + $0x40] sm:$0xff] }
  0x14   : > { %412 = vmatpush3.bf16.msra.mxu0 %v411_v7  ;;  %v420_v15 = vpack.c.bf16 %v231_v14, %v230_v13 }
  0x15   : > { %413 = vmatprep.subr.bf16.mxu0 %v444_v0 }
  0x18   : > { %415 = vmatpush3.bf16.msra.mxu0 %v414_v9 }
  0x19   : > { %416 = vmatprep.subr.bf16.mxu0 %v444_v0 }
  0x1c   : > { %418 = vmatpush3.bf16.msra.mxu0 %v417_v12 }
  0x1d   : > { %419 = vmatprep.subr.bf16.mxu0 %v444_v0 }
  0x20   : > { %421 = vmatpush3.bf16.msra.mxu0 %v420_v15 }
  0x21   : > { %405 = vmatprep.subr.mxu0 %v446_v1 }
  0x24   : > { %406 = vmatpush3.msra.mxu0 %v232_v16 }
  0x25   : > { %408 = vmatmul.mubr.msk.f32.vlgmr.msra.gmra.mrb[0].mxu0 %vm239_vm1, %v223_v17 }
  0x87   : > { %v237_v18 = vpop.permute.xlu0 %236 }
  0xf8   : > { %v309_v19 = vpop.f32.mrb[0].mxu0 }
  0xf9   : > { %v310_v20 = vadd.f32 %v309_v19, %v237_v18  ;;  %v409_v21 = vpop.f32.mrb[1].mxu0 }
  0xfb   : > { %v313_v22 = vmax.f32 %v310_v20, 0.0 }
  0xfd   : > { %315 = vst.msk [vmem:[%s222_s29] sm:$0xff] %vm314_vm2, %v313_v22 }
  0xfe PF: > { %s15_s18 = sadd.s32 1, %s442_s18  }
  0xff   : > { %p12_p4 = scmp.ge.s32.totalorder %s15_s18, 4  }
 0x101   :  { %14 = sbr.rel (!%p12_p4) target bundleno = 1 (0x1), region = 70 }

// kernel: solo_inference.105
= control target key start
LH: loop header
LB: loop body
LE: loop exit
PB: predicated region body
PF: predicated region fallthrough
CT: control target
= control target key end

     0   :  { %s470_s18 = smov 0   ;;  %s497_s0 = inlined_call_operand.vmem [shape: f32[2,72,1], index: 0, kind: input, shape index: {}]   ;;  %s498_s1 = inlined_call_operand.vmem [shape: f32[8,72], index: 1, kind: input, shape index: {}]   ;;  %s499_s2 = inlined_call_operand.vmem [shape: f32[8,1], index: 2, kind: input, shape index: {}]   ;;  %s500_s3 = inlined_call_operand.vmem [shape: f32[8,1], index: 3, kind: input, shape index: {}]   ;;  %s501_s4 = inlined_call_operand.vmem [shape: f32[8,1], index: 4, kind: input, shape index: {}]   ;;  %s502_s5 = inlined_call_operand.vmem [shape: f32[2,8,1], index: 5, kind: output, shape index: {}]  }
   0x1 LB: > { %s364_s19 = sadd.s32 4294967295, %s435_s18   ;;  %p368_p0 = scmp.ge.s32.totalorder %s435_s18, 1  ;;  %s435_s18 = sphi %s470_s18, %s15_s18  }
   0x2   : > { %p187_p1 = scmp.lt.s32.totalorder %s435_s18, 3 }
   0x4   : > { %p188_p2 = pnand %p368_p0, %p187_p1 }
   0x5   : > { %p214_p3 = scmp.lt.s32.totalorder (!%p188_p2), %s364_s19, 1  ;;  %v437_v0 = vmov (!%p188_p2), 0.0|0.0   ;;  %vm438_vm0 = vmmov (!%p188_p2), 0   ;;  %v439_v1 = vmov (!%p188_p2), 0.0   ;;  %v223_v15 = vld [vmem:[%s498_s1] sm:$0xff] (!%p188_p2)  ;;  %vm234_vm1 = vcmask (!%p188_p2), 588800  }
   0x6   : > { %191 = sbr.rel (%p188_p2) target bundleno = 254 (0xfe), region = 40  ;;  %405 = vmatprep.subr.bf16.mxu0 (!%p188_p2), %v437_v0  ;;  %402 = vmatprep.mubr.msk.f32.mxu0 (!%p188_p2), %vm438_vm0, %v439_v1  ;;  %v233_v16 = vld [vmem:[%s499_s2] sm:$0xff] (!%p188_p2)  ;;  %vm309_vm2 = vcmask (!%p188_p2), 7168  }
   0xd   : > { %s504_s19 = smov (!%p214_p3, %s364_s19), 1 }
   0xe   : > { %s417_s3 = smul.u32 72, %s504_s19  ;;  %s370_s26 = sshll.u32 %s504_s19, 3 }
   0xf   : > { %s222_s29 = scalar_lea.vmem %s502_s5, %s370_s26 }
  0x10   : > { %s218_s21 = scalar_lea.vmem %s497_s0, %s417_s3 }
  0x11   : > { %v224_v2 = vld [vmem:[%s218_s21] sm:$0xff]  ;;  %v225_v3 = vld [vmem:[%s218_s21 + $0x8] sm:$0xff]  ;;  %v226_v4 = vld [vmem:[%s218_s21 + $0x10] sm:$0xff] }
  0x12   : > { %v406_v5 = vpack.c.bf16 %v225_v3, %v224_v2  ;;  %v227_v6 = vld [vmem:[%s218_s21 + $0x18] sm:$0xff]  ;;  %v228_v8 = vld [vmem:[%s218_s21 + $0x20] sm:$0xff]  ;;  %v229_v9 = vld [vmem:[%s218_s21 + $0x28] sm:$0xff] }
  0x13   : > { %v409_v7 = vpack.c.bf16 %v227_v6, %v226_v4  ;;  %v412_v10 = vpack.c.bf16 %v229_v9, %v228_v8  ;;  %v230_v11 = vld [vmem:[%s218_s21 + $0x30] sm:$0xff]  ;;  %v231_v12 = vld [vmem:[%s218_s21 + $0x38] sm:$0xff]  ;;  %v232_v14 = vld [vmem:[%s218_s21 + $0x40] sm:$0xff] }
  0x14   : > { %407 = vmatpush3.bf16.msra.mxu0 %v406_v5  ;;  %v415_v13 = vpack.c.bf16 %v231_v12, %v230_v11 }
  0x15   : > { %408 = vmatprep.subr.bf16.mxu0 %v437_v0 }
  0x18   : > { %410 = vmatpush3.bf16.msra.mxu0 %v409_v7 }
  0x19   : > { %411 = vmatprep.subr.bf16.mxu0 %v437_v0 }
  0x1c   : > { %413 = vmatpush3.bf16.msra.mxu0 %v412_v10 }
  0x1d   : > { %414 = vmatprep.subr.bf16.mxu0 %v437_v0 }
  0x20   : > { %416 = vmatpush3.bf16.msra.mxu0 %v415_v13 }
  0x21   : > { %400 = vmatprep.subr.mxu0 %v439_v1 }
  0x24   : > { %401 = vmatpush3.msra.mxu0 %v232_v14 }
  0x25   : > { %403 = vmatmul.mubr.msk.f32.vlgmr.msra.gmra.mrb[0].mxu0 %vm234_vm1, %v223_v15 }
  0xf8   : > { %v304_v17 = vpop.f32.mrb[0].mxu0 }
  0xf9   : > { %v305_v18 = vadd.f32 %v304_v17, %v233_v16  ;;  %v404_v19 = vpop.f32.mrb[1].mxu0 }
  0xfb   : > { %v308_v20 = vmax.f32 %v305_v18, 0.0 }
  0xfd   : > { %310 = vst.msk [vmem:[%s222_s29] sm:$0xff] %vm309_vm2, %v308_v20 }
  0xfe PF: > { %s15_s18 = sadd.s32 1, %s435_s18  }
  0xff   : > { %p12_p4 = scmp.ge.s32.totalorder %s15_s18, 4  }
 0x101   :  { %14 = sbr.rel (!%p12_p4) target bundleno = 1 (0x1), region = 70 }

// kernel: solo_inference.106
= control target key start
LH: loop header
LB: loop body
LE: loop exit
PB: predicated region body
PF: predicated region fallthrough
CT: control target
= control target key end

     0   :  { %s198_s6 = smov 0   ;;  %s218_s0 = inlined_call_operand.vmem [shape: f32[2,8,1], index: 0, kind: input, shape index: {}]   ;;  %s219_s1 = inlined_call_operand.vmem [shape: f32[2,8,1], index: 1, kind: output, shape index: {}]  }
   0x1 LB: > { %s173_s7 = sadd.s32 4294967295, %s200_s6   ;;  %p177_p0 = scmp.ge.s32.totalorder %s200_s6, 1  ;;  %s200_s6 = sphi %s198_s6, %s11_s6  }
   0x2   : > { %p86_p1 = scmp.lt.s32.totalorder %s200_s6, 3 }
   0x4   : > { %p87_p2 = pnand %p177_p0, %p86_p1 }
   0x5   : > { %p104_p3 = scmp.lt.s32.totalorder (!%p87_p2), %s173_s7, 1  ;;  %vm118_vm0 = vcmask (!%p87_p2), 7168  }
   0x6   : > { %90 = sbr.rel (%p87_p2) target bundleno = 46 (0x2e), region = 24 }
   0xd   : > { %s221_s7 = smov (!%p104_p3, %s173_s7), 1 }
   0xe   : > { %s178_s8 = sshll.u32 %s221_s7, 3 }
   0xf   : > { %s107_s11 = scalar_lea.vmem %s218_s0, %s178_s8  ;;  %s111_s14 = scalar_lea.vmem %s219_s1, %s178_s8 }
  0x10   : > { %v112_v0 = vld [vmem:[%s107_s11] sm:$0xff] }
  0x11   : > { %v113_v1 = vsub.f32 0.0, %v112_v0 }
  0x13   : > { %v114_v2 = vmul.f32 1.442695, %v113_v1 }
  0x15   : > { %190 = vpow2.f32 %v114_v2 }
  0x1f   : > { %v191_v3 = vpop.eup %190 }
  0x20   : > { %v116_v4 = vadd.f32 1.0, %v191_v3 }
  0x22   : > { %192 = vrcp.f32 %v116_v4 }
  0x2c   : > { %v193_v5 = vpop.eup %192 }
  0x2d   : > { %119 = vst.msk [vmem:[%s111_s14] sm:$0xff] %vm118_vm0, %v193_v5 }
  0x2e PF: > { %s11_s6 = sadd.s32 1, %s200_s6  }
  0x2f   : > { %p8_p4 = scmp.ge.s32.totalorder %s11_s6, 4  }
  0x31   :  { %10 = sbr.rel (!%p8_p4) target bundleno = 1 (0x1), region = 54 }

// kernel: solo_inference.104
= control target key start
LH: loop header
LB: loop body
LE: loop exit
PB: predicated region body
PF: predicated region fallthrough
CT: control target
= control target key end

     0   :  { %s478_s18 = smov 0   ;;  %s505_s0 = inlined_call_operand.vmem [shape: f32[2,72,9], index: 0, kind: input, shape index: {}]   ;;  %s506_s1 = inlined_call_operand.vmem [shape: f32[8,72], index: 1, kind: input, shape index: {}]   ;;  %s507_s2 = inlined_call_operand.vmem [shape: f32[8,1], index: 2, kind: input, shape index: {}]   ;;  %s508_s3 = inlined_call_operand.vmem [shape: f32[8,1], index: 3, kind: input, shape index: {}]   ;;  %s509_s4 = inlined_call_operand.vmem [shape: f32[8,1], index: 4, kind: input, shape index: {}]   ;;  %s510_s5 = inlined_call_operand.vmem [shape: f32[2,8,9], index: 5, kind: output, shape index: {}]  }
   0x1 LB: > { %s369_s19 = sadd.s32 4294967295, %s442_s18   ;;  %p373_p0 = scmp.ge.s32.totalorder %s442_s18, 1  ;;  %s442_s18 = sphi %s478_s18, %s15_s18  }
   0x2   : > { %p187_p1 = scmp.lt.s32.totalorder %s442_s18, 3 }
   0x4   : > { %p188_p2 = pnand %p373_p0, %p187_p1 }
   0x5   : > { %p214_p3 = scmp.lt.s32.totalorder (!%p188_p2), %s369_s19, 1  ;;  %v444_v0 = vmov (!%p188_p2), 0.0|0.0   ;;  %vm445_vm0 = vmmov (!%p188_p2), 0   ;;  %v446_v1 = vmov (!%p188_p2), 0.0   ;;  %v233_v2 = vld [vmem:[%s507_s2] sm:$0xff] (!%p188_p2)  ;;  %v447_v3 = vmov (!%p188_p2), 0  }
   0x6   : > { %191 = sbr.rel (%p188_p2) target bundleno = 254 (0xfe), region = 40  ;;  %410 = vmatprep.subr.bf16.mxu0 (!%p188_p2), %v444_v0  ;;  %407 = vmatprep.mubr.msk.f32.mxu0 (!%p188_p2), %vm445_vm0, %v446_v1  ;;  %v223_v17 = vld [vmem:[%s506_s1] sm:$0xff] (!%p188_p2)  ;;  %vm239_vm1 = vcmask (!%p188_p2), 588800   ;;  %vm314_vm2 = vcmask (!%p188_p2), 72704  }
   0x7   : > { %435 = vset.pattern.permute.xlu0 (!%p188_p2), %v447_v3 }
   0x8   : > { %236 = vperm.xlu0 (!%p188_p2), %435, %v233_v2  }
   0xd   : > { %s512_s19 = smov (!%p214_p3, %s369_s19), 1 }
   0xe   : > { %s422_s20 = smul.u32 72, %s512_s19  ;;  %s375_s26 = sshll.u32 %s512_s19, 3 }
   0xf   : > { %s222_s29 = scalar_lea.vmem %s510_s5, %s375_s26 }
  0x10   : > { %s218_s23 = scalar_lea.vmem %s505_s0, %s422_s20 }
  0x11   : > { %v224_v4 = vld [vmem:[%s218_s23] sm:$0xff]  ;;  %v225_v5 = vld [vmem:[%s218_s23 + $0x8] sm:$0xff]  ;;  %v226_v6 = vld [vmem:[%s218_s23 + $0x10] sm:$0xff] }
  0x12   : > { %v411_v7 = vpack.c.bf16 %v225_v5, %v224_v4  ;;  %v227_v8 = vld [vmem:[%s218_s23 + $0x18] sm:$0xff]  ;;  %v228_v10 = vld [vmem:[%s218_s23 + $0x20] sm:$0xff]  ;;  %v229_v11 = vld [vmem:[%s218_s23 + $0x28] sm:$0xff] }
  0x13   : > { %v414_v9 = vpack.c.bf16 %v227_v8, %v226_v6  ;;  %v417_v12 = vpack.c.bf16 %v229_v11, %v228_v10  ;;  %v230_v13 = vld [vmem:[%s218_s23 + $0x30] sm:$0xff]  ;;  %v231_v14 = vld [vmem:[%s218_s23 + $0x38] sm:$0xff]  ;;  %v232_v16 = vld [vmem:[%s218_s23 + $0x40] sm:$0xff] }
  0x14   : > { %412 = vmatpush3.bf16.msra.mxu0 %v411_v7  ;;  %v420_v15 = vpack.c.bf16 %v231_v14, %v230_v13 }
  0x15   : > { %413 = vmatprep.subr.bf16.mxu0 %v444_v0 }
  0x18   : > { %415 = vmatpush3.bf16.msra.mxu0 %v414_v9 }
  0x19   : > { %416 = vmatprep.subr.bf16.mxu0 %v444_v0 }
  0x1c   : > { %418 = vmatpush3.bf16.msra.mxu0 %v417_v12 }
  0x1d   : > { %419 = vmatprep.subr.bf16.mxu0 %v444_v0 }
  0x20   : > { %421 = vmatpush3.bf16.msra.mxu0 %v420_v15 }
  0x21   : > { %405 = vmatprep.subr.mxu0 %v446_v1 }
  0x24   : > { %406 = vmatpush3.msra.mxu0 %v232_v16 }
  0x25   : > { %408 = vmatmul.mubr.msk.f32.vlgmr.msra.gmra.mrb[0].mxu0 %vm239_vm1, %v223_v17 }
  0x87   : > { %v237_v18 = vpop.permute.xlu0 %236 }
  0xf8   : > { %v309_v19 = vpop.f32.mrb[0].mxu0 }
  0xf9   : > { %v310_v20 = vadd.f32 %v309_v19, %v237_v18  ;;  %v409_v21 = vpop.f32.mrb[1].mxu0 }
  0xfb   : > { %v313_v22 = vmax.f32 %v310_v20, 0.0 }
  0xfd   : > { %315 = vst.msk [vmem:[%s222_s29] sm:$0xff] %vm314_vm2, %v313_v22 }
  0xfe PF: > { %s15_s18 = sadd.s32 1, %s442_s18  }
  0xff   : > { %p12_p4 = scmp.ge.s32.totalorder %s15_s18, 4  }
 0x101   :  { %14 = sbr.rel (!%p12_p4) target bundleno = 1 (0x1), region = 70 }

</bundles_post_ra>
